<compile_context>
chip_gen: v7x
topology: tpu7x:2x2x1
jax: 0.10.0
libtpu: 0.0.40
codegen_flags: <defaults>
</compile_context>

<pallas_src>
import functools

import jax
import jax.numpy as jnp
from jax import lax
from jax.experimental import pallas as pl
from jax.experimental.pallas import tpu as pltpu


# Interior of the zero-haloed activation scratch starts at this (sublane-aligned)
# column, so interior stores land on whole sublane tiles.
_COL0 = 8


# ---------------------------------------------------------------------------
# In-kernel helpers
# ---------------------------------------------------------------------------
def _conv_taps(tap_fn, w_fn, bias, n_pix, c_out):
    """3x3 conv as 9 shifted-tap matmuls: bf16 x bf16 -> f32 accumulate, + bias."""
    acc = jnp.zeros((n_pix, c_out), jnp.float32)
    for k in range(9):
        ky, kx = k // 3, k % 3
        acc = acc + jnp.dot(tap_fn(ky, kx), w_fn(k),
                            preferred_element_type=jnp.float32)
    return acc + bias


def _store_interior(scr_ref, val, h, w):
    """Write an (h*w, C) activation into the interior of a zero-haloed scratch."""
    scr_ref[1:h + 1, _COL0:_COL0 + w, :] = val.reshape(h, w, val.shape[-1])


def _tap_from_scratch(scr_ref, ky, kx, h, w):
    """Read the (ky, kx)-shifted tap of the haloed scratch as (h*w, C) bf16."""
    c0 = _COL0 - 1 + kx
    t = scr_ref[ky:ky + h, c0:c0 + w, :]
    return t.reshape(h * w, scr_ref.shape[-1]).astype(jnp.bfloat16)


# ---------------------------------------------------------------------------
# Stage 1: conv1_head + ReLU + ResBlocks + conv1_tail + skip  (one pallas_call)
# ---------------------------------------------------------------------------
def _make_stage1_kernel(H, W, c_in, c_f, num_res_blocks, res_scale):
    P = H * W

    def kernel(x_ref, wh_ref, bh_ref, wrb_ref, brb_ref, wt_ref, bt_ref,
               out_ref, xp_s, hp_s, x1_s):
        # Zero the haloed scratches once per image; only interiors are rewritten
        # afterwards, so the halo stays zero (= the conv's zero padding).
        xp_s[...] = jnp.zeros_like(xp_s)
        hp_s[...] = jnp.zeros_like(hp_s)

        # ---- conv1_head + ReLU (input block is already spatially padded) ----
        def head_tap(ky, kx):
            t = x_ref[0, ky:ky + H, kx:kx + W, :]
            return t.reshape(P, c_in).astype(jnp.bfloat16)

        y = _conv_taps(head_tap, lambda k: wh_ref[k], bh_ref[...], P, c_f)
        y = jnp.maximum(y, 0.0)
        x1_s[...] = y                      # saved for the tail skip connection
        _store_interior(xp_s, y, H, W)

        # ---- ResBlocks: x = conv2(relu(conv1(x))) * res_scale + x ----
        for i in range(num_res_blocks):
            h = _conv_taps(
                lambda ky, kx: _tap_from_scratch(xp_s, ky, kx, H, W),
                lambda k: wrb_ref[2 * i, k], brb_ref[2 * i], P, c_f)
            h = jnp.maximum(h, 0.0)
            _store_interior(hp_s, h, H, W)
            y2 = _conv_taps(
                lambda ky, kx: _tap_from_scratch(hp_s, ky, kx, H, W),
                lambda k: wrb_ref[2 * i + 1, k], brb_ref[2 * i + 1], P, c_f)
            x_cur = xp_s[1:H + 1, _COL0:_COL0 + W, :].reshape(P, c_f)
            _store_interior(xp_s, y2 * res_scale + x_cur, H, W)

        # ---- conv1_tail + skip(x1) ----
        yt = _conv_taps(
            lambda ky, kx: _tap_from_scratch(xp_s, ky, kx, H, W),
            lambda k: wt_ref[k], bt_ref[...], P, c_f)
        out = yt + x1_s[...]
        out_ref[...] = out.reshape(1, H, W, c_f).astype(out_ref.dtype)

    return kernel


def _stage1_forward(x_nhwc, wh, bh, wrb, brb, wt, bt, *,
                    num_res_blocks, res_scale):
    N, H, W, c_in = x_nhwc.shape
    c_f = wh.shape[-1]
    x_pad = jnp.pad(x_nhwc, ((0, 0), (1, 1), (1, 1), (0, 0)))
    w_scr = _COL0 + W + 8     # haloed scratch width (aligned interior at _COL0)

    kernel = _make_stage1_kernel(H, W, c_in, c_f, num_res_blocks, res_scale)
    return pl.pallas_call(
        kernel,
        out_shape=jax.ShapeDtypeStruct((N, H, W, c_f), jnp.float32),
        grid=(N,),
        in_specs=[
            pl.BlockSpec((1, H + 2, W + 2, c_in), lambda n: (n, 0, 0, 0)),
            pl.BlockSpec(wh.shape, lambda n: (0, 0, 0)),
            pl.BlockSpec(bh.shape, lambda n: (0, 0)),
            pl.BlockSpec(wrb.shape, lambda n: (0, 0, 0, 0)),
            pl.BlockSpec(brb.shape, lambda n: (0, 0, 0)),
            pl.BlockSpec(wt.shape, lambda n: (0, 0, 0)),
            pl.BlockSpec(bt.shape, lambda n: (0, 0)),
        ],
        out_specs=pl.BlockSpec((1, H, W, c_f), lambda n: (n, 0, 0, 0)),
        scratch_shapes=[
            pltpu.VMEM((H + 2, w_scr, c_f), jnp.float32),   # haloed x
            pltpu.VMEM((H + 2, w_scr, c_f), jnp.float32),   # haloed h
            pltpu.VMEM((H * W, c_f), jnp.float32),          # saved x1
        ],
        compiler_params=pltpu.CompilerParams(
            dimension_semantics=("parallel",)),
    )(x_pad, wh, bh, wrb, brb, wt, bt)


# ---------------------------------------------------------------------------
# Stages 2-4: convK_head (stride 2) + ReLU + convK_tail  (one pallas_call each)
# ---------------------------------------------------------------------------
def _make_down_kernel(Ho, Wo, c_in, c_mid, c_out):
    P = Ho * Wo

    def kernel(ph_ref, wh_ref, bh_ref, wt_ref, bt_ref, out_ref, hp_s):
        hp_s[...] = jnp.zeros_like(hp_s)

        # stride-2 head conv via the 2x2 polyphase planes of the padded input
        def head_tap(ky, kx):
            phase = 2 * (ky % 2) + (kx % 2)
            oy, ox = ky // 2, kx // 2
            t = ph_ref[phase, oy:oy + Ho, ox:ox + Wo, :]
            return t.reshape(P, c_in).astype(jnp.bfloat16)

        h = _conv_taps(head_tap, lambda k: wh_ref[k], bh_ref[...], P, c_mid)
        h = jnp.maximum(h, 0.0)
        _store_interior(hp_s, h, Ho, Wo)

        # stride-1 tail conv on the haloed intermediate
        y = _conv_taps(
            lambda ky, kx: _tap_from_scratch(hp_s, ky, kx, Ho, Wo),
            lambda k: wt_ref[k], bt_ref[...], P, c_out)
        out_ref[...] = y.reshape(1, Ho, Wo, c_out).astype(out_ref.dtype)

    return kernel


def _down_stage_forward(x_nhwc, wh, bh, wt, bt):
    N, Hs, Ws, c_in = x_nhwc.shape
    assert Hs % 2 == 0 and Ws % 2 == 0, "spatial dims must be even for stride 2"
    Ho, Wo = Hs // 2, Ws // 2
    c_mid, c_out = wh.shape[-1], wt.shape[-1]

    # 2x2 polyphase decomposition of the padded input (cheap JAX glue, ~1x data,
    # no 9x im2col); each stride-2 tap becomes a static unit-stride slice in-kernel.
    xp = jnp.pad(x_nhwc, ((0, 0), (1, 1), (1, 1), (0, 0)))
    phases = jnp.stack([xp[:, a::2, b::2, :] for a in (0, 1) for b in (0, 1)],
                       axis=1)                                # (N, 4, Ho+1, Wo+1, C)
    phases = phases.reshape(N * 4, Ho + 1, Wo + 1, c_in)

    w_scr = _COL0 + Wo + 8
    kernel = _make_down_kernel(Ho, Wo, c_in, c_mid, c_out)
    return pl.pallas_call(
        kernel,
        out_shape=jax.ShapeDtypeStruct((N, Ho, Wo, c_out), jnp.float32),
        grid=(N,),
        in_specs=[
            pl.BlockSpec((4, Ho + 1, Wo + 1, c_in), lambda n: (n, 0, 0, 0)),
            pl.BlockSpec(wh.shape, lambda n: (0, 0, 0)),
            pl.BlockSpec(bh.shape, lambda n: (0, 0)),
            pl.BlockSpec(wt.shape, lambda n: (0, 0, 0)),
            pl.BlockSpec(bt.shape, lambda n: (0, 0)),
        ],
        out_specs=pl.BlockSpec((1, Ho, Wo, c_out), lambda n: (n, 0, 0, 0)),
        scratch_shapes=[pltpu.VMEM((Ho + 2, w_scr, c_mid), jnp.float32)],
        compiler_params=pltpu.CompilerParams(
            dimension_semantics=("parallel",)),
    )(phases, wh, bh, wt, bt)


# ---------------------------------------------------------------------------
# Parameter construction (PyTorch layout) and one-time kernel-layout prep
# ---------------------------------------------------------------------------
def init_se_params(key, num_res_blocks, n_feats):
    def conv_params(k, cin, cout):
        kw, kb = jax.random.split(k)
        w = jax.random.normal(kw, (cout, cin, 3, 3), jnp.float32) * 0.05
        b = jax.random.normal(kb, (cout,), jnp.float32) * 0.05
        return w, b

    keys = jax.random.split(key, 8 + 2 * num_res_blocks)
    p = {}
    p["conv1_head"] = conv_params(keys[0], 6, n_feats)
    p["RB1s"] = []
    for i in range(num_res_blocks):
        c1 = conv_params(keys[1 + 2 * i], n_feats, n_feats)
        c2 = conv_params(keys[2 + 2 * i], n_feats, n_feats)
        p["RB1s"].append((c1, c2))
    off = 1 + 2 * num_res_blocks
    names = ["conv1_tail", "conv2_head", "conv2_tail",
             "conv3_head", "conv3_tail", "conv4_head", "conv4_tail"]
    for j, name in enumerate(names):
        p[name] = conv_params(keys[off + j], n_feats, n_feats)
    return p


def prepare_kernel_params(params):
    """One-time conversion: W (Cout,Cin,3,3) -> (9,Cin,Cout) bf16, b -> (1,Cout) f32."""
    def pw(w):
        cout, cin = w.shape[0], w.shape[1]
        return jnp.transpose(w, (2, 3, 1, 0)).reshape(9, cin, cout).astype(jnp.bfloat16)

    def pb(b):
        return b.reshape(1, -1).astype(jnp.float32)

    wh, bh = params["conv1_head"]
    n_feats = wh.shape[0]
    rb_ws, rb_bs = [], []
    for (w1, b1), (w2, b2) in params["RB1s"]:
        rb_ws += [pw(w1), pw(w2)]
        rb_bs += [pb(b1), pb(b2)]
    if not rb_ws:   # num_res_blocks == 0: keep shapes valid with unused dummies
        rb_ws = [jnp.zeros((9, n_feats, n_feats), jnp.bfloat16)]
        rb_bs = [jnp.zeros((1, n_feats), jnp.float32)]
    wt, bt = params["conv1_tail"]
    prep = {"stage1": (pw(wh), pb(bh), jnp.stack(rb_ws, 0), jnp.stack(rb_bs, 0),
                       pw(wt), pb(bt))}
    for s, (hname, tname) in enumerate(
            [("conv2_head", "conv2_tail"),
             ("conv3_head", "conv3_tail"),
             ("conv4_head", "conv4_tail")], start=2):
        w_h, b_h = params[hname]
        w_t, b_t = params[tname]
        prep[f"stage{s}"] = (pw(w_h), pb(b_h), pw(w_t), pb(b_t))
    return prep


# ---------------------------------------------------------------------------
# SE forward (matches PyTorch SE.forward semantics)
# ---------------------------------------------------------------------------
def se_forward(prep, x_nchw, *, num_res_blocks, res_scale):
    x = jnp.transpose(x_nchw, (0, 2, 3, 1)).astype(jnp.float32)   # NCHW -> NHWC
    x1 = _stage1_forward(x, *prep["stage1"],
                         num_res_blocks=num_res_blocks, res_scale=res_scale)
    x2 = _down_stage_forward(x1, *prep["stage2"])
    x3 = _down_stage_forward(x2, *prep["stage3"])
    x4 = _down_stage_forward(x3, *prep["stage4"])
    return tuple(jnp.transpose(t, (0, 3, 1, 2)) for t in (x1, x2, x3, x4))


# ---------------------------------------------------------------------------
# Pure-JAX reference (XLA conv, f32) for a correctness check
# ---------------------------------------------------------------------------
def _conv_ref(x_nhwc, w, b, stride=1, relu=False):
    y = lax.conv_general_dilated(
        x_nhwc, jnp.transpose(w, (2, 3, 1, 0)),
        window_strides=(stride, stride), padding=((1, 1), (1, 1)),
        dimension_numbers=("NHWC", "HWIO", "NHWC")) + b
    return jnp.maximum(y, 0.0) if relu else y


def se_forward_ref(params, x_nchw, num_res_blocks, res_scale):
    x = jnp.transpose(x_nchw, (0, 2, 3, 1))
    w, b = params["conv1_head"]
    x = _conv_ref(x, w, b, relu=True)
    x1 = x
    for i in range(num_res_blocks):
        (w1, b1), (w2, b2) = params["RB1s"][i]
        h = _conv_ref(x, w1, b1, relu=True)
        x = _conv_ref(h, w2, b2) * res_scale + x
    w, b = params["conv1_tail"]
    x = _conv_ref(x, w, b) + x1
    x1_out = x
    w, b = params["conv2_head"]; x = _conv_ref(x, w, b, stride=2, relu=True)
    w, b = params["conv2_tail"]; x = _conv_ref(x, w, b)
    x2_out = x
    w, b = params["conv3_head"]; x = _conv_ref(x, w, b, stride=2, relu=True)
    w, b = params["conv3_tail"]; x = _conv_ref(x, w, b)
    x3_out = x
    w, b = params["conv4_head"]; x = _conv_ref(x, w, b, stride=2, relu=True)
    w, b = params["conv4_tail"]; x = _conv_ref(x, w, b)
    x4_out = x
    return tuple(jnp.transpose(t, (0, 3, 1, 2))
                 for t in (x1_out, x2_out, x3_out, x4_out))


if __name__ == "__main__":
    num_res_blocks = 2
    n_feats = 8
    res_scale = 1.0
    N, C, H, W = 2, 6, 16, 16   # conv1_head expects 6 input channels

    key = jax.random.PRNGKey(0)
    kp, kx = jax.random.split(key)
    params = init_se_params(kp, num_res_blocks, n_feats)
    x = jax.random.normal(kx, (N, C, H, W), jnp.float32)

    prep = prepare_kernel_params(params)   # one-time weight re-layout (bf16)

    fwd = jax.jit(functools.partial(se_forward,
                                    num_res_blocks=num_res_blocks,
                                    res_scale=res_scale))
    outs = jax.block_until_ready(fwd(prep, x))

    refs = se_forward_ref(params, x, num_res_blocks, res_scale)
    # bf16 MXU operands (f32 accumulate/epilogue) -> slightly looser tolerance.
    for o, r in zip(outs, refs):
        assert o.shape == r.shape
        assert jnp.allclose(o, r, atol=2e-2, rtol=5e-2), "mismatch vs XLA reference"

    # Expected shapes: (2,8,16,16), (2,8,8,8), (2,8,4,4), (2,8,2,2)
    print("KERNEL_OK")
</pallas_src>

<mosaic_0001>
module attributes {stable_mosaic.version = 11 : i64} {
  func.func @kernel(%arg0: i32, %arg1: memref<1x18x18x6xf32, #tpu.memory_space<vmem>>, %arg2: memref<9x6x8xbf16, #tpu.memory_space<vmem>>, %arg3: memref<1x8xf32, #tpu.memory_space<vmem>>, %arg4: memref<4x9x8x8xbf16, #tpu.memory_space<vmem>>, %arg5: memref<4x1x8xf32, #tpu.memory_space<vmem>>, %arg6: memref<9x8x8xbf16, #tpu.memory_space<vmem>>, %arg7: memref<1x8xf32, #tpu.memory_space<vmem>>, %arg8: memref<1x16x16x8xf32, #tpu.memory_space<vmem>>, %arg9: memref<18x32x8xf32, #tpu.memory_space<vmem>>, %arg10: memref<18x32x8xf32, #tpu.memory_space<vmem>>, %arg11: memref<256x8xf32, #tpu.memory_space<vmem>>) attributes {dimension_semantics = [#tpu.dimension_semantics<parallel>], iteration_bounds = array<i64: 2>, scalar_prefetch = 0 : i64, scratch_operands = 3 : i64, tpu.core_type = #tpu.core_type<tc>, window_params = [{transform_indices = @transform_0, window_bounds = array<i64: 1, 18, 18, 6>}, {pipeline_mode = #tpu.pipeline_mode<synchronous>, transform_indices = @transform_1, window_bounds = array<i64: 9, 6, 8>}, {pipeline_mode = #tpu.pipeline_mode<synchronous>, transform_indices = @transform_2, window_bounds = array<i64: 1, 8>}, {pipeline_mode = #tpu.pipeline_mode<synchronous>, transform_indices = @transform_3, window_bounds = array<i64: 4, 9, 8, 8>}, {pipeline_mode = #tpu.pipeline_mode<synchronous>, transform_indices = @transform_4, window_bounds = array<i64: 4, 1, 8>}, {pipeline_mode = #tpu.pipeline_mode<synchronous>, transform_indices = @transform_5, window_bounds = array<i64: 9, 8, 8>}, {pipeline_mode = #tpu.pipeline_mode<synchronous>, transform_indices = @transform_6, window_bounds = array<i64: 1, 8>}, {transform_indices = @transform_7, window_bounds = array<i64: 1, 16, 16, 8>}]} {
    %cst = arith.constant 0.000000e+00 : f32
    %0 = vector.broadcast %cst : f32 to vector<18x32x8xf32>
    %c0 = arith.constant 0 : index
    %c0_0 = arith.constant 0 : index
    %c0_1 = arith.constant 0 : index
    %1 = vector.load %arg9[%c0, %c0_0, %c0_1] : memref<18x32x8xf32, #tpu.memory_space<vmem>>, vector<18x32x8xf32>
    tpu.vector_store %arg9[%c0, %c0_0, %c0_1], %0 {strides = array<i32>} : memref<18x32x8xf32, #tpu.memory_space<vmem>>, vector<18x32x8xf32>,
    %cst_2 = arith.constant 0.000000e+00 : f32
    %2 = vector.broadcast %cst_2 : f32 to vector<18x32x8xf32>
    %c0_3 = arith.constant 0 : index
    %c0_4 = arith.constant 0 : index
    %c0_5 = arith.constant 0 : index
    %3 = vector.load %arg10[%c0_3, %c0_4, %c0_5] : memref<18x32x8xf32, #tpu.memory_space<vmem>>, vector<18x32x8xf32>
    tpu.vector_store %arg10[%c0_3, %c0_4, %c0_5], %2 {strides = array<i32>} : memref<18x32x8xf32, #tpu.memory_space<vmem>>, vector<18x32x8xf32>,
    %c0_6 = arith.constant 0 : index
    %c0_7 = arith.constant 0 : index
    %4 = vector.load %arg3[%c0_6, %c0_7] : memref<1x8xf32, #tpu.memory_space<vmem>>, vector<1x8xf32>
    %cst_8 = arith.constant 0.000000e+00 : f32
    %5 = vector.broadcast %cst_8 : f32 to vector<256x8xf32>
    %c0_9 = arith.constant 0 : index
    %c0_10 = arith.constant 0 : index
    %c0_11 = arith.constant 0 : index
    %c0_12 = arith.constant 0 : index
    %6 = vector.load %arg1[%c0_9, %c0_10, %c0_11, %c0_12] : memref<1x18x18x6xf32, #tpu.memory_space<vmem>>, vector<1x16x16x6xf32>
    %7 = vector.shape_cast %6 : vector<1x16x16x6xf32> to vector<16x16x6xf32>
    %8 = vector.shape_cast %7 : vector<16x16x6xf32> to vector<256x6xf32>
    %9 = arith.truncf %8 : vector<256x6xf32> to vector<256x6xbf16>
    %c0_13 = arith.constant 0 : index
    %c0_14 = arith.constant 0 : index
    %c0_15 = arith.constant 0 : index
    %10 = vector.load %arg2[%c0_13, %c0_14, %c0_15] : memref<9x6x8xbf16, #tpu.memory_space<vmem>>, vector<1x6x8xbf16>
    %11 = vector.shape_cast %10 : vector<1x6x8xbf16> to vector<6x8xbf16>
    %cst_16 = arith.constant dense<0.000000e+00> : vector<256x8xf32>
    %12 = tpu.matmul %9, %11, %cst_16 {dimension_numbers = #tpu.dot_dimension_numbers<[1], [0], [0], [1], [0, 0, 1, 1], [], []>} : vector<256x6xbf16>, vector<6x8xbf16>, vector<256x8xf32> -> vector<256x8xf32>
    %13 = arith.addf %5, %12 : vector<256x8xf32>
    %c0_17 = arith.constant 0 : index
    %c0_18 = arith.constant 0 : index
    %c1 = arith.constant 1 : index
    %c0_19 = arith.constant 0 : index
    %14 = vector.load %arg1[%c0_17, %c0_18, %c1, %c0_19] : memref<1x18x18x6xf32, #tpu.memory_space<vmem>>, vector<1x16x16x6xf32>
    %15 = vector.shape_cast %14 : vector<1x16x16x6xf32> to vector<16x16x6xf32>
    %16 = vector.shape_cast %15 : vector<16x16x6xf32> to vector<256x6xf32>
    %17 = arith.truncf %16 : vector<256x6xf32> to vector<256x6xbf16>
    %c1_20 = arith.constant 1 : index
    %c0_21 = arith.constant 0 : index
    %c0_22 = arith.constant 0 : index
    %18 = vector.load %arg2[%c1_20, %c0_21, %c0_22] : memref<9x6x8xbf16, #tpu.memory_space<vmem>>, vector<1x6x8xbf16>
    %19 = vector.shape_cast %18 : vector<1x6x8xbf16> to vector<6x8xbf16>
    %cst_23 = arith.constant dense<0.000000e+00> : vector<256x8xf32>
    %20 = tpu.matmul %17, %19, %cst_23 {dimension_numbers = #tpu.dot_dimension_numbers<[1], [0], [0], [1], [0, 0, 1, 1], [], []>} : vector<256x6xbf16>, vector<6x8xbf16>, vector<256x8xf32> -> vector<256x8xf32>
    %21 = arith.addf %13, %20 : vector<256x8xf32>
    %c0_24 = arith.constant 0 : index
    %c0_25 = arith.constant 0 : index
    %c2 = arith.constant 2 : index
    %c0_26 = arith.constant 0 : index
    %22 = vector.load %arg1[%c0_24, %c0_25, %c2, %c0_26] : memref<1x18x18x6xf32, #tpu.memory_space<vmem>>, vector<1x16x16x6xf32>
    %23 = vector.shape_cast %22 : vector<1x16x16x6xf32> to vector<16x16x6xf32>
    %24 = vector.shape_cast %23 : vector<16x16x6xf32> to vector<256x6xf32>
    %25 = arith.truncf %24 : vector<256x6xf32> to vector<256x6xbf16>
    %c2_27 = arith.constant 2 : index
    %c0_28 = arith.constant 0 : index
    %c0_29 = arith.constant 0 : index
    %26 = vector.load %arg2[%c2_27, %c0_28, %c0_29] : memref<9x6x8xbf16, #tpu.memory_space<vmem>>, vector<1x6x8xbf16>
    %27 = vector.shape_cast %26 : vector<1x6x8xbf16> to vector<6x8xbf16>
    %cst_30 = arith.constant dense<0.000000e+00> : vector<256x8xf32>
    %28 = tpu.matmul %25, %27, %cst_30 {dimension_numbers = #tpu.dot_dimension_numbers<[1], [0], [0], [1], [0, 0, 1, 1], [], []>} : vector<256x6xbf16>, vector<6x8xbf16>, vector<256x8xf32> -> vector<256x8xf32>
    %29 = arith.addf %21, %28 : vector<256x8xf32>
    %c0_31 = arith.constant 0 : index
    %c1_32 = arith.constant 1 : index
    %c0_33 = arith.constant 0 : index
    %c0_34 = arith.constant 0 : index
    %30 = vector.load %arg1[%c0_31, %c1_32, %c0_33, %c0_34] : memref<1x18x18x6xf32, #tpu.memory_space<vmem>>, vector<1x16x16x6xf32>
    %31 = vector.shape_cast %30 : vector<1x16x16x6xf32> to vector<16x16x6xf32>
    %32 = vector.shape_cast %31 : vector<16x16x6xf32> to vector<256x6xf32>
    %33 = arith.truncf %32 : vector<256x6xf32> to vector<256x6xbf16>
    %c3 = arith.constant 3 : index
    %c0_35 = arith.constant 0 : index
    %c0_36 = arith.constant 0 : index
    %34 = vector.load %arg2[%c3, %c0_35, %c0_36] : memref<9x6x8xbf16, #tpu.memory_space<vmem>>, vector<1x6x8xbf16>
    %35 = vector.shape_cast %34 : vector<1x6x8xbf16> to vector<6x8xbf16>
    %cst_37 = arith.constant dense<0.000000e+00> : vector<256x8xf32>
    %36 = tpu.matmul %33, %35, %cst_37 {dimension_numbers = #tpu.dot_dimension_numbers<[1], [0], [0], [1], [0, 0, 1, 1], [], []>} : vector<256x6xbf16>, vector<6x8xbf16>, vector<256x8xf32> -> vector<256x8xf32>
    %37 = arith.addf %29, %36 : vector<256x8xf32>
    %c0_38 = arith.constant 0 : index
    %c1_39 = arith.constant 1 : index
    %c1_40 = arith.constant 1 : index
    %c0_41 = arith.constant 0 : index
    %38 = vector.load %arg1[%c0_38, %c1_39, %c1_40, %c0_41] : memref<1x18x18x6xf32, #tpu.memory_space<vmem>>, vector<1x16x16x6xf32>
    %39 = vector.shape_cast %38 : vector<1x16x16x6xf32> to vector<16x16x6xf32>
    %40 = vector.shape_cast %39 : vector<16x16x6xf32> to vector<256x6xf32>
    %41 = arith.truncf %40 : vector<256x6xf32> to vector<256x6xbf16>
    %c4 = arith.constant 4 : index
    %c0_42 = arith.constant 0 : index
    %c0_43 = arith.constant 0 : index
    %42 = vector.load %arg2[%c4, %c0_42, %c0_43] : memref<9x6x8xbf16, #tpu.memory_space<vmem>>, vector<1x6x8xbf16>
    %43 = vector.shape_cast %42 : vector<1x6x8xbf16> to vector<6x8xbf16>
    %cst_44 = arith.constant dense<0.000000e+00> : vector<256x8xf32>
    %44 = tpu.matmul %41, %43, %cst_44 {dimension_numbers = #tpu.dot_dimension_numbers<[1], [0], [0], [1], [0, 0, 1, 1], [], []>} : vector<256x6xbf16>, vector<6x8xbf16>, vector<256x8xf32> -> vector<256x8xf32>
    %45 = arith.addf %37, %44 : vector<256x8xf32>
    %c0_45 = arith.constant 0 : index
    %c1_46 = arith.constant 1 : index
    %c2_47 = arith.constant 2 : index
    %c0_48 = arith.constant 0 : index
    %46 = vector.load %arg1[%c0_45, %c1_46, %c2_47, %c0_48] : memref<1x18x18x6xf32, #tpu.memory_space<vmem>>, vector<1x16x16x6xf32>
    %47 = vector.shape_cast %46 : vector<1x16x16x6xf32> to vector<16x16x6xf32>
    %48 = vector.shape_cast %47 : vector<16x16x6xf32> to vector<256x6xf32>
    %49 = arith.truncf %48 : vector<256x6xf32> to vector<256x6xbf16>
    %c5 = arith.constant 5 : index
    %c0_49 = arith.constant 0 : index
    %c0_50 = arith.constant 0 : index
    %50 = vector.load %arg2[%c5, %c0_49, %c0_50] : memref<9x6x8xbf16, #tpu.memory_space<vmem>>, vector<1x6x8xbf16>
    %51 = vector.shape_cast %50 : vector<1x6x8xbf16> to vector<6x8xbf16>
    %cst_51 = arith.constant dense<0.000000e+00> : vector<256x8xf32>
    %52 = tpu.matmul %49, %51, %cst_51 {dimension_numbers = #tpu.dot_dimension_numbers<[1], [0], [0], [1], [0, 0, 1, 1], [], []>} : vector<256x6xbf16>, vector<6x8xbf16>, vector<256x8xf32> -> vector<256x8xf32>
    %53 = arith.addf %45, %52 : vector<256x8xf32>
    %c0_52 = arith.constant 0 : index
    %c2_53 = arith.constant 2 : index
    %c0_54 = arith.constant 0 : index
    %c0_55 = arith.constant 0 : index
    %54 = vector.load %arg1[%c0_52, %c2_53, %c0_54, %c0_55] : memref<1x18x18x6xf32, #tpu.memory_space<vmem>>, vector<1x16x16x6xf32>
    %55 = vector.shape_cast %54 : vector<1x16x16x6xf32> to vector<16x16x6xf32>
    %56 = vector.shape_cast %55 : vector<16x16x6xf32> to vector<256x6xf32>
    %57 = arith.truncf %56 : vector<256x6xf32> to vector<256x6xbf16>
    %c6 = arith.constant 6 : index
    %c0_56 = arith.constant 0 : index
    %c0_57 = arith.constant 0 : index
    %58 = vector.load %arg2[%c6, %c0_56, %c0_57] : memref<9x6x8xbf16, #tpu.memory_space<vmem>>, vector<1x6x8xbf16>
    %59 = vector.shape_cast %58 : vector<1x6x8xbf16> to vector<6x8xbf16>
    %cst_58 = arith.constant dense<0.000000e+00> : vector<256x8xf32>
    %60 = tpu.matmul %57, %59, %cst_58 {dimension_numbers = #tpu.dot_dimension_numbers<[1], [0], [0], [1], [0, 0, 1, 1], [], []>} : vector<256x6xbf16>, vector<6x8xbf16>, vector<256x8xf32> -> vector<256x8xf32>
    %61 = arith.addf %53, %60 : vector<256x8xf32>
    %c0_59 = arith.constant 0 : index
    %c2_60 = arith.constant 2 : index
    %c1_61 = arith.constant 1 : index
    %c0_62 = arith.constant 0 : index
    %62 = vector.load %arg1[%c0_59, %c2_60, %c1_61, %c0_62] : memref<1x18x18x6xf32, #tpu.memory_space<vmem>>, vector<1x16x16x6xf32>
    %63 = vector.shape_cast %62 : vector<1x16x16x6xf32> to vector<16x16x6xf32>
    %64 = vector.shape_cast %63 : vector<16x16x6xf32> to vector<256x6xf32>
    %65 = arith.truncf %64 : vector<256x6xf32> to vector<256x6xbf16>
    %c7 = arith.constant 7 : index
    %c0_63 = arith.constant 0 : index
    %c0_64 = arith.constant 0 : index
    %66 = vector.load %arg2[%c7, %c0_63, %c0_64] : memref<9x6x8xbf16, #tpu.memory_space<vmem>>, vector<1x6x8xbf16>
    %67 = vector.shape_cast %66 : vector<1x6x8xbf16> to vector<6x8xbf16>
    %cst_65 = arith.constant dense<0.000000e+00> : vector<256x8xf32>
    %68 = tpu.matmul %65, %67, %cst_65 {dimension_numbers = #tpu.dot_dimension_numbers<[1], [0], [0], [1], [0, 0, 1, 1], [], []>} : vector<256x6xbf16>, vector<6x8xbf16>, vector<256x8xf32> -> vector<256x8xf32>
    %69 = arith.addf %61, %68 : vector<256x8xf32>
    %c0_66 = arith.constant 0 : index
    %c2_67 = arith.constant 2 : index
    %c2_68 = arith.constant 2 : index
    %c0_69 = arith.constant 0 : index
    %70 = vector.load %arg1[%c0_66, %c2_67, %c2_68, %c0_69] : memref<1x18x18x6xf32, #tpu.memory_space<vmem>>, vector<1x16x16x6xf32>
    %71 = vector.shape_cast %70 : vector<1x16x16x6xf32> to vector<16x16x6xf32>
    %72 = vector.shape_cast %71 : vector<16x16x6xf32> to vector<256x6xf32>
    %73 = arith.truncf %72 : vector<256x6xf32> to vector<256x6xbf16>
    %c8 = arith.constant 8 : index
    %c0_70 = arith.constant 0 : index
    %c0_71 = arith.constant 0 : index
    %74 = vector.load %arg2[%c8, %c0_70, %c0_71] : memref<9x6x8xbf16, #tpu.memory_space<vmem>>, vector<1x6x8xbf16>
    %75 = vector.shape_cast %74 : vector<1x6x8xbf16> to vector<6x8xbf16>
    %cst_72 = arith.constant dense<0.000000e+00> : vector<256x8xf32>
    %76 = tpu.matmul %73, %75, %cst_72 {dimension_numbers = #tpu.dot_dimension_numbers<[1], [0], [0], [1], [0, 0, 1, 1], [], []>} : vector<256x6xbf16>, vector<6x8xbf16>, vector<256x8xf32> -> vector<256x8xf32>
    %77 = arith.addf %69, %76 : vector<256x8xf32>
    %78 = vector.broadcast %4 : vector<1x8xf32> to vector<256x8xf32>
    %79 = arith.addf %77, %78 : vector<256x8xf32>
    %cst_73 = arith.constant 0.000000e+00 : f32
    %80 = vector.broadcast %cst_73 : f32 to vector<256x8xf32>
    %81 = arith.maximumf %79, %80 : vector<256x8xf32>
    %c0_74 = arith.constant 0 : index
    %c0_75 = arith.constant 0 : index
    %82 = vector.load %arg11[%c0_74, %c0_75] : memref<256x8xf32, #tpu.memory_space<vmem>>, vector<256x8xf32>
    tpu.vector_store %arg11[%c0_74, %c0_75], %81 {strides = array<i32>} : memref<256x8xf32, #tpu.memory_space<vmem>>, vector<256x8xf32>,
    %83 = vector.shape_cast %81 : vector<256x8xf32> to vector<16x16x8xf32>
    %c1_76 = arith.constant 1 : index
    %c8_77 = arith.constant 8 : index
    %c0_78 = arith.constant 0 : index
    %84 = vector.load %arg9[%c1_76, %c8_77, %c0_78] : memref<18x32x8xf32, #tpu.memory_space<vmem>>, vector<16x16x8xf32>
    tpu.vector_store %arg9[%c1_76, %c8_77, %c0_78], %83 {strides = array<i32>} : memref<18x32x8xf32, #tpu.memory_space<vmem>>, vector<16x16x8xf32>,
    %c0_79 = arith.constant 0 : index
    %c0_80 = arith.constant 0 : index
    %c0_81 = arith.constant 0 : index
    %85 = vector.load %arg5[%c0_79, %c0_80, %c0_81] : memref<4x1x8xf32, #tpu.memory_space<vmem>>, vector<1x1x8xf32>
    %86 = vector.shape_cast %85 : vector<1x1x8xf32> to vector<1x8xf32>
    %cst_82 = arith.constant 0.000000e+00 : f32
    %87 = vector.broadcast %cst_82 : f32 to vector<256x8xf32>
    %c0_83 = arith.constant 0 : index
    %c7_84 = arith.constant 7 : index
    %c0_85 = arith.constant 0 : index
    %88 = vector.load %arg9[%c0_83, %c7_84, %c0_85] : memref<18x32x8xf32, #tpu.memory_space<vmem>>, vector<16x16x8xf32>
    %89 = vector.shape_cast %88 : vector<16x16x8xf32> to vector<256x8xf32>
    %90 = arith.truncf %89 : vector<256x8xf32> to vector<256x8xbf16>
    %c0_86 = arith.constant 0 : index
    %c0_87 = arith.constant 0 : index
    %c0_88 = arith.constant 0 : index
    %c0_89 = arith.constant 0 : index
    %91 = vector.load %arg4[%c0_86, %c0_87, %c0_88, %c0_89] : memref<4x9x8x8xbf16, #tpu.memory_space<vmem>>, vector<1x1x8x8xbf16>
    %92 = vector.shape_cast %91 : vector<1x1x8x8xbf16> to vector<8x8xbf16>
    %cst_90 = arith.constant dense<0.000000e+00> : vector<256x8xf32>
    %93 = tpu.matmul %90, %92, %cst_90 {dimension_numbers = #tpu.dot_dimension_numbers<[1], [0], [0], [1], [0, 0, 1, 1], [], []>} : vector<256x8xbf16>, vector<8x8xbf16>, vector<256x8xf32> -> vector<256x8xf32>
    %94 = arith.addf %87, %93 : vector<256x8xf32>
    %c0_91 = arith.constant 0 : index
    %c8_92 = arith.constant 8 : index
    %c0_93 = arith.constant 0 : index
    %95 = vector.load %arg9[%c0_91, %c8_92, %c0_93] : memref<18x32x8xf32, #tpu.memory_space<vmem>>, vector<16x16x8xf32>
    %96 = vector.shape_cast %95 : vector<16x16x8xf32> to vector<256x8xf32>
    %97 = arith.truncf %96 : vector<256x8xf32> to vector<256x8xbf16>
    %c0_94 = arith.constant 0 : index
    %c1_95 = arith.constant 1 : index
    %c0_96 = arith.constant 0 : index
    %c0_97 = arith.constant 0 : index
    %98 = vector.load %arg4[%c0_94, %c1_95, %c0_96, %c0_97] : memref<4x9x8x8xbf16, #tpu.memory_space<vmem>>, vector<1x1x8x8xbf16>
    %99 = vector.shape_cast %98 : vector<1x1x8x8xbf16> to vector<8x8xbf16>
    %cst_98 = arith.constant dense<0.000000e+00> : vector<256x8xf32>
    %100 = tpu.matmul %97, %99, %cst_98 {dimension_numbers = #tpu.dot_dimension_numbers<[1], [0], [0], [1], [0, 0, 1, 1], [], []>} : vector<256x8xbf16>, vector<8x8xbf16>, vector<256x8xf32> -> vector<256x8xf32>
    %101 = arith.addf %94, %100 : vector<256x8xf32>
    %c0_99 = arith.constant 0 : index
    %c9 = arith.constant 9 : index
    %c0_100 = arith.constant 0 : index
    %102 = vector.load %arg9[%c0_99, %c9, %c0_100] : memref<18x32x8xf32, #tpu.memory_space<vmem>>, vector<16x16x8xf32>
    %103 = vector.shape_cast %102 : vector<16x16x8xf32> to vector<256x8xf32>
    %104 = arith.truncf %103 : vector<256x8xf32> to vector<256x8xbf16>
    %c0_101 = arith.constant 0 : index
    %c2_102 = arith.constant 2 : index
    %c0_103 = arith.constant 0 : index
    %c0_104 = arith.constant 0 : index
    %105 = vector.load %arg4[%c0_101, %c2_102, %c0_103, %c0_104] : memref<4x9x8x8xbf16, #tpu.memory_space<vmem>>, vector<1x1x8x8xbf16>
    %106 = vector.shape_cast %105 : vector<1x1x8x8xbf16> to vector<8x8xbf16>
    %cst_105 = arith.constant dense<0.000000e+00> : vector<256x8xf32>
    %107 = tpu.matmul %104, %106, %cst_105 {dimension_numbers = #tpu.dot_dimension_numbers<[1], [0], [0], [1], [0, 0, 1, 1], [], []>} : vector<256x8xbf16>, vector<8x8xbf16>, vector<256x8xf32> -> vector<256x8xf32>
    %108 = arith.addf %101, %107 : vector<256x8xf32>
    %c1_106 = arith.constant 1 : index
    %c7_107 = arith.constant 7 : index
    %c0_108 = arith.constant 0 : index
    %109 = vector.load %arg9[%c1_106, %c7_107, %c0_108] : memref<18x32x8xf32, #tpu.memory_space<vmem>>, vector<16x16x8xf32>
    %110 = vector.shape_cast %109 : vector<16x16x8xf32> to vector<256x8xf32>
    %111 = arith.truncf %110 : vector<256x8xf32> to vector<256x8xbf16>
    %c0_109 = arith.constant 0 : index
    %c3_110 = arith.constant 3 : index
    %c0_111 = arith.constant 0 : index
    %c0_112 = arith.constant 0 : index
    %112 = vector.load %arg4[%c0_109, %c3_110, %c0_111, %c0_112] : memref<4x9x8x8xbf16, #tpu.memory_space<vmem>>, vector<1x1x8x8xbf16>
    %113 = vector.shape_cast %112 : vector<1x1x8x8xbf16> to vector<8x8xbf16>
    %cst_113 = arith.constant dense<0.000000e+00> : vector<256x8xf32>
    %114 = tpu.matmul %111, %113, %cst_113 {dimension_numbers = #tpu.dot_dimension_numbers<[1], [0], [0], [1], [0, 0, 1, 1], [], []>} : vector<256x8xbf16>, vector<8x8xbf16>, vector<256x8xf32> -> vector<256x8xf32>
    %115 = arith.addf %108, %114 : vector<256x8xf32>
    %c1_114 = arith.constant 1 : index
    %c8_115 = arith.constant 8 : index
    %c0_116 = arith.constant 0 : index
    %116 = vector.load %arg9[%c1_114, %c8_115, %c0_116] : memref<18x32x8xf32, #tpu.memory_space<vmem>>, vector<16x16x8xf32>
    %117 = vector.shape_cast %116 : vector<16x16x8xf32> to vector<256x8xf32>
    %118 = arith.truncf %117 : vector<256x8xf32> to vector<256x8xbf16>
    %c0_117 = arith.constant 0 : index
    %c4_118 = arith.constant 4 : index
    %c0_119 = arith.constant 0 : index
    %c0_120 = arith.constant 0 : index
    %119 = vector.load %arg4[%c0_117, %c4_118, %c0_119, %c0_120] : memref<4x9x8x8xbf16, #tpu.memory_space<vmem>>, vector<1x1x8x8xbf16>
    %120 = vector.shape_cast %119 : vector<1x1x8x8xbf16> to vector<8x8xbf16>
    %cst_121 = arith.constant dense<0.000000e+00> : vector<256x8xf32>
    %121 = tpu.matmul %118, %120, %cst_121 {dimension_numbers = #tpu.dot_dimension_numbers<[1], [0], [0], [1], [0, 0, 1, 1], [], []>} : vector<256x8xbf16>, vector<8x8xbf16>, vector<256x8xf32> -> vector<256x8xf32>
    %122 = arith.addf %115, %121 : vector<256x8xf32>
    %c1_122 = arith.constant 1 : index
    %c9_123 = arith.constant 9 : index
    %c0_124 = arith.constant 0 : index
    %123 = vector.load %arg9[%c1_122, %c9_123, %c0_124] : memref<18x32x8xf32, #tpu.memory_space<vmem>>, vector<16x16x8xf32>
    %124 = vector.shape_cast %123 : vector<16x16x8xf32> to vector<256x8xf32>
    %125 = arith.truncf %124 : vector<256x8xf32> to vector<256x8xbf16>
    %c0_125 = arith.constant 0 : index
    %c5_126 = arith.constant 5 : index
    %c0_127 = arith.constant 0 : index
    %c0_128 = arith.constant 0 : index
    %126 = vector.load %arg4[%c0_125, %c5_126, %c0_127, %c0_128] : memref<4x9x8x8xbf16, #tpu.memory_space<vmem>>, vector<1x1x8x8xbf16>
    %127 = vector.shape_cast %126 : vector<1x1x8x8xbf16> to vector<8x8xbf16>
    %cst_129 = arith.constant dense<0.000000e+00> : vector<256x8xf32>
    %128 = tpu.matmul %125, %127, %cst_129 {dimension_numbers = #tpu.dot_dimension_numbers<[1], [0], [0], [1], [0, 0, 1, 1], [], []>} : vector<256x8xbf16>, vector<8x8xbf16>, vector<256x8xf32> -> vector<256x8xf32>
    %129 = arith.addf %122, %128 : vector<256x8xf32>
    %c2_130 = arith.constant 2 : index
    %c7_131 = arith.constant 7 : index
    %c0_132 = arith.constant 0 : index
    %130 = vector.load %arg9[%c2_130, %c7_131, %c0_132] : memref<18x32x8xf32, #tpu.memory_space<vmem>>, vector<16x16x8xf32>
    %131 = vector.shape_cast %130 : vector<16x16x8xf32> to vector<256x8xf32>
    %132 = arith.truncf %131 : vector<256x8xf32> to vector<256x8xbf16>
    %c0_133 = arith.constant 0 : index
    %c6_134 = arith.constant 6 : index
    %c0_135 = arith.constant 0 : index
    %c0_136 = arith.constant 0 : index
    %133 = vector.load %arg4[%c0_133, %c6_134, %c0_135, %c0_136] : memref<4x9x8x8xbf16, #tpu.memory_space<vmem>>, vector<1x1x8x8xbf16>
    %134 = vector.shape_cast %133 : vector<1x1x8x8xbf16> to vector<8x8xbf16>
    %cst_137 = arith.constant dense<0.000000e+00> : vector<256x8xf32>
    %135 = tpu.matmul %132, %134, %cst_137 {dimension_numbers = #tpu.dot_dimension_numbers<[1], [0], [0], [1], [0, 0, 1, 1], [], []>} : vector<256x8xbf16>, vector<8x8xbf16>, vector<256x8xf32> -> vector<256x8xf32>
    %136 = arith.addf %129, %135 : vector<256x8xf32>
    %c2_138 = arith.constant 2 : index
    %c8_139 = arith.constant 8 : index
    %c0_140 = arith.constant 0 : index
    %137 = vector.load %arg9[%c2_138, %c8_139, %c0_140] : memref<18x32x8xf32, #tpu.memory_space<vmem>>, vector<16x16x8xf32>
    %138 = vector.shape_cast %137 : vector<16x16x8xf32> to vector<256x8xf32>
    %139 = arith.truncf %138 : vector<256x8xf32> to vector<256x8xbf16>
    %c0_141 = arith.constant 0 : index
    %c7_142 = arith.constant 7 : index
    %c0_143 = arith.constant 0 : index
    %c0_144 = arith.constant 0 : index
    %140 = vector.load %arg4[%c0_141, %c7_142, %c0_143, %c0_144] : memref<4x9x8x8xbf16, #tpu.memory_space<vmem>>, vector<1x1x8x8xbf16>
    %141 = vector.shape_cast %140 : vector<1x1x8x8xbf16> to vector<8x8xbf16>
    %cst_145 = arith.constant dense<0.000000e+00> : vector<256x8xf32>
    %142 = tpu.matmul %139, %141, %cst_145 {dimension_numbers = #tpu.dot_dimension_numbers<[1], [0], [0], [1], [0, 0, 1, 1], [], []>} : vector<256x8xbf16>, vector<8x8xbf16>, vector<256x8xf32> -> vector<256x8xf32>
    %143 = arith.addf %136, %142 : vector<256x8xf32>
    %c2_146 = arith.constant 2 : index
    %c9_147 = arith.constant 9 : index
    %c0_148 = arith.constant 0 : index
    %144 = vector.load %arg9[%c2_146, %c9_147, %c0_148] : memref<18x32x8xf32, #tpu.memory_space<vmem>>, vector<16x16x8xf32>
    %145 = vector.shape_cast %144 : vector<16x16x8xf32> to vector<256x8xf32>
    %146 = arith.truncf %145 : vector<256x8xf32> to vector<256x8xbf16>
    %c0_149 = arith.constant 0 : index
    %c8_150 = arith.constant 8 : index
    %c0_151 = arith.constant 0 : index
    %c0_152 = arith.constant 0 : index
    %147 = vector.load %arg4[%c0_149, %c8_150, %c0_151, %c0_152] : memref<4x9x8x8xbf16, #tpu.memory_space<vmem>>, vector<1x1x8x8xbf16>
    %148 = vector.shape_cast %147 : vector<1x1x8x8xbf16> to vector<8x8xbf16>
    %cst_153 = arith.constant dense<0.000000e+00> : vector<256x8xf32>
    %149 = tpu.matmul %146, %148, %cst_153 {dimension_numbers = #tpu.dot_dimension_numbers<[1], [0], [0], [1], [0, 0, 1, 1], [], []>} : vector<256x8xbf16>, vector<8x8xbf16>, vector<256x8xf32> -> vector<256x8xf32>
    %150 = arith.addf %143, %149 : vector<256x8xf32>
    %151 = vector.broadcast %86 : vector<1x8xf32> to vector<256x8xf32>
    %152 = arith.addf %150, %151 : vector<256x8xf32>
    %cst_154 = arith.constant 0.000000e+00 : f32
    %153 = vector.broadcast %cst_154 : f32 to vector<256x8xf32>
    %154 = arith.maximumf %152, %153 : vector<256x8xf32>
    %155 = vector.shape_cast %154 : vector<256x8xf32> to vector<16x16x8xf32>
    %c1_155 = arith.constant 1 : index
    %c8_156 = arith.constant 8 : index
    %c0_157 = arith.constant 0 : index
    %156 = vector.load %arg10[%c1_155, %c8_156, %c0_157] : memref<18x32x8xf32, #tpu.memory_space<vmem>>, vector<16x16x8xf32>
    tpu.vector_store %arg10[%c1_155, %c8_156, %c0_157], %155 {strides = array<i32>} : memref<18x32x8xf32, #tpu.memory_space<vmem>>, vector<16x16x8xf32>,
    %c1_158 = arith.constant 1 : index
    %c0_159 = arith.constant 0 : index
    %c0_160 = arith.constant 0 : index
    %157 = vector.load %arg5[%c1_158, %c0_159, %c0_160] : memref<4x1x8xf32, #tpu.memory_space<vmem>>, vector<1x1x8xf32>
    %158 = vector.shape_cast %157 : vector<1x1x8xf32> to vector<1x8xf32>
    %cst_161 = arith.constant 0.000000e+00 : f32
    %159 = vector.broadcast %cst_161 : f32 to vector<256x8xf32>
    %c0_162 = arith.constant 0 : index
    %c7_163 = arith.constant 7 : index
    %c0_164 = arith.constant 0 : index
    %160 = vector.load %arg10[%c0_162, %c7_163, %c0_164] : memref<18x32x8xf32, #tpu.memory_space<vmem>>, vector<16x16x8xf32>
    %161 = vector.shape_cast %160 : vector<16x16x8xf32> to vector<256x8xf32>
    %162 = arith.truncf %161 : vector<256x8xf32> to vector<256x8xbf16>
    %c1_165 = arith.constant 1 : index
    %c0_166 = arith.constant 0 : index
    %c0_167 = arith.constant 0 : index
    %c0_168 = arith.constant 0 : index
    %163 = vector.load %arg4[%c1_165, %c0_166, %c0_167, %c0_168] : memref<4x9x8x8xbf16, #tpu.memory_space<vmem>>, vector<1x1x8x8xbf16>
    %164 = vector.shape_cast %163 : vector<1x1x8x8xbf16> to vector<8x8xbf16>
    %cst_169 = arith.constant dense<0.000000e+00> : vector<256x8xf32>
    %165 = tpu.matmul %162, %164, %cst_169 {dimension_numbers = #tpu.dot_dimension_numbers<[1], [0], [0], [1], [0, 0, 1, 1], [], []>} : vector<256x8xbf16>, vector<8x8xbf16>, vector<256x8xf32> -> vector<256x8xf32>
    %166 = arith.addf %159, %165 : vector<256x8xf32>
    %c0_170 = arith.constant 0 : index
    %c8_171 = arith.constant 8 : index
    %c0_172 = arith.constant 0 : index
    %167 = vector.load %arg10[%c0_170, %c8_171, %c0_172] : memref<18x32x8xf32, #tpu.memory_space<vmem>>, vector<16x16x8xf32>
    %168 = vector.shape_cast %167 : vector<16x16x8xf32> to vector<256x8xf32>
    %169 = arith.truncf %168 : vector<256x8xf32> to vector<256x8xbf16>
    %c1_173 = arith.constant 1 : index
    %c1_174 = arith.constant 1 : index
    %c0_175 = arith.constant 0 : index
    %c0_176 = arith.constant 0 : index
    %170 = vector.load %arg4[%c1_173, %c1_174, %c0_175, %c0_176] : memref<4x9x8x8xbf16, #tpu.memory_space<vmem>>, vector<1x1x8x8xbf16>
    %171 = vector.shape_cast %170 : vector<1x1x8x8xbf16> to vector<8x8xbf16>
    %cst_177 = arith.constant dense<0.000000e+00> : vector<256x8xf32>
    %172 = tpu.matmul %169, %171, %cst_177 {dimension_numbers = #tpu.dot_dimension_numbers<[1], [0], [0], [1], [0, 0, 1, 1], [], []>} : vector<256x8xbf16>, vector<8x8xbf16>, vector<256x8xf32> -> vector<256x8xf32>
    %173 = arith.addf %166, %172 : vector<256x8xf32>
    %c0_178 = arith.constant 0 : index
    %c9_179 = arith.constant 9 : index
    %c0_180 = arith.constant 0 : index
    %174 = vector.load %arg10[%c0_178, %c9_179, %c0_180] : memref<18x32x8xf32, #tpu.memory_space<vmem>>, vector<16x16x8xf32>
    %175 = vector.shape_cast %174 : vector<16x16x8xf32> to vector<256x8xf32>
    %176 = arith.truncf %175 : vector<256x8xf32> to vector<256x8xbf16>
    %c1_181 = arith.constant 1 : index
    %c2_182 = arith.constant 2 : index
    %c0_183 = arith.constant 0 : index
    %c0_184 = arith.constant 0 : index
    %177 = vector.load %arg4[%c1_181, %c2_182, %c0_183, %c0_184] : memref<4x9x8x8xbf16, #tpu.memory_space<vmem>>, vector<1x1x8x8xbf16>
    %178 = vector.shape_cast %177 : vector<1x1x8x8xbf16> to vector<8x8xbf16>
    %cst_185 = arith.constant dense<0.000000e+00> : vector<256x8xf32>
    %179 = tpu.matmul %176, %178, %cst_185 {dimension_numbers = #tpu.dot_dimension_numbers<[1], [0], [0], [1], [0, 0, 1, 1], [], []>} : vector<256x8xbf16>, vector<8x8xbf16>, vector<256x8xf32> -> vector<256x8xf32>
    %180 = arith.addf %173, %179 : vector<256x8xf32>
    %c1_186 = arith.constant 1 : index
    %c7_187 = arith.constant 7 : index
    %c0_188 = arith.constant 0 : index
    %181 = vector.load %arg10[%c1_186, %c7_187, %c0_188] : memref<18x32x8xf32, #tpu.memory_space<vmem>>, vector<16x16x8xf32>
    %182 = vector.shape_cast %181 : vector<16x16x8xf32> to vector<256x8xf32>
    %183 = arith.truncf %182 : vector<256x8xf32> to vector<256x8xbf16>
    %c1_189 = arith.constant 1 : index
    %c3_190 = arith.constant 3 : index
    %c0_191 = arith.constant 0 : index
    %c0_192 = arith.constant 0 : index
    %184 = vector.load %arg4[%c1_189, %c3_190, %c0_191, %c0_192] : memref<4x9x8x8xbf16, #tpu.memory_space<vmem>>, vector<1x1x8x8xbf16>
    %185 = vector.shape_cast %184 : vector<1x1x8x8xbf16> to vector<8x8xbf16>
    %cst_193 = arith.constant dense<0.000000e+00> : vector<256x8xf32>
    %186 = tpu.matmul %183, %185, %cst_193 {dimension_numbers = #tpu.dot_dimension_numbers<[1], [0], [0], [1], [0, 0, 1, 1], [], []>} : vector<256x8xbf16>, vector<8x8xbf16>, vector<256x8xf32> -> vector<256x8xf32>
    %187 = arith.addf %180, %186 : vector<256x8xf32>
    %c1_194 = arith.constant 1 : index
    %c8_195 = arith.constant 8 : index
    %c0_196 = arith.constant 0 : index
    %188 = vector.load %arg10[%c1_194, %c8_195, %c0_196] : memref<18x32x8xf32, #tpu.memory_space<vmem>>, vector<16x16x8xf32>
    %189 = vector.shape_cast %188 : vector<16x16x8xf32> to vector<256x8xf32>
    %190 = arith.truncf %189 : vector<256x8xf32> to vector<256x8xbf16>
    %c1_197 = arith.constant 1 : index
    %c4_198 = arith.constant 4 : index
    %c0_199 = arith.constant 0 : index
    %c0_200 = arith.constant 0 : index
    %191 = vector.load %arg4[%c1_197, %c4_198, %c0_199, %c0_200] : memref<4x9x8x8xbf16, #tpu.memory_space<vmem>>, vector<1x1x8x8xbf16>
    %192 = vector.shape_cast %191 : vector<1x1x8x8xbf16> to vector<8x8xbf16>
    %cst_201 = arith.constant dense<0.000000e+00> : vector<256x8xf32>
    %193 = tpu.matmul %190, %192, %cst_201 {dimension_numbers = #tpu.dot_dimension_numbers<[1], [0], [0], [1], [0, 0, 1, 1], [], []>} : vector<256x8xbf16>, vector<8x8xbf16>, vector<256x8xf32> -> vector<256x8xf32>
    %194 = arith.addf %187, %193 : vector<256x8xf32>
    %c1_202 = arith.constant 1 : index
    %c9_203 = arith.constant 9 : index
    %c0_204 = arith.constant 0 : index
    %195 = vector.load %arg10[%c1_202, %c9_203, %c0_204] : memref<18x32x8xf32, #tpu.memory_space<vmem>>, vector<16x16x8xf32>
    %196 = vector.shape_cast %195 : vector<16x16x8xf32> to vector<256x8xf32>
    %197 = arith.truncf %196 : vector<256x8xf32> to vector<256x8xbf16>
    %c1_205 = arith.constant 1 : index
    %c5_206 = arith.constant 5 : index
    %c0_207 = arith.constant 0 : index
    %c0_208 = arith.constant 0 : index
    %198 = vector.load %arg4[%c1_205, %c5_206, %c0_207, %c0_208] : memref<4x9x8x8xbf16, #tpu.memory_space<vmem>>, vector<1x1x8x8xbf16>
    %199 = vector.shape_cast %198 : vector<1x1x8x8xbf16> to vector<8x8xbf16>
    %cst_209 = arith.constant dense<0.000000e+00> : vector<256x8xf32>
    %200 = tpu.matmul %197, %199, %cst_209 {dimension_numbers = #tpu.dot_dimension_numbers<[1], [0], [0], [1], [0, 0, 1, 1], [], []>} : vector<256x8xbf16>, vector<8x8xbf16>, vector<256x8xf32> -> vector<256x8xf32>
    %201 = arith.addf %194, %200 : vector<256x8xf32>
    %c2_210 = arith.constant 2 : index
    %c7_211 = arith.constant 7 : index
    %c0_212 = arith.constant 0 : index
    %202 = vector.load %arg10[%c2_210, %c7_211, %c0_212] : memref<18x32x8xf32, #tpu.memory_space<vmem>>, vector<16x16x8xf32>
    %203 = vector.shape_cast %202 : vector<16x16x8xf32> to vector<256x8xf32>
    %204 = arith.truncf %203 : vector<256x8xf32> to vector<256x8xbf16>
    %c1_213 = arith.constant 1 : index
    %c6_214 = arith.constant 6 : index
    %c0_215 = arith.constant 0 : index
    %c0_216 = arith.constant 0 : index
    %205 = vector.load %arg4[%c1_213, %c6_214, %c0_215, %c0_216] : memref<4x9x8x8xbf16, #tpu.memory_space<vmem>>, vector<1x1x8x8xbf16>
    %206 = vector.shape_cast %205 : vector<1x1x8x8xbf16> to vector<8x8xbf16>
    %cst_217 = arith.constant dense<0.000000e+00> : vector<256x8xf32>
    %207 = tpu.matmul %204, %206, %cst_217 {dimension_numbers = #tpu.dot_dimension_numbers<[1], [0], [0], [1], [0, 0, 1, 1], [], []>} : vector<256x8xbf16>, vector<8x8xbf16>, vector<256x8xf32> -> vector<256x8xf32>
    %208 = arith.addf %201, %207 : vector<256x8xf32>
    %c2_218 = arith.constant 2 : index
    %c8_219 = arith.constant 8 : index
    %c0_220 = arith.constant 0 : index
    %209 = vector.load %arg10[%c2_218, %c8_219, %c0_220] : memref<18x32x8xf32, #tpu.memory_space<vmem>>, vector<16x16x8xf32>
    %210 = vector.shape_cast %209 : vector<16x16x8xf32> to vector<256x8xf32>
    %211 = arith.truncf %210 : vector<256x8xf32> to vector<256x8xbf16>
    %c1_221 = arith.constant 1 : index
    %c7_222 = arith.constant 7 : index
    %c0_223 = arith.constant 0 : index
    %c0_224 = arith.constant 0 : index
    %212 = vector.load %arg4[%c1_221, %c7_222, %c0_223, %c0_224] : memref<4x9x8x8xbf16, #tpu.memory_space<vmem>>, vector<1x1x8x8xbf16>
    %213 = vector.shape_cast %212 : vector<1x1x8x8xbf16> to vector<8x8xbf16>
    %cst_225 = arith.constant dense<0.000000e+00> : vector<256x8xf32>
    %214 = tpu.matmul %211, %213, %cst_225 {dimension_numbers = #tpu.dot_dimension_numbers<[1], [0], [0], [1], [0, 0, 1, 1], [], []>} : vector<256x8xbf16>, vector<8x8xbf16>, vector<256x8xf32> -> vector<256x8xf32>
    %215 = arith.addf %208, %214 : vector<256x8xf32>
    %c2_226 = arith.constant 2 : index
    %c9_227 = arith.constant 9 : index
    %c0_228 = arith.constant 0 : index
    %216 = vector.load %arg10[%c2_226, %c9_227, %c0_228] : memref<18x32x8xf32, #tpu.memory_space<vmem>>, vector<16x16x8xf32>
    %217 = vector.shape_cast %216 : vector<16x16x8xf32> to vector<256x8xf32>
    %218 = arith.truncf %217 : vector<256x8xf32> to vector<256x8xbf16>
    %c1_229 = arith.constant 1 : index
    %c8_230 = arith.constant 8 : index
    %c0_231 = arith.constant 0 : index
    %c0_232 = arith.constant 0 : index
    %219 = vector.load %arg4[%c1_229, %c8_230, %c0_231, %c0_232] : memref<4x9x8x8xbf16, #tpu.memory_space<vmem>>, vector<1x1x8x8xbf16>
    %220 = vector.shape_cast %219 : vector<1x1x8x8xbf16> to vector<8x8xbf16>
    %cst_233 = arith.constant dense<0.000000e+00> : vector<256x8xf32>
    %221 = tpu.matmul %218, %220, %cst_233 {dimension_numbers = #tpu.dot_dimension_numbers<[1], [0], [0], [1], [0, 0, 1, 1], [], []>} : vector<256x8xbf16>, vector<8x8xbf16>, vector<256x8xf32> -> vector<256x8xf32>
    %222 = arith.addf %215, %221 : vector<256x8xf32>
    %223 = vector.broadcast %158 : vector<1x8xf32> to vector<256x8xf32>
    %224 = arith.addf %222, %223 : vector<256x8xf32>
    %c1_234 = arith.constant 1 : index
    %c8_235 = arith.constant 8 : index
    %c0_236 = arith.constant 0 : index
    %225 = vector.load %arg9[%c1_234, %c8_235, %c0_236] : memref<18x32x8xf32, #tpu.memory_space<vmem>>, vector<16x16x8xf32>
    %226 = vector.shape_cast %225 : vector<16x16x8xf32> to vector<256x8xf32>
    %cst_237 = arith.constant 1.000000e+00 : f32
    %227 = vector.broadcast %cst_237 : f32 to vector<256x8xf32>
    %228 = arith.mulf %224, %227 : vector<256x8xf32>
    %229 = arith.addf %228, %226 : vector<256x8xf32>
    %230 = vector.shape_cast %229 : vector<256x8xf32> to vector<16x16x8xf32>
    %c1_238 = arith.constant 1 : index
    %c8_239 = arith.constant 8 : index
    %c0_240 = arith.constant 0 : index
    %231 = vector.load %arg9[%c1_238, %c8_239, %c0_240] : memref<18x32x8xf32, #tpu.memory_space<vmem>>, vector<16x16x8xf32>
    tpu.vector_store %arg9[%c1_238, %c8_239, %c0_240], %230 {strides = array<i32>} : memref<18x32x8xf32, #tpu.memory_space<vmem>>, vector<16x16x8xf32>,
    %c2_241 = arith.constant 2 : index
    %c0_242 = arith.constant 0 : index
    %c0_243 = arith.constant 0 : index
    %232 = vector.load %arg5[%c2_241, %c0_242, %c0_243] : memref<4x1x8xf32, #tpu.memory_space<vmem>>, vector<1x1x8xf32>
    %233 = vector.shape_cast %232 : vector<1x1x8xf32> to vector<1x8xf32>
    %cst_244 = arith.constant 0.000000e+00 : f32
    %234 = vector.broadcast %cst_244 : f32 to vector<256x8xf32>
    %c0_245 = arith.constant 0 : index
    %c7_246 = arith.constant 7 : index
    %c0_247 = arith.constant 0 : index
    %235 = vector.load %arg9[%c0_245, %c7_246, %c0_247] : memref<18x32x8xf32, #tpu.memory_space<vmem>>, vector<16x16x8xf32>
    %236 = vector.shape_cast %235 : vector<16x16x8xf32> to vector<256x8xf32>
    %237 = arith.truncf %236 : vector<256x8xf32> to vector<256x8xbf16>
    %c2_248 = arith.constant 2 : index
    %c0_249 = arith.constant 0 : index
    %c0_250 = arith.constant 0 : index
    %c0_251 = arith.constant 0 : index
    %238 = vector.load %arg4[%c2_248, %c0_249, %c0_250, %c0_251] : memref<4x9x8x8xbf16, #tpu.memory_space<vmem>>, vector<1x1x8x8xbf16>
    %239 = vector.shape_cast %238 : vector<1x1x8x8xbf16> to vector<8x8xbf16>
    %cst_252 = arith.constant dense<0.000000e+00> : vector<256x8xf32>
    %240 = tpu.matmul %237, %239, %cst_252 {dimension_numbers = #tpu.dot_dimension_numbers<[1], [0], [0], [1], [0, 0, 1, 1], [], []>} : vector<256x8xbf16>, vector<8x8xbf16>, vector<256x8xf32> -> vector<256x8xf32>
    %241 = arith.addf %234, %240 : vector<256x8xf32>
    %c0_253 = arith.constant 0 : index
    %c8_254 = arith.constant 8 : index
    %c0_255 = arith.constant 0 : index
    %242 = vector.load %arg9[%c0_253, %c8_254, %c0_255] : memref<18x32x8xf32, #tpu.memory_space<vmem>>, vector<16x16x8xf32>
    %243 = vector.shape_cast %242 : vector<16x16x8xf32> to vector<256x8xf32>
    %244 = arith.truncf %243 : vector<256x8xf32> to vector<256x8xbf16>
    %c2_256 = arith.constant 2 : index
    %c1_257 = arith.constant 1 : index
    %c0_258 = arith.constant 0 : index
    %c0_259 = arith.constant 0 : index
    %245 = vector.load %arg4[%c2_256, %c1_257, %c0_258, %c0_259] : memref<4x9x8x8xbf16, #tpu.memory_space<vmem>>, vector<1x1x8x8xbf16>
    %246 = vector.shape_cast %245 : vector<1x1x8x8xbf16> to vector<8x8xbf16>
    %cst_260 = arith.constant dense<0.000000e+00> : vector<256x8xf32>
    %247 = tpu.matmul %244, %246, %cst_260 {dimension_numbers = #tpu.dot_dimension_numbers<[1], [0], [0], [1], [0, 0, 1, 1], [], []>} : vector<256x8xbf16>, vector<8x8xbf16>, vector<256x8xf32> -> vector<256x8xf32>
    %248 = arith.addf %241, %247 : vector<256x8xf32>
    %c0_261 = arith.constant 0 : index
    %c9_262 = arith.constant 9 : index
    %c0_263 = arith.constant 0 : index
    %249 = vector.load %arg9[%c0_261, %c9_262, %c0_263] : memref<18x32x8xf32, #tpu.memory_space<vmem>>, vector<16x16x8xf32>
    %250 = vector.shape_cast %249 : vector<16x16x8xf32> to vector<256x8xf32>
    %251 = arith.truncf %250 : vector<256x8xf32> to vector<256x8xbf16>
    %c2_264 = arith.constant 2 : index
    %c2_265 = arith.constant 2 : index
    %c0_266 = arith.constant 0 : index
    %c0_267 = arith.constant 0 : index
    %252 = vector.load %arg4[%c2_264, %c2_265, %c0_266, %c0_267] : memref<4x9x8x8xbf16, #tpu.memory_space<vmem>>, vector<1x1x8x8xbf16>
    %253 = vector.shape_cast %252 : vector<1x1x8x8xbf16> to vector<8x8xbf16>
    %cst_268 = arith.constant dense<0.000000e+00> : vector<256x8xf32>
    %254 = tpu.matmul %251, %253, %cst_268 {dimension_numbers = #tpu.dot_dimension_numbers<[1], [0], [0], [1], [0, 0, 1, 1], [], []>} : vector<256x8xbf16>, vector<8x8xbf16>, vector<256x8xf32> -> vector<256x8xf32>
    %255 = arith.addf %248, %254 : vector<256x8xf32>
    %c1_269 = arith.constant 1 : index
    %c7_270 = arith.constant 7 : index
    %c0_271 = arith.constant 0 : index
    %256 = vector.load %arg9[%c1_269, %c7_270, %c0_271] : memref<18x32x8xf32, #tpu.memory_space<vmem>>, vector<16x16x8xf32>
    %257 = vector.shape_cast %256 : vector<16x16x8xf32> to vector<256x8xf32>
    %258 = arith.truncf %257 : vector<256x8xf32> to vector<256x8xbf16>
    %c2_272 = arith.constant 2 : index
    %c3_273 = arith.constant 3 : index
    %c0_274 = arith.constant 0 : index
    %c0_275 = arith.constant 0 : index
    %259 = vector.load %arg4[%c2_272, %c3_273, %c0_274, %c0_275] : memref<4x9x8x8xbf16, #tpu.memory_space<vmem>>, vector<1x1x8x8xbf16>
    %260 = vector.shape_cast %259 : vector<1x1x8x8xbf16> to vector<8x8xbf16>
    %cst_276 = arith.constant dense<0.000000e+00> : vector<256x8xf32>
    %261 = tpu.matmul %258, %260, %cst_276 {dimension_numbers = #tpu.dot_dimension_numbers<[1], [0], [0], [1], [0, 0, 1, 1], [], []>} : vector<256x8xbf16>, vector<8x8xbf16>, vector<256x8xf32> -> vector<256x8xf32>
    %262 = arith.addf %255, %261 : vector<256x8xf32>
    %c1_277 = arith.constant 1 : index
    %c8_278 = arith.constant 8 : index
    %c0_279 = arith.constant 0 : index
    %263 = vector.load %arg9[%c1_277, %c8_278, %c0_279] : memref<18x32x8xf32, #tpu.memory_space<vmem>>, vector<16x16x8xf32>
    %264 = vector.shape_cast %263 : vector<16x16x8xf32> to vector<256x8xf32>
    %265 = arith.truncf %264 : vector<256x8xf32> to vector<256x8xbf16>
    %c2_280 = arith.constant 2 : index
    %c4_281 = arith.constant 4 : index
    %c0_282 = arith.constant 0 : index
    %c0_283 = arith.constant 0 : index
    %266 = vector.load %arg4[%c2_280, %c4_281, %c0_282, %c0_283] : memref<4x9x8x8xbf16, #tpu.memory_space<vmem>>, vector<1x1x8x8xbf16>
    %267 = vector.shape_cast %266 : vector<1x1x8x8xbf16> to vector<8x8xbf16>
    %cst_284 = arith.constant dense<0.000000e+00> : vector<256x8xf32>
    %268 = tpu.matmul %265, %267, %cst_284 {dimension_numbers = #tpu.dot_dimension_numbers<[1], [0], [0], [1], [0, 0, 1, 1], [], []>} : vector<256x8xbf16>, vector<8x8xbf16>, vector<256x8xf32> -> vector<256x8xf32>
    %269 = arith.addf %262, %268 : vector<256x8xf32>
    %c1_285 = arith.constant 1 : index
    %c9_286 = arith.constant 9 : index
    %c0_287 = arith.constant 0 : index
    %270 = vector.load %arg9[%c1_285, %c9_286, %c0_287] : memref<18x32x8xf32, #tpu.memory_space<vmem>>, vector<16x16x8xf32>
    %271 = vector.shape_cast %270 : vector<16x16x8xf32> to vector<256x8xf32>
    %272 = arith.truncf %271 : vector<256x8xf32> to vector<256x8xbf16>
    %c2_288 = arith.constant 2 : index
    %c5_289 = arith.constant 5 : index
    %c0_290 = arith.constant 0 : index
    %c0_291 = arith.constant 0 : index
    %273 = vector.load %arg4[%c2_288, %c5_289, %c0_290, %c0_291] : memref<4x9x8x8xbf16, #tpu.memory_space<vmem>>, vector<1x1x8x8xbf16>
    %274 = vector.shape_cast %273 : vector<1x1x8x8xbf16> to vector<8x8xbf16>
    %cst_292 = arith.constant dense<0.000000e+00> : vector<256x8xf32>
    %275 = tpu.matmul %272, %274, %cst_292 {dimension_numbers = #tpu.dot_dimension_numbers<[1], [0], [0], [1], [0, 0, 1, 1], [], []>} : vector<256x8xbf16>, vector<8x8xbf16>, vector<256x8xf32> -> vector<256x8xf32>
    %276 = arith.addf %269, %275 : vector<256x8xf32>
    %c2_293 = arith.constant 2 : index
    %c7_294 = arith.constant 7 : index
    %c0_295 = arith.constant 0 : index
    %277 = vector.load %arg9[%c2_293, %c7_294, %c0_295] : memref<18x32x8xf32, #tpu.memory_space<vmem>>, vector<16x16x8xf32>
    %278 = vector.shape_cast %277 : vector<16x16x8xf32> to vector<256x8xf32>
    %279 = arith.truncf %278 : vector<256x8xf32> to vector<256x8xbf16>
    %c2_296 = arith.constant 2 : index
    %c6_297 = arith.constant 6 : index
    %c0_298 = arith.constant 0 : index
    %c0_299 = arith.constant 0 : index
    %280 = vector.load %arg4[%c2_296, %c6_297, %c0_298, %c0_299] : memref<4x9x8x8xbf16, #tpu.memory_space<vmem>>, vector<1x1x8x8xbf16>
    %281 = vector.shape_cast %280 : vector<1x1x8x8xbf16> to vector<8x8xbf16>
    %cst_300 = arith.constant dense<0.000000e+00> : vector<256x8xf32>
    %282 = tpu.matmul %279, %281, %cst_300 {dimension_numbers = #tpu.dot_dimension_numbers<[1], [0], [0], [1], [0, 0, 1, 1], [], []>} : vector<256x8xbf16>, vector<8x8xbf16>, vector<256x8xf32> -> vector<256x8xf32>
    %283 = arith.addf %276, %282 : vector<256x8xf32>
    %c2_301 = arith.constant 2 : index
    %c8_302 = arith.constant 8 : index
    %c0_303 = arith.constant 0 : index
    %284 = vector.load %arg9[%c2_301, %c8_302, %c0_303] : memref<18x32x8xf32, #tpu.memory_space<vmem>>, vector<16x16x8xf32>
    %285 = vector.shape_cast %284 : vector<16x16x8xf32> to vector<256x8xf32>
    %286 = arith.truncf %285 : vector<256x8xf32> to vector<256x8xbf16>
    %c2_304 = arith.constant 2 : index
    %c7_305 = arith.constant 7 : index
    %c0_306 = arith.constant 0 : index
    %c0_307 = arith.constant 0 : index
    %287 = vector.load %arg4[%c2_304, %c7_305, %c0_306, %c0_307] : memref<4x9x8x8xbf16, #tpu.memory_space<vmem>>, vector<1x1x8x8xbf16>
    %288 = vector.shape_cast %287 : vector<1x1x8x8xbf16> to vector<8x8xbf16>
    %cst_308 = arith.constant dense<0.000000e+00> : vector<256x8xf32>
    %289 = tpu.matmul %286, %288, %cst_308 {dimension_numbers = #tpu.dot_dimension_numbers<[1], [0], [0], [1], [0, 0, 1, 1], [], []>} : vector<256x8xbf16>, vector<8x8xbf16>, vector<256x8xf32> -> vector<256x8xf32>
    %290 = arith.addf %283, %289 : vector<256x8xf32>
    %c2_309 = arith.constant 2 : index
    %c9_310 = arith.constant 9 : index
    %c0_311 = arith.constant 0 : index
    %291 = vector.load %arg9[%c2_309, %c9_310, %c0_311] : memref<18x32x8xf32, #tpu.memory_space<vmem>>, vector<16x16x8xf32>
    %292 = vector.shape_cast %291 : vector<16x16x8xf32> to vector<256x8xf32>
    %293 = arith.truncf %292 : vector<256x8xf32> to vector<256x8xbf16>
    %c2_312 = arith.constant 2 : index
    %c8_313 = arith.constant 8 : index
    %c0_314 = arith.constant 0 : index
    %c0_315 = arith.constant 0 : index
    %294 = vector.load %arg4[%c2_312, %c8_313, %c0_314, %c0_315] : memref<4x9x8x8xbf16, #tpu.memory_space<vmem>>, vector<1x1x8x8xbf16>
    %295 = vector.shape_cast %294 : vector<1x1x8x8xbf16> to vector<8x8xbf16>
    %cst_316 = arith.constant dense<0.000000e+00> : vector<256x8xf32>
    %296 = tpu.matmul %293, %295, %cst_316 {dimension_numbers = #tpu.dot_dimension_numbers<[1], [0], [0], [1], [0, 0, 1, 1], [], []>} : vector<256x8xbf16>, vector<8x8xbf16>, vector<256x8xf32> -> vector<256x8xf32>
    %297 = arith.addf %290, %296 : vector<256x8xf32>
    %298 = vector.broadcast %233 : vector<1x8xf32> to vector<256x8xf32>
    %299 = arith.addf %297, %298 : vector<256x8xf32>
    %cst_317 = arith.constant 0.000000e+00 : f32
    %300 = vector.broadcast %cst_317 : f32 to vector<256x8xf32>
    %301 = arith.maximumf %299, %300 : vector<256x8xf32>
    %302 = vector.shape_cast %301 : vector<256x8xf32> to vector<16x16x8xf32>
    %c1_318 = arith.constant 1 : index
    %c8_319 = arith.constant 8 : index
    %c0_320 = arith.constant 0 : index
    %303 = vector.load %arg10[%c1_318, %c8_319, %c0_320] : memref<18x32x8xf32, #tpu.memory_space<vmem>>, vector<16x16x8xf32>
    tpu.vector_store %arg10[%c1_318, %c8_319, %c0_320], %302 {strides = array<i32>} : memref<18x32x8xf32, #tpu.memory_space<vmem>>, vector<16x16x8xf32>,
    %c3_321 = arith.constant 3 : index
    %c0_322 = arith.constant 0 : index
    %c0_323 = arith.constant 0 : index
    %304 = vector.load %arg5[%c3_321, %c0_322, %c0_323] : memref<4x1x8xf32, #tpu.memory_space<vmem>>, vector<1x1x8xf32>
    %305 = vector.shape_cast %304 : vector<1x1x8xf32> to vector<1x8xf32>
    %cst_324 = arith.constant 0.000000e+00 : f32
    %306 = vector.broadcast %cst_324 : f32 to vector<256x8xf32>
    %c0_325 = arith.constant 0 : index
    %c7_326 = arith.constant 7 : index
    %c0_327 = arith.constant 0 : index
    %307 = vector.load %arg10[%c0_325, %c7_326, %c0_327] : memref<18x32x8xf32, #tpu.memory_space<vmem>>, vector<16x16x8xf32>
    %308 = vector.shape_cast %307 : vector<16x16x8xf32> to vector<256x8xf32>
    %309 = arith.truncf %308 : vector<256x8xf32> to vector<256x8xbf16>
    %c3_328 = arith.constant 3 : index
    %c0_329 = arith.constant 0 : index
    %c0_330 = arith.constant 0 : index
    %c0_331 = arith.constant 0 : index
    %310 = vector.load %arg4[%c3_328, %c0_329, %c0_330, %c0_331] : memref<4x9x8x8xbf16, #tpu.memory_space<vmem>>, vector<1x1x8x8xbf16>
    %311 = vector.shape_cast %310 : vector<1x1x8x8xbf16> to vector<8x8xbf16>
    %cst_332 = arith.constant dense<0.000000e+00> : vector<256x8xf32>
    %312 = tpu.matmul %309, %311, %cst_332 {dimension_numbers = #tpu.dot_dimension_numbers<[1], [0], [0], [1], [0, 0, 1, 1], [], []>} : vector<256x8xbf16>, vector<8x8xbf16>, vector<256x8xf32> -> vector<256x8xf32>
    %313 = arith.addf %306, %312 : vector<256x8xf32>
    %c0_333 = arith.constant 0 : index
    %c8_334 = arith.constant 8 : index
    %c0_335 = arith.constant 0 : index
    %314 = vector.load %arg10[%c0_333, %c8_334, %c0_335] : memref<18x32x8xf32, #tpu.memory_space<vmem>>, vector<16x16x8xf32>
    %315 = vector.shape_cast %314 : vector<16x16x8xf32> to vector<256x8xf32>
    %316 = arith.truncf %315 : vector<256x8xf32> to vector<256x8xbf16>
    %c3_336 = arith.constant 3 : index
    %c1_337 = arith.constant 1 : index
    %c0_338 = arith.constant 0 : index
    %c0_339 = arith.constant 0 : index
    %317 = vector.load %arg4[%c3_336, %c1_337, %c0_338, %c0_339] : memref<4x9x8x8xbf16, #tpu.memory_space<vmem>>, vector<1x1x8x8xbf16>
    %318 = vector.shape_cast %317 : vector<1x1x8x8xbf16> to vector<8x8xbf16>
    %cst_340 = arith.constant dense<0.000000e+00> : vector<256x8xf32>
    %319 = tpu.matmul %316, %318, %cst_340 {dimension_numbers = #tpu.dot_dimension_numbers<[1], [0], [0], [1], [0, 0, 1, 1], [], []>} : vector<256x8xbf16>, vector<8x8xbf16>, vector<256x8xf32> -> vector<256x8xf32>
    %320 = arith.addf %313, %319 : vector<256x8xf32>
    %c0_341 = arith.constant 0 : index
    %c9_342 = arith.constant 9 : index
    %c0_343 = arith.constant 0 : index
    %321 = vector.load %arg10[%c0_341, %c9_342, %c0_343] : memref<18x32x8xf32, #tpu.memory_space<vmem>>, vector<16x16x8xf32>
    %322 = vector.shape_cast %321 : vector<16x16x8xf32> to vector<256x8xf32>
    %323 = arith.truncf %322 : vector<256x8xf32> to vector<256x8xbf16>
    %c3_344 = arith.constant 3 : index
    %c2_345 = arith.constant 2 : index
    %c0_346 = arith.constant 0 : index
    %c0_347 = arith.constant 0 : index
    %324 = vector.load %arg4[%c3_344, %c2_345, %c0_346, %c0_347] : memref<4x9x8x8xbf16, #tpu.memory_space<vmem>>, vector<1x1x8x8xbf16>
    %325 = vector.shape_cast %324 : vector<1x1x8x8xbf16> to vector<8x8xbf16>
    %cst_348 = arith.constant dense<0.000000e+00> : vector<256x8xf32>
    %326 = tpu.matmul %323, %325, %cst_348 {dimension_numbers = #tpu.dot_dimension_numbers<[1], [0], [0], [1], [0, 0, 1, 1], [], []>} : vector<256x8xbf16>, vector<8x8xbf16>, vector<256x8xf32> -> vector<256x8xf32>
    %327 = arith.addf %320, %326 : vector<256x8xf32>
    %c1_349 = arith.constant 1 : index
    %c7_350 = arith.constant 7 : index
    %c0_351 = arith.constant 0 : index
    %328 = vector.load %arg10[%c1_349, %c7_350, %c0_351] : memref<18x32x8xf32, #tpu.memory_space<vmem>>, vector<16x16x8xf32>
    %329 = vector.shape_cast %328 : vector<16x16x8xf32> to vector<256x8xf32>
    %330 = arith.truncf %329 : vector<256x8xf32> to vector<256x8xbf16>
    %c3_352 = arith.constant 3 : index
    %c3_353 = arith.constant 3 : index
    %c0_354 = arith.constant 0 : index
    %c0_355 = arith.constant 0 : index
    %331 = vector.load %arg4[%c3_352, %c3_353, %c0_354, %c0_355] : memref<4x9x8x8xbf16, #tpu.memory_space<vmem>>, vector<1x1x8x8xbf16>
    %332 = vector.shape_cast %331 : vector<1x1x8x8xbf16> to vector<8x8xbf16>
    %cst_356 = arith.constant dense<0.000000e+00> : vector<256x8xf32>
    %333 = tpu.matmul %330, %332, %cst_356 {dimension_numbers = #tpu.dot_dimension_numbers<[1], [0], [0], [1], [0, 0, 1, 1], [], []>} : vector<256x8xbf16>, vector<8x8xbf16>, vector<256x8xf32> -> vector<256x8xf32>
    %334 = arith.addf %327, %333 : vector<256x8xf32>
    %c1_357 = arith.constant 1 : index
    %c8_358 = arith.constant 8 : index
    %c0_359 = arith.constant 0 : index
    %335 = vector.load %arg10[%c1_357, %c8_358, %c0_359] : memref<18x32x8xf32, #tpu.memory_space<vmem>>, vector<16x16x8xf32>
    %336 = vector.shape_cast %335 : vector<16x16x8xf32> to vector<256x8xf32>
    %337 = arith.truncf %336 : vector<256x8xf32> to vector<256x8xbf16>
    %c3_360 = arith.constant 3 : index
    %c4_361 = arith.constant 4 : index
    %c0_362 = arith.constant 0 : index
    %c0_363 = arith.constant 0 : index
    %338 = vector.load %arg4[%c3_360, %c4_361, %c0_362, %c0_363] : memref<4x9x8x8xbf16, #tpu.memory_space<vmem>>, vector<1x1x8x8xbf16>
    %339 = vector.shape_cast %338 : vector<1x1x8x8xbf16> to vector<8x8xbf16>
    %cst_364 = arith.constant dense<0.000000e+00> : vector<256x8xf32>
    %340 = tpu.matmul %337, %339, %cst_364 {dimension_numbers = #tpu.dot_dimension_numbers<[1], [0], [0], [1], [0, 0, 1, 1], [], []>} : vector<256x8xbf16>, vector<8x8xbf16>, vector<256x8xf32> -> vector<256x8xf32>
    %341 = arith.addf %334, %340 : vector<256x8xf32>
    %c1_365 = arith.constant 1 : index
    %c9_366 = arith.constant 9 : index
    %c0_367 = arith.constant 0 : index
    %342 = vector.load %arg10[%c1_365, %c9_366, %c0_367] : memref<18x32x8xf32, #tpu.memory_space<vmem>>, vector<16x16x8xf32>
    %343 = vector.shape_cast %342 : vector<16x16x8xf32> to vector<256x8xf32>
    %344 = arith.truncf %343 : vector<256x8xf32> to vector<256x8xbf16>
    %c3_368 = arith.constant 3 : index
    %c5_369 = arith.constant 5 : index
    %c0_370 = arith.constant 0 : index
    %c0_371 = arith.constant 0 : index
    %345 = vector.load %arg4[%c3_368, %c5_369, %c0_370, %c0_371] : memref<4x9x8x8xbf16, #tpu.memory_space<vmem>>, vector<1x1x8x8xbf16>
    %346 = vector.shape_cast %345 : vector<1x1x8x8xbf16> to vector<8x8xbf16>
    %cst_372 = arith.constant dense<0.000000e+00> : vector<256x8xf32>
    %347 = tpu.matmul %344, %346, %cst_372 {dimension_numbers = #tpu.dot_dimension_numbers<[1], [0], [0], [1], [0, 0, 1, 1], [], []>} : vector<256x8xbf16>, vector<8x8xbf16>, vector<256x8xf32> -> vector<256x8xf32>
    %348 = arith.addf %341, %347 : vector<256x8xf32>
    %c2_373 = arith.constant 2 : index
    %c7_374 = arith.constant 7 : index
    %c0_375 = arith.constant 0 : index
    %349 = vector.load %arg10[%c2_373, %c7_374, %c0_375] : memref<18x32x8xf32, #tpu.memory_space<vmem>>, vector<16x16x8xf32>
    %350 = vector.shape_cast %349 : vector<16x16x8xf32> to vector<256x8xf32>
    %351 = arith.truncf %350 : vector<256x8xf32> to vector<256x8xbf16>
    %c3_376 = arith.constant 3 : index
    %c6_377 = arith.constant 6 : index
    %c0_378 = arith.constant 0 : index
    %c0_379 = arith.constant 0 : index
    %352 = vector.load %arg4[%c3_376, %c6_377, %c0_378, %c0_379] : memref<4x9x8x8xbf16, #tpu.memory_space<vmem>>, vector<1x1x8x8xbf16>
    %353 = vector.shape_cast %352 : vector<1x1x8x8xbf16> to vector<8x8xbf16>
    %cst_380 = arith.constant dense<0.000000e+00> : vector<256x8xf32>
    %354 = tpu.matmul %351, %353, %cst_380 {dimension_numbers = #tpu.dot_dimension_numbers<[1], [0], [0], [1], [0, 0, 1, 1], [], []>} : vector<256x8xbf16>, vector<8x8xbf16>, vector<256x8xf32> -> vector<256x8xf32>
    %355 = arith.addf %348, %354 : vector<256x8xf32>
    %c2_381 = arith.constant 2 : index
    %c8_382 = arith.constant 8 : index
    %c0_383 = arith.constant 0 : index
    %356 = vector.load %arg10[%c2_381, %c8_382, %c0_383] : memref<18x32x8xf32, #tpu.memory_space<vmem>>, vector<16x16x8xf32>
    %357 = vector.shape_cast %356 : vector<16x16x8xf32> to vector<256x8xf32>
    %358 = arith.truncf %357 : vector<256x8xf32> to vector<256x8xbf16>
    %c3_384 = arith.constant 3 : index
    %c7_385 = arith.constant 7 : index
    %c0_386 = arith.constant 0 : index
    %c0_387 = arith.constant 0 : index
    %359 = vector.load %arg4[%c3_384, %c7_385, %c0_386, %c0_387] : memref<4x9x8x8xbf16, #tpu.memory_space<vmem>>, vector<1x1x8x8xbf16>
    %360 = vector.shape_cast %359 : vector<1x1x8x8xbf16> to vector<8x8xbf16>
    %cst_388 = arith.constant dense<0.000000e+00> : vector<256x8xf32>
    %361 = tpu.matmul %358, %360, %cst_388 {dimension_numbers = #tpu.dot_dimension_numbers<[1], [0], [0], [1], [0, 0, 1, 1], [], []>} : vector<256x8xbf16>, vector<8x8xbf16>, vector<256x8xf32> -> vector<256x8xf32>
    %362 = arith.addf %355, %361 : vector<256x8xf32>
    %c2_389 = arith.constant 2 : index
    %c9_390 = arith.constant 9 : index
    %c0_391 = arith.constant 0 : index
    %363 = vector.load %arg10[%c2_389, %c9_390, %c0_391] : memref<18x32x8xf32, #tpu.memory_space<vmem>>, vector<16x16x8xf32>
    %364 = vector.shape_cast %363 : vector<16x16x8xf32> to vector<256x8xf32>
    %365 = arith.truncf %364 : vector<256x8xf32> to vector<256x8xbf16>
    %c3_392 = arith.constant 3 : index
    %c8_393 = arith.constant 8 : index
    %c0_394 = arith.constant 0 : index
    %c0_395 = arith.constant 0 : index
    %366 = vector.load %arg4[%c3_392, %c8_393, %c0_394, %c0_395] : memref<4x9x8x8xbf16, #tpu.memory_space<vmem>>, vector<1x1x8x8xbf16>
    %367 = vector.shape_cast %366 : vector<1x1x8x8xbf16> to vector<8x8xbf16>
    %cst_396 = arith.constant dense<0.000000e+00> : vector<256x8xf32>
    %368 = tpu.matmul %365, %367, %cst_396 {dimension_numbers = #tpu.dot_dimension_numbers<[1], [0], [0], [1], [0, 0, 1, 1], [], []>} : vector<256x8xbf16>, vector<8x8xbf16>, vector<256x8xf32> -> vector<256x8xf32>
    %369 = arith.addf %362, %368 : vector<256x8xf32>
    %370 = vector.broadcast %305 : vector<1x8xf32> to vector<256x8xf32>
    %371 = arith.addf %369, %370 : vector<256x8xf32>
    %c1_397 = arith.constant 1 : index
    %c8_398 = arith.constant 8 : index
    %c0_399 = arith.constant 0 : index
    %372 = vector.load %arg9[%c1_397, %c8_398, %c0_399] : memref<18x32x8xf32, #tpu.memory_space<vmem>>, vector<16x16x8xf32>
    %373 = vector.shape_cast %372 : vector<16x16x8xf32> to vector<256x8xf32>
    %cst_400 = arith.constant 1.000000e+00 : f32
    %374 = vector.broadcast %cst_400 : f32 to vector<256x8xf32>
    %375 = arith.mulf %371, %374 : vector<256x8xf32>
    %376 = arith.addf %375, %373 : vector<256x8xf32>
    %377 = vector.shape_cast %376 : vector<256x8xf32> to vector<16x16x8xf32>
    %c1_401 = arith.constant 1 : index
    %c8_402 = arith.constant 8 : index
    %c0_403 = arith.constant 0 : index
    %378 = vector.load %arg9[%c1_401, %c8_402, %c0_403] : memref<18x32x8xf32, #tpu.memory_space<vmem>>, vector<16x16x8xf32>
    tpu.vector_store %arg9[%c1_401, %c8_402, %c0_403], %377 {strides = array<i32>} : memref<18x32x8xf32, #tpu.memory_space<vmem>>, vector<16x16x8xf32>,
    %c0_404 = arith.constant 0 : index
    %c0_405 = arith.constant 0 : index
    %379 = vector.load %arg7[%c0_404, %c0_405] : memref<1x8xf32, #tpu.memory_space<vmem>>, vector<1x8xf32>
    %cst_406 = arith.constant 0.000000e+00 : f32
    %380 = vector.broadcast %cst_406 : f32 to vector<256x8xf32>
    %c0_407 = arith.constant 0 : index
    %c7_408 = arith.constant 7 : index
    %c0_409 = arith.constant 0 : index
    %381 = vector.load %arg9[%c0_407, %c7_408, %c0_409] : memref<18x32x8xf32, #tpu.memory_space<vmem>>, vector<16x16x8xf32>
    %382 = vector.shape_cast %381 : vector<16x16x8xf32> to vector<256x8xf32>
    %383 = arith.truncf %382 : vector<256x8xf32> to vector<256x8xbf16>
    %c0_410 = arith.constant 0 : index
    %c0_411 = arith.constant 0 : index
    %c0_412 = arith.constant 0 : index
    %384 = vector.load %arg6[%c0_410, %c0_411, %c0_412] : memref<9x8x8xbf16, #tpu.memory_space<vmem>>, vector<1x8x8xbf16>
    %385 = vector.shape_cast %384 : vector<1x8x8xbf16> to vector<8x8xbf16>
    %cst_413 = arith.constant dense<0.000000e+00> : vector<256x8xf32>
    %386 = tpu.matmul %383, %385, %cst_413 {dimension_numbers = #tpu.dot_dimension_numbers<[1], [0], [0], [1], [0, 0, 1, 1], [], []>} : vector<256x8xbf16>, vector<8x8xbf16>, vector<256x8xf32> -> vector<256x8xf32>
    %387 = arith.addf %380, %386 : vector<256x8xf32>
    %c0_414 = arith.constant 0 : index
    %c8_415 = arith.constant 8 : index
    %c0_416 = arith.constant 0 : index
    %388 = vector.load %arg9[%c0_414, %c8_415, %c0_416] : memref<18x32x8xf32, #tpu.memory_space<vmem>>, vector<16x16x8xf32>
    %389 = vector.shape_cast %388 : vector<16x16x8xf32> to vector<256x8xf32>
    %390 = arith.truncf %389 : vector<256x8xf32> to vector<256x8xbf16>
    %c1_417 = arith.constant 1 : index
    %c0_418 = arith.constant 0 : index
    %c0_419 = arith.constant 0 : index
    %391 = vector.load %arg6[%c1_417, %c0_418, %c0_419] : memref<9x8x8xbf16, #tpu.memory_space<vmem>>, vector<1x8x8xbf16>
    %392 = vector.shape_cast %391 : vector<1x8x8xbf16> to vector<8x8xbf16>
    %cst_420 = arith.constant dense<0.000000e+00> : vector<256x8xf32>
    %393 = tpu.matmul %390, %392, %cst_420 {dimension_numbers = #tpu.dot_dimension_numbers<[1], [0], [0], [1], [0, 0, 1, 1], [], []>} : vector<256x8xbf16>, vector<8x8xbf16>, vector<256x8xf32> -> vector<256x8xf32>
    %394 = arith.addf %387, %393 : vector<256x8xf32>
    %c0_421 = arith.constant 0 : index
    %c9_422 = arith.constant 9 : index
    %c0_423 = arith.constant 0 : index
    %395 = vector.load %arg9[%c0_421, %c9_422, %c0_423] : memref<18x32x8xf32, #tpu.memory_space<vmem>>, vector<16x16x8xf32>
    %396 = vector.shape_cast %395 : vector<16x16x8xf32> to vector<256x8xf32>
    %397 = arith.truncf %396 : vector<256x8xf32> to vector<256x8xbf16>
    %c2_424 = arith.constant 2 : index
    %c0_425 = arith.constant 0 : index
    %c0_426 = arith.constant 0 : index
    %398 = vector.load %arg6[%c2_424, %c0_425, %c0_426] : memref<9x8x8xbf16, #tpu.memory_space<vmem>>, vector<1x8x8xbf16>
    %399 = vector.shape_cast %398 : vector<1x8x8xbf16> to vector<8x8xbf16>
    %cst_427 = arith.constant dense<0.000000e+00> : vector<256x8xf32>
    %400 = tpu.matmul %397, %399, %cst_427 {dimension_numbers = #tpu.dot_dimension_numbers<[1], [0], [0], [1], [0, 0, 1, 1], [], []>} : vector<256x8xbf16>, vector<8x8xbf16>, vector<256x8xf32> -> vector<256x8xf32>
    %401 = arith.addf %394, %400 : vector<256x8xf32>
    %c1_428 = arith.constant 1 : index
    %c7_429 = arith.constant 7 : index
    %c0_430 = arith.constant 0 : index
    %402 = vector.load %arg9[%c1_428, %c7_429, %c0_430] : memref<18x32x8xf32, #tpu.memory_space<vmem>>, vector<16x16x8xf32>
    %403 = vector.shape_cast %402 : vector<16x16x8xf32> to vector<256x8xf32>
    %404 = arith.truncf %403 : vector<256x8xf32> to vector<256x8xbf16>
    %c3_431 = arith.constant 3 : index
    %c0_432 = arith.constant 0 : index
    %c0_433 = arith.constant 0 : index
    %405 = vector.load %arg6[%c3_431, %c0_432, %c0_433] : memref<9x8x8xbf16, #tpu.memory_space<vmem>>, vector<1x8x8xbf16>
    %406 = vector.shape_cast %405 : vector<1x8x8xbf16> to vector<8x8xbf16>
    %cst_434 = arith.constant dense<0.000000e+00> : vector<256x8xf32>
    %407 = tpu.matmul %404, %406, %cst_434 {dimension_numbers = #tpu.dot_dimension_numbers<[1], [0], [0], [1], [0, 0, 1, 1], [], []>} : vector<256x8xbf16>, vector<8x8xbf16>, vector<256x8xf32> -> vector<256x8xf32>
    %408 = arith.addf %401, %407 : vector<256x8xf32>
    %c1_435 = arith.constant 1 : index
    %c8_436 = arith.constant 8 : index
    %c0_437 = arith.constant 0 : index
    %409 = vector.load %arg9[%c1_435, %c8_436, %c0_437] : memref<18x32x8xf32, #tpu.memory_space<vmem>>, vector<16x16x8xf32>
    %410 = vector.shape_cast %409 : vector<16x16x8xf32> to vector<256x8xf32>
    %411 = arith.truncf %410 : vector<256x8xf32> to vector<256x8xbf16>
    %c4_438 = arith.constant 4 : index
    %c0_439 = arith.constant 0 : index
    %c0_440 = arith.constant 0 : index
    %412 = vector.load %arg6[%c4_438, %c0_439, %c0_440] : memref<9x8x8xbf16, #tpu.memory_space<vmem>>, vector<1x8x8xbf16>
    %413 = vector.shape_cast %412 : vector<1x8x8xbf16> to vector<8x8xbf16>
    %cst_441 = arith.constant dense<0.000000e+00> : vector<256x8xf32>
    %414 = tpu.matmul %411, %413, %cst_441 {dimension_numbers = #tpu.dot_dimension_numbers<[1], [0], [0], [1], [0, 0, 1, 1], [], []>} : vector<256x8xbf16>, vector<8x8xbf16>, vector<256x8xf32> -> vector<256x8xf32>
    %415 = arith.addf %408, %414 : vector<256x8xf32>
    %c1_442 = arith.constant 1 : index
    %c9_443 = arith.constant 9 : index
    %c0_444 = arith.constant 0 : index
    %416 = vector.load %arg9[%c1_442, %c9_443, %c0_444] : memref<18x32x8xf32, #tpu.memory_space<vmem>>, vector<16x16x8xf32>
    %417 = vector.shape_cast %416 : vector<16x16x8xf32> to vector<256x8xf32>
    %418 = arith.truncf %417 : vector<256x8xf32> to vector<256x8xbf16>
    %c5_445 = arith.constant 5 : index
    %c0_446 = arith.constant 0 : index
    %c0_447 = arith.constant 0 : index
    %419 = vector.load %arg6[%c5_445, %c0_446, %c0_447] : memref<9x8x8xbf16, #tpu.memory_space<vmem>>, vector<1x8x8xbf16>
    %420 = vector.shape_cast %419 : vector<1x8x8xbf16> to vector<8x8xbf16>
    %cst_448 = arith.constant dense<0.000000e+00> : vector<256x8xf32>
    %421 = tpu.matmul %418, %420, %cst_448 {dimension_numbers = #tpu.dot_dimension_numbers<[1], [0], [0], [1], [0, 0, 1, 1], [], []>} : vector<256x8xbf16>, vector<8x8xbf16>, vector<256x8xf32> -> vector<256x8xf32>
    %422 = arith.addf %415, %421 : vector<256x8xf32>
    %c2_449 = arith.constant 2 : index
    %c7_450 = arith.constant 7 : index
    %c0_451 = arith.constant 0 : index
    %423 = vector.load %arg9[%c2_449, %c7_450, %c0_451] : memref<18x32x8xf32, #tpu.memory_space<vmem>>, vector<16x16x8xf32>
    %424 = vector.shape_cast %423 : vector<16x16x8xf32> to vector<256x8xf32>
    %425 = arith.truncf %424 : vector<256x8xf32> to vector<256x8xbf16>
    %c6_452 = arith.constant 6 : index
    %c0_453 = arith.constant 0 : index
    %c0_454 = arith.constant 0 : index
    %426 = vector.load %arg6[%c6_452, %c0_453, %c0_454] : memref<9x8x8xbf16, #tpu.memory_space<vmem>>, vector<1x8x8xbf16>
    %427 = vector.shape_cast %426 : vector<1x8x8xbf16> to vector<8x8xbf16>
    %cst_455 = arith.constant dense<0.000000e+00> : vector<256x8xf32>
    %428 = tpu.matmul %425, %427, %cst_455 {dimension_numbers = #tpu.dot_dimension_numbers<[1], [0], [0], [1], [0, 0, 1, 1], [], []>} : vector<256x8xbf16>, vector<8x8xbf16>, vector<256x8xf32> -> vector<256x8xf32>
    %429 = arith.addf %422, %428 : vector<256x8xf32>
    %c2_456 = arith.constant 2 : index
    %c8_457 = arith.constant 8 : index
    %c0_458 = arith.constant 0 : index
    %430 = vector.load %arg9[%c2_456, %c8_457, %c0_458] : memref<18x32x8xf32, #tpu.memory_space<vmem>>, vector<16x16x8xf32>
    %431 = vector.shape_cast %430 : vector<16x16x8xf32> to vector<256x8xf32>
    %432 = arith.truncf %431 : vector<256x8xf32> to vector<256x8xbf16>
    %c7_459 = arith.constant 7 : index
    %c0_460 = arith.constant 0 : index
    %c0_461 = arith.constant 0 : index
    %433 = vector.load %arg6[%c7_459, %c0_460, %c0_461] : memref<9x8x8xbf16, #tpu.memory_space<vmem>>, vector<1x8x8xbf16>
    %434 = vector.shape_cast %433 : vector<1x8x8xbf16> to vector<8x8xbf16>
    %cst_462 = arith.constant dense<0.000000e+00> : vector<256x8xf32>
    %435 = tpu.matmul %432, %434, %cst_462 {dimension_numbers = #tpu.dot_dimension_numbers<[1], [0], [0], [1], [0, 0, 1, 1], [], []>} : vector<256x8xbf16>, vector<8x8xbf16>, vector<256x8xf32> -> vector<256x8xf32>
    %436 = arith.addf %429, %435 : vector<256x8xf32>
    %c2_463 = arith.constant 2 : index
    %c9_464 = arith.constant 9 : index
    %c0_465 = arith.constant 0 : index
    %437 = vector.load %arg9[%c2_463, %c9_464, %c0_465] : memref<18x32x8xf32, #tpu.memory_space<vmem>>, vector<16x16x8xf32>
    %438 = vector.shape_cast %437 : vector<16x16x8xf32> to vector<256x8xf32>
    %439 = arith.truncf %438 : vector<256x8xf32> to vector<256x8xbf16>
    %c8_466 = arith.constant 8 : index
    %c0_467 = arith.constant 0 : index
    %c0_468 = arith.constant 0 : index
    %440 = vector.load %arg6[%c8_466, %c0_467, %c0_468] : memref<9x8x8xbf16, #tpu.memory_space<vmem>>, vector<1x8x8xbf16>
    %441 = vector.shape_cast %440 : vector<1x8x8xbf16> to vector<8x8xbf16>
    %cst_469 = arith.constant dense<0.000000e+00> : vector<256x8xf32>
    %442 = tpu.matmul %439, %441, %cst_469 {dimension_numbers = #tpu.dot_dimension_numbers<[1], [0], [0], [1], [0, 0, 1, 1], [], []>} : vector<256x8xbf16>, vector<8x8xbf16>, vector<256x8xf32> -> vector<256x8xf32>
    %443 = arith.addf %436, %442 : vector<256x8xf32>
    %444 = vector.broadcast %379 : vector<1x8xf32> to vector<256x8xf32>
    %445 = arith.addf %443, %444 : vector<256x8xf32>
    %c0_470 = arith.constant 0 : index
    %c0_471 = arith.constant 0 : index
    %446 = vector.load %arg11[%c0_470, %c0_471] : memref<256x8xf32, #tpu.memory_space<vmem>>, vector<256x8xf32>
    %447 = arith.addf %445, %446 : vector<256x8xf32>
    %448 = vector.shape_cast %447 : vector<256x8xf32> to vector<1x16x16x8xf32>
    %c0_472 = arith.constant 0 : index
    %c0_473 = arith.constant 0 : index
    %c0_474 = arith.constant 0 : index
    %c0_475 = arith.constant 0 : index
    %449 = vector.load %arg8[%c0_472, %c0_473, %c0_474, %c0_475] : memref<1x16x16x8xf32, #tpu.memory_space<vmem>>, vector<1x16x16x8xf32>
    tpu.vector_store %arg8[%c0_472, %c0_473, %c0_474, %c0_475], %448 {strides = array<i32>} : memref<1x16x16x8xf32, #tpu.memory_space<vmem>>, vector<1x16x16x8xf32>,
    return
  }
  func.func @transform_0(%arg0: i32) -> (i32, i32, i32, i32) {
    %c0_i32 = arith.constant 0 : i32
    %c0_i32_0 = arith.constant 0 : i32
    %c0_i32_1 = arith.constant 0 : i32
    %c0_i32_2 = arith.constant 0 : i32
    return %arg0, %c0_i32, %c0_i32_0, %c0_i32_1 : i32, i32, i32, i32
  }
  func.func @transform_1(%arg0: i32) -> (i32, i32, i32) {
    %c0_i32 = arith.constant 0 : i32
    %c0_i32_0 = arith.constant 0 : i32
    %c0_i32_1 = arith.constant 0 : i32
    %c0_i32_2 = arith.constant 0 : i32
    return %c0_i32, %c0_i32_0, %c0_i32_1 : i32, i32, i32
  }
  func.func @transform_2(%arg0: i32) -> (i32, i32) {
    %c0_i32 = arith.constant 0 : i32
    %c0_i32_0 = arith.constant 0 : i32
    %c0_i32_1 = arith.constant 0 : i32
    return %c0_i32, %c0_i32_0 : i32, i32
  }
  func.func @transform_3(%arg0: i32) -> (i32, i32, i32, i32) {
    %c0_i32 = arith.constant 0 : i32
    %c0_i32_0 = arith.constant 0 : i32
    %c0_i32_1 = arith.constant 0 : i32
    %c0_i32_2 = arith.constant 0 : i32
    %c0_i32_3 = arith.constant 0 : i32
    return %c0_i32, %c0_i32_0, %c0_i32_1, %c0_i32_2 : i32, i32, i32, i32
  }
  func.func @transform_4(%arg0: i32) -> (i32, i32, i32) {
    %c0_i32 = arith.constant 0 : i32
    %c0_i32_0 = arith.constant 0 : i32
    %c0_i32_1 = arith.constant 0 : i32
    %c0_i32_2 = arith.constant 0 : i32
    return %c0_i32, %c0_i32_0, %c0_i32_1 : i32, i32, i32
  }
  func.func @transform_5(%arg0: i32) -> (i32, i32, i32) {
    %c0_i32 = arith.constant 0 : i32
    %c0_i32_0 = arith.constant 0 : i32
    %c0_i32_1 = arith.constant 0 : i32
    %c0_i32_2 = arith.constant 0 : i32
    return %c0_i32, %c0_i32_0, %c0_i32_1 : i32, i32, i32
  }
  func.func @transform_6(%arg0: i32) -> (i32, i32) {
    %c0_i32 = arith.constant 0 : i32
    %c0_i32_0 = arith.constant 0 : i32
    %c0_i32_1 = arith.constant 0 : i32
    return %c0_i32, %c0_i32_0 : i32, i32
  }
  func.func @transform_7(%arg0: i32) -> (i32, i32, i32, i32) {
    %c0_i32 = arith.constant 0 : i32
    %c0_i32_0 = arith.constant 0 : i32
    %c0_i32_1 = arith.constant 0 : i32
    %c0_i32_2 = arith.constant 0 : i32
    return %arg0, %c0_i32, %c0_i32_0, %c0_i32_1 : i32, i32, i32, i32
  }
}

module attributes {stable_mosaic.version = 11 : i64} {
  func.func @kernel(%arg0: i32, %arg1: memref<4x9x9x8xf32, #tpu.memory_space<vmem>>, %arg2: memref<9x8x8xbf16, #tpu.memory_space<vmem>>, %arg3: memref<1x8xf32, #tpu.memory_space<vmem>>, %arg4: memref<9x8x8xbf16, #tpu.memory_space<vmem>>, %arg5: memref<1x8xf32, #tpu.memory_space<vmem>>, %arg6: memref<1x8x8x8xf32, #tpu.memory_space<vmem>>, %arg7: memref<10x24x8xf32, #tpu.memory_space<vmem>>) attributes {dimension_semantics = [#tpu.dimension_semantics<parallel>], iteration_bounds = array<i64: 2>, scalar_prefetch = 0 : i64, scratch_operands = 1 : i64, tpu.core_type = #tpu.core_type<tc>, window_params = [{transform_indices = @transform_0, window_bounds = array<i64: 4, 9, 9, 8>}, {pipeline_mode = #tpu.pipeline_mode<synchronous>, transform_indices = @transform_1, window_bounds = array<i64: 9, 8, 8>}, {pipeline_mode = #tpu.pipeline_mode<synchronous>, transform_indices = @transform_2, window_bounds = array<i64: 1, 8>}, {pipeline_mode = #tpu.pipeline_mode<synchronous>, transform_indices = @transform_3, window_bounds = array<i64: 9, 8, 8>}, {pipeline_mode = #tpu.pipeline_mode<synchronous>, transform_indices = @transform_4, window_bounds = array<i64: 1, 8>}, {transform_indices = @transform_5, window_bounds = array<i64: 1, 8, 8, 8>}]} {
    %cst = arith.constant 0.000000e+00 : f32
    %0 = vector.broadcast %cst : f32 to vector<10x24x8xf32>
    %c0 = arith.constant 0 : index
    %c0_0 = arith.constant 0 : index
    %c0_1 = arith.constant 0 : index
    %1 = vector.load %arg7[%c0, %c0_0, %c0_1] : memref<10x24x8xf32, #tpu.memory_space<vmem>>, vector<10x24x8xf32>
    tpu.vector_store %arg7[%c0, %c0_0, %c0_1], %0 {strides = array<i32>} : memref<10x24x8xf32, #tpu.memory_space<vmem>>, vector<10x24x8xf32>,
    %c0_2 = arith.constant 0 : index
    %c0_3 = arith.constant 0 : index
    %2 = vector.load %arg3[%c0_2, %c0_3] : memref<1x8xf32, #tpu.memory_space<vmem>>, vector<1x8xf32>
    %cst_4 = arith.constant 0.000000e+00 : f32
    %3 = vector.broadcast %cst_4 : f32 to vector<64x8xf32>
    %c0_5 = arith.constant 0 : index
    %c0_6 = arith.constant 0 : index
    %c0_7 = arith.constant 0 : index
    %c0_8 = arith.constant 0 : index
    %4 = vector.load %arg1[%c0_5, %c0_6, %c0_7, %c0_8] : memref<4x9x9x8xf32, #tpu.memory_space<vmem>>, vector<1x8x8x8xf32>
    %5 = vector.shape_cast %4 : vector<1x8x8x8xf32> to vector<8x8x8xf32>
    %6 = vector.shape_cast %5 : vector<8x8x8xf32> to vector<64x8xf32>
    %7 = arith.truncf %6 : vector<64x8xf32> to vector<64x8xbf16>
    %c0_9 = arith.constant 0 : index
    %c0_10 = arith.constant 0 : index
    %c0_11 = arith.constant 0 : index
    %8 = vector.load %arg2[%c0_9, %c0_10, %c0_11] : memref<9x8x8xbf16, #tpu.memory_space<vmem>>, vector<1x8x8xbf16>
    %9 = vector.shape_cast %8 : vector<1x8x8xbf16> to vector<8x8xbf16>
    %cst_12 = arith.constant dense<0.000000e+00> : vector<64x8xf32>
    %10 = tpu.matmul %7, %9, %cst_12 {dimension_numbers = #tpu.dot_dimension_numbers<[1], [0], [0], [1], [0, 0, 1, 1], [], []>} : vector<64x8xbf16>, vector<8x8xbf16>, vector<64x8xf32> -> vector<64x8xf32>
    %11 = arith.addf %3, %10 : vector<64x8xf32>
    %c1 = arith.constant 1 : index
    %c0_13 = arith.constant 0 : index
    %c0_14 = arith.constant 0 : index
    %c0_15 = arith.constant 0 : index
    %12 = vector.load %arg1[%c1, %c0_13, %c0_14, %c0_15] : memref<4x9x9x8xf32, #tpu.memory_space<vmem>>, vector<1x8x8x8xf32>
    %13 = vector.shape_cast %12 : vector<1x8x8x8xf32> to vector<8x8x8xf32>
    %14 = vector.shape_cast %13 : vector<8x8x8xf32> to vector<64x8xf32>
    %15 = arith.truncf %14 : vector<64x8xf32> to vector<64x8xbf16>
    %c1_16 = arith.constant 1 : index
    %c0_17 = arith.constant 0 : index
    %c0_18 = arith.constant 0 : index
    %16 = vector.load %arg2[%c1_16, %c0_17, %c0_18] : memref<9x8x8xbf16, #tpu.memory_space<vmem>>, vector<1x8x8xbf16>
    %17 = vector.shape_cast %16 : vector<1x8x8xbf16> to vector<8x8xbf16>
    %cst_19 = arith.constant dense<0.000000e+00> : vector<64x8xf32>
    %18 = tpu.matmul %15, %17, %cst_19 {dimension_numbers = #tpu.dot_dimension_numbers<[1], [0], [0], [1], [0, 0, 1, 1], [], []>} : vector<64x8xbf16>, vector<8x8xbf16>, vector<64x8xf32> -> vector<64x8xf32>
    %19 = arith.addf %11, %18 : vector<64x8xf32>
    %c0_20 = arith.constant 0 : index
    %c0_21 = arith.constant 0 : index
    %c1_22 = arith.constant 1 : index
    %c0_23 = arith.constant 0 : index
    %20 = vector.load %arg1[%c0_20, %c0_21, %c1_22, %c0_23] : memref<4x9x9x8xf32, #tpu.memory_space<vmem>>, vector<1x8x8x8xf32>
    %21 = vector.shape_cast %20 : vector<1x8x8x8xf32> to vector<8x8x8xf32>
    %22 = vector.shape_cast %21 : vector<8x8x8xf32> to vector<64x8xf32>
    %23 = arith.truncf %22 : vector<64x8xf32> to vector<64x8xbf16>
    %c2 = arith.constant 2 : index
    %c0_24 = arith.constant 0 : index
    %c0_25 = arith.constant 0 : index
    %24 = vector.load %arg2[%c2, %c0_24, %c0_25] : memref<9x8x8xbf16, #tpu.memory_space<vmem>>, vector<1x8x8xbf16>
    %25 = vector.shape_cast %24 : vector<1x8x8xbf16> to vector<8x8xbf16>
    %cst_26 = arith.constant dense<0.000000e+00> : vector<64x8xf32>
    %26 = tpu.matmul %23, %25, %cst_26 {dimension_numbers = #tpu.dot_dimension_numbers<[1], [0], [0], [1], [0, 0, 1, 1], [], []>} : vector<64x8xbf16>, vector<8x8xbf16>, vector<64x8xf32> -> vector<64x8xf32>
    %27 = arith.addf %19, %26 : vector<64x8xf32>
    %c2_27 = arith.constant 2 : index
    %c0_28 = arith.constant 0 : index
    %c0_29 = arith.constant 0 : index
    %c0_30 = arith.constant 0 : index
    %28 = vector.load %arg1[%c2_27, %c0_28, %c0_29, %c0_30] : memref<4x9x9x8xf32, #tpu.memory_space<vmem>>, vector<1x8x8x8xf32>
    %29 = vector.shape_cast %28 : vector<1x8x8x8xf32> to vector<8x8x8xf32>
    %30 = vector.shape_cast %29 : vector<8x8x8xf32> to vector<64x8xf32>
    %31 = arith.truncf %30 : vector<64x8xf32> to vector<64x8xbf16>
    %c3 = arith.constant 3 : index
    %c0_31 = arith.constant 0 : index
    %c0_32 = arith.constant 0 : index
    %32 = vector.load %arg2[%c3, %c0_31, %c0_32] : memref<9x8x8xbf16, #tpu.memory_space<vmem>>, vector<1x8x8xbf16>
    %33 = vector.shape_cast %32 : vector<1x8x8xbf16> to vector<8x8xbf16>
    %cst_33 = arith.constant dense<0.000000e+00> : vector<64x8xf32>
    %34 = tpu.matmul %31, %33, %cst_33 {dimension_numbers = #tpu.dot_dimension_numbers<[1], [0], [0], [1], [0, 0, 1, 1], [], []>} : vector<64x8xbf16>, vector<8x8xbf16>, vector<64x8xf32> -> vector<64x8xf32>
    %35 = arith.addf %27, %34 : vector<64x8xf32>
    %c3_34 = arith.constant 3 : index
    %c0_35 = arith.constant 0 : index
    %c0_36 = arith.constant 0 : index
    %c0_37 = arith.constant 0 : index
    %36 = vector.load %arg1[%c3_34, %c0_35, %c0_36, %c0_37] : memref<4x9x9x8xf32, #tpu.memory_space<vmem>>, vector<1x8x8x8xf32>
    %37 = vector.shape_cast %36 : vector<1x8x8x8xf32> to vector<8x8x8xf32>
    %38 = vector.shape_cast %37 : vector<8x8x8xf32> to vector<64x8xf32>
    %39 = arith.truncf %38 : vector<64x8xf32> to vector<64x8xbf16>
    %c4 = arith.constant 4 : index
    %c0_38 = arith.constant 0 : index
    %c0_39 = arith.constant 0 : index
    %40 = vector.load %arg2[%c4, %c0_38, %c0_39] : memref<9x8x8xbf16, #tpu.memory_space<vmem>>, vector<1x8x8xbf16>
    %41 = vector.shape_cast %40 : vector<1x8x8xbf16> to vector<8x8xbf16>
    %cst_40 = arith.constant dense<0.000000e+00> : vector<64x8xf32>
    %42 = tpu.matmul %39, %41, %cst_40 {dimension_numbers = #tpu.dot_dimension_numbers<[1], [0], [0], [1], [0, 0, 1, 1], [], []>} : vector<64x8xbf16>, vector<8x8xbf16>, vector<64x8xf32> -> vector<64x8xf32>
    %43 = arith.addf %35, %42 : vector<64x8xf32>
    %c2_41 = arith.constant 2 : index
    %c0_42 = arith.constant 0 : index
    %c1_43 = arith.constant 1 : index
    %c0_44 = arith.constant 0 : index
    %44 = vector.load %arg1[%c2_41, %c0_42, %c1_43, %c0_44] : memref<4x9x9x8xf32, #tpu.memory_space<vmem>>, vector<1x8x8x8xf32>
    %45 = vector.shape_cast %44 : vector<1x8x8x8xf32> to vector<8x8x8xf32>
    %46 = vector.shape_cast %45 : vector<8x8x8xf32> to vector<64x8xf32>
    %47 = arith.truncf %46 : vector<64x8xf32> to vector<64x8xbf16>
    %c5 = arith.constant 5 : index
    %c0_45 = arith.constant 0 : index
    %c0_46 = arith.constant 0 : index
    %48 = vector.load %arg2[%c5, %c0_45, %c0_46] : memref<9x8x8xbf16, #tpu.memory_space<vmem>>, vector<1x8x8xbf16>
    %49 = vector.shape_cast %48 : vector<1x8x8xbf16> to vector<8x8xbf16>
    %cst_47 = arith.constant dense<0.000000e+00> : vector<64x8xf32>
    %50 = tpu.matmul %47, %49, %cst_47 {dimension_numbers = #tpu.dot_dimension_numbers<[1], [0], [0], [1], [0, 0, 1, 1], [], []>} : vector<64x8xbf16>, vector<8x8xbf16>, vector<64x8xf32> -> vector<64x8xf32>
    %51 = arith.addf %43, %50 : vector<64x8xf32>
    %c0_48 = arith.constant 0 : index
    %c1_49 = arith.constant 1 : index
    %c0_50 = arith.constant 0 : index
    %c0_51 = arith.constant 0 : index
    %52 = vector.load %arg1[%c0_48, %c1_49, %c0_50, %c0_51] : memref<4x9x9x8xf32, #tpu.memory_space<vmem>>, vector<1x8x8x8xf32>
    %53 = vector.shape_cast %52 : vector<1x8x8x8xf32> to vector<8x8x8xf32>
    %54 = vector.shape_cast %53 : vector<8x8x8xf32> to vector<64x8xf32>
    %55 = arith.truncf %54 : vector<64x8xf32> to vector<64x8xbf16>
    %c6 = arith.constant 6 : index
    %c0_52 = arith.constant 0 : index
    %c0_53 = arith.constant 0 : index
    %56 = vector.load %arg2[%c6, %c0_52, %c0_53] : memref<9x8x8xbf16, #tpu.memory_space<vmem>>, vector<1x8x8xbf16>
    %57 = vector.shape_cast %56 : vector<1x8x8xbf16> to vector<8x8xbf16>
    %cst_54 = arith.constant dense<0.000000e+00> : vector<64x8xf32>
    %58 = tpu.matmul %55, %57, %cst_54 {dimension_numbers = #tpu.dot_dimension_numbers<[1], [0], [0], [1], [0, 0, 1, 1], [], []>} : vector<64x8xbf16>, vector<8x8xbf16>, vector<64x8xf32> -> vector<64x8xf32>
    %59 = arith.addf %51, %58 : vector<64x8xf32>
    %c1_55 = arith.constant 1 : index
    %c1_56 = arith.constant 1 : index
    %c0_57 = arith.constant 0 : index
    %c0_58 = arith.constant 0 : index
    %60 = vector.load %arg1[%c1_55, %c1_56, %c0_57, %c0_58] : memref<4x9x9x8xf32, #tpu.memory_space<vmem>>, vector<1x8x8x8xf32>
    %61 = vector.shape_cast %60 : vector<1x8x8x8xf32> to vector<8x8x8xf32>
    %62 = vector.shape_cast %61 : vector<8x8x8xf32> to vector<64x8xf32>
    %63 = arith.truncf %62 : vector<64x8xf32> to vector<64x8xbf16>
    %c7 = arith.constant 7 : index
    %c0_59 = arith.constant 0 : index
    %c0_60 = arith.constant 0 : index
    %64 = vector.load %arg2[%c7, %c0_59, %c0_60] : memref<9x8x8xbf16, #tpu.memory_space<vmem>>, vector<1x8x8xbf16>
    %65 = vector.shape_cast %64 : vector<1x8x8xbf16> to vector<8x8xbf16>
    %cst_61 = arith.constant dense<0.000000e+00> : vector<64x8xf32>
    %66 = tpu.matmul %63, %65, %cst_61 {dimension_numbers = #tpu.dot_dimension_numbers<[1], [0], [0], [1], [0, 0, 1, 1], [], []>} : vector<64x8xbf16>, vector<8x8xbf16>, vector<64x8xf32> -> vector<64x8xf32>
    %67 = arith.addf %59, %66 : vector<64x8xf32>
    %c0_62 = arith.constant 0 : index
    %c1_63 = arith.constant 1 : index
    %c1_64 = arith.constant 1 : index
    %c0_65 = arith.constant 0 : index
    %68 = vector.load %arg1[%c0_62, %c1_63, %c1_64, %c0_65] : memref<4x9x9x8xf32, #tpu.memory_space<vmem>>, vector<1x8x8x8xf32>
    %69 = vector.shape_cast %68 : vector<1x8x8x8xf32> to vector<8x8x8xf32>
    %70 = vector.shape_cast %69 : vector<8x8x8xf32> to vector<64x8xf32>
    %71 = arith.truncf %70 : vector<64x8xf32> to vector<64x8xbf16>
    %c8 = arith.constant 8 : index
    %c0_66 = arith.constant 0 : index
    %c0_67 = arith.constant 0 : index
    %72 = vector.load %arg2[%c8, %c0_66, %c0_67] : memref<9x8x8xbf16, #tpu.memory_space<vmem>>, vector<1x8x8xbf16>
    %73 = vector.shape_cast %72 : vector<1x8x8xbf16> to vector<8x8xbf16>
    %cst_68 = arith.constant dense<0.000000e+00> : vector<64x8xf32>
    %74 = tpu.matmul %71, %73, %cst_68 {dimension_numbers = #tpu.dot_dimension_numbers<[1], [0], [0], [1], [0, 0, 1, 1], [], []>} : vector<64x8xbf16>, vector<8x8xbf16>, vector<64x8xf32> -> vector<64x8xf32>
    %75 = arith.addf %67, %74 : vector<64x8xf32>
    %76 = vector.broadcast %2 : vector<1x8xf32> to vector<64x8xf32>
    %77 = arith.addf %75, %76 : vector<64x8xf32>
    %cst_69 = arith.constant 0.000000e+00 : f32
    %78 = vector.broadcast %cst_69 : f32 to vector<64x8xf32>
    %79 = arith.maximumf %77, %78 : vector<64x8xf32>
    %80 = vector.shape_cast %79 : vector<64x8xf32> to vector<8x8x8xf32>
    %c1_70 = arith.constant 1 : index
    %c8_71 = arith.constant 8 : index
    %c0_72 = arith.constant 0 : index
    %81 = vector.load %arg7[%c1_70, %c8_71, %c0_72] : memref<10x24x8xf32, #tpu.memory_space<vmem>>, vector<8x8x8xf32>
    tpu.vector_store %arg7[%c1_70, %c8_71, %c0_72], %80 {strides = array<i32>} : memref<10x24x8xf32, #tpu.memory_space<vmem>>, vector<8x8x8xf32>,
    %c0_73 = arith.constant 0 : index
    %c0_74 = arith.constant 0 : index
    %82 = vector.load %arg5[%c0_73, %c0_74] : memref<1x8xf32, #tpu.memory_space<vmem>>, vector<1x8xf32>
    %cst_75 = arith.constant 0.000000e+00 : f32
    %83 = vector.broadcast %cst_75 : f32 to vector<64x8xf32>
    %c0_76 = arith.constant 0 : index
    %c7_77 = arith.constant 7 : index
    %c0_78 = arith.constant 0 : index
    %84 = vector.load %arg7[%c0_76, %c7_77, %c0_78] : memref<10x24x8xf32, #tpu.memory_space<vmem>>, vector<8x8x8xf32>
    %85 = vector.shape_cast %84 : vector<8x8x8xf32> to vector<64x8xf32>
    %86 = arith.truncf %85 : vector<64x8xf32> to vector<64x8xbf16>
    %c0_79 = arith.constant 0 : index
    %c0_80 = arith.constant 0 : index
    %c0_81 = arith.constant 0 : index
    %87 = vector.load %arg4[%c0_79, %c0_80, %c0_81] : memref<9x8x8xbf16, #tpu.memory_space<vmem>>, vector<1x8x8xbf16>
    %88 = vector.shape_cast %87 : vector<1x8x8xbf16> to vector<8x8xbf16>
    %cst_82 = arith.constant dense<0.000000e+00> : vector<64x8xf32>
    %89 = tpu.matmul %86, %88, %cst_82 {dimension_numbers = #tpu.dot_dimension_numbers<[1], [0], [0], [1], [0, 0, 1, 1], [], []>} : vector<64x8xbf16>, vector<8x8xbf16>, vector<64x8xf32> -> vector<64x8xf32>
    %90 = arith.addf %83, %89 : vector<64x8xf32>
    %c0_83 = arith.constant 0 : index
    %c8_84 = arith.constant 8 : index
    %c0_85 = arith.constant 0 : index
    %91 = vector.load %arg7[%c0_83, %c8_84, %c0_85] : memref<10x24x8xf32, #tpu.memory_space<vmem>>, vector<8x8x8xf32>
    %92 = vector.shape_cast %91 : vector<8x8x8xf32> to vector<64x8xf32>
    %93 = arith.truncf %92 : vector<64x8xf32> to vector<64x8xbf16>
    %c1_86 = arith.constant 1 : index
    %c0_87 = arith.constant 0 : index
    %c0_88 = arith.constant 0 : index
    %94 = vector.load %arg4[%c1_86, %c0_87, %c0_88] : memref<9x8x8xbf16, #tpu.memory_space<vmem>>, vector<1x8x8xbf16>
    %95 = vector.shape_cast %94 : vector<1x8x8xbf16> to vector<8x8xbf16>
    %cst_89 = arith.constant dense<0.000000e+00> : vector<64x8xf32>
    %96 = tpu.matmul %93, %95, %cst_89 {dimension_numbers = #tpu.dot_dimension_numbers<[1], [0], [0], [1], [0, 0, 1, 1], [], []>} : vector<64x8xbf16>, vector<8x8xbf16>, vector<64x8xf32> -> vector<64x8xf32>
    %97 = arith.addf %90, %96 : vector<64x8xf32>
    %c0_90 = arith.constant 0 : index
    %c9 = arith.constant 9 : index
    %c0_91 = arith.constant 0 : index
    %98 = vector.load %arg7[%c0_90, %c9, %c0_91] : memref<10x24x8xf32, #tpu.memory_space<vmem>>, vector<8x8x8xf32>
    %99 = vector.shape_cast %98 : vector<8x8x8xf32> to vector<64x8xf32>
    %100 = arith.truncf %99 : vector<64x8xf32> to vector<64x8xbf16>
    %c2_92 = arith.constant 2 : index
    %c0_93 = arith.constant 0 : index
    %c0_94 = arith.constant 0 : index
    %101 = vector.load %arg4[%c2_92, %c0_93, %c0_94] : memref<9x8x8xbf16, #tpu.memory_space<vmem>>, vector<1x8x8xbf16>
    %102 = vector.shape_cast %101 : vector<1x8x8xbf16> to vector<8x8xbf16>
    %cst_95 = arith.constant dense<0.000000e+00> : vector<64x8xf32>
    %103 = tpu.matmul %100, %102, %cst_95 {dimension_numbers = #tpu.dot_dimension_numbers<[1], [0], [0], [1], [0, 0, 1, 1], [], []>} : vector<64x8xbf16>, vector<8x8xbf16>, vector<64x8xf32> -> vector<64x8xf32>
    %104 = arith.addf %97, %103 : vector<64x8xf32>
    %c1_96 = arith.constant 1 : index
    %c7_97 = arith.constant 7 : index
    %c0_98 = arith.constant 0 : index
    %105 = vector.load %arg7[%c1_96, %c7_97, %c0_98] : memref<10x24x8xf32, #tpu.memory_space<vmem>>, vector<8x8x8xf32>
    %106 = vector.shape_cast %105 : vector<8x8x8xf32> to vector<64x8xf32>
    %107 = arith.truncf %106 : vector<64x8xf32> to vector<64x8xbf16>
    %c3_99 = arith.constant 3 : index
    %c0_100 = arith.constant 0 : index
    %c0_101 = arith.constant 0 : index
    %108 = vector.load %arg4[%c3_99, %c0_100, %c0_101] : memref<9x8x8xbf16, #tpu.memory_space<vmem>>, vector<1x8x8xbf16>
    %109 = vector.shape_cast %108 : vector<1x8x8xbf16> to vector<8x8xbf16>
    %cst_102 = arith.constant dense<0.000000e+00> : vector<64x8xf32>
    %110 = tpu.matmul %107, %109, %cst_102 {dimension_numbers = #tpu.dot_dimension_numbers<[1], [0], [0], [1], [0, 0, 1, 1], [], []>} : vector<64x8xbf16>, vector<8x8xbf16>, vector<64x8xf32> -> vector<64x8xf32>
    %111 = arith.addf %104, %110 : vector<64x8xf32>
    %c1_103 = arith.constant 1 : index
    %c8_104 = arith.constant 8 : index
    %c0_105 = arith.constant 0 : index
    %112 = vector.load %arg7[%c1_103, %c8_104, %c0_105] : memref<10x24x8xf32, #tpu.memory_space<vmem>>, vector<8x8x8xf32>
    %113 = vector.shape_cast %112 : vector<8x8x8xf32> to vector<64x8xf32>
    %114 = arith.truncf %113 : vector<64x8xf32> to vector<64x8xbf16>
    %c4_106 = arith.constant 4 : index
    %c0_107 = arith.constant 0 : index
    %c0_108 = arith.constant 0 : index
    %115 = vector.load %arg4[%c4_106, %c0_107, %c0_108] : memref<9x8x8xbf16, #tpu.memory_space<vmem>>, vector<1x8x8xbf16>
    %116 = vector.shape_cast %115 : vector<1x8x8xbf16> to vector<8x8xbf16>
    %cst_109 = arith.constant dense<0.000000e+00> : vector<64x8xf32>
    %117 = tpu.matmul %114, %116, %cst_109 {dimension_numbers = #tpu.dot_dimension_numbers<[1], [0], [0], [1], [0, 0, 1, 1], [], []>} : vector<64x8xbf16>, vector<8x8xbf16>, vector<64x8xf32> -> vector<64x8xf32>
    %118 = arith.addf %111, %117 : vector<64x8xf32>
    %c1_110 = arith.constant 1 : index
    %c9_111 = arith.constant 9 : index
    %c0_112 = arith.constant 0 : index
    %119 = vector.load %arg7[%c1_110, %c9_111, %c0_112] : memref<10x24x8xf32, #tpu.memory_space<vmem>>, vector<8x8x8xf32>
    %120 = vector.shape_cast %119 : vector<8x8x8xf32> to vector<64x8xf32>
    %121 = arith.truncf %120 : vector<64x8xf32> to vector<64x8xbf16>
    %c5_113 = arith.constant 5 : index
    %c0_114 = arith.constant 0 : index
    %c0_115 = arith.constant 0 : index
    %122 = vector.load %arg4[%c5_113, %c0_114, %c0_115] : memref<9x8x8xbf16, #tpu.memory_space<vmem>>, vector<1x8x8xbf16>
    %123 = vector.shape_cast %122 : vector<1x8x8xbf16> to vector<8x8xbf16>
    %cst_116 = arith.constant dense<0.000000e+00> : vector<64x8xf32>
    %124 = tpu.matmul %121, %123, %cst_116 {dimension_numbers = #tpu.dot_dimension_numbers<[1], [0], [0], [1], [0, 0, 1, 1], [], []>} : vector<64x8xbf16>, vector<8x8xbf16>, vector<64x8xf32> -> vector<64x8xf32>
    %125 = arith.addf %118, %124 : vector<64x8xf32>
    %c2_117 = arith.constant 2 : index
    %c7_118 = arith.constant 7 : index
    %c0_119 = arith.constant 0 : index
    %126 = vector.load %arg7[%c2_117, %c7_118, %c0_119] : memref<10x24x8xf32, #tpu.memory_space<vmem>>, vector<8x8x8xf32>
    %127 = vector.shape_cast %126 : vector<8x8x8xf32> to vector<64x8xf32>
    %128 = arith.truncf %127 : vector<64x8xf32> to vector<64x8xbf16>
    %c6_120 = arith.constant 6 : index
    %c0_121 = arith.constant 0 : index
    %c0_122 = arith.constant 0 : index
    %129 = vector.load %arg4[%c6_120, %c0_121, %c0_122] : memref<9x8x8xbf16, #tpu.memory_space<vmem>>, vector<1x8x8xbf16>
    %130 = vector.shape_cast %129 : vector<1x8x8xbf16> to vector<8x8xbf16>
    %cst_123 = arith.constant dense<0.000000e+00> : vector<64x8xf32>
    %131 = tpu.matmul %128, %130, %cst_123 {dimension_numbers = #tpu.dot_dimension_numbers<[1], [0], [0], [1], [0, 0, 1, 1], [], []>} : vector<64x8xbf16>, vector<8x8xbf16>, vector<64x8xf32> -> vector<64x8xf32>
    %132 = arith.addf %125, %131 : vector<64x8xf32>
    %c2_124 = arith.constant 2 : index
    %c8_125 = arith.constant 8 : index
    %c0_126 = arith.constant 0 : index
    %133 = vector.load %arg7[%c2_124, %c8_125, %c0_126] : memref<10x24x8xf32, #tpu.memory_space<vmem>>, vector<8x8x8xf32>
    %134 = vector.shape_cast %133 : vector<8x8x8xf32> to vector<64x8xf32>
    %135 = arith.truncf %134 : vector<64x8xf32> to vector<64x8xbf16>
    %c7_127 = arith.constant 7 : index
    %c0_128 = arith.constant 0 : index
    %c0_129 = arith.constant 0 : index
    %136 = vector.load %arg4[%c7_127, %c0_128, %c0_129] : memref<9x8x8xbf16, #tpu.memory_space<vmem>>, vector<1x8x8xbf16>
    %137 = vector.shape_cast %136 : vector<1x8x8xbf16> to vector<8x8xbf16>
    %cst_130 = arith.constant dense<0.000000e+00> : vector<64x8xf32>
    %138 = tpu.matmul %135, %137, %cst_130 {dimension_numbers = #tpu.dot_dimension_numbers<[1], [0], [0], [1], [0, 0, 1, 1], [], []>} : vector<64x8xbf16>, vector<8x8xbf16>, vector<64x8xf32> -> vector<64x8xf32>
    %139 = arith.addf %132, %138 : vector<64x8xf32>
    %c2_131 = arith.constant 2 : index
    %c9_132 = arith.constant 9 : index
    %c0_133 = arith.constant 0 : index
    %140 = vector.load %arg7[%c2_131, %c9_132, %c0_133] : memref<10x24x8xf32, #tpu.memory_space<vmem>>, vector<8x8x8xf32>
    %141 = vector.shape_cast %140 : vector<8x8x8xf32> to vector<64x8xf32>
    %142 = arith.truncf %141 : vector<64x8xf32> to vector<64x8xbf16>
    %c8_134 = arith.constant 8 : index
    %c0_135 = arith.constant 0 : index
    %c0_136 = arith.constant 0 : index
    %143 = vector.load %arg4[%c8_134, %c0_135, %c0_136] : memref<9x8x8xbf16, #tpu.memory_space<vmem>>, vector<1x8x8xbf16>
    %144 = vector.shape_cast %143 : vector<1x8x8xbf16> to vector<8x8xbf16>
    %cst_137 = arith.constant dense<0.000000e+00> : vector<64x8xf32>
    %145 = tpu.matmul %142, %144, %cst_137 {dimension_numbers = #tpu.dot_dimension_numbers<[1], [0], [0], [1], [0, 0, 1, 1], [], []>} : vector<64x8xbf16>, vector<8x8xbf16>, vector<64x8xf32> -> vector<64x8xf32>
    %146 = arith.addf %139, %145 : vector<64x8xf32>
    %147 = vector.broadcast %82 : vector<1x8xf32> to vector<64x8xf32>
    %148 = arith.addf %146, %147 : vector<64x8xf32>
    %149 = vector.shape_cast %148 : vector<64x8xf32> to vector<1x8x8x8xf32>
    %c0_138 = arith.constant 0 : index
    %c0_139 = arith.constant 0 : index
    %c0_140 = arith.constant 0 : index
    %c0_141 = arith.constant 0 : index
    %150 = vector.load %arg6[%c0_138, %c0_139, %c0_140, %c0_141] : memref<1x8x8x8xf32, #tpu.memory_space<vmem>>, vector<1x8x8x8xf32>
    tpu.vector_store %arg6[%c0_138, %c0_139, %c0_140, %c0_141], %149 {strides = array<i32>} : memref<1x8x8x8xf32, #tpu.memory_space<vmem>>, vector<1x8x8x8xf32>,
    return
  }
  func.func @transform_0(%arg0: i32) -> (i32, i32, i32, i32) {
    %c0_i32 = arith.constant 0 : i32
    %c0_i32_0 = arith.constant 0 : i32
    %c0_i32_1 = arith.constant 0 : i32
    %c0_i32_2 = arith.constant 0 : i32
    return %arg0, %c0_i32, %c0_i32_0, %c0_i32_1 : i32, i32, i32, i32
  }
  func.func @transform_1(%arg0: i32) -> (i32, i32, i32) {
    %c0_i32 = arith.constant 0 : i32
    %c0_i32_0 = arith.constant 0 : i32
    %c0_i32_1 = arith.constant 0 : i32
    %c0_i32_2 = arith.constant 0 : i32
    return %c0_i32, %c0_i32_0, %c0_i32_1 : i32, i32, i32
  }
  func.func @transform_2(%arg0: i32) -> (i32, i32) {
    %c0_i32 = arith.constant 0 : i32
    %c0_i32_0 = arith.constant 0 : i32
    %c0_i32_1 = arith.constant 0 : i32
    return %c0_i32, %c0_i32_0 : i32, i32
  }
  func.func @transform_3(%arg0: i32) -> (i32, i32, i32) {
    %c0_i32 = arith.constant 0 : i32
    %c0_i32_0 = arith.constant 0 : i32
    %c0_i32_1 = arith.constant 0 : i32
    %c0_i32_2 = arith.constant 0 : i32
    return %c0_i32, %c0_i32_0, %c0_i32_1 : i32, i32, i32
  }
  func.func @transform_4(%arg0: i32) -> (i32, i32) {
    %c0_i32 = arith.constant 0 : i32
    %c0_i32_0 = arith.constant 0 : i32
    %c0_i32_1 = arith.constant 0 : i32
    return %c0_i32, %c0_i32_0 : i32, i32
  }
  func.func @transform_5(%arg0: i32) -> (i32, i32, i32, i32) {
    %c0_i32 = arith.constant 0 : i32
    %c0_i32_0 = arith.constant 0 : i32
    %c0_i32_1 = arith.constant 0 : i32
    %c0_i32_2 = arith.constant 0 : i32
    return %arg0, %c0_i32, %c0_i32_0, %c0_i32_1 : i32, i32, i32, i32
  }
}

module attributes {stable_mosaic.version = 11 : i64} {
  func.func @kernel(%arg0: i32, %arg1: memref<4x5x5x8xf32, #tpu.memory_space<vmem>>, %arg2: memref<9x8x8xbf16, #tpu.memory_space<vmem>>, %arg3: memref<1x8xf32, #tpu.memory_space<vmem>>, %arg4: memref<9x8x8xbf16, #tpu.memory_space<vmem>>, %arg5: memref<1x8xf32, #tpu.memory_space<vmem>>, %arg6: memref<1x4x4x8xf32, #tpu.memory_space<vmem>>, %arg7: memref<6x20x8xf32, #tpu.memory_space<vmem>>) attributes {dimension_semantics = [#tpu.dimension_semantics<parallel>], iteration_bounds = array<i64: 2>, scalar_prefetch = 0 : i64, scratch_operands = 1 : i64, tpu.core_type = #tpu.core_type<tc>, window_params = [{transform_indices = @transform_0, window_bounds = array<i64: 4, 5, 5, 8>}, {pipeline_mode = #tpu.pipeline_mode<synchronous>, transform_indices = @transform_1, window_bounds = array<i64: 9, 8, 8>}, {pipeline_mode = #tpu.pipeline_mode<synchronous>, transform_indices = @transform_2, window_bounds = array<i64: 1, 8>}, {pipeline_mode = #tpu.pipeline_mode<synchronous>, transform_indices = @transform_3, window_bounds = array<i64: 9, 8, 8>}, {pipeline_mode = #tpu.pipeline_mode<synchronous>, transform_indices = @transform_4, window_bounds = array<i64: 1, 8>}, {transform_indices = @transform_5, window_bounds = array<i64: 1, 4, 4, 8>}]} {
    %cst = arith.constant 0.000000e+00 : f32
    %0 = vector.broadcast %cst : f32 to vector<6x20x8xf32>
    %c0 = arith.constant 0 : index
    %c0_0 = arith.constant 0 : index
    %c0_1 = arith.constant 0 : index
    %1 = vector.load %arg7[%c0, %c0_0, %c0_1] : memref<6x20x8xf32, #tpu.memory_space<vmem>>, vector<6x20x8xf32>
    tpu.vector_store %arg7[%c0, %c0_0, %c0_1], %0 {strides = array<i32>} : memref<6x20x8xf32, #tpu.memory_space<vmem>>, vector<6x20x8xf32>,
    %c0_2 = arith.constant 0 : index
    %c0_3 = arith.constant 0 : index
    %2 = vector.load %arg3[%c0_2, %c0_3] : memref<1x8xf32, #tpu.memory_space<vmem>>, vector<1x8xf32>
    %cst_4 = arith.constant 0.000000e+00 : f32
    %3 = vector.broadcast %cst_4 : f32 to vector<16x8xf32>
    %c0_5 = arith.constant 0 : index
    %c0_6 = arith.constant 0 : index
    %c0_7 = arith.constant 0 : index
    %c0_8 = arith.constant 0 : index
    %4 = vector.load %arg1[%c0_5, %c0_6, %c0_7, %c0_8] : memref<4x5x5x8xf32, #tpu.memory_space<vmem>>, vector<1x4x4x8xf32>
    %5 = vector.shape_cast %4 : vector<1x4x4x8xf32> to vector<4x4x8xf32>
    %6 = vector.shape_cast %5 : vector<4x4x8xf32> to vector<16x8xf32>
    %7 = arith.truncf %6 : vector<16x8xf32> to vector<16x8xbf16>
    %c0_9 = arith.constant 0 : index
    %c0_10 = arith.constant 0 : index
    %c0_11 = arith.constant 0 : index
    %8 = vector.load %arg2[%c0_9, %c0_10, %c0_11] : memref<9x8x8xbf16, #tpu.memory_space<vmem>>, vector<1x8x8xbf16>
    %9 = vector.shape_cast %8 : vector<1x8x8xbf16> to vector<8x8xbf16>
    %cst_12 = arith.constant dense<0.000000e+00> : vector<16x8xf32>
    %10 = tpu.matmul %7, %9, %cst_12 {dimension_numbers = #tpu.dot_dimension_numbers<[1], [0], [0], [1], [0, 0, 1, 1], [], []>} : vector<16x8xbf16>, vector<8x8xbf16>, vector<16x8xf32> -> vector<16x8xf32>
    %11 = arith.addf %3, %10 : vector<16x8xf32>
    %c1 = arith.constant 1 : index
    %c0_13 = arith.constant 0 : index
    %c0_14 = arith.constant 0 : index
    %c0_15 = arith.constant 0 : index
    %12 = vector.load %arg1[%c1, %c0_13, %c0_14, %c0_15] : memref<4x5x5x8xf32, #tpu.memory_space<vmem>>, vector<1x4x4x8xf32>
    %13 = vector.shape_cast %12 : vector<1x4x4x8xf32> to vector<4x4x8xf32>
    %14 = vector.shape_cast %13 : vector<4x4x8xf32> to vector<16x8xf32>
    %15 = arith.truncf %14 : vector<16x8xf32> to vector<16x8xbf16>
    %c1_16 = arith.constant 1 : index
    %c0_17 = arith.constant 0 : index
    %c0_18 = arith.constant 0 : index
    %16 = vector.load %arg2[%c1_16, %c0_17, %c0_18] : memref<9x8x8xbf16, #tpu.memory_space<vmem>>, vector<1x8x8xbf16>
    %17 = vector.shape_cast %16 : vector<1x8x8xbf16> to vector<8x8xbf16>
    %cst_19 = arith.constant dense<0.000000e+00> : vector<16x8xf32>
    %18 = tpu.matmul %15, %17, %cst_19 {dimension_numbers = #tpu.dot_dimension_numbers<[1], [0], [0], [1], [0, 0, 1, 1], [], []>} : vector<16x8xbf16>, vector<8x8xbf16>, vector<16x8xf32> -> vector<16x8xf32>
    %19 = arith.addf %11, %18 : vector<16x8xf32>
    %c0_20 = arith.constant 0 : index
    %c0_21 = arith.constant 0 : index
    %c1_22 = arith.constant 1 : index
    %c0_23 = arith.constant 0 : index
    %20 = vector.load %arg1[%c0_20, %c0_21, %c1_22, %c0_23] : memref<4x5x5x8xf32, #tpu.memory_space<vmem>>, vector<1x4x4x8xf32>
    %21 = vector.shape_cast %20 : vector<1x4x4x8xf32> to vector<4x4x8xf32>
    %22 = vector.shape_cast %21 : vector<4x4x8xf32> to vector<16x8xf32>
    %23 = arith.truncf %22 : vector<16x8xf32> to vector<16x8xbf16>
    %c2 = arith.constant 2 : index
    %c0_24 = arith.constant 0 : index
    %c0_25 = arith.constant 0 : index
    %24 = vector.load %arg2[%c2, %c0_24, %c0_25] : memref<9x8x8xbf16, #tpu.memory_space<vmem>>, vector<1x8x8xbf16>
    %25 = vector.shape_cast %24 : vector<1x8x8xbf16> to vector<8x8xbf16>
    %cst_26 = arith.constant dense<0.000000e+00> : vector<16x8xf32>
    %26 = tpu.matmul %23, %25, %cst_26 {dimension_numbers = #tpu.dot_dimension_numbers<[1], [0], [0], [1], [0, 0, 1, 1], [], []>} : vector<16x8xbf16>, vector<8x8xbf16>, vector<16x8xf32> -> vector<16x8xf32>
    %27 = arith.addf %19, %26 : vector<16x8xf32>
    %c2_27 = arith.constant 2 : index
    %c0_28 = arith.constant 0 : index
    %c0_29 = arith.constant 0 : index
    %c0_30 = arith.constant 0 : index
    %28 = vector.load %arg1[%c2_27, %c0_28, %c0_29, %c0_30] : memref<4x5x5x8xf32, #tpu.memory_space<vmem>>, vector<1x4x4x8xf32>
    %29 = vector.shape_cast %28 : vector<1x4x4x8xf32> to vector<4x4x8xf32>
    %30 = vector.shape_cast %29 : vector<4x4x8xf32> to vector<16x8xf32>
    %31 = arith.truncf %30 : vector<16x8xf32> to vector<16x8xbf16>
    %c3 = arith.constant 3 : index
    %c0_31 = arith.constant 0 : index
    %c0_32 = arith.constant 0 : index
    %32 = vector.load %arg2[%c3, %c0_31, %c0_32] : memref<9x8x8xbf16, #tpu.memory_space<vmem>>, vector<1x8x8xbf16>
    %33 = vector.shape_cast %32 : vector<1x8x8xbf16> to vector<8x8xbf16>
    %cst_33 = arith.constant dense<0.000000e+00> : vector<16x8xf32>
    %34 = tpu.matmul %31, %33, %cst_33 {dimension_numbers = #tpu.dot_dimension_numbers<[1], [0], [0], [1], [0, 0, 1, 1], [], []>} : vector<16x8xbf16>, vector<8x8xbf16>, vector<16x8xf32> -> vector<16x8xf32>
    %35 = arith.addf %27, %34 : vector<16x8xf32>
    %c3_34 = arith.constant 3 : index
    %c0_35 = arith.constant 0 : index
    %c0_36 = arith.constant 0 : index
    %c0_37 = arith.constant 0 : index
    %36 = vector.load %arg1[%c3_34, %c0_35, %c0_36, %c0_37] : memref<4x5x5x8xf32, #tpu.memory_space<vmem>>, vector<1x4x4x8xf32>
    %37 = vector.shape_cast %36 : vector<1x4x4x8xf32> to vector<4x4x8xf32>
    %38 = vector.shape_cast %37 : vector<4x4x8xf32> to vector<16x8xf32>
    %39 = arith.truncf %38 : vector<16x8xf32> to vector<16x8xbf16>
    %c4 = arith.constant 4 : index
    %c0_38 = arith.constant 0 : index
    %c0_39 = arith.constant 0 : index
    %40 = vector.load %arg2[%c4, %c0_38, %c0_39] : memref<9x8x8xbf16, #tpu.memory_space<vmem>>, vector<1x8x8xbf16>
    %41 = vector.shape_cast %40 : vector<1x8x8xbf16> to vector<8x8xbf16>
    %cst_40 = arith.constant dense<0.000000e+00> : vector<16x8xf32>
    %42 = tpu.matmul %39, %41, %cst_40 {dimension_numbers = #tpu.dot_dimension_numbers<[1], [0], [0], [1], [0, 0, 1, 1], [], []>} : vector<16x8xbf16>, vector<8x8xbf16>, vector<16x8xf32> -> vector<16x8xf32>
    %43 = arith.addf %35, %42 : vector<16x8xf32>
    %c2_41 = arith.constant 2 : index
    %c0_42 = arith.constant 0 : index
    %c1_43 = arith.constant 1 : index
    %c0_44 = arith.constant 0 : index
    %44 = vector.load %arg1[%c2_41, %c0_42, %c1_43, %c0_44] : memref<4x5x5x8xf32, #tpu.memory_space<vmem>>, vector<1x4x4x8xf32>
    %45 = vector.shape_cast %44 : vector<1x4x4x8xf32> to vector<4x4x8xf32>
    %46 = vector.shape_cast %45 : vector<4x4x8xf32> to vector<16x8xf32>
    %47 = arith.truncf %46 : vector<16x8xf32> to vector<16x8xbf16>
    %c5 = arith.constant 5 : index
    %c0_45 = arith.constant 0 : index
    %c0_46 = arith.constant 0 : index
    %48 = vector.load %arg2[%c5, %c0_45, %c0_46] : memref<9x8x8xbf16, #tpu.memory_space<vmem>>, vector<1x8x8xbf16>
    %49 = vector.shape_cast %48 : vector<1x8x8xbf16> to vector<8x8xbf16>
    %cst_47 = arith.constant dense<0.000000e+00> : vector<16x8xf32>
    %50 = tpu.matmul %47, %49, %cst_47 {dimension_numbers = #tpu.dot_dimension_numbers<[1], [0], [0], [1], [0, 0, 1, 1], [], []>} : vector<16x8xbf16>, vector<8x8xbf16>, vector<16x8xf32> -> vector<16x8xf32>
    %51 = arith.addf %43, %50 : vector<16x8xf32>
    %c0_48 = arith.constant 0 : index
    %c1_49 = arith.constant 1 : index
    %c0_50 = arith.constant 0 : index
    %c0_51 = arith.constant 0 : index
    %52 = vector.load %arg1[%c0_48, %c1_49, %c0_50, %c0_51] : memref<4x5x5x8xf32, #tpu.memory_space<vmem>>, vector<1x4x4x8xf32>
    %53 = vector.shape_cast %52 : vector<1x4x4x8xf32> to vector<4x4x8xf32>
    %54 = vector.shape_cast %53 : vector<4x4x8xf32> to vector<16x8xf32>
    %55 = arith.truncf %54 : vector<16x8xf32> to vector<16x8xbf16>
    %c6 = arith.constant 6 : index
    %c0_52 = arith.constant 0 : index
    %c0_53 = arith.constant 0 : index
    %56 = vector.load %arg2[%c6, %c0_52, %c0_53] : memref<9x8x8xbf16, #tpu.memory_space<vmem>>, vector<1x8x8xbf16>
    %57 = vector.shape_cast %56 : vector<1x8x8xbf16> to vector<8x8xbf16>
    %cst_54 = arith.constant dense<0.000000e+00> : vector<16x8xf32>
    %58 = tpu.matmul %55, %57, %cst_54 {dimension_numbers = #tpu.dot_dimension_numbers<[1], [0], [0], [1], [0, 0, 1, 1], [], []>} : vector<16x8xbf16>, vector<8x8xbf16>, vector<16x8xf32> -> vector<16x8xf32>
    %59 = arith.addf %51, %58 : vector<16x8xf32>
    %c1_55 = arith.constant 1 : index
    %c1_56 = arith.constant 1 : index
    %c0_57 = arith.constant 0 : index
    %c0_58 = arith.constant 0 : index
    %60 = vector.load %arg1[%c1_55, %c1_56, %c0_57, %c0_58] : memref<4x5x5x8xf32, #tpu.memory_space<vmem>>, vector<1x4x4x8xf32>
    %61 = vector.shape_cast %60 : vector<1x4x4x8xf32> to vector<4x4x8xf32>
    %62 = vector.shape_cast %61 : vector<4x4x8xf32> to vector<16x8xf32>
    %63 = arith.truncf %62 : vector<16x8xf32> to vector<16x8xbf16>
    %c7 = arith.constant 7 : index
    %c0_59 = arith.constant 0 : index
    %c0_60 = arith.constant 0 : index
    %64 = vector.load %arg2[%c7, %c0_59, %c0_60] : memref<9x8x8xbf16, #tpu.memory_space<vmem>>, vector<1x8x8xbf16>
    %65 = vector.shape_cast %64 : vector<1x8x8xbf16> to vector<8x8xbf16>
    %cst_61 = arith.constant dense<0.000000e+00> : vector<16x8xf32>
    %66 = tpu.matmul %63, %65, %cst_61 {dimension_numbers = #tpu.dot_dimension_numbers<[1], [0], [0], [1], [0, 0, 1, 1], [], []>} : vector<16x8xbf16>, vector<8x8xbf16>, vector<16x8xf32> -> vector<16x8xf32>
    %67 = arith.addf %59, %66 : vector<16x8xf32>
    %c0_62 = arith.constant 0 : index
    %c1_63 = arith.constant 1 : index
    %c1_64 = arith.constant 1 : index
    %c0_65 = arith.constant 0 : index
    %68 = vector.load %arg1[%c0_62, %c1_63, %c1_64, %c0_65] : memref<4x5x5x8xf32, #tpu.memory_space<vmem>>, vector<1x4x4x8xf32>
    %69 = vector.shape_cast %68 : vector<1x4x4x8xf32> to vector<4x4x8xf32>
    %70 = vector.shape_cast %69 : vector<4x4x8xf32> to vector<16x8xf32>
    %71 = arith.truncf %70 : vector<16x8xf32> to vector<16x8xbf16>
    %c8 = arith.constant 8 : index
    %c0_66 = arith.constant 0 : index
    %c0_67 = arith.constant 0 : index
    %72 = vector.load %arg2[%c8, %c0_66, %c0_67] : memref<9x8x8xbf16, #tpu.memory_space<vmem>>, vector<1x8x8xbf16>
    %73 = vector.shape_cast %72 : vector<1x8x8xbf16> to vector<8x8xbf16>
    %cst_68 = arith.constant dense<0.000000e+00> : vector<16x8xf32>
    %74 = tpu.matmul %71, %73, %cst_68 {dimension_numbers = #tpu.dot_dimension_numbers<[1], [0], [0], [1], [0, 0, 1, 1], [], []>} : vector<16x8xbf16>, vector<8x8xbf16>, vector<16x8xf32> -> vector<16x8xf32>
    %75 = arith.addf %67, %74 : vector<16x8xf32>
    %76 = vector.broadcast %2 : vector<1x8xf32> to vector<16x8xf32>
    %77 = arith.addf %75, %76 : vector<16x8xf32>
    %cst_69 = arith.constant 0.000000e+00 : f32
    %78 = vector.broadcast %cst_69 : f32 to vector<16x8xf32>
    %79 = arith.maximumf %77, %78 : vector<16x8xf32>
    %80 = vector.shape_cast %79 : vector<16x8xf32> to vector<4x4x8xf32>
    %c1_70 = arith.constant 1 : index
    %c8_71 = arith.constant 8 : index
    %c0_72 = arith.constant 0 : index
    %81 = vector.load %arg7[%c1_70, %c8_71, %c0_72] : memref<6x20x8xf32, #tpu.memory_space<vmem>>, vector<4x4x8xf32>
    tpu.vector_store %arg7[%c1_70, %c8_71, %c0_72], %80 {strides = array<i32>} : memref<6x20x8xf32, #tpu.memory_space<vmem>>, vector<4x4x8xf32>,
    %c0_73 = arith.constant 0 : index
    %c0_74 = arith.constant 0 : index
    %82 = vector.load %arg5[%c0_73, %c0_74] : memref<1x8xf32, #tpu.memory_space<vmem>>, vector<1x8xf32>
    %cst_75 = arith.constant 0.000000e+00 : f32
    %83 = vector.broadcast %cst_75 : f32 to vector<16x8xf32>
    %c0_76 = arith.constant 0 : index
    %c7_77 = arith.constant 7 : index
    %c0_78 = arith.constant 0 : index
    %84 = vector.load %arg7[%c0_76, %c7_77, %c0_78] : memref<6x20x8xf32, #tpu.memory_space<vmem>>, vector<4x4x8xf32>
    %85 = vector.shape_cast %84 : vector<4x4x8xf32> to vector<16x8xf32>
    %86 = arith.truncf %85 : vector<16x8xf32> to vector<16x8xbf16>
    %c0_79 = arith.constant 0 : index
    %c0_80 = arith.constant 0 : index
    %c0_81 = arith.constant 0 : index
    %87 = vector.load %arg4[%c0_79, %c0_80, %c0_81] : memref<9x8x8xbf16, #tpu.memory_space<vmem>>, vector<1x8x8xbf16>
    %88 = vector.shape_cast %87 : vector<1x8x8xbf16> to vector<8x8xbf16>
    %cst_82 = arith.constant dense<0.000000e+00> : vector<16x8xf32>
    %89 = tpu.matmul %86, %88, %cst_82 {dimension_numbers = #tpu.dot_dimension_numbers<[1], [0], [0], [1], [0, 0, 1, 1], [], []>} : vector<16x8xbf16>, vector<8x8xbf16>, vector<16x8xf32> -> vector<16x8xf32>
    %90 = arith.addf %83, %89 : vector<16x8xf32>
    %c0_83 = arith.constant 0 : index
    %c8_84 = arith.constant 8 : index
    %c0_85 = arith.constant 0 : index
    %91 = vector.load %arg7[%c0_83, %c8_84, %c0_85] : memref<6x20x8xf32, #tpu.memory_space<vmem>>, vector<4x4x8xf32>
    %92 = vector.shape_cast %91 : vector<4x4x8xf32> to vector<16x8xf32>
    %93 = arith.truncf %92 : vector<16x8xf32> to vector<16x8xbf16>
    %c1_86 = arith.constant 1 : index
    %c0_87 = arith.constant 0 : index
    %c0_88 = arith.constant 0 : index
    %94 = vector.load %arg4[%c1_86, %c0_87, %c0_88] : memref<9x8x8xbf16, #tpu.memory_space<vmem>>, vector<1x8x8xbf16>
    %95 = vector.shape_cast %94 : vector<1x8x8xbf16> to vector<8x8xbf16>
    %cst_89 = arith.constant dense<0.000000e+00> : vector<16x8xf32>
    %96 = tpu.matmul %93, %95, %cst_89 {dimension_numbers = #tpu.dot_dimension_numbers<[1], [0], [0], [1], [0, 0, 1, 1], [], []>} : vector<16x8xbf16>, vector<8x8xbf16>, vector<16x8xf32> -> vector<16x8xf32>
    %97 = arith.addf %90, %96 : vector<16x8xf32>
    %c0_90 = arith.constant 0 : index
    %c9 = arith.constant 9 : index
    %c0_91 = arith.constant 0 : index
    %98 = vector.load %arg7[%c0_90, %c9, %c0_91] : memref<6x20x8xf32, #tpu.memory_space<vmem>>, vector<4x4x8xf32>
    %99 = vector.shape_cast %98 : vector<4x4x8xf32> to vector<16x8xf32>
    %100 = arith.truncf %99 : vector<16x8xf32> to vector<16x8xbf16>
    %c2_92 = arith.constant 2 : index
    %c0_93 = arith.constant 0 : index
    %c0_94 = arith.constant 0 : index
    %101 = vector.load %arg4[%c2_92, %c0_93, %c0_94] : memref<9x8x8xbf16, #tpu.memory_space<vmem>>, vector<1x8x8xbf16>
    %102 = vector.shape_cast %101 : vector<1x8x8xbf16> to vector<8x8xbf16>
    %cst_95 = arith.constant dense<0.000000e+00> : vector<16x8xf32>
    %103 = tpu.matmul %100, %102, %cst_95 {dimension_numbers = #tpu.dot_dimension_numbers<[1], [0], [0], [1], [0, 0, 1, 1], [], []>} : vector<16x8xbf16>, vector<8x8xbf16>, vector<16x8xf32> -> vector<16x8xf32>
    %104 = arith.addf %97, %103 : vector<16x8xf32>
    %c1_96 = arith.constant 1 : index
    %c7_97 = arith.constant 7 : index
    %c0_98 = arith.constant 0 : index
    %105 = vector.load %arg7[%c1_96, %c7_97, %c0_98] : memref<6x20x8xf32, #tpu.memory_space<vmem>>, vector<4x4x8xf32>
    %106 = vector.shape_cast %105 : vector<4x4x8xf32> to vector<16x8xf32>
    %107 = arith.truncf %106 : vector<16x8xf32> to vector<16x8xbf16>
    %c3_99 = arith.constant 3 : index
    %c0_100 = arith.constant 0 : index
    %c0_101 = arith.constant 0 : index
    %108 = vector.load %arg4[%c3_99, %c0_100, %c0_101] : memref<9x8x8xbf16, #tpu.memory_space<vmem>>, vector<1x8x8xbf16>
    %109 = vector.shape_cast %108 : vector<1x8x8xbf16> to vector<8x8xbf16>
    %cst_102 = arith.constant dense<0.000000e+00> : vector<16x8xf32>
    %110 = tpu.matmul %107, %109, %cst_102 {dimension_numbers = #tpu.dot_dimension_numbers<[1], [0], [0], [1], [0, 0, 1, 1], [], []>} : vector<16x8xbf16>, vector<8x8xbf16>, vector<16x8xf32> -> vector<16x8xf32>
    %111 = arith.addf %104, %110 : vector<16x8xf32>
    %c1_103 = arith.constant 1 : index
    %c8_104 = arith.constant 8 : index
    %c0_105 = arith.constant 0 : index
    %112 = vector.load %arg7[%c1_103, %c8_104, %c0_105] : memref<6x20x8xf32, #tpu.memory_space<vmem>>, vector<4x4x8xf32>
    %113 = vector.shape_cast %112 : vector<4x4x8xf32> to vector<16x8xf32>
    %114 = arith.truncf %113 : vector<16x8xf32> to vector<16x8xbf16>
    %c4_106 = arith.constant 4 : index
    %c0_107 = arith.constant 0 : index
    %c0_108 = arith.constant 0 : index
    %115 = vector.load %arg4[%c4_106, %c0_107, %c0_108] : memref<9x8x8xbf16, #tpu.memory_space<vmem>>, vector<1x8x8xbf16>
    %116 = vector.shape_cast %115 : vector<1x8x8xbf16> to vector<8x8xbf16>
    %cst_109 = arith.constant dense<0.000000e+00> : vector<16x8xf32>
    %117 = tpu.matmul %114, %116, %cst_109 {dimension_numbers = #tpu.dot_dimension_numbers<[1], [0], [0], [1], [0, 0, 1, 1], [], []>} : vector<16x8xbf16>, vector<8x8xbf16>, vector<16x8xf32> -> vector<16x8xf32>
    %118 = arith.addf %111, %117 : vector<16x8xf32>
    %c1_110 = arith.constant 1 : index
    %c9_111 = arith.constant 9 : index
    %c0_112 = arith.constant 0 : index
    %119 = vector.load %arg7[%c1_110, %c9_111, %c0_112] : memref<6x20x8xf32, #tpu.memory_space<vmem>>, vector<4x4x8xf32>
    %120 = vector.shape_cast %119 : vector<4x4x8xf32> to vector<16x8xf32>
    %121 = arith.truncf %120 : vector<16x8xf32> to vector<16x8xbf16>
    %c5_113 = arith.constant 5 : index
    %c0_114 = arith.constant 0 : index
    %c0_115 = arith.constant 0 : index
    %122 = vector.load %arg4[%c5_113, %c0_114, %c0_115] : memref<9x8x8xbf16, #tpu.memory_space<vmem>>, vector<1x8x8xbf16>
    %123 = vector.shape_cast %122 : vector<1x8x8xbf16> to vector<8x8xbf16>
    %cst_116 = arith.constant dense<0.000000e+00> : vector<16x8xf32>
    %124 = tpu.matmul %121, %123, %cst_116 {dimension_numbers = #tpu.dot_dimension_numbers<[1], [0], [0], [1], [0, 0, 1, 1], [], []>} : vector<16x8xbf16>, vector<8x8xbf16>, vector<16x8xf32> -> vector<16x8xf32>
    %125 = arith.addf %118, %124 : vector<16x8xf32>
    %c2_117 = arith.constant 2 : index
    %c7_118 = arith.constant 7 : index
    %c0_119 = arith.constant 0 : index
    %126 = vector.load %arg7[%c2_117, %c7_118, %c0_119] : memref<6x20x8xf32, #tpu.memory_space<vmem>>, vector<4x4x8xf32>
    %127 = vector.shape_cast %126 : vector<4x4x8xf32> to vector<16x8xf32>
    %128 = arith.truncf %127 : vector<16x8xf32> to vector<16x8xbf16>
    %c6_120 = arith.constant 6 : index
    %c0_121 = arith.constant 0 : index
    %c0_122 = arith.constant 0 : index
    %129 = vector.load %arg4[%c6_120, %c0_121, %c0_122] : memref<9x8x8xbf16, #tpu.memory_space<vmem>>, vector<1x8x8xbf16>
    %130 = vector.shape_cast %129 : vector<1x8x8xbf16> to vector<8x8xbf16>
    %cst_123 = arith.constant dense<0.000000e+00> : vector<16x8xf32>
    %131 = tpu.matmul %128, %130, %cst_123 {dimension_numbers = #tpu.dot_dimension_numbers<[1], [0], [0], [1], [0, 0, 1, 1], [], []>} : vector<16x8xbf16>, vector<8x8xbf16>, vector<16x8xf32> -> vector<16x8xf32>
    %132 = arith.addf %125, %131 : vector<16x8xf32>
    %c2_124 = arith.constant 2 : index
    %c8_125 = arith.constant 8 : index
    %c0_126 = arith.constant 0 : index
    %133 = vector.load %arg7[%c2_124, %c8_125, %c0_126] : memref<6x20x8xf32, #tpu.memory_space<vmem>>, vector<4x4x8xf32>
    %134 = vector.shape_cast %133 : vector<4x4x8xf32> to vector<16x8xf32>
    %135 = arith.truncf %134 : vector<16x8xf32> to vector<16x8xbf16>
    %c7_127 = arith.constant 7 : index
    %c0_128 = arith.constant 0 : index
    %c0_129 = arith.constant 0 : index
    %136 = vector.load %arg4[%c7_127, %c0_128, %c0_129] : memref<9x8x8xbf16, #tpu.memory_space<vmem>>, vector<1x8x8xbf16>
    %137 = vector.shape_cast %136 : vector<1x8x8xbf16> to vector<8x8xbf16>
    %cst_130 = arith.constant dense<0.000000e+00> : vector<16x8xf32>
    %138 = tpu.matmul %135, %137, %cst_130 {dimension_numbers = #tpu.dot_dimension_numbers<[1], [0], [0], [1], [0, 0, 1, 1], [], []>} : vector<16x8xbf16>, vector<8x8xbf16>, vector<16x8xf32> -> vector<16x8xf32>
    %139 = arith.addf %132, %138 : vector<16x8xf32>
    %c2_131 = arith.constant 2 : index
    %c9_132 = arith.constant 9 : index
    %c0_133 = arith.constant 0 : index
    %140 = vector.load %arg7[%c2_131, %c9_132, %c0_133] : memref<6x20x8xf32, #tpu.memory_space<vmem>>, vector<4x4x8xf32>
    %141 = vector.shape_cast %140 : vector<4x4x8xf32> to vector<16x8xf32>
    %142 = arith.truncf %141 : vector<16x8xf32> to vector<16x8xbf16>
    %c8_134 = arith.constant 8 : index
    %c0_135 = arith.constant 0 : index
    %c0_136 = arith.constant 0 : index
    %143 = vector.load %arg4[%c8_134, %c0_135, %c0_136] : memref<9x8x8xbf16, #tpu.memory_space<vmem>>, vector<1x8x8xbf16>
    %144 = vector.shape_cast %143 : vector<1x8x8xbf16> to vector<8x8xbf16>
    %cst_137 = arith.constant dense<0.000000e+00> : vector<16x8xf32>
    %145 = tpu.matmul %142, %144, %cst_137 {dimension_numbers = #tpu.dot_dimension_numbers<[1], [0], [0], [1], [0, 0, 1, 1], [], []>} : vector<16x8xbf16>, vector<8x8xbf16>, vector<16x8xf32> -> vector<16x8xf32>
    %146 = arith.addf %139, %145 : vector<16x8xf32>
    %147 = vector.broadcast %82 : vector<1x8xf32> to vector<16x8xf32>
    %148 = arith.addf %146, %147 : vector<16x8xf32>
    %149 = vector.shape_cast %148 : vector<16x8xf32> to vector<1x4x4x8xf32>
    %c0_138 = arith.constant 0 : index
    %c0_139 = arith.constant 0 : index
    %c0_140 = arith.constant 0 : index
    %c0_141 = arith.constant 0 : index
    %150 = vector.load %arg6[%c0_138, %c0_139, %c0_140, %c0_141] : memref<1x4x4x8xf32, #tpu.memory_space<vmem>>, vector<1x4x4x8xf32>
    tpu.vector_store %arg6[%c0_138, %c0_139, %c0_140, %c0_141], %149 {strides = array<i32>} : memref<1x4x4x8xf32, #tpu.memory_space<vmem>>, vector<1x4x4x8xf32>,
    return
  }
  func.func @transform_0(%arg0: i32) -> (i32, i32, i32, i32) {
    %c0_i32 = arith.constant 0 : i32
    %c0_i32_0 = arith.constant 0 : i32
    %c0_i32_1 = arith.constant 0 : i32
    %c0_i32_2 = arith.constant 0 : i32
    return %arg0, %c0_i32, %c0_i32_0, %c0_i32_1 : i32, i32, i32, i32
  }
  func.func @transform_1(%arg0: i32) -> (i32, i32, i32) {
    %c0_i32 = arith.constant 0 : i32
    %c0_i32_0 = arith.constant 0 : i32
    %c0_i32_1 = arith.constant 0 : i32
    %c0_i32_2 = arith.constant 0 : i32
    return %c0_i32, %c0_i32_0, %c0_i32_1 : i32, i32, i32
  }
  func.func @transform_2(%arg0: i32) -> (i32, i32) {
    %c0_i32 = arith.constant 0 : i32
    %c0_i32_0 = arith.constant 0 : i32
    %c0_i32_1 = arith.constant 0 : i32
    return %c0_i32, %c0_i32_0 : i32, i32
  }
  func.func @transform_3(%arg0: i32) -> (i32, i32, i32) {
    %c0_i32 = arith.constant 0 : i32
    %c0_i32_0 = arith.constant 0 : i32
    %c0_i32_1 = arith.constant 0 : i32
    %c0_i32_2 = arith.constant 0 : i32
    return %c0_i32, %c0_i32_0, %c0_i32_1 : i32, i32, i32
  }
  func.func @transform_4(%arg0: i32) -> (i32, i32) {
    %c0_i32 = arith.constant 0 : i32
    %c0_i32_0 = arith.constant 0 : i32
    %c0_i32_1 = arith.constant 0 : i32
    return %c0_i32, %c0_i32_0 : i32, i32
  }
  func.func @transform_5(%arg0: i32) -> (i32, i32, i32, i32) {
    %c0_i32 = arith.constant 0 : i32
    %c0_i32_0 = arith.constant 0 : i32
    %c0_i32_1 = arith.constant 0 : i32
    %c0_i32_2 = arith.constant 0 : i32
    return %arg0, %c0_i32, %c0_i32_0, %c0_i32_1 : i32, i32, i32, i32
  }
}

module attributes {stable_mosaic.version = 11 : i64} {
  func.func @kernel(%arg0: i32, %arg1: memref<4x3x3x8xf32, #tpu.memory_space<vmem>>, %arg2: memref<9x8x8xbf16, #tpu.memory_space<vmem>>, %arg3: memref<1x8xf32, #tpu.memory_space<vmem>>, %arg4: memref<9x8x8xbf16, #tpu.memory_space<vmem>>, %arg5: memref<1x8xf32, #tpu.memory_space<vmem>>, %arg6: memref<1x2x2x8xf32, #tpu.memory_space<vmem>>, %arg7: memref<4x18x8xf32, #tpu.memory_space<vmem>>) attributes {dimension_semantics = [#tpu.dimension_semantics<parallel>], iteration_bounds = array<i64: 2>, scalar_prefetch = 0 : i64, scratch_operands = 1 : i64, tpu.core_type = #tpu.core_type<tc>, window_params = [{transform_indices = @transform_0, window_bounds = array<i64: 4, 3, 3, 8>}, {pipeline_mode = #tpu.pipeline_mode<synchronous>, transform_indices = @transform_1, window_bounds = array<i64: 9, 8, 8>}, {pipeline_mode = #tpu.pipeline_mode<synchronous>, transform_indices = @transform_2, window_bounds = array<i64: 1, 8>}, {pipeline_mode = #tpu.pipeline_mode<synchronous>, transform_indices = @transform_3, window_bounds = array<i64: 9, 8, 8>}, {pipeline_mode = #tpu.pipeline_mode<synchronous>, transform_indices = @transform_4, window_bounds = array<i64: 1, 8>}, {transform_indices = @transform_5, window_bounds = array<i64: 1, 2, 2, 8>}]} {
    %cst = arith.constant 0.000000e+00 : f32
    %0 = vector.broadcast %cst : f32 to vector<4x18x8xf32>
    %c0 = arith.constant 0 : index
    %c0_0 = arith.constant 0 : index
    %c0_1 = arith.constant 0 : index
    %1 = vector.load %arg7[%c0, %c0_0, %c0_1] : memref<4x18x8xf32, #tpu.memory_space<vmem>>, vector<4x18x8xf32>
    tpu.vector_store %arg7[%c0, %c0_0, %c0_1], %0 {strides = array<i32>} : memref<4x18x8xf32, #tpu.memory_space<vmem>>, vector<4x18x8xf32>,
    %c0_2 = arith.constant 0 : index
    %c0_3 = arith.constant 0 : index
    %2 = vector.load %arg3[%c0_2, %c0_3] : memref<1x8xf32, #tpu.memory_space<vmem>>, vector<1x8xf32>
    %cst_4 = arith.constant 0.000000e+00 : f32
    %3 = vector.broadcast %cst_4 : f32 to vector<4x8xf32>
    %c0_5 = arith.constant 0 : index
    %c0_6 = arith.constant 0 : index
    %c0_7 = arith.constant 0 : index
    %c0_8 = arith.constant 0 : index
    %4 = vector.load %arg1[%c0_5, %c0_6, %c0_7, %c0_8] : memref<4x3x3x8xf32, #tpu.memory_space<vmem>>, vector<1x2x2x8xf32>
    %5 = vector.shape_cast %4 : vector<1x2x2x8xf32> to vector<2x2x8xf32>
    %6 = vector.shape_cast %5 : vector<2x2x8xf32> to vector<4x8xf32>
    %7 = arith.truncf %6 : vector<4x8xf32> to vector<4x8xbf16>
    %c0_9 = arith.constant 0 : index
    %c0_10 = arith.constant 0 : index
    %c0_11 = arith.constant 0 : index
    %8 = vector.load %arg2[%c0_9, %c0_10, %c0_11] : memref<9x8x8xbf16, #tpu.memory_space<vmem>>, vector<1x8x8xbf16>
    %9 = vector.shape_cast %8 : vector<1x8x8xbf16> to vector<8x8xbf16>
    %cst_12 = arith.constant dense<0.000000e+00> : vector<4x8xf32>
    %10 = tpu.matmul %7, %9, %cst_12 {dimension_numbers = #tpu.dot_dimension_numbers<[1], [0], [0], [1], [0, 0, 1, 1], [], []>} : vector<4x8xbf16>, vector<8x8xbf16>, vector<4x8xf32> -> vector<4x8xf32>
    %11 = arith.addf %3, %10 : vector<4x8xf32>
    %c1 = arith.constant 1 : index
    %c0_13 = arith.constant 0 : index
    %c0_14 = arith.constant 0 : index
    %c0_15 = arith.constant 0 : index
    %12 = vector.load %arg1[%c1, %c0_13, %c0_14, %c0_15] : memref<4x3x3x8xf32, #tpu.memory_space<vmem>>, vector<1x2x2x8xf32>
    %13 = vector.shape_cast %12 : vector<1x2x2x8xf32> to vector<2x2x8xf32>
    %14 = vector.shape_cast %13 : vector<2x2x8xf32> to vector<4x8xf32>
    %15 = arith.truncf %14 : vector<4x8xf32> to vector<4x8xbf16>
    %c1_16 = arith.constant 1 : index
    %c0_17 = arith.constant 0 : index
    %c0_18 = arith.constant 0 : index
    %16 = vector.load %arg2[%c1_16, %c0_17, %c0_18] : memref<9x8x8xbf16, #tpu.memory_space<vmem>>, vector<1x8x8xbf16>
    %17 = vector.shape_cast %16 : vector<1x8x8xbf16> to vector<8x8xbf16>
    %cst_19 = arith.constant dense<0.000000e+00> : vector<4x8xf32>
    %18 = tpu.matmul %15, %17, %cst_19 {dimension_numbers = #tpu.dot_dimension_numbers<[1], [0], [0], [1], [0, 0, 1, 1], [], []>} : vector<4x8xbf16>, vector<8x8xbf16>, vector<4x8xf32> -> vector<4x8xf32>
    %19 = arith.addf %11, %18 : vector<4x8xf32>
    %c0_20 = arith.constant 0 : index
    %c0_21 = arith.constant 0 : index
    %c1_22 = arith.constant 1 : index
    %c0_23 = arith.constant 0 : index
    %20 = vector.load %arg1[%c0_20, %c0_21, %c1_22, %c0_23] : memref<4x3x3x8xf32, #tpu.memory_space<vmem>>, vector<1x2x2x8xf32>
    %21 = vector.shape_cast %20 : vector<1x2x2x8xf32> to vector<2x2x8xf32>
    %22 = vector.shape_cast %21 : vector<2x2x8xf32> to vector<4x8xf32>
    %23 = arith.truncf %22 : vector<4x8xf32> to vector<4x8xbf16>
    %c2 = arith.constant 2 : index
    %c0_24 = arith.constant 0 : index
    %c0_25 = arith.constant 0 : index
    %24 = vector.load %arg2[%c2, %c0_24, %c0_25] : memref<9x8x8xbf16, #tpu.memory_space<vmem>>, vector<1x8x8xbf16>
    %25 = vector.shape_cast %24 : vector<1x8x8xbf16> to vector<8x8xbf16>
    %cst_26 = arith.constant dense<0.000000e+00> : vector<4x8xf32>
    %26 = tpu.matmul %23, %25, %cst_26 {dimension_numbers = #tpu.dot_dimension_numbers<[1], [0], [0], [1], [0, 0, 1, 1], [], []>} : vector<4x8xbf16>, vector<8x8xbf16>, vector<4x8xf32> -> vector<4x8xf32>
    %27 = arith.addf %19, %26 : vector<4x8xf32>
    %c2_27 = arith.constant 2 : index
    %c0_28 = arith.constant 0 : index
    %c0_29 = arith.constant 0 : index
    %c0_30 = arith.constant 0 : index
    %28 = vector.load %arg1[%c2_27, %c0_28, %c0_29, %c0_30] : memref<4x3x3x8xf32, #tpu.memory_space<vmem>>, vector<1x2x2x8xf32>
    %29 = vector.shape_cast %28 : vector<1x2x2x8xf32> to vector<2x2x8xf32>
    %30 = vector.shape_cast %29 : vector<2x2x8xf32> to vector<4x8xf32>
    %31 = arith.truncf %30 : vector<4x8xf32> to vector<4x8xbf16>
    %c3 = arith.constant 3 : index
    %c0_31 = arith.constant 0 : index
    %c0_32 = arith.constant 0 : index
    %32 = vector.load %arg2[%c3, %c0_31, %c0_32] : memref<9x8x8xbf16, #tpu.memory_space<vmem>>, vector<1x8x8xbf16>
    %33 = vector.shape_cast %32 : vector<1x8x8xbf16> to vector<8x8xbf16>
    %cst_33 = arith.constant dense<0.000000e+00> : vector<4x8xf32>
    %34 = tpu.matmul %31, %33, %cst_33 {dimension_numbers = #tpu.dot_dimension_numbers<[1], [0], [0], [1], [0, 0, 1, 1], [], []>} : vector<4x8xbf16>, vector<8x8xbf16>, vector<4x8xf32> -> vector<4x8xf32>
    %35 = arith.addf %27, %34 : vector<4x8xf32>
    %c3_34 = arith.constant 3 : index
    %c0_35 = arith.constant 0 : index
    %c0_36 = arith.constant 0 : index
    %c0_37 = arith.constant 0 : index
    %36 = vector.load %arg1[%c3_34, %c0_35, %c0_36, %c0_37] : memref<4x3x3x8xf32, #tpu.memory_space<vmem>>, vector<1x2x2x8xf32>
    %37 = vector.shape_cast %36 : vector<1x2x2x8xf32> to vector<2x2x8xf32>
    %38 = vector.shape_cast %37 : vector<2x2x8xf32> to vector<4x8xf32>
    %39 = arith.truncf %38 : vector<4x8xf32> to vector<4x8xbf16>
    %c4 = arith.constant 4 : index
    %c0_38 = arith.constant 0 : index
    %c0_39 = arith.constant 0 : index
    %40 = vector.load %arg2[%c4, %c0_38, %c0_39] : memref<9x8x8xbf16, #tpu.memory_space<vmem>>, vector<1x8x8xbf16>
    %41 = vector.shape_cast %40 : vector<1x8x8xbf16> to vector<8x8xbf16>
    %cst_40 = arith.constant dense<0.000000e+00> : vector<4x8xf32>
    %42 = tpu.matmul %39, %41, %cst_40 {dimension_numbers = #tpu.dot_dimension_numbers<[1], [0], [0], [1], [0, 0, 1, 1], [], []>} : vector<4x8xbf16>, vector<8x8xbf16>, vector<4x8xf32> -> vector<4x8xf32>
    %43 = arith.addf %35, %42 : vector<4x8xf32>
    %c2_41 = arith.constant 2 : index
    %c0_42 = arith.constant 0 : index
    %c1_43 = arith.constant 1 : index
    %c0_44 = arith.constant 0 : index
    %44 = vector.load %arg1[%c2_41, %c0_42, %c1_43, %c0_44] : memref<4x3x3x8xf32, #tpu.memory_space<vmem>>, vector<1x2x2x8xf32>
    %45 = vector.shape_cast %44 : vector<1x2x2x8xf32> to vector<2x2x8xf32>
    %46 = vector.shape_cast %45 : vector<2x2x8xf32> to vector<4x8xf32>
    %47 = arith.truncf %46 : vector<4x8xf32> to vector<4x8xbf16>
    %c5 = arith.constant 5 : index
    %c0_45 = arith.constant 0 : index
    %c0_46 = arith.constant 0 : index
    %48 = vector.load %arg2[%c5, %c0_45, %c0_46] : memref<9x8x8xbf16, #tpu.memory_space<vmem>>, vector<1x8x8xbf16>
    %49 = vector.shape_cast %48 : vector<1x8x8xbf16> to vector<8x8xbf16>
    %cst_47 = arith.constant dense<0.000000e+00> : vector<4x8xf32>
    %50 = tpu.matmul %47, %49, %cst_47 {dimension_numbers = #tpu.dot_dimension_numbers<[1], [0], [0], [1], [0, 0, 1, 1], [], []>} : vector<4x8xbf16>, vector<8x8xbf16>, vector<4x8xf32> -> vector<4x8xf32>
    %51 = arith.addf %43, %50 : vector<4x8xf32>
    %c0_48 = arith.constant 0 : index
    %c1_49 = arith.constant 1 : index
    %c0_50 = arith.constant 0 : index
    %c0_51 = arith.constant 0 : index
    %52 = vector.load %arg1[%c0_48, %c1_49, %c0_50, %c0_51] : memref<4x3x3x8xf32, #tpu.memory_space<vmem>>, vector<1x2x2x8xf32>
    %53 = vector.shape_cast %52 : vector<1x2x2x8xf32> to vector<2x2x8xf32>
    %54 = vector.shape_cast %53 : vector<2x2x8xf32> to vector<4x8xf32>
    %55 = arith.truncf %54 : vector<4x8xf32> to vector<4x8xbf16>
    %c6 = arith.constant 6 : index
    %c0_52 = arith.constant 0 : index
    %c0_53 = arith.constant 0 : index
    %56 = vector.load %arg2[%c6, %c0_52, %c0_53] : memref<9x8x8xbf16, #tpu.memory_space<vmem>>, vector<1x8x8xbf16>
    %57 = vector.shape_cast %56 : vector<1x8x8xbf16> to vector<8x8xbf16>
    %cst_54 = arith.constant dense<0.000000e+00> : vector<4x8xf32>
    %58 = tpu.matmul %55, %57, %cst_54 {dimension_numbers = #tpu.dot_dimension_numbers<[1], [0], [0], [1], [0, 0, 1, 1], [], []>} : vector<4x8xbf16>, vector<8x8xbf16>, vector<4x8xf32> -> vector<4x8xf32>
    %59 = arith.addf %51, %58 : vector<4x8xf32>
    %c1_55 = arith.constant 1 : index
    %c1_56 = arith.constant 1 : index
    %c0_57 = arith.constant 0 : index
    %c0_58 = arith.constant 0 : index
    %60 = vector.load %arg1[%c1_55, %c1_56, %c0_57, %c0_58] : memref<4x3x3x8xf32, #tpu.memory_space<vmem>>, vector<1x2x2x8xf32>
    %61 = vector.shape_cast %60 : vector<1x2x2x8xf32> to vector<2x2x8xf32>
    %62 = vector.shape_cast %61 : vector<2x2x8xf32> to vector<4x8xf32>
    %63 = arith.truncf %62 : vector<4x8xf32> to vector<4x8xbf16>
    %c7 = arith.constant 7 : index
    %c0_59 = arith.constant 0 : index
    %c0_60 = arith.constant 0 : index
    %64 = vector.load %arg2[%c7, %c0_59, %c0_60] : memref<9x8x8xbf16, #tpu.memory_space<vmem>>, vector<1x8x8xbf16>
    %65 = vector.shape_cast %64 : vector<1x8x8xbf16> to vector<8x8xbf16>
    %cst_61 = arith.constant dense<0.000000e+00> : vector<4x8xf32>
    %66 = tpu.matmul %63, %65, %cst_61 {dimension_numbers = #tpu.dot_dimension_numbers<[1], [0], [0], [1], [0, 0, 1, 1], [], []>} : vector<4x8xbf16>, vector<8x8xbf16>, vector<4x8xf32> -> vector<4x8xf32>
    %67 = arith.addf %59, %66 : vector<4x8xf32>
    %c0_62 = arith.constant 0 : index
    %c1_63 = arith.constant 1 : index
    %c1_64 = arith.constant 1 : index
    %c0_65 = arith.constant 0 : index
    %68 = vector.load %arg1[%c0_62, %c1_63, %c1_64, %c0_65] : memref<4x3x3x8xf32, #tpu.memory_space<vmem>>, vector<1x2x2x8xf32>
    %69 = vector.shape_cast %68 : vector<1x2x2x8xf32> to vector<2x2x8xf32>
    %70 = vector.shape_cast %69 : vector<2x2x8xf32> to vector<4x8xf32>
    %71 = arith.truncf %70 : vector<4x8xf32> to vector<4x8xbf16>
    %c8 = arith.constant 8 : index
    %c0_66 = arith.constant 0 : index
    %c0_67 = arith.constant 0 : index
    %72 = vector.load %arg2[%c8, %c0_66, %c0_67] : memref<9x8x8xbf16, #tpu.memory_space<vmem>>, vector<1x8x8xbf16>
    %73 = vector.shape_cast %72 : vector<1x8x8xbf16> to vector<8x8xbf16>
    %cst_68 = arith.constant dense<0.000000e+00> : vector<4x8xf32>
    %74 = tpu.matmul %71, %73, %cst_68 {dimension_numbers = #tpu.dot_dimension_numbers<[1], [0], [0], [1], [0, 0, 1, 1], [], []>} : vector<4x8xbf16>, vector<8x8xbf16>, vector<4x8xf32> -> vector<4x8xf32>
    %75 = arith.addf %67, %74 : vector<4x8xf32>
    %76 = vector.broadcast %2 : vector<1x8xf32> to vector<4x8xf32>
    %77 = arith.addf %75, %76 : vector<4x8xf32>
    %cst_69 = arith.constant 0.000000e+00 : f32
    %78 = vector.broadcast %cst_69 : f32 to vector<4x8xf32>
    %79 = arith.maximumf %77, %78 : vector<4x8xf32>
    %80 = vector.shape_cast %79 : vector<4x8xf32> to vector<2x2x8xf32>
    %c1_70 = arith.constant 1 : index
    %c8_71 = arith.constant 8 : index
    %c0_72 = arith.constant 0 : index
    %81 = vector.load %arg7[%c1_70, %c8_71, %c0_72] : memref<4x18x8xf32, #tpu.memory_space<vmem>>, vector<2x2x8xf32>
    tpu.vector_store %arg7[%c1_70, %c8_71, %c0_72], %80 {strides = array<i32>} : memref<4x18x8xf32, #tpu.memory_space<vmem>>, vector<2x2x8xf32>,
    %c0_73 = arith.constant 0 : index
    %c0_74 = arith.constant 0 : index
    %82 = vector.load %arg5[%c0_73, %c0_74] : memref<1x8xf32, #tpu.memory_space<vmem>>, vector<1x8xf32>
    %cst_75 = arith.constant 0.000000e+00 : f32
    %83 = vector.broadcast %cst_75 : f32 to vector<4x8xf32>
    %c0_76 = arith.constant 0 : index
    %c7_77 = arith.constant 7 : index
    %c0_78 = arith.constant 0 : index
    %84 = vector.load %arg7[%c0_76, %c7_77, %c0_78] : memref<4x18x8xf32, #tpu.memory_space<vmem>>, vector<2x2x8xf32>
    %85 = vector.shape_cast %84 : vector<2x2x8xf32> to vector<4x8xf32>
    %86 = arith.truncf %85 : vector<4x8xf32> to vector<4x8xbf16>
    %c0_79 = arith.constant 0 : index
    %c0_80 = arith.constant 0 : index
    %c0_81 = arith.constant 0 : index
    %87 = vector.load %arg4[%c0_79, %c0_80, %c0_81] : memref<9x8x8xbf16, #tpu.memory_space<vmem>>, vector<1x8x8xbf16>
    %88 = vector.shape_cast %87 : vector<1x8x8xbf16> to vector<8x8xbf16>
    %cst_82 = arith.constant dense<0.000000e+00> : vector<4x8xf32>
    %89 = tpu.matmul %86, %88, %cst_82 {dimension_numbers = #tpu.dot_dimension_numbers<[1], [0], [0], [1], [0, 0, 1, 1], [], []>} : vector<4x8xbf16>, vector<8x8xbf16>, vector<4x8xf32> -> vector<4x8xf32>
    %90 = arith.addf %83, %89 : vector<4x8xf32>
    %c0_83 = arith.constant 0 : index
    %c8_84 = arith.constant 8 : index
    %c0_85 = arith.constant 0 : index
    %91 = vector.load %arg7[%c0_83, %c8_84, %c0_85] : memref<4x18x8xf32, #tpu.memory_space<vmem>>, vector<2x2x8xf32>
    %92 = vector.shape_cast %91 : vector<2x2x8xf32> to vector<4x8xf32>
    %93 = arith.truncf %92 : vector<4x8xf32> to vector<4x8xbf16>
    %c1_86 = arith.constant 1 : index
    %c0_87 = arith.constant 0 : index
    %c0_88 = arith.constant 0 : index
    %94 = vector.load %arg4[%c1_86, %c0_87, %c0_88] : memref<9x8x8xbf16, #tpu.memory_space<vmem>>, vector<1x8x8xbf16>
    %95 = vector.shape_cast %94 : vector<1x8x8xbf16> to vector<8x8xbf16>
    %cst_89 = arith.constant dense<0.000000e+00> : vector<4x8xf32>
    %96 = tpu.matmul %93, %95, %cst_89 {dimension_numbers = #tpu.dot_dimension_numbers<[1], [0], [0], [1], [0, 0, 1, 1], [], []>} : vector<4x8xbf16>, vector<8x8xbf16>, vector<4x8xf32> -> vector<4x8xf32>
    %97 = arith.addf %90, %96 : vector<4x8xf32>
    %c0_90 = arith.constant 0 : index
    %c9 = arith.constant 9 : index
    %c0_91 = arith.constant 0 : index
    %98 = vector.load %arg7[%c0_90, %c9, %c0_91] : memref<4x18x8xf32, #tpu.memory_space<vmem>>, vector<2x2x8xf32>
    %99 = vector.shape_cast %98 : vector<2x2x8xf32> to vector<4x8xf32>
    %100 = arith.truncf %99 : vector<4x8xf32> to vector<4x8xbf16>
    %c2_92 = arith.constant 2 : index
    %c0_93 = arith.constant 0 : index
    %c0_94 = arith.constant 0 : index
    %101 = vector.load %arg4[%c2_92, %c0_93, %c0_94] : memref<9x8x8xbf16, #tpu.memory_space<vmem>>, vector<1x8x8xbf16>
    %102 = vector.shape_cast %101 : vector<1x8x8xbf16> to vector<8x8xbf16>
    %cst_95 = arith.constant dense<0.000000e+00> : vector<4x8xf32>
    %103 = tpu.matmul %100, %102, %cst_95 {dimension_numbers = #tpu.dot_dimension_numbers<[1], [0], [0], [1], [0, 0, 1, 1], [], []>} : vector<4x8xbf16>, vector<8x8xbf16>, vector<4x8xf32> -> vector<4x8xf32>
    %104 = arith.addf %97, %103 : vector<4x8xf32>
    %c1_96 = arith.constant 1 : index
    %c7_97 = arith.constant 7 : index
    %c0_98 = arith.constant 0 : index
    %105 = vector.load %arg7[%c1_96, %c7_97, %c0_98] : memref<4x18x8xf32, #tpu.memory_space<vmem>>, vector<2x2x8xf32>
    %106 = vector.shape_cast %105 : vector<2x2x8xf32> to vector<4x8xf32>
    %107 = arith.truncf %106 : vector<4x8xf32> to vector<4x8xbf16>
    %c3_99 = arith.constant 3 : index
    %c0_100 = arith.constant 0 : index
    %c0_101 = arith.constant 0 : index
    %108 = vector.load %arg4[%c3_99, %c0_100, %c0_101] : memref<9x8x8xbf16, #tpu.memory_space<vmem>>, vector<1x8x8xbf16>
    %109 = vector.shape_cast %108 : vector<1x8x8xbf16> to vector<8x8xbf16>
    %cst_102 = arith.constant dense<0.000000e+00> : vector<4x8xf32>
    %110 = tpu.matmul %107, %109, %cst_102 {dimension_numbers = #tpu.dot_dimension_numbers<[1], [0], [0], [1], [0, 0, 1, 1], [], []>} : vector<4x8xbf16>, vector<8x8xbf16>, vector<4x8xf32> -> vector<4x8xf32>
    %111 = arith.addf %104, %110 : vector<4x8xf32>
    %c1_103 = arith.constant 1 : index
    %c8_104 = arith.constant 8 : index
    %c0_105 = arith.constant 0 : index
    %112 = vector.load %arg7[%c1_103, %c8_104, %c0_105] : memref<4x18x8xf32, #tpu.memory_space<vmem>>, vector<2x2x8xf32>
    %113 = vector.shape_cast %112 : vector<2x2x8xf32> to vector<4x8xf32>
    %114 = arith.truncf %113 : vector<4x8xf32> to vector<4x8xbf16>
    %c4_106 = arith.constant 4 : index
    %c0_107 = arith.constant 0 : index
    %c0_108 = arith.constant 0 : index
    %115 = vector.load %arg4[%c4_106, %c0_107, %c0_108] : memref<9x8x8xbf16, #tpu.memory_space<vmem>>, vector<1x8x8xbf16>
    %116 = vector.shape_cast %115 : vector<1x8x8xbf16> to vector<8x8xbf16>
    %cst_109 = arith.constant dense<0.000000e+00> : vector<4x8xf32>
    %117 = tpu.matmul %114, %116, %cst_109 {dimension_numbers = #tpu.dot_dimension_numbers<[1], [0], [0], [1], [0, 0, 1, 1], [], []>} : vector<4x8xbf16>, vector<8x8xbf16>, vector<4x8xf32> -> vector<4x8xf32>
    %118 = arith.addf %111, %117 : vector<4x8xf32>
    %c1_110 = arith.constant 1 : index
    %c9_111 = arith.constant 9 : index
    %c0_112 = arith.constant 0 : index
    %119 = vector.load %arg7[%c1_110, %c9_111, %c0_112] : memref<4x18x8xf32, #tpu.memory_space<vmem>>, vector<2x2x8xf32>
    %120 = vector.shape_cast %119 : vector<2x2x8xf32> to vector<4x8xf32>
    %121 = arith.truncf %120 : vector<4x8xf32> to vector<4x8xbf16>
    %c5_113 = arith.constant 5 : index
    %c0_114 = arith.constant 0 : index
    %c0_115 = arith.constant 0 : index
    %122 = vector.load %arg4[%c5_113, %c0_114, %c0_115] : memref<9x8x8xbf16, #tpu.memory_space<vmem>>, vector<1x8x8xbf16>
    %123 = vector.shape_cast %122 : vector<1x8x8xbf16> to vector<8x8xbf16>
    %cst_116 = arith.constant dense<0.000000e+00> : vector<4x8xf32>
    %124 = tpu.matmul %121, %123, %cst_116 {dimension_numbers = #tpu.dot_dimension_numbers<[1], [0], [0], [1], [0, 0, 1, 1], [], []>} : vector<4x8xbf16>, vector<8x8xbf16>, vector<4x8xf32> -> vector<4x8xf32>
    %125 = arith.addf %118, %124 : vector<4x8xf32>
    %c2_117 = arith.constant 2 : index
    %c7_118 = arith.constant 7 : index
    %c0_119 = arith.constant 0 : index
    %126 = vector.load %arg7[%c2_117, %c7_118, %c0_119] : memref<4x18x8xf32, #tpu.memory_space<vmem>>, vector<2x2x8xf32>
    %127 = vector.shape_cast %126 : vector<2x2x8xf32> to vector<4x8xf32>
    %128 = arith.truncf %127 : vector<4x8xf32> to vector<4x8xbf16>
    %c6_120 = arith.constant 6 : index
    %c0_121 = arith.constant 0 : index
    %c0_122 = arith.constant 0 : index
    %129 = vector.load %arg4[%c6_120, %c0_121, %c0_122] : memref<9x8x8xbf16, #tpu.memory_space<vmem>>, vector<1x8x8xbf16>
    %130 = vector.shape_cast %129 : vector<1x8x8xbf16> to vector<8x8xbf16>
    %cst_123 = arith.constant dense<0.000000e+00> : vector<4x8xf32>
    %131 = tpu.matmul %128, %130, %cst_123 {dimension_numbers = #tpu.dot_dimension_numbers<[1], [0], [0], [1], [0, 0, 1, 1], [], []>} : vector<4x8xbf16>, vector<8x8xbf16>, vector<4x8xf32> -> vector<4x8xf32>
    %132 = arith.addf %125, %131 : vector<4x8xf32>
    %c2_124 = arith.constant 2 : index
    %c8_125 = arith.constant 8 : index
    %c0_126 = arith.constant 0 : index
    %133 = vector.load %arg7[%c2_124, %c8_125, %c0_126] : memref<4x18x8xf32, #tpu.memory_space<vmem>>, vector<2x2x8xf32>
    %134 = vector.shape_cast %133 : vector<2x2x8xf32> to vector<4x8xf32>
    %135 = arith.truncf %134 : vector<4x8xf32> to vector<4x8xbf16>
    %c7_127 = arith.constant 7 : index
    %c0_128 = arith.constant 0 : index
    %c0_129 = arith.constant 0 : index
    %136 = vector.load %arg4[%c7_127, %c0_128, %c0_129] : memref<9x8x8xbf16, #tpu.memory_space<vmem>>, vector<1x8x8xbf16>
    %137 = vector.shape_cast %136 : vector<1x8x8xbf16> to vector<8x8xbf16>
    %cst_130 = arith.constant dense<0.000000e+00> : vector<4x8xf32>
    %138 = tpu.matmul %135, %137, %cst_130 {dimension_numbers = #tpu.dot_dimension_numbers<[1], [0], [0], [1], [0, 0, 1, 1], [], []>} : vector<4x8xbf16>, vector<8x8xbf16>, vector<4x8xf32> -> vector<4x8xf32>
    %139 = arith.addf %132, %138 : vector<4x8xf32>
    %c2_131 = arith.constant 2 : index
    %c9_132 = arith.constant 9 : index
    %c0_133 = arith.constant 0 : index
    %140 = vector.load %arg7[%c2_131, %c9_132, %c0_133] : memref<4x18x8xf32, #tpu.memory_space<vmem>>, vector<2x2x8xf32>
    %141 = vector.shape_cast %140 : vector<2x2x8xf32> to vector<4x8xf32>
    %142 = arith.truncf %141 : vector<4x8xf32> to vector<4x8xbf16>
    %c8_134 = arith.constant 8 : index
    %c0_135 = arith.constant 0 : index
    %c0_136 = arith.constant 0 : index
    %143 = vector.load %arg4[%c8_134, %c0_135, %c0_136] : memref<9x8x8xbf16, #tpu.memory_space<vmem>>, vector<1x8x8xbf16>
    %144 = vector.shape_cast %143 : vector<1x8x8xbf16> to vector<8x8xbf16>
    %cst_137 = arith.constant dense<0.000000e+00> : vector<4x8xf32>
    %145 = tpu.matmul %142, %144, %cst_137 {dimension_numbers = #tpu.dot_dimension_numbers<[1], [0], [0], [1], [0, 0, 1, 1], [], []>} : vector<4x8xbf16>, vector<8x8xbf16>, vector<4x8xf32> -> vector<4x8xf32>
    %146 = arith.addf %139, %145 : vector<4x8xf32>
    %147 = vector.broadcast %82 : vector<1x8xf32> to vector<4x8xf32>
    %148 = arith.addf %146, %147 : vector<4x8xf32>
    %149 = vector.shape_cast %148 : vector<4x8xf32> to vector<1x2x2x8xf32>
    %c0_138 = arith.constant 0 : index
    %c0_139 = arith.constant 0 : index
    %c0_140 = arith.constant 0 : index
    %c0_141 = arith.constant 0 : index
    %150 = vector.load %arg6[%c0_138, %c0_139, %c0_140, %c0_141] : memref<1x2x2x8xf32, #tpu.memory_space<vmem>>, vector<1x2x2x8xf32>
    tpu.vector_store %arg6[%c0_138, %c0_139, %c0_140, %c0_141], %149 {strides = array<i32>} : memref<1x2x2x8xf32, #tpu.memory_space<vmem>>, vector<1x2x2x8xf32>,
    return
  }
  func.func @transform_0(%arg0: i32) -> (i32, i32, i32, i32) {
    %c0_i32 = arith.constant 0 : i32
    %c0_i32_0 = arith.constant 0 : i32
    %c0_i32_1 = arith.constant 0 : i32
    %c0_i32_2 = arith.constant 0 : i32
    return %arg0, %c0_i32, %c0_i32_0, %c0_i32_1 : i32, i32, i32, i32
  }
  func.func @transform_1(%arg0: i32) -> (i32, i32, i32) {
    %c0_i32 = arith.constant 0 : i32
    %c0_i32_0 = arith.constant 0 : i32
    %c0_i32_1 = arith.constant 0 : i32
    %c0_i32_2 = arith.constant 0 : i32
    return %c0_i32, %c0_i32_0, %c0_i32_1 : i32, i32, i32
  }
  func.func @transform_2(%arg0: i32) -> (i32, i32) {
    %c0_i32 = arith.constant 0 : i32
    %c0_i32_0 = arith.constant 0 : i32
    %c0_i32_1 = arith.constant 0 : i32
    return %c0_i32, %c0_i32_0 : i32, i32
  }
  func.func @transform_3(%arg0: i32) -> (i32, i32, i32) {
    %c0_i32 = arith.constant 0 : i32
    %c0_i32_0 = arith.constant 0 : i32
    %c0_i32_1 = arith.constant 0 : i32
    %c0_i32_2 = arith.constant 0 : i32
    return %c0_i32, %c0_i32_0, %c0_i32_1 : i32, i32, i32
  }
  func.func @transform_4(%arg0: i32) -> (i32, i32) {
    %c0_i32 = arith.constant 0 : i32
    %c0_i32_0 = arith.constant 0 : i32
    %c0_i32_1 = arith.constant 0 : i32
    return %c0_i32, %c0_i32_0 : i32, i32
  }
  func.func @transform_5(%arg0: i32) -> (i32, i32, i32, i32) {
    %c0_i32 = arith.constant 0 : i32
    %c0_i32_0 = arith.constant 0 : i32
    %c0_i32_1 = arith.constant 0 : i32
    %c0_i32_2 = arith.constant 0 : i32
    return %arg0, %c0_i32, %c0_i32_0, %c0_i32_1 : i32, i32, i32, i32
  }
}

</mosaic_0001>

<bundles_post_ra>
// kernel: se_forward.6
= control target key start
LH: loop header
LB: loop body
LE: loop exit
PB: predicated region body
PF: predicated region fallthrough
CT: control target
= control target key end

     0   :  { %s1803_s18 = smov 0   ;;  %s2033_s0 = inlined_call_operand.vmem [shape: f32[8,5,5,8], index: 0, kind: input, shape index: {}]   ;;  %s2034_s1 = inlined_call_operand.vmem [shape: bf16[9,8,8], index: 1, kind: input, shape index: {}]   ;;  %s2035_s2 = inlined_call_operand.vmem [shape: f32[1,8], index: 2, kind: input, shape index: {}]   ;;  %s2036_s3 = inlined_call_operand.vmem [shape: bf16[9,8,8], index: 3, kind: input, shape index: {}]   ;;  %s2037_s4 = inlined_call_operand.vmem [shape: f32[1,8], index: 4, kind: input, shape index: {}]   ;;  %s2038_s5 = inlined_call_operand.vmem [shape: f32[2,4,4,8], index: 5, kind: output, shape index: {}]  }
   0x1 LB: > { %s1809_s19 = sadd.s32 4294967295, %s1769_s18   ;;  %p1500_p0 = scmp.ge.s32.totalorder %s1769_s18, 1  ;;  %s1769_s18 = sphi %s1803_s18, %s15_s18  }
   0x2   : > { %p189_p1 = scmp.lt.s32.totalorder %s1769_s18, 3 }
   0x4   : > { %p190_p2 = pnand %p1500_p0, %p189_p1 }
   0x5   : > { %v1509_v0 = vld [vmem:[%s2034_s1 + $0x4] sm:$0xf] (!%p190_p2)  ;;  %vm285_vm0 = vcmask (!%p190_p2), 1043456   ;;  %v265_v1 = vld [vmem:[%s2034_s1] sm:$0xf] (!%p190_p2)  ;;  %v1771_v2 = vmov (!%p190_p2), 0.0  }
   0x6   : > { %193 = sbr.rel (%p190_p2) target bundleno = 535 (0x217), region = 40  ;;  %1608 = vmatprep.subr.bf16.mxu0 (!%p190_p2), %v1771_v2  ;;  %v287_v3 = vsel (!%p190_p2), %vm285_vm0, %v1509_v0, 0  ;;  %1614 = vmatprep.subr.bf16.mxu1 (!%p190_p2), %v1771_v2  ;;  %v334_v4 = vsel (!%p190_p2), %vm285_vm0, %v265_v1, 0  ;;  %s1501_s24 = sshll.u32 (!%p190_p2), %s1809_s19, 2  ;;  %vm231_vm1 = vcmask (!%p190_p2), 64512   ;;  %vm1772_vm2 = vmmov (!%p190_p2), 0  }
   0x7   : > { %1609 = vmatpush3.bf16.msra.mxu0 (!%p190_p2), %v287_v3  ;;  %1615 = vmatpush3.bf16.msra.mxu1 (!%p190_p2), %v334_v4  ;;  %p1824_p3 = scmp.lt.s32.totalorder (!%p190_p2), %s1501_s24, 7  ;;  %232 = vst.msk [vmem:[#allocation2] sm:$0xff] (!%p190_p2), %vm231_vm1, %v1771_v2  ;;  %233 = vst.msk [vmem:[#allocation2 + $0x8] sm:$0xff] (!%p190_p2), %vm231_vm1, %v1771_v2  ;;  %v1512_v5 = vld [vmem:[%s2034_s1 + $0x8] sm:$0xf] (!%p190_p2)  ;;  %vm234_vm3 = vcmask (!%p190_p2), 60416  }
   0x8   : > { %236 = vst.msk [vmem:[#allocation2 + $0x18] sm:$0xff] (!%p190_p2), %vm231_vm1, %v1771_v2  ;;  %237 = vst.msk [vmem:[#allocation2 + $0x20] sm:$0xff] (!%p190_p2), %vm231_vm1, %v1771_v2  ;;  %1610 = vmatprep.mubr.msk.bf16.mxu0 (!%p190_p2), %vm1772_vm2, %v1771_v2  ;;  %1616 = vmatprep.mubr.msk.bf16.mxu1 (!%p190_p2), %vm1772_vm2, %v1771_v2  ;;  %v1518_v6 = vld [vmem:[%s2034_s1 + $0xc] sm:$0xf] (!%p190_p2)  ;;  %v396_v7 = vsel (!%p190_p2), %vm285_vm0, %v1512_v5, 0  ;;  %p225_p4 = scmp.lt.s32.totalorder (!%p190_p2), %s1809_s19, 1 }
   0x9   : > { %239 = vst.msk [vmem:[#allocation2 + $0x30] sm:$0xff] (!%p190_p2), %vm231_vm1, %v1771_v2  ;;  %240 = vst.msk [vmem:[#allocation2 + $0x38] sm:$0xff] (!%p190_p2), %vm231_vm1, %v1771_v2  ;;  %1620 = vmatprep.subr.bf16.mxu0 (!%p190_p2), %v1771_v2  ;;  %1626 = vmatprep.subr.bf16.mxu1 (!%p190_p2), %v1771_v2  ;;  %v461_v8 = vsel (!%p190_p2), %vm285_vm0, %v1518_v6, 0  ;;  %v1524_v17 = vld [vmem:[%s2034_s1 + $0x10] sm:$0xf] (!%p190_p2) }
   0xa   : > { %242 = vst.msk [vmem:[#allocation2 + $0x48] sm:$0xff] (!%p190_p2), %vm231_vm1, %v1771_v2  ;;  %243 = vst.msk [vmem:[#allocation2 + $0x50] sm:$0xff] (!%p190_p2), %vm231_vm1, %v1771_v2  ;;  %v1530_v18 = vld [vmem:[%s2034_s1 + $0x14] sm:$0xf] (!%p190_p2)  ;;  %v526_v22 = vsel (!%p190_p2), %vm285_vm0, %v1524_v17, 0 }
   0xb   : > { %245 = vst.msk [vmem:[#allocation2 + $0x60] sm:$0xff] (!%p190_p2), %vm231_vm1, %v1771_v2  ;;  %246 = vst.msk [vmem:[#allocation2 + $0x68] sm:$0xff] (!%p190_p2), %vm231_vm1, %v1771_v2  ;;  %v590_v24 = vsel (!%p190_p2), %vm285_vm0, %v1530_v18, 0  ;;  %v1536_v25 = vld [vmem:[%s2034_s1 + $0x18] sm:$0xf] (!%p190_p2) }
   0xc   : > { %248 = vst.msk [vmem:[#allocation2 + $0x78] sm:$0xff] (!%p190_p2), %vm231_vm1, %v1771_v2  ;;  %249 = vst.msk [vmem:[#allocation2 + $0x80] sm:$0xff] (!%p190_p2), %vm231_vm1, %v1771_v2  ;;  %v655_v31 = vsel (!%p190_p2), %vm285_vm0, %v1536_v25, 0  ;;  %v1542_v32 = vld [vmem:[%s2034_s1 + $0x1c] sm:$0xf] (!%p190_p2) }
   0xd   : > { %s2041_s24 = smov (!%p1824_p3, %s1501_s24), 7  ;;  %v720_v34 = vsel %vm285_vm0, %v1542_v32, 0  ;;  %v1548_v39 = vld [vmem:[%s2034_s1 + $0x20] sm:$0xf]  ;;  %v1551_v46 = vld [vmem:[%s2036_s3 + $0x4] sm:$0xf] }
   0xe   : > { %s1716_s30 = smul.u32 40, %s2041_s24  ;;  %v784_v41 = vsel %vm285_vm0, %v1548_v39, 0  ;;  %v864_v47 = vld [vmem:[%s2036_s3] sm:$0xf]  ;;  %v884_v48 = vsel %vm285_vm0, %v1551_v46, 0  ;;  %s2043_s19 = smov (!%p225_p4, %s1809_s19), 1 }
   0xf   : > { %v931_v49 = vsel %vm285_vm0, %v864_v47, 0  ;;  %v1554_v46 = vld [vmem:[%s2036_s3 + $0x8] sm:$0xf]  ;;  %v1556_v47 = vld [vmem:[%s2036_s3 + $0xc] sm:$0xf]  ;;  %s1571_s16 = sshll.u32 %s2043_s19, 4 }
  0x10   : > { %s1869_s8 = scalar_lea.vmem %s2033_s0, %s1716_s30  ;;  %s229_s23 = scalar_lea.vmem %s2038_s5, %s1571_s16 }
  0x11   : > { %v1727_v9 = vld [vmem:[%s1869_s8 + $0x28] ss:$8 sps:$4 sm:$0xff]   ;;  %v1728_v10 = vld [vmem:[%s1869_s8 + $0x38] ss:$8 sps:$4 sm:$0xff]  }
  0x12   : > { %v279_v11 = vpack.c.bf16 %v1728_v10, %v1727_v9  ;;  %v1729_v12 = vld [vmem:[%s1869_s8] ss:$8 sps:$4 sm:$0xff]   ;;  %v1730_v13 = vld [vmem:[%s1869_s8 + $0x10] ss:$8 sps:$4 sm:$0xff]  }
  0x13   : > { %v264_v14 = vpack.c.bf16 %v1730_v13, %v1729_v12  ;;  %v1731_v15 = vld [vmem:[%s1869_s8 + $0x1] ss:$8 sps:$4 sm:$0xff]   ;;  %v1732_v16 = vld [vmem:[%s1869_s8 + $0x11] ss:$8 sps:$4 sm:$0xff]  }
  0x14   : > { %1611 = vmatmul.mubr.msk.bf16.vlgmr.msra.gmra.mrb[0].mxu0 %vm231_vm1, %v279_v11  ;;  %v1733_v19 = vld [vmem:[%s1869_s8 + $0x50] ss:$8 sps:$4 sm:$0xff]   ;;  %v1734_v20 = vld [vmem:[%s1869_s8 + $0x60] ss:$8 sps:$4 sm:$0xff]   ;;  %v389_v21 = vpack.c.bf16 %v1732_v16, %v1731_v15 }
  0x15   : > { %1621 = vmatpush3.bf16.msra.mxu0 %v396_v7  ;;  %1622 = vmatprep.mubr.msk.bf16.mxu0 %vm1772_vm2, %v1771_v2  ;;  %v454_v23 = vpack.c.bf16 %v1734_v20, %v1733_v19  ;;  %v1735_v26 = vld [vmem:[%s1869_s8 + $0x78] ss:$8 sps:$4 sm:$0xff]   ;;  %v1736_v27 = vld [vmem:[%s1869_s8 + $0x88] ss:$8 sps:$4 sm:$0xff]  }
  0x16   : > { %1617 = vmatmul.mubr.msk.bf16.vlgmr.msra.gmra.mrb[0].mxu1 %vm231_vm1, %v264_v14  ;;  %1632 = vmatprep.subr.bf16.mxu0 %v1771_v2  ;;  %v1737_v28 = vld [vmem:[%s1869_s8 + $0x51] ss:$8 sps:$4 sm:$0xff]   ;;  %v1738_v29 = vld [vmem:[%s1869_s8 + $0x61] ss:$8 sps:$4 sm:$0xff]   ;;  %v519_v30 = vpack.c.bf16 %v1736_v27, %v1735_v26 }
  0x17   : > { %1627 = vmatpush3.bf16.msra.mxu1 %v461_v8  ;;  %1628 = vmatprep.mubr.msk.bf16.mxu1 %vm1772_vm2, %v1771_v2  ;;  %v583_v33 = vpack.c.bf16 %v1738_v29, %v1737_v28  ;;  %v1739_v35 = vld [vmem:[%s1869_s8 + $0x8] ss:$8 sps:$4 sm:$0xff]   ;;  %v1740_v36 = vld [vmem:[%s1869_s8 + $0x18] ss:$8 sps:$4 sm:$0xff]  }
  0x18   : > { %1638 = vmatprep.subr.bf16.mxu1 %v1771_v2  ;;  %v1741_v37 = vld [vmem:[%s1869_s8 + $0x30] ss:$8 sps:$4 sm:$0xff]   ;;  %v1742_v38 = vld [vmem:[%s1869_s8 + $0x40] ss:$8 sps:$4 sm:$0xff]   ;;  %v648_v40 = vpack.c.bf16 %v1740_v36, %v1739_v35 }
  0x19   : > { %v713_v42 = vpack.c.bf16 %v1742_v38, %v1741_v37  ;;  %v1743_v43 = vld [vmem:[%s1869_s8 + $0x9] ss:$8 sps:$4 sm:$0xff]   ;;  %v1744_v44 = vld [vmem:[%s1869_s8 + $0x19] ss:$8 sps:$4 sm:$0xff]  }
  0x1a   : > { %v777_v45 = vpack.c.bf16 %v1744_v44, %v1743_v43 }
  0x1c   : > { %1623 = vmatmul.mubr.msk.bf16.vlgmr.msra.gmra.mrb[4].mxu0 %vm231_vm1, %v389_v21 }
  0x1d   : > { %1633 = vmatpush3.bf16.msra.mxu0 %v526_v22  ;;  %1634 = vmatprep.mubr.msk.bf16.mxu0 %vm1772_vm2, %v1771_v2 }
  0x1e   : > { %1629 = vmatmul.mubr.msk.bf16.vlgmr.msra.gmra.mrb[4].mxu1 %vm231_vm1, %v454_v23  ;;  %1644 = vmatprep.subr.bf16.mxu0 %v1771_v2 }
  0x1f   : > { %1639 = vmatpush3.bf16.msra.mxu1 %v590_v24  ;;  %1640 = vmatprep.mubr.msk.bf16.mxu1 %vm1772_vm2, %v1771_v2 }
  0x20   : > { %1650 = vmatprep.subr.bf16.mxu1 %v1771_v2 }
  0x24   : > { %1635 = vmatmul.mubr.msk.bf16.vlgmr.msra.gmra.mrb[8].mxu0 %vm231_vm1, %v519_v30 }
  0x25   : > { %1645 = vmatpush3.bf16.msra.mxu0 %v655_v31  ;;  %1646 = vmatprep.mubr.msk.bf16.mxu0 %vm1772_vm2, %v1771_v2 }
  0x26   : > { %1641 = vmatmul.mubr.msk.bf16.vlgmr.msra.gmra.mrb[8].mxu1 %vm231_vm1, %v583_v33  ;;  %1656 = vmatprep.subr.bf16.mxu0 %v1771_v2  ;;  %v1550_v33 = vld [vmem:[%s2035_s2] ss:$0 sm:$0xff] }
  0x27   : > { %1651 = vmatpush3.bf16.msra.mxu1 %v720_v34  ;;  %1652 = vmatprep.mubr.msk.bf16.mxu1 %vm1772_vm2, %v1771_v2 }
  0x28   : > { %1662 = vmatprep.subr.bf16.mxu1 %v1771_v2 }
  0x2c   : > { %1647 = vmatmul.mubr.msk.bf16.vlgmr.msra.gmra.mrb[12].mxu0 %vm231_vm1, %v648_v40 }
  0x2d   : > { %1657 = vmatpush3.bf16.msra.mxu0 %v784_v41  ;;  %1658 = vmatprep.mubr.msk.bf16.mxu0 %vm1772_vm2, %v1771_v2 }
  0x2e   : > { %1653 = vmatmul.mubr.msk.bf16.vlgmr.msra.gmra.mrb[12].mxu1 %vm231_vm1, %v713_v42  ;;  %1668 = vmatprep.subr.bf16.mxu0 %v1771_v2 }
  0x2f   : > { %1664 = vmatprep.mubr.msk.bf16.mxu1 %vm1772_vm2, %v1771_v2  ;;  %1663 = vmatpush3.bf16.msra.mxu1 %v884_v48 }
  0x30   : > { %1674 = vmatprep.subr.bf16.mxu1 %v1771_v2 }
  0x34   : > { %1659 = vmatmul.mubr.msk.bf16.vlgmr.msra.gmra.mrb[16].mxu0 %vm231_vm1, %v777_v45 }
  0x35   : > { %1670 = vmatprep.mubr.msk.bf16.mxu0 %vm1772_vm2, %v1771_v2  ;;  %1669 = vmatpush3.bf16.msra.mxu0 %v931_v49 }
  0x36   : > { %1680 = vmatprep.subr.bf16.mxu0 %v1771_v2 }
  0xe7   : > { %v323_v50 = vpop.f32.mrb[0].mxu0 }
  0xe8   : > { %v1612_v51 = vpop.f32.mrb[1].mxu0 }
  0xe9   : > { %v370_v52 = vpop.f32.mrb[0].mxu1  ;;  %v326_v53 = vpop.f32.mrb[2].mxu0 }
  0xea   : > { %v371_v54 = vadd.f32 %v370_v52, %v323_v50  ;;  %v1618_v55 = vpop.f32.mrb[1].mxu1  ;;  %v1613_v56 = vpop.f32.mrb[3].mxu0 }
  0xeb   : > { %v373_v57 = vpop.f32.mrb[2].mxu1  ;;  %v1558_v56 = vld [vmem:[%s2036_s3 + $0x10] sm:$0xf] }
  0xec   : > { %v374_v58 = vadd.f32 %v373_v57, %v326_v53  ;;  %v1619_v59 = vpop.f32.mrb[3].mxu1  ;;  %v993_v53 = vsel %vm285_vm0, %v1554_v46, 0 }
  0xed   : > { %v1560_v59 = vld [vmem:[%s2036_s3 + $0x14] sm:$0xf] }
  0xef   : > { %v432_v60 = vpop.f32.mrb[4].mxu0 }
  0xf0   : > { %v439_v61 = vadd.f32 %v432_v60, %v371_v54  ;;  %v1624_v62 = vpop.f32.mrb[5].mxu0  ;;  %v1057_v54 = vsel %vm285_vm0, %v1556_v47, 0 }
  0xf1   : > { %v435_v63 = vpop.f32.mrb[6].mxu0  ;;  %v497_v0 = vpop.f32.mrb[4].mxu1 }
  0xf2   : > { %v440_v1 = vadd.f32 %v435_v63, %v374_v58  ;;  %v504_v3 = vadd.f32 %v497_v0, %v439_v61  ;;  %v1625_v4 = vpop.f32.mrb[7].mxu0  ;;  %v1630_v5 = vpop.f32.mrb[5].mxu1  ;;  %v1121_v63 = vsel %vm285_vm0, %v1558_v56, 0 }
  0xf3   : > { %v500_v6 = vpop.f32.mrb[6].mxu1  ;;  %v1562_v5 = vld [vmem:[%s2036_s3 + $0x18] sm:$0xf] }
  0xf4   : > { %v505_v7 = vadd.f32 %v500_v6, %v440_v1  ;;  %v1631_v8 = vpop.f32.mrb[7].mxu1  ;;  %v1185_v1 = vsel %vm285_vm0, %v1560_v59, 0 }
  0xf7   : > { %v562_v9 = vpop.f32.mrb[8].mxu0 }
  0xf8   : > { %v569_v10 = vadd.f32 %v562_v9, %v504_v3  ;;  %v1636_v11 = vpop.f32.mrb[9].mxu0 }
  0xf9   : > { %v565_v12 = vpop.f32.mrb[10].mxu0  ;;  %v626_v13 = vpop.f32.mrb[8].mxu1 }
  0xfa   : > { %v570_v14 = vadd.f32 %v565_v12, %v505_v7  ;;  %v633_v15 = vadd.f32 %v626_v13, %v569_v10  ;;  %v1637_v16 = vpop.f32.mrb[11].mxu0  ;;  %v1642_v17 = vpop.f32.mrb[9].mxu1  ;;  %v1564_v7 = vld [vmem:[%s2036_s3 + $0x1c] sm:$0xf]  ;;  %v1250_v10 = vsel %vm285_vm0, %v1562_v5, 0 }
  0xfb   : > { %v629_v18 = vpop.f32.mrb[10].mxu1  ;;  %v1314_v12 = vsel %vm285_vm0, %v1564_v7, 0 }
  0xfc   : > { %v634_v19 = vadd.f32 %v629_v18, %v570_v14  ;;  %v1643_v20 = vpop.f32.mrb[11].mxu1 }
  0xff   : > { %v691_v21 = vpop.f32.mrb[12].mxu0 }
 0x100   : > { %v698_v22 = vadd.f32 %v691_v21, %v633_v15  ;;  %v1648_v23 = vpop.f32.mrb[13].mxu0  ;;  %v1566_v15 = vld [vmem:[%s2036_s3 + $0x20] sm:$0xf] }
 0x101   : > { %v694_v24 = vpop.f32.mrb[14].mxu0  ;;  %v756_v25 = vpop.f32.mrb[12].mxu1 }
 0x102   : > { %v699_v26 = vadd.f32 %v694_v24, %v634_v19  ;;  %v763_v27 = vadd.f32 %v756_v25, %v698_v22  ;;  %v1649_v28 = vpop.f32.mrb[15].mxu0  ;;  %v1654_v29 = vpop.f32.mrb[13].mxu1  ;;  %v1378_v19 = vsel %vm285_vm0, %v1566_v15, 0 }
 0x103   : > { %v759_v30 = vpop.f32.mrb[14].mxu1 }
 0x104   : > { %v764_v31 = vadd.f32 %v759_v30, %v699_v26  ;;  %v1655_v32 = vpop.f32.mrb[15].mxu1 }
 0x107   : > { %v820_v34 = vpop.f32.mrb[16].mxu0 }
 0x108   : > { %v827_v35 = vadd.f32 %v820_v34, %v763_v27  ;;  %v1660_v36 = vpop.f32.mrb[17].mxu0 }
 0x109   : > { %v823_v37 = vpop.f32.mrb[18].mxu0 }
 0x10a   : > { %v835_v38 = vadd.f32 %v1550_v33, %v827_v35  ;;  %v828_v39 = vadd.f32 %v823_v37, %v764_v31  ;;  %v1661_v40 = vpop.f32.mrb[19].mxu0 }
 0x10c   : > { %v837_v41 = vmax.f32 %v835_v38, 0.0  ;;  %v836_v42 = vadd.f32 %v1550_v33, %v828_v39 }
 0x10e   : > { %v841_v43 = vcombine.high %v837_v41, %v837_v41  ;;  %846 = vst.msk [vmem:[#allocation2 + $0x20] sm:$0xf] %vm234_vm3, %v837_v41  ;;  %v838_v44 = vmax.f32 %v836_v42, 0.0 }
 0x110   : > { %847 = vst.msk [vmem:[#allocation2 + $0x38] sm:$0xf] %vm234_vm3, %v841_v43  ;;  %v842_v45 = vcombine.high %v838_v44, %v838_v44  ;;  %848 = vst.msk [vmem:[#allocation2 + $0x50] sm:$0xf] %vm234_vm3, %v838_v44 }
 0x112   : > { %849 = vst.msk [vmem:[#allocation2 + $0x68] sm:$0xf] %vm234_vm3, %v842_v45 }
 0x115   : > { %v1745_v48 = vld [vmem:[#allocation2 + $0x8] ss:$24 sps:$4 sm:$0xff]  }
 0x116   : > { %v1747_v49 = vld [vmem:[#allocation2 + $0x7] ss:$24 sps:$4 sm:$0xff]  }
 0x117   : > { %v1746_v50 = vld [vmem:[#allocation2 + $0x38] ss:$24 sps:$4 sm:$0xff]   ;;  %v1749_v60 = vld [vmem:[#allocation2 + $0x9] ss:$24 sps:$4 sm:$0xff]  }
 0x118   : > { %v1748_v51 = vld [vmem:[#allocation2 + $0x37] ss:$24 sps:$4 sm:$0xff]   ;;  %v877_v52 = vpack.c.bf16 %v1746_v50, %v1745_v48 }
 0x119   : > { %v863_v55 = vpack.c.bf16 %v1748_v51, %v1747_v49  ;;  %v1750_v57 = vld [vmem:[#allocation2 + $0x39] ss:$24 sps:$4 sm:$0xff]   ;;  %v1758_v13 = vld [vmem:[#allocation2 + $0x67] ss:$24 sps:$4 sm:$0xff]  }
 0x11a   : > { %1665 = vmatmul.mubr.msk.bf16.vlgmr.msra.gmra.mrb[16].mxu1 %vm231_vm1, %v877_v52  ;;  %v1752_v58 = vld [vmem:[#allocation2 + $0x4f] ss:$24 sps:$4 sm:$0xff]   ;;  %v1751_v61 = vld [vmem:[#allocation2 + $0x1f] ss:$24 sps:$4 sm:$0xff]   ;;  %v986_v62 = vpack.c.bf16 %v1750_v57, %v1749_v60 }
 0x11b   : > { %1671 = vmatmul.mubr.msk.bf16.vlgmr.msra.gmra.mrb[20].mxu0 %vm231_vm1, %v863_v55  ;;  %1675 = vmatpush3.bf16.msra.mxu1 %v993_v53  ;;  %v1050_v0 = vpack.c.bf16 %v1752_v58, %v1751_v61  ;;  %v1754_v3 = vld [vmem:[#allocation2 + $0x50] ss:$24 sps:$4 sm:$0xff]   ;;  %v1753_v6 = vld [vmem:[#allocation2 + $0x20] ss:$24 sps:$4 sm:$0xff]  }
 0x11c   : > { %1681 = vmatpush3.bf16.msra.mxu0 %v1057_v54  ;;  %1676 = vmatprep.mubr.msk.bf16.mxu1 %vm1772_vm2, %v1771_v2  ;;  %v1756_v4 = vld [vmem:[#allocation2 + $0x51] ss:$24 sps:$4 sm:$0xff]   ;;  %v1755_v8 = vld [vmem:[#allocation2 + $0x21] ss:$24 sps:$4 sm:$0xff]   ;;  %v1114_v9 = vpack.c.bf16 %v1754_v3, %v1753_v6  ;;  %v1568_v6 = vld [vmem:[%s2037_s4] ss:$0 sm:$0xff] }
 0x11d   : > { %1682 = vmatprep.mubr.msk.bf16.mxu0 %vm1772_vm2, %v1771_v2  ;;  %1686 = vmatprep.subr.bf16.mxu1 %v1771_v2  ;;  %v1178_v11 = vpack.c.bf16 %v1756_v4, %v1755_v8  ;;  %v1760_v14 = vld [vmem:[#allocation2 + $0x68] ss:$24 sps:$4 sm:$0xff]   ;;  %v1757_v16 = vld [vmem:[#allocation2 + $0x37] ss:$24 sps:$4 sm:$0xff]  }
 0x11e   : > { %1692 = vmatprep.subr.bf16.mxu0 %v1771_v2  ;;  %v1759_v17 = vld [vmem:[#allocation2 + $0x38] ss:$24 sps:$4 sm:$0xff]   ;;  %v1243_v18 = vpack.c.bf16 %v1758_v13, %v1757_v16  ;;  %v1762_v21 = vld [vmem:[#allocation2 + $0x69] ss:$24 sps:$4 sm:$0xff]  }
 0x11f   : > { %v1307_v20 = vpack.c.bf16 %v1760_v14, %v1759_v17  ;;  %v1761_v22 = vld [vmem:[#allocation2 + $0x39] ss:$24 sps:$4 sm:$0xff]  }
 0x120   : > { %v1371_v23 = vpack.c.bf16 %v1762_v21, %v1761_v22 }
 0x122   : > { %1677 = vmatmul.mubr.msk.bf16.vlgmr.msra.gmra.mrb[20].mxu1 %vm231_vm1, %v986_v62 }
 0x123   : > { %1683 = vmatmul.mubr.msk.bf16.vlgmr.msra.gmra.mrb[24].mxu0 %vm231_vm1, %v1050_v0  ;;  %1687 = vmatpush3.bf16.msra.mxu1 %v1121_v63 }
 0x124   : > { %1693 = vmatpush3.bf16.msra.mxu0 %v1185_v1  ;;  %1688 = vmatprep.mubr.msk.bf16.mxu1 %vm1772_vm2, %v1771_v2 }
 0x125   : > { %1694 = vmatprep.mubr.msk.bf16.mxu0 %vm1772_vm2, %v1771_v2  ;;  %1698 = vmatprep.subr.bf16.mxu1 %v1771_v2 }
 0x126   : > { %1704 = vmatprep.subr.bf16.mxu0 %v1771_v2 }
 0x12a   : > { %1689 = vmatmul.mubr.msk.bf16.vlgmr.msra.gmra.mrb[24].mxu1 %vm231_vm1, %v1114_v9 }
 0x12b   : > { %1695 = vmatmul.mubr.msk.bf16.vlgmr.msra.gmra.mrb[28].mxu0 %vm231_vm1, %v1178_v11  ;;  %1699 = vmatpush3.bf16.msra.mxu1 %v1250_v10 }
 0x12c   : > { %1705 = vmatpush3.bf16.msra.mxu0 %v1314_v12  ;;  %1700 = vmatprep.mubr.msk.bf16.mxu1 %vm1772_vm2, %v1771_v2 }
 0x12d   : > { %1706 = vmatprep.mubr.msk.bf16.mxu0 %vm1772_vm2, %v1771_v2  ;;  %1710 = vmatprep.subr.bf16.mxu1 %v1771_v2 }
 0x132   : > { %1701 = vmatmul.mubr.msk.bf16.vlgmr.msra.gmra.mrb[28].mxu1 %vm231_vm1, %v1243_v18 }
 0x133   : > { %1707 = vmatmul.mubr.msk.bf16.vlgmr.msra.gmra.mrb[32].mxu0 %vm231_vm1, %v1307_v20  ;;  %1711 = vmatpush3.bf16.msra.mxu1 %v1378_v19 }
 0x134   : > { %1712 = vmatprep.mubr.msk.bf16.mxu1 %vm1772_vm2, %v1771_v2 }
 0x13a   : > { %1713 = vmatmul.mubr.msk.bf16.vlgmr.msra.gmra.mrb[32].mxu1 %vm231_vm1, %v1371_v23 }
 0x1ed   : > { %v920_v24 = vpop.f32.mrb[16].mxu1 }
 0x1ee   : > { %v967_v25 = vpop.f32.mrb[20].mxu0  ;;  %v1666_v26 = vpop.f32.mrb[17].mxu1 }
 0x1ef   : > { %v968_v27 = vadd.f32 %v967_v25, %v920_v24  ;;  %v1672_v28 = vpop.f32.mrb[21].mxu0  ;;  %v923_v29 = vpop.f32.mrb[18].mxu1 }
 0x1f0   : > { %v970_v30 = vpop.f32.mrb[22].mxu0  ;;  %v1667_v31 = vpop.f32.mrb[19].mxu1 }
 0x1f1   : > { %v971_v32 = vadd.f32 %v970_v30, %v923_v29  ;;  %v1673_v33 = vpop.f32.mrb[23].mxu0 }
 0x1f5   : > { %v1029_v34 = vpop.f32.mrb[20].mxu1 }
 0x1f6   : > { %v1036_v35 = vadd.f32 %v1029_v34, %v968_v27  ;;  %v1093_v36 = vpop.f32.mrb[24].mxu0  ;;  %v1678_v37 = vpop.f32.mrb[21].mxu1 }
 0x1f7   : > { %v1684_v2 = vpop.f32.mrb[25].mxu0  ;;  %v1032_v38 = vpop.f32.mrb[22].mxu1 }
 0x1f8   : > { %v1100_v39 = vadd.f32 %v1093_v36, %v1036_v35  ;;  %v1037_v40 = vadd.f32 %v1032_v38, %v971_v32  ;;  %v1096_v41 = vpop.f32.mrb[26].mxu0  ;;  %v1679_v42 = vpop.f32.mrb[23].mxu1 }
 0x1f9   : > { %v1685_v43 = vpop.f32.mrb[27].mxu0 }
 0x1fa   : > { %v1101_v44 = vadd.f32 %v1096_v41, %v1037_v40 }
 0x1fd   : > { %v1157_v45 = vpop.f32.mrb[24].mxu1 }
 0x1fe   : > { %v1164_v46 = vadd.f32 %v1157_v45, %v1100_v39  ;;  %v1221_v47 = vpop.f32.mrb[28].mxu0  ;;  %v1690_v48 = vpop.f32.mrb[25].mxu1 }
 0x1ff   : > { %v1696_v49 = vpop.f32.mrb[29].mxu0  ;;  %v1160_v50 = vpop.f32.mrb[26].mxu1 }
 0x200   : > { %v1228_v51 = vadd.f32 %v1221_v47, %v1164_v46  ;;  %v1165_v52 = vadd.f32 %v1160_v50, %v1101_v44  ;;  %v1224_v53 = vpop.f32.mrb[30].mxu0  ;;  %v1691_v54 = vpop.f32.mrb[27].mxu1 }
 0x201   : > { %v1697_v55 = vpop.f32.mrb[31].mxu0 }
 0x202   : > { %v1229_v56 = vadd.f32 %v1224_v53, %v1165_v52 }
 0x205   : > { %v1286_v57 = vpop.f32.mrb[28].mxu1 }
 0x206   : > { %v1293_v58 = vadd.f32 %v1286_v57, %v1228_v51  ;;  %v1350_v59 = vpop.f32.mrb[32].mxu0  ;;  %v1702_v60 = vpop.f32.mrb[29].mxu1 }
 0x207   : > { %v1708_v61 = vpop.f32.mrb[33].mxu0  ;;  %v1289_v62 = vpop.f32.mrb[30].mxu1 }
 0x208   : > { %v1357_v63 = vadd.f32 %v1350_v59, %v1293_v58  ;;  %v1294_v0 = vadd.f32 %v1289_v62, %v1229_v56  ;;  %v1353_v1 = vpop.f32.mrb[34].mxu0  ;;  %v1703_v3 = vpop.f32.mrb[31].mxu1 }
 0x209   : > { %v1709_v4 = vpop.f32.mrb[35].mxu0 }
 0x20a   : > { %v1358_v5 = vadd.f32 %v1353_v1, %v1294_v0 }
 0x20d   : > { %v1414_v7 = vpop.f32.mrb[32].mxu1 }
 0x20e   : > { %v1421_v8 = vadd.f32 %v1414_v7, %v1357_v63  ;;  %v1714_v9 = vpop.f32.mrb[33].mxu1 }
 0x20f   : > { %v1417_v10 = vpop.f32.mrb[34].mxu1 }
 0x210   : > { %v1429_v11 = vadd.f32 %v1568_v6, %v1421_v8  ;;  %v1422_v12 = vadd.f32 %v1417_v10, %v1358_v5  ;;  %v1715_v13 = vpop.f32.mrb[35].mxu1 }
 0x212   : > { %v1433_v14 = vcombine.high %v1429_v11, %v1429_v11  ;;  %1437 = vst.msk [vmem:[%s229_s23] sm:$0xf] %vm234_vm3, %v1429_v11  ;;  %v1430_v15 = vadd.f32 %v1568_v6, %v1422_v12 }
 0x214   : > { %1438 = vst.msk [vmem:[%s229_s23 + $0x4] sm:$0xf] %vm234_vm3, %v1433_v14  ;;  %v1434_v16 = vcombine.high %v1430_v15, %v1430_v15  ;;  %1439 = vst.msk [vmem:[%s229_s23 + $0x8] sm:$0xf] %vm234_vm3, %v1430_v15 }
 0x216   : > { %1440 = vst.msk [vmem:[%s229_s23 + $0xc] sm:$0xf] %vm234_vm3, %v1434_v16 }
 0x217 PF: > { %s15_s18 = sadd.s32 1, %s1769_s18  }
 0x218   : > { %p12_p5 = scmp.ge.s32.totalorder %s15_s18, 4  }
 0x21a   :  { %14 = sbr.rel (!%p12_p5) target bundleno = 1 (0x1), region = 93 }

// kernel: se_forward.5
= control target key start
LH: loop header
LB: loop body
LE: loop exit
PB: predicated region body
PF: predicated region fallthrough
CT: control target
= control target key end

     0   :  { %s2804_s18 = smov 0   ;;  %s3286_s0 = inlined_call_operand.vmem [shape: f32[8,9,9,8], index: 0, kind: input, shape index: {}]   ;;  %s3287_s1 = inlined_call_operand.vmem [shape: bf16[9,8,8], index: 1, kind: input, shape index: {}]   ;;  %s3288_s2 = inlined_call_operand.vmem [shape: f32[1,8], index: 2, kind: input, shape index: {}]   ;;  %s3289_s3 = inlined_call_operand.vmem [shape: bf16[9,8,8], index: 3, kind: input, shape index: {}]   ;;  %s3290_s4 = inlined_call_operand.vmem [shape: f32[1,8], index: 4, kind: input, shape index: {}]   ;;  %s3291_s5 = inlined_call_operand.vmem [shape: f32[2,8,8,8], index: 5, kind: output, shape index: {}]  }
   0x1 LB: > { %s2810_s19 = sadd.s32 4294967295, %s2771_s18   ;;  %p2185_p0 = scmp.ge.s32.totalorder %s2771_s18, 1  ;;  %s2771_s18 = sphi %s2804_s18, %s15_s18  }
   0x2   : > { %p189_p1 = scmp.lt.s32.totalorder %s2771_s18, 3 }
   0x4   : > { %p190_p2 = pnand %p2185_p0, %p189_p1 }
   0x5   : > { %v2198_v0 = vld [vmem:[%s3287_s1 + $0x4] sm:$0xf] (!%p190_p2)  ;;  %vm303_vm0 = vcmask (!%p190_p2), 1043456   ;;  %s2186_s22 = sshll.u32 (!%p190_p2), %s2810_s19, 2  ;;  %v275_v2 = vld [vmem:[%s3287_s1] sm:$0xf] (!%p190_p2) }
   0x6   : > { %193 = sbr.rel (%p190_p2) target bundleno = 732 (0x2dc), region = 40  ;;  %2737 = vmatprep.subr.msk.bf16.mxu0 (!%p190_p2), %vm303_vm0, %v2198_v0  ;;  %v305_v1 = vsel (!%p190_p2), %vm303_vm0, %v2198_v0, 0  ;;  %p219_p3 = scmp.lt.s32.totalorder (!%p190_p2), %s2186_s22, 7  ;;  %vm231_vm1 = vcmask (!%p190_p2), 64512   ;;  %v385_v12 = vsel (!%p190_p2), %vm303_vm0, %v275_v2, 0  ;;  %v2773_v40 = vmov (!%p190_p2), 0.0  }
   0x7   : > { %2430 = vmatpush3.bf16.msra.mxu0 (!%p190_p2), %v305_v1  ;;  %v2859_v15 = vld [vmem:[%s3287_s1 + $0x8] sm:$0xf] (!%p190_p2)  ;;  %242 = vst.msk [vmem:[#allocation2 + $0x50] sm:$0xff] (!%p190_p2), %vm231_vm1, %v2773_v40  ;;  %232 = vst.msk [vmem:[#allocation2] sm:$0xff] (!%p190_p2), %vm231_vm1, %v2773_v40  ;;  %v2220_v52 = vld [vmem:[%s3287_s1 + $0xc] sm:$0xf] (!%p190_p2) }
   0x8   : > { %2738 = vmatprep.subr.msk.bf16.mxu0 (!%p190_p2), %vm303_vm0, %v275_v2  ;;  %233 = vst.msk [vmem:[#allocation2 + $0x8] sm:$0xff] (!%p190_p2), %vm231_vm1, %v2773_v40  ;;  %234 = vst.msk [vmem:[#allocation2 + $0x10] sm:$0xff] (!%p190_p2), %vm231_vm1, %v2773_v40  ;;  %v479_v51 = vsel (!%p190_p2), %vm303_vm0, %v2859_v15, 0  ;;  %v582_v58 = vsel (!%p190_p2), %vm303_vm0, %v2220_v52, 0  ;;  %v2233_v59 = vld [vmem:[%s3287_s1 + $0x10] sm:$0xf] (!%p190_p2) }
   0x9   : > { %235 = vst.msk [vmem:[#allocation2 + $0x18] sm:$0xff] (!%p190_p2), %vm231_vm1, %v2773_v40  ;;  %236 = vst.msk [vmem:[#allocation2 + $0x20] sm:$0xff] (!%p190_p2), %vm231_vm1, %v2773_v40  ;;  %p225_p4 = scmp.lt.s32.totalorder (!%p190_p2), %s2810_s19, 1 }
   0xa   : > { %237 = vst.msk [vmem:[#allocation2 + $0x28] sm:$0xff] (!%p190_p2), %vm231_vm1, %v2773_v40  ;;  %238 = vst.msk [vmem:[#allocation2 + $0x30] sm:$0xff] (!%p190_p2), %vm231_vm1, %v2773_v40 }
   0xb   : > { %239 = vst.msk [vmem:[#allocation2 + $0x38] sm:$0xff] (!%p190_p2), %vm231_vm1, %v2773_v40  ;;  %240 = vst.msk [vmem:[#allocation2 + $0x40] sm:$0xff] (!%p190_p2), %vm231_vm1, %v2773_v40 }
   0xc   : > { %241 = vst.msk [vmem:[#allocation2 + $0x48] sm:$0xff] (!%p190_p2), %vm231_vm1, %v2773_v40  ;;  %243 = vst.msk [vmem:[#allocation2 + $0x58] sm:$0xff] (!%p190_p2), %vm231_vm1, %v2773_v40 }
   0xd   : > { %s3293_s22 = smov (!%p219_p3, %s2186_s22), 7  ;;  %244 = vst.msk [vmem:[#allocation2 + $0x60] sm:$0xff] %vm231_vm1, %v2773_v40  ;;  %245 = vst.msk [vmem:[#allocation2 + $0x68] sm:$0xff] %vm231_vm1, %v2773_v40  ;;  %s3295_s19 = smov (!%p225_p4, %s2810_s19), 1 }
   0xe   : > { %s2755_s25 = smul.u32 144, %s3293_s22  ;;  %246 = vst.msk [vmem:[#allocation2 + $0x70] sm:$0xff] %vm231_vm1, %v2773_v40  ;;  %247 = vst.msk [vmem:[#allocation2 + $0x78] sm:$0xff] %vm231_vm1, %v2773_v40  ;;  %s2338_s15 = sshll.u32 %s3295_s19, 6 }
   0xf   : > { %248 = vst.msk [vmem:[#allocation2 + $0x80] sm:$0xff] %vm231_vm1, %v2773_v40  ;;  %249 = vst.msk [vmem:[#allocation2 + $0x88] sm:$0xff] %vm231_vm1, %v2773_v40  ;;  %s229_s22 = scalar_lea.vmem %s3291_s5, %s2338_s15 }
  0x10   : > { %s2827_s28 = scalar_lea.vmem %s3286_s0, %s2755_s25  ;;  %250 = vst.msk [vmem:[#allocation2 + $0x90] sm:$0xff] %vm231_vm1, %v2773_v40  ;;  %251 = vst.msk [vmem:[#allocation2 + $0x98] sm:$0xff] %vm231_vm1, %v2773_v40 }
  0x11   : > { %v2190_v3 = vld [vmem:[%s2827_s28 + $0x90] sm:$0xff]  ;;  %v2831_v4 = vld [vmem:[%s2827_s28 + $0xa0] sm:$0xff]  ;;  %252 = vst.msk [vmem:[#allocation2 + $0xa0] sm:$0xff] %vm231_vm1, %v2773_v40  ;;  %253 = vst.msk [vmem:[#allocation2 + $0xa8] sm:$0xff] %vm231_vm1, %v2773_v40 }
  0x12   : > { %v2834_v5 = vld [vmem:[%s2827_s28 + $0xb0] sm:$0xff]  ;;  %v285_v6 = vpack.c.bf16 %v2831_v4, %v2190_v3  ;;  %v2838_v7 = vld [vmem:[%s2827_s28 + $0xc0] sm:$0xff]  ;;  %254 = vst.msk [vmem:[#allocation2 + $0xb0] sm:$0xff] %vm231_vm1, %v2773_v40  ;;  %255 = vst.msk [vmem:[#allocation2 + $0xb8] sm:$0xff] %vm231_vm1, %v2773_v40 }
  0x13   : > { %v2841_v8 = vld [vmem:[%s2827_s28 + $0xd0] sm:$0xff]  ;;  %v2844_v9 = vld [vmem:[%s2827_s28 + $0xe0] sm:$0xff]  ;;  %v974_v10 = vpack.c.bf16 %v2834_v5, %v2831_v4  ;;  %v286_v11 = vpack.c.bf16 %v2838_v7, %v2834_v5  ;;  %256 = vst.msk [vmem:[#allocation2 + $0xc0] sm:$0xff] %vm231_vm1, %v2773_v40  ;;  %257 = vst.msk [vmem:[#allocation2 + $0xc8] sm:$0xff] %vm231_vm1, %v2773_v40 }
  0x14   : > { %v287_v13 = vpack.c.bf16 %v2844_v9, %v2841_v8  ;;  %v2854_v14 = vld [vmem:[%s2827_s28 + $0xf0] sm:$0xff]  ;;  %v975_v16 = vpack.c.bf16 %v2841_v8, %v2838_v7  ;;  %2431 = vmatprep.mubr.msk.bf16.mxu0 %vm231_vm1, %v285_v6  ;;  %v2868_v18 = vld [vmem:[%s2827_s28 + $0x20] sm:$0xff]  ;;  %258 = vst.msk [vmem:[#allocation2 + $0xd0] sm:$0xff] %vm231_vm1, %v2773_v40  ;;  %259 = vst.msk [vmem:[#allocation2 + $0xd8] sm:$0xff] %vm231_vm1, %v2773_v40 }
  0x15   : > { %v2865_v17 = vld [vmem:[%s2827_s28 + $0x10] sm:$0xff]  ;;  %v976_v20 = vpack.c.bf16 %v2854_v14, %v2844_v9  ;;  %2432 = vmatmul.mubr.msk.bf16.vlgmr.msra.gmra.mrb[0].mxu0 %vm231_vm1, %v286_v11  ;;  %v2877_v21 = vld [vmem:[%s2827_s28 + $0x40] sm:$0xff]  ;;  %260 = vst.msk [vmem:[#allocation2 + $0xe0] sm:$0xff] %vm231_vm1, %v2773_v40  ;;  %261 = vst.msk [vmem:[#allocation2 + $0xe8] sm:$0xff] %vm231_vm1, %v2773_v40 }
  0x16   : > { %v2871_v19 = vld [vmem:[%s2827_s28 + $0x30] sm:$0xff]  ;;  %v2883_v23 = vld [vmem:[%s2827_s28 + $0x60] sm:$0xff]  ;;  %v871_v24 = vpack.c.bf16 %v2868_v18, %v2865_v17  ;;  %2440 = vmatpush3.bf16.msra.mxu0 %v385_v12  ;;  %2435 = vmatprep.mubr.msk.bf16.mxu0 %vm231_vm1, %v287_v13  ;;  %v685_v12 = vsel %vm303_vm0, %v2233_v59, 0 }
  0x17   : > { %v2880_v22 = vld [vmem:[%s2827_s28 + $0x50] sm:$0xff]  ;;  %v2889_v25 = vld [vmem:[%s2827_s28 + $0x100] sm:$0xff]  ;;  %v872_v28 = vpack.c.bf16 %v2877_v21, %v2871_v19  ;;  %2739 = vmatprep.subr.msk.bf16.mxu0 %vm303_vm0, %v2859_v15  ;;  %v272_v43 = vpack.c.bf16 %v2871_v19, %v2868_v18 }
  0x18   : > { %v263_v26 = vld [vmem:[%s2827_s28] sm:$0xff]  ;;  %v2893_v27 = vld [vmem:[%s2827_s28 + $0x11] sm:$0xff]  ;;  %v873_v29 = vpack.c.bf16 %v2883_v23, %v2880_v22  ;;  %v288_v37 = vpack.c.bf16 %v2889_v25, %v2854_v14  ;;  %v273_v47 = vpack.c.bf16 %v2880_v22, %v2877_v21 }
  0x19   : > { %v2902_v30 = vld [vmem:[%s2827_s28 + $0x21] sm:$0xff]  ;;  %v2905_v31 = vld [vmem:[%s2827_s28 + $0x31] sm:$0xff]  ;;  %v271_v39 = vpack.c.bf16 %v2865_v17, %v263_v26  ;;  %v2290_v8 = vld [vmem:[%s3288_s2] ss:$0 sm:$0xff] }
  0x1a   : > { %v2908_v32 = vld [vmem:[%s2827_s28 + $0x41] sm:$0xff]  ;;  %v2911_v33 = vld [vmem:[%s2827_s28 + $0x51] sm:$0xff]  ;;  %v1076_v35 = vpack.c.bf16 %v2902_v30, %v2893_v27  ;;  %v461_v56 = vpack.c.bf16 %v2905_v31, %v2902_v30 }
  0x1b   : > { %v2914_v34 = vld [vmem:[%s2827_s28 + $0x61] sm:$0xff]  ;;  %v1077_v36 = vpack.c.bf16 %v2908_v32, %v2905_v31  ;;  %v2958_v41 = vld [vmem:[%s2827_s28 + $0x70] sm:$0xff]  ;;  %v462_v57 = vpack.c.bf16 %v2911_v33, %v2908_v32 }
  0x1c   : > { %v1078_v38 = vpack.c.bf16 %v2914_v34, %v2911_v33  ;;  %v2961_v42 = vld [vmem:[%s2827_s28 + $0x71] sm:$0xff]  ;;  %v2966_v44 = vld [vmem:[%s2827_s28 + $0x80] sm:$0xff]  ;;  %v274_v54 = vpack.c.bf16 %v2958_v41, %v2883_v23 }
  0x1d   : > { %2436 = vmatmul.mubr.msk.bf16.gmra.mrb[4].mxu0 %vm231_vm1, %v288_v37  ;;  %v2969_v45 = vld [vmem:[%s2827_s28 + $0x110] sm:$0xff]  ;;  %v2972_v46 = vld [vmem:[%s2827_s28 + $0x81] sm:$0xff]  ;;  %v874_v48 = vpack.c.bf16 %v2966_v44, %v2958_v41  ;;  %v463_v62 = vpack.c.bf16 %v2961_v42, %v2914_v34 }
  0x1e   : > { %2441 = vmatprep.mubr.msk.bf16.mxu0 %vm231_vm1, %v271_v39  ;;  %v977_v49 = vpack.c.bf16 %v2969_v45, %v2889_v25  ;;  %v1079_v50 = vpack.c.bf16 %v2972_v46, %v2961_v42  ;;  %v452_v53 = vld [vmem:[%s2827_s28 + $0x1] sm:$0xff]  ;;  %v2213_v61 = vld [vmem:[%s2827_s28 + $0x130] sm:$0xff] }
  0x1f   : > { %v460_v55 = vpack.c.bf16 %v2893_v27, %v452_v53  ;;  %v2212_v60 = vld [vmem:[%s2827_s28 + $0x120] sm:$0xff]  ;;  %v2215_v1 = vld [vmem:[%s2827_s28 + $0x150] sm:$0xff] }
  0x20   : > { %v563_v63 = vpack.c.bf16 %v2213_v61, %v2212_v60  ;;  %v2214_v0 = vld [vmem:[%s2827_s28 + $0x140] sm:$0xff]  ;;  %v2217_v3 = vld [vmem:[%s2827_s28 + $0x170] sm:$0xff] }
  0x21   : > { %v2216_v2 = vld [vmem:[%s2827_s28 + $0x160] sm:$0xff]  ;;  %v564_v6 = vpack.c.bf16 %v2215_v1, %v2214_v0  ;;  %v2246_v13 = vld [vmem:[%s3287_s1 + $0x14] sm:$0xf] }
  0x22   : > { %v565_v11 = vpack.c.bf16 %v2217_v3, %v2216_v2  ;;  %v2218_v15 = vld [vmem:[%s2827_s28 + $0x180] sm:$0xff]  ;;  %v2219_v26 = vld [vmem:[%s2827_s28 + $0x190] sm:$0xff] }
  0x23   : > { %v2225_v37 = vld [vmem:[%s2827_s28 + $0x1b0] sm:$0xff]  ;;  %v2226_v39 = vld [vmem:[%s2827_s28 + $0x1c0] sm:$0xff]  ;;  %v566_v40 = vpack.c.bf16 %v2219_v26, %v2218_v15 }
  0x24   : > { %v2230_v53 = vld [vmem:[%s2827_s28 + $0x200] sm:$0xff]  ;;  %v2239_v61 = vld [vmem:[%s2827_s28 + $0x131] sm:$0xff] }
  0x25   : > { %2442 = vmatmul.mubr.msk.bf16.vlgmr.msra.gmra.mrb[0].mxu0 %vm231_vm1, %v272_v43  ;;  %v666_v43 = vpack.c.bf16 %v2226_v39, %v2225_v37  ;;  %v2238_v60 = vld [vmem:[%s2827_s28 + $0x121] sm:$0xff]  ;;  %v2241_v1 = vld [vmem:[%s2827_s28 + $0x151] sm:$0xff] }
  0x26   : > { %2450 = vmatpush3.bf16.msra.mxu0 %v479_v51  ;;  %2445 = vmatprep.mubr.msk.bf16.mxu0 %vm231_vm1, %v273_v47  ;;  %v2227_v47 = vld [vmem:[%s2827_s28 + $0x1d0] sm:$0xff]  ;;  %v2228_v51 = vld [vmem:[%s2827_s28 + $0x1e0] sm:$0xff] }
  0x27   : > { %2740 = vmatprep.subr.msk.bf16.mxu0 %vm303_vm0, %v2220_v52  ;;  %v2229_v52 = vld [vmem:[%s2827_s28 + $0x1f0] sm:$0xff]  ;;  %v2240_v0 = vld [vmem:[%s2827_s28 + $0x141] sm:$0xff] }
  0x28   : > { %v2242_v2 = vld [vmem:[%s2827_s28 + $0x161] sm:$0xff]  ;;  %v2243_v3 = vld [vmem:[%s2827_s28 + $0x171] sm:$0xff] }
  0x29   : > { %v2244_v15 = vld [vmem:[%s2827_s28 + $0x181] sm:$0xff]  ;;  %v2245_v26 = vld [vmem:[%s2827_s28 + $0x191] sm:$0xff] }
  0x2a   : > { %v771_v37 = vpack.c.bf16 %v2245_v26, %v2244_v15  ;;  %v2291_v4 = vld [vmem:[%s3289_s3 + $0x4] sm:$0xf]  ;;  %v1214_v7 = vld [vmem:[%s3289_s3] sm:$0xf] }
  0x2b   : > { %2746 = vmatprep.subr.msk.bf16.mxu1 %vm303_vm0, %v2291_v4  ;;  %v1242_v5 = vsel %vm303_vm0, %v2291_v4, 0 }
  0x2c   : > { %2520 = vmatpush3.bf16.msra.mxu1 %v1242_v5 }
  0x2d   : > { %2446 = vmatmul.mubr.msk.bf16.gmra.mrb[4].mxu0 %vm231_vm1, %v274_v54  ;;  %v667_v54 = vpack.c.bf16 %v2228_v51, %v2227_v47  ;;  %2747 = vmatprep.subr.msk.bf16.mxu1 %vm303_vm0, %v1214_v7 }
  0x2e   : > { %2451 = vmatprep.mubr.msk.bf16.mxu0 %vm231_vm1, %v460_v55  ;;  %v668_v55 = vpack.c.bf16 %v2230_v53, %v2229_v52  ;;  %v1202_v53 = vld [vmem:[#allocation2 + $0x7] sm:$0xff] }
  0x35   : > { %2452 = vmatmul.mubr.msk.bf16.vlgmr.msra.gmra.mrb[0].mxu0 %vm231_vm1, %v461_v56  ;;  %v787_v56 = vsel %vm303_vm0, %v2246_v13, 0 }
  0x36   : > { %2460 = vmatpush3.bf16.msra.mxu0 %v582_v58  ;;  %2455 = vmatprep.mubr.msk.bf16.mxu0 %vm231_vm1, %v462_v57  ;;  %v2259_v57 = vld [vmem:[%s3287_s1 + $0x18] sm:$0xf]  ;;  %v2231_v58 = vld [vmem:[%s2827_s28 + $0x210] sm:$0xff] }
  0x37   : > { %2741 = vmatprep.subr.msk.bf16.mxu0 %vm303_vm0, %v2233_v59  ;;  %v2232_v59 = vld [vmem:[%s2827_s28 + $0x220] sm:$0xff] }
  0x3d   : > { %2456 = vmatmul.mubr.msk.bf16.gmra.mrb[4].mxu0 %vm231_vm1, %v463_v62  ;;  %v669_v62 = vpack.c.bf16 %v2232_v59, %v2231_v58 }
  0x3e   : > { %2461 = vmatprep.mubr.msk.bf16.mxu0 %vm231_vm1, %v563_v63  ;;  %v768_v63 = vpack.c.bf16 %v2239_v61, %v2238_v60 }
  0x45   : > { %2462 = vmatmul.mubr.msk.bf16.vlgmr.msra.gmra.mrb[0].mxu0 %vm231_vm1, %v564_v6  ;;  %v769_v6 = vpack.c.bf16 %v2241_v1, %v2240_v0 }
  0x46   : > { %2470 = vmatpush3.bf16.msra.mxu0 %v685_v12  ;;  %2465 = vmatprep.mubr.msk.bf16.mxu0 %vm231_vm1, %v565_v11  ;;  %v770_v11 = vpack.c.bf16 %v2243_v3, %v2242_v2  ;;  %v890_v12 = vsel %vm303_vm0, %v2259_v57, 0  ;;  %v2305_v2 = vld [vmem:[%s3289_s3 + $0xc] sm:$0xf] }
  0x47   : > { %2742 = vmatprep.subr.msk.bf16.mxu0 %vm303_vm0, %v2246_v13  ;;  %v2272_v13 = vld [vmem:[%s3287_s1 + $0x1c] sm:$0xf] }
  0x48   : > { %v993_v39 = vsel %vm303_vm0, %v2272_v13, 0 }
  0x4d   : > { %2466 = vmatmul.mubr.msk.bf16.gmra.mrb[4].mxu0 %vm231_vm1, %v566_v40  ;;  %v2285_v40 = vld [vmem:[%s3287_s1 + $0x20] sm:$0xf] }
  0x4e   : > { %2471 = vmatprep.mubr.msk.bf16.mxu0 %vm231_vm1, %v666_v43  ;;  %v1095_v17 = vsel %vm303_vm0, %v2285_v40, 0  ;;  %v2300_v43 = vld [vmem:[%s3289_s3 + $0x8] sm:$0xf] }
  0x55   : > { %2472 = vmatmul.mubr.msk.bf16.vlgmr.msra.gmra.mrb[0].mxu0 %vm231_vm1, %v667_v54 }
  0x56   : > { %2480 = vmatpush3.bf16.msra.mxu0 %v787_v56  ;;  %2475 = vmatprep.mubr.msk.bf16.mxu0 %vm231_vm1, %v668_v55 }
  0x57   : > { %2743 = vmatprep.subr.msk.bf16.mxu0 %vm303_vm0, %v2259_v57 }
  0x5d   : > { %2476 = vmatmul.mubr.msk.bf16.gmra.mrb[4].mxu0 %vm231_vm1, %v669_v62 }
  0x5e   : > { %2481 = vmatprep.mubr.msk.bf16.mxu0 %vm231_vm1, %v768_v63  ;;  %v1416_v63 = vsel %vm303_vm0, %v2300_v43, 0 }
  0x65   : > { %2482 = vmatmul.mubr.msk.bf16.vlgmr.msra.gmra.mrb[0].mxu0 %vm231_vm1, %v769_v6  ;;  %v1389_v6 = vld [vmem:[#allocation2 + $0x9] sm:$0xff] }
  0x66   : > { %2490 = vmatpush3.bf16.msra.mxu0 %v890_v12  ;;  %2485 = vmatprep.mubr.msk.bf16.mxu0 %vm231_vm1, %v770_v11 }
  0x67   : > { %2744 = vmatprep.subr.msk.bf16.mxu0 %vm303_vm0, %v2272_v13 }
  0x6d   : > { %2486 = vmatmul.mubr.msk.bf16.gmra.mrb[4].mxu0 %vm231_vm1, %v771_v37 }
  0x6e   : > { %2491 = vmatprep.mubr.msk.bf16.mxu0 %vm231_vm1, %v871_v24 }
  0x75   : > { %2492 = vmatmul.mubr.msk.bf16.vlgmr.msra.gmra.mrb[0].mxu0 %vm231_vm1, %v872_v28 }
  0x76   : > { %2500 = vmatpush3.bf16.msra.mxu0 %v993_v39  ;;  %2495 = vmatprep.mubr.msk.bf16.mxu0 %vm231_vm1, %v873_v29 }
  0x77   : > { %2745 = vmatprep.subr.msk.bf16.mxu0 %vm303_vm0, %v2285_v40 }
  0x7d   : > { %2496 = vmatmul.mubr.msk.bf16.gmra.mrb[4].mxu0 %vm231_vm1, %v874_v48 }
  0x7e   : > { %2501 = vmatprep.mubr.msk.bf16.mxu0 %vm231_vm1, %v974_v10 }
  0x85   : > { %2502 = vmatmul.mubr.msk.bf16.vlgmr.msra.gmra.mrb[0].mxu0 %vm231_vm1, %v975_v16 }
  0x86   : > { %2510 = vmatpush3.bf16.msra.mxu0 %v1095_v17  ;;  %2505 = vmatprep.mubr.msk.bf16.mxu0 %vm231_vm1, %v976_v20  ;;  %v1518_v17 = vsel %vm303_vm0, %v2305_v2, 0 }
  0x8d   : > { %2506 = vmatmul.mubr.msk.bf16.gmra.mrb[4].mxu0 %vm231_vm1, %v977_v49 }
  0x8e   : > { %2511 = vmatprep.mubr.msk.bf16.mxu0 %vm231_vm1, %v1076_v35  ;;  %v1215_v35 = vld [vmem:[#allocation2 + $0x8] sm:$0xff] }
  0x95   : > { %2512 = vmatmul.mubr.msk.bf16.vlgmr.msra.gmra.mrb[0].mxu0 %vm231_vm1, %v1077_v36 }
  0x96   : > { %2515 = vmatprep.mubr.msk.bf16.mxu0 %vm231_vm1, %v1078_v38 }
  0x9d   : > { %2516 = vmatmul.mubr.msk.bf16.gmra.mrb[4].mxu0 %vm231_vm1, %v1079_v50  ;;  %v1322_v50 = vsel %vm303_vm0, %v1214_v7, 0  ;;  %v2310_v7 = vld [vmem:[%s3289_s3 + $0x10] sm:$0xf] }
 0x168   : > { %v2513_v9 = vpop.f32.mrb[0].mxu0 }
 0x169   : > { %v1178_v10 = vadd.f32 %v2513_v9, %v2290_v8  ;;  %v1131_v14 = vpop.f32.mrb[1].mxu0 }
 0x16a   : > { %v1176_v16 = vadd.f32 %v2290_v8, %v1131_v14  ;;  %v2514_v18 = vpop.f32.mrb[2].mxu0 }
 0x16b   : > { %v1186_v19 = vmax.f32 %v1178_v10, 0.0  ;;  %v1179_v20 = vadd.f32 %v2514_v18, %v2290_v8  ;;  %v1134_v21 = vpop.f32.mrb[3].mxu0  ;;  %v1620_v18 = vsel %vm303_vm0, %v2310_v7, 0 }
 0x16c   : > { %v1184_v22 = vmax.f32 %v1176_v16, 0.0  ;;  %v1177_v23 = vadd.f32 %v2290_v8, %v1134_v21 }
 0x16d   : > { %1195 = vst.msk [vmem:[#allocation2 + $0x50] sm:$0xff] %vm231_vm1, %v1186_v19  ;;  %v1187_v24 = vmax.f32 %v1179_v20, 0.0  ;;  %v2315_v20 = vld [vmem:[%s3289_s3 + $0x14] sm:$0xf] }
 0x16e   : > { %1193 = vst.msk [vmem:[#allocation2 + $0x20] sm:$0xff] %vm231_vm1, %v1184_v22  ;;  %v1185_v25 = vmax.f32 %v1177_v23, 0.0 }
 0x16f   : > { %1196 = vst.msk [vmem:[#allocation2 + $0x68] sm:$0xff] %vm231_vm1, %v1187_v24 }
 0x170   : > { %1194 = vst.msk [vmem:[#allocation2 + $0x38] sm:$0xff] %vm231_vm1, %v1185_v25  ;;  %v2517_v27 = vpop.f32.mrb[4].mxu0  ;;  %v1722_v25 = vsel %vm303_vm0, %v2315_v20, 0 }
 0x171   : > { %v1182_v28 = vadd.f32 %v2517_v27, %v2290_v8  ;;  %v1147_v29 = vpop.f32.mrb[5].mxu0 }
 0x172   : > { %v1180_v30 = vadd.f32 %v2290_v8, %v1147_v29  ;;  %v2518_v31 = vpop.f32.mrb[6].mxu0 }
 0x173   : > { %v1190_v32 = vmax.f32 %v1182_v28, 0.0  ;;  %v1183_v33 = vadd.f32 %v2518_v31, %v2290_v8  ;;  %v1150_v34 = vpop.f32.mrb[7].mxu0  ;;  %v2320_v28 = vld [vmem:[%s3289_s3 + $0x18] sm:$0xf] }
 0x174   : > { %v1188_v36 = vmax.f32 %v1180_v30, 0.0  ;;  %v1181_v38 = vadd.f32 %v2290_v8, %v1150_v34  ;;  %v3139_v48 = vld [vmem:[#allocation2 + $0x50] sm:$0xff] }
 0x175   : > { %1199 = vst.msk [vmem:[#allocation2 + $0xb0] sm:$0xff] %vm231_vm1, %v1190_v32  ;;  %v1191_v41 = vmax.f32 %v1183_v33, 0.0  ;;  %v3132_v42 = vld [vmem:[#allocation2 + $0x20] sm:$0xff]  ;;  %v1205_v61 = vld [vmem:[#allocation2 + $0x4f] sm:$0xff]  ;;  %v1825_v33 = vsel %vm303_vm0, %v2320_v28, 0 }
 0x176   : > { %1197 = vst.msk [vmem:[#allocation2 + $0x80] sm:$0xff] %vm231_vm1, %v1188_v36  ;;  %v1189_v44 = vmax.f32 %v1181_v38, 0.0  ;;  %v1223_v45 = vpack.c.bf16 %v3132_v42, %v1215_v35  ;;  %v3154_v47 = vld [vmem:[#allocation2 + $0x68] sm:$0xff]  ;;  %v1203_v54 = vld [vmem:[#allocation2 + $0x1f] sm:$0xff]  ;;  %v1392_v39 = vld [vmem:[#allocation2 + $0x51] sm:$0xff] }
 0x177   : > { %1200 = vst.msk [vmem:[#allocation2 + $0xc8] sm:$0xff] %vm231_vm1, %v1191_v41  ;;  %v3137_v46 = vld [vmem:[#allocation2 + $0x38] sm:$0xff]  ;;  %v1210_v58 = vpack.c.bf16 %v1203_v54, %v1202_v53  ;;  %v1206_v0 = vld [vmem:[#allocation2 + $0x67] sm:$0xff]  ;;  %v1602_v24 = vpack.c.bf16 %v3154_v47, %v3139_v48 }
 0x178   : > { %1198 = vst.msk [vmem:[#allocation2 + $0x98] sm:$0xff] %vm231_vm1, %v1189_v44  ;;  %2521 = vmatprep.mubr.msk.bf16.mxu1 %vm231_vm1, %v1223_v45  ;;  %v3145_v49 = vpack.c.bf16 %v3139_v48, %v3137_v46  ;;  %v1204_v59 = vld [vmem:[#allocation2 + $0x37] sm:$0xff]  ;;  %v1390_v11 = vld [vmem:[#allocation2 + $0x21] sm:$0xff]  ;;  %v1393_v4 = vld [vmem:[#allocation2 + $0x69] sm:$0xff]  ;;  %v1500_v16 = vpack.c.bf16 %v1206_v0, %v1205_v61  ;;  %v1601_v23 = vpack.c.bf16 %v3137_v46, %v3132_v42 }
 0x179   : > { %v3175_v62 = vpack.c.bf16 %v1205_v61, %v1204_v59  ;;  %v1397_v15 = vpack.c.bf16 %v1390_v11, %v1389_v6  ;;  %v1391_v26 = vld [vmem:[#allocation2 + $0x39] sm:$0xff]  ;;  %v1499_v14 = vpack.c.bf16 %v1204_v59, %v1203_v54  ;;  %v1704_v32 = vpack.c.bf16 %v1393_v4, %v1392_v39 }
 0x17a   : > { %2522 = vmatmul.mubr.msk.bf16.vlgmr.msra.gmra.mrb[0].mxu1 %vm231_vm1, %v3145_v49  ;;  %v3193_v40 = vpack.c.bf16 %v1392_v39, %v1391_v26  ;;  %v1703_v31 = vpack.c.bf16 %v1391_v26, %v1390_v11  ;;  %v2325_v35 = vld [vmem:[%s3289_s3 + $0x1c] sm:$0xf]  ;;  %v2330_v42 = vld [vmem:[%s3289_s3 + $0x20] sm:$0xf] }
 0x17b   : > { %2530 = vmatpush3.bf16.msra.mxu1 %v1322_v50  ;;  %v1927_v41 = vsel %vm303_vm0, %v2325_v35, 0  ;;  %v1805_v44 = vld [vmem:[#allocation2 + $0xdf] sm:$0xff]  ;;  %v2029_v46 = vsel %vm303_vm0, %v2330_v42, 0 }
 0x17c   : > { %2748 = vmatprep.subr.msk.bf16.mxu1 %vm303_vm0, %v2300_v43  ;;  %v3164_v56 = vld [vmem:[#allocation2 + $0xb0] sm:$0xff]  ;;  %v1907_v48 = vld [vmem:[#allocation2 + $0xe0] sm:$0xff] }
 0x17d   : > { %v3156_v51 = vld [vmem:[#allocation2 + $0x80] sm:$0xff]  ;;  %v1209_v12 = vld [vmem:[#allocation2 + $0xaf] sm:$0xff] }
 0x17e   : > { %v3160_v52 = vpack.c.bf16 %v3156_v51, %v3154_v47  ;;  %v1207_v60 = vld [vmem:[#allocation2 + $0x7f] sm:$0xff]  ;;  %v1396_v9 = vld [vmem:[#allocation2 + $0xb1] sm:$0xff]  ;;  %v1498_v21 = vld [vmem:[#allocation2 + $0xc7] sm:$0xff] }
 0x17f   : > { %v3162_v55 = vld [vmem:[#allocation2 + $0x98] sm:$0xff]  ;;  %v3178_v1 = vpack.c.bf16 %v1207_v60, %v1206_v0  ;;  %v1394_v37 = vld [vmem:[#allocation2 + $0x81] sm:$0xff]  ;;  %v1502_v22 = vpack.c.bf16 %v1498_v21, %v1209_v12  ;;  %v1702_v36 = vld [vmem:[#allocation2 + $0xc9] sm:$0xff]  ;;  %v1809_v45 = vpack.c.bf16 %v1805_v44, %v1498_v21 }
 0x180   : > { %2525 = vmatprep.mubr.msk.bf16.mxu1 %vm231_vm1, %v3160_v52  ;;  %v3170_v57 = vpack.c.bf16 %v3164_v56, %v3162_v55  ;;  %v1208_v3 = vld [vmem:[#allocation2 + $0x97] sm:$0xff]  ;;  %v3196_v5 = vpack.c.bf16 %v1394_v37, %v1393_v4  ;;  %v1603_v27 = vpack.c.bf16 %v3162_v55, %v3156_v51  ;;  %v1600_v29 = vld [vmem:[#allocation2 + $0xc8] sm:$0xff]  ;;  %v1706_v38 = vpack.c.bf16 %v1702_v36, %v1396_v9  ;;  %v2335_v47 = vld [vmem:[%s3290_s4] ss:$0 sm:$0xff] }
 0x181   : > { %v3188_v13 = vpack.c.bf16 %v1209_v12, %v1208_v3  ;;  %v1395_v8 = vld [vmem:[#allocation2 + $0x99] sm:$0xff]  ;;  %v1501_v19 = vpack.c.bf16 %v1208_v3, %v1207_v60  ;;  %v1604_v30 = vpack.c.bf16 %v1600_v29, %v3164_v56  ;;  %v1911_v50 = vpack.c.bf16 %v1907_v48, %v1600_v29 }
 0x182   : > { %2526 = vmatmul.mubr.msk.bf16.gmra.mrb[4].mxu1 %vm231_vm1, %v3170_v57  ;;  %v1400_v10 = vpack.c.bf16 %v1396_v9, %v1395_v8  ;;  %v1705_v34 = vpack.c.bf16 %v1395_v8, %v1394_v37 }
 0x183   : > { %2531 = vmatprep.mubr.msk.bf16.mxu1 %vm231_vm1, %v1210_v58 }
 0x18a   : > { %2532 = vmatmul.mubr.msk.bf16.vlgmr.msra.gmra.mrb[0].mxu1 %vm231_vm1, %v3175_v62 }
 0x18b   : > { %2540 = vmatpush3.bf16.msra.mxu1 %v1416_v63  ;;  %2535 = vmatprep.mubr.msk.bf16.mxu1 %vm231_vm1, %v3178_v1 }
 0x18c   : > { %2749 = vmatprep.subr.msk.bf16.mxu1 %vm303_vm0, %v2305_v2 }
 0x192   : > { %2536 = vmatmul.mubr.msk.bf16.gmra.mrb[4].mxu1 %vm231_vm1, %v3188_v13 }
 0x193   : > { %2541 = vmatprep.mubr.msk.bf16.mxu1 %vm231_vm1, %v1397_v15 }
 0x19a   : > { %2542 = vmatmul.mubr.msk.bf16.vlgmr.msra.gmra.mrb[0].mxu1 %vm231_vm1, %v3193_v40 }
 0x19b   : > { %2550 = vmatpush3.bf16.msra.mxu1 %v1518_v17  ;;  %2545 = vmatprep.mubr.msk.bf16.mxu1 %vm231_vm1, %v3196_v5 }
 0x19c   : > { %2750 = vmatprep.subr.msk.bf16.mxu1 %vm303_vm0, %v2310_v7 }
 0x1a2   : > { %2546 = vmatmul.mubr.msk.bf16.gmra.mrb[4].mxu1 %vm231_vm1, %v1400_v10 }
 0x1a3   : > { %2551 = vmatprep.mubr.msk.bf16.mxu1 %vm231_vm1, %v1499_v14 }
 0x1aa   : > { %2552 = vmatmul.mubr.msk.bf16.vlgmr.msra.gmra.mrb[0].mxu1 %vm231_vm1, %v1500_v16 }
 0x1ab   : > { %2560 = vmatpush3.bf16.msra.mxu1 %v1620_v18  ;;  %2555 = vmatprep.mubr.msk.bf16.mxu1 %vm231_vm1, %v1501_v19 }
 0x1ac   : > { %2751 = vmatprep.subr.msk.bf16.mxu1 %vm303_vm0, %v2315_v20 }
 0x1b2   : > { %2556 = vmatmul.mubr.msk.bf16.gmra.mrb[4].mxu1 %vm231_vm1, %v1502_v22 }
 0x1b3   : > { %2561 = vmatprep.mubr.msk.bf16.mxu1 %vm231_vm1, %v1601_v23 }
 0x1ba   : > { %2562 = vmatmul.mubr.msk.bf16.vlgmr.msra.gmra.mrb[0].mxu1 %vm231_vm1, %v1602_v24 }
 0x1bb   : > { %2570 = vmatpush3.bf16.msra.mxu1 %v1722_v25  ;;  %2565 = vmatprep.mubr.msk.bf16.mxu1 %vm231_vm1, %v1603_v27 }
 0x1bc   : > { %2752 = vmatprep.subr.msk.bf16.mxu1 %vm303_vm0, %v2320_v28 }
 0x1c2   : > { %2566 = vmatmul.mubr.msk.bf16.gmra.mrb[4].mxu1 %vm231_vm1, %v1604_v30 }
 0x1c3   : > { %2571 = vmatprep.mubr.msk.bf16.mxu1 %vm231_vm1, %v1703_v31 }
 0x1ca   : > { %2572 = vmatmul.mubr.msk.bf16.vlgmr.msra.gmra.mrb[0].mxu1 %vm231_vm1, %v1704_v32 }
 0x1cb   : > { %2580 = vmatpush3.bf16.msra.mxu1 %v1825_v33  ;;  %2575 = vmatprep.mubr.msk.bf16.mxu1 %vm231_vm1, %v1705_v34 }
 0x1cc   : > { %2753 = vmatprep.subr.msk.bf16.mxu1 %vm303_vm0, %v2325_v35 }
 0x1d2   : > { %2576 = vmatmul.mubr.msk.bf16.gmra.mrb[4].mxu1 %vm231_vm1, %v1706_v38 }
 0x1d3   : > { %2581 = vmatprep.mubr.msk.bf16.mxu1 %vm231_vm1, %v3175_v62 }
 0x1da   : > { %2582 = vmatmul.mubr.msk.bf16.vlgmr.msra.gmra.mrb[0].mxu1 %vm231_vm1, %v3178_v1 }
 0x1db   : > { %2590 = vmatpush3.bf16.msra.mxu1 %v1927_v41  ;;  %2585 = vmatprep.mubr.msk.bf16.mxu1 %vm231_vm1, %v3188_v13 }
 0x1dc   : > { %2754 = vmatprep.subr.msk.bf16.mxu1 %vm303_vm0, %v2330_v42 }
 0x1e2   : > { %2586 = vmatmul.mubr.msk.bf16.gmra.mrb[4].mxu1 %vm231_vm1, %v1809_v45 }
 0x1e3   : > { %2591 = vmatprep.mubr.msk.bf16.mxu1 %vm231_vm1, %v3145_v49  ;;  %v2009_v49 = vld [vmem:[#allocation2 + $0xe1] sm:$0xff] }
 0x1e4   : > { %v2013_v43 = vpack.c.bf16 %v2009_v49, %v1702_v36 }
 0x1ea   : > { %2592 = vmatmul.mubr.msk.bf16.vlgmr.msra.gmra.mrb[0].mxu1 %vm231_vm1, %v3160_v52 }
 0x1eb   : > { %2600 = vmatpush3.bf16.msra.mxu1 %v2029_v46  ;;  %2595 = vmatprep.mubr.msk.bf16.mxu1 %vm231_vm1, %v3170_v57 }
 0x1f2   : > { %2596 = vmatmul.mubr.msk.bf16.gmra.mrb[4].mxu1 %vm231_vm1, %v1911_v50 }
 0x1f3   : > { %2601 = vmatprep.mubr.msk.bf16.mxu1 %vm231_vm1, %v3193_v40 }
 0x1fa   : > { %2602 = vmatmul.mubr.msk.bf16.vlgmr.msra.gmra.mrb[0].mxu1 %vm231_vm1, %v3196_v5 }
 0x1fb   : > { %2605 = vmatprep.mubr.msk.bf16.mxu1 %vm231_vm1, %v1400_v10 }
 0x202   : > { %2606 = vmatmul.mubr.msk.bf16.gmra.mrb[4].mxu1 %vm231_vm1, %v2013_v43 }
 0x2cd   : > { %v2603_v51 = vpop.f32.mrb[0].mxu1 }
 0x2ce   : > { %v2112_v52 = vadd.f32 %v2603_v51, %v2335_v47  ;;  %v2065_v53 = vpop.f32.mrb[1].mxu1 }
 0x2cf   : > { %v2110_v54 = vadd.f32 %v2335_v47, %v2065_v53  ;;  %v2604_v55 = vpop.f32.mrb[2].mxu1 }
 0x2d0   : > { %2120 = vst.msk [vmem:[%s229_s22 + $0x10] sm:$0xff] %vm231_vm1, %v2112_v52  ;;  %v2113_v56 = vadd.f32 %v2604_v55, %v2335_v47  ;;  %v2068_v57 = vpop.f32.mrb[3].mxu1 }
 0x2d1   : > { %2118 = vst.msk [vmem:[%s229_s22] sm:$0xff] %vm231_vm1, %v2110_v54  ;;  %v2111_v58 = vadd.f32 %v2335_v47, %v2068_v57 }
 0x2d2   : > { %2121 = vst.msk [vmem:[%s229_s22 + $0x18] sm:$0xff] %vm231_vm1, %v2113_v56 }
 0x2d3   : > { %2119 = vst.msk [vmem:[%s229_s22 + $0x8] sm:$0xff] %vm231_vm1, %v2111_v58 }
 0x2d5   : > { %v2607_v59 = vpop.f32.mrb[4].mxu1 }
 0x2d6   : > { %v2116_v60 = vadd.f32 %v2607_v59, %v2335_v47  ;;  %v2081_v61 = vpop.f32.mrb[5].mxu1 }
 0x2d7   : > { %v2114_v62 = vadd.f32 %v2335_v47, %v2081_v61  ;;  %v2608_v63 = vpop.f32.mrb[6].mxu1 }
 0x2d8   : > { %2124 = vst.msk [vmem:[%s229_s22 + $0x30] sm:$0xff] %vm231_vm1, %v2116_v60  ;;  %v2117_v0 = vadd.f32 %v2608_v63, %v2335_v47  ;;  %v2084_v1 = vpop.f32.mrb[7].mxu1 }
 0x2d9   : > { %2122 = vst.msk [vmem:[%s229_s22 + $0x20] sm:$0xff] %vm231_vm1, %v2114_v62  ;;  %v2115_v2 = vadd.f32 %v2335_v47, %v2084_v1 }
 0x2da   : > { %2125 = vst.msk [vmem:[%s229_s22 + $0x38] sm:$0xff] %vm231_vm1, %v2117_v0 }
 0x2db   : > { %2123 = vst.msk [vmem:[%s229_s22 + $0x28] sm:$0xff] %vm231_vm1, %v2115_v2 }
 0x2dc PF: > { %s15_s18 = sadd.s32 1, %s2771_s18  }
 0x2dd   : > { %p12_p5 = scmp.ge.s32.totalorder %s15_s18, 4  }
 0x2df   :  { %14 = sbr.rel (!%p12_p5) target bundleno = 1 (0x1), region = 93 }

// kernel: se_forward.7
= control target key start
LH: loop header
LB: loop body
LE: loop exit
PB: predicated region body
PF: predicated region fallthrough
CT: control target
= control target key end

     0   :  { %10 = vsyncpa [#allocation4], 0  ;;  %s2179_s0 = inlined_call_operand.vmem [shape: f32[8,3,3,8], index: 0, kind: input, shape index: {}]   ;;  %s2180_s1 = inlined_call_operand.vmem [shape: bf16[9,8,8], index: 1, kind: input, shape index: {}]   ;;  %s2181_s2 = inlined_call_operand.vmem [shape: f32[1,8], index: 2, kind: input, shape index: {}]   ;;  %s2182_s3 = inlined_call_operand.vmem [shape: bf16[9,8,8], index: 3, kind: input, shape index: {}]   ;;  %s2183_s4 = inlined_call_operand.vmem [shape: f32[1,8], index: 4, kind: input, shape index: {}]   ;;  %s2184_s5 = inlined_call_operand.hbm [shape: f32[2,2,2,8], index: 5, kind: output, shape index: {}]  }
   0x1   :  { %12 = vsyncpa [#allocation4 + $0x1], 0  ;;  %s1877_s18 = smov 0   ;;  %s1879_s19 = smov 0  }
   0x2   :  { %s1881_s20 = smov 0   ;;  %s1883_s21 = smov 0  }
   0x3 LB: > { %s1898_s22 = sadd.s32 4294967295, %s1839_s21   ;;  %s1498_s23 = sadd.s32 4294967294, %s1839_s21   ;;  %s1839_s21 = sphi %s1883_s21, %s2191_s21   ;;  %s1835_s20 = sphi %s1881_s20, %s2190_s20   ;;  %s1831_s19 = sphi %s1879_s19, %s2189_s19   ;;  %s1827_s18 = sphi %s1877_s18, %s2188_s18  }
   0x4   : > { %s1902_s24 = sadd.s32 1, %s1839_s21   ;;  %s135_s25 = sadd.s32 1, %s1835_s20 }
   0x5   : > { %s132_s26 = ssub.s32 %s1839_s21, %s1902_s24  ;;  %p145_p0 = scmp.ne.s32.totalorder %s1835_s20, %s1831_s19 }
   0x6   : > { %p133_p1 = scmp.eq.s32.totalorder %s132_s26, 0  ;;  %p146_p2 = scmp.eq.s32.totalorder %s1898_s22, 1 }
   0x7   : > { %p151_p3 = scmp.ne.s32.totalorder %s1831_s19, %s1827_s18  ;;  %p152_p4 = scmp.eq.s32.totalorder %s1498_s23, 1 }
   0x8   : > { %s1913_s27 = scalar_select %p133_p1, %s1835_s20, %s135_s25  }
   0x9   : > { %p1915_p5 = por %p146_p2, %p145_p0  ;;  %p1919_p6 = por %p152_p4, %p151_p3 }
   0xa   : > { %p1501_p7 = scmp.ge.s32.totalorder %s1839_s21, 1  ;;  %p192_p8 = scmp.lt.s32.totalorder %s1839_s21, 3 }
   0xc   : > { %p193_p9 = pnand %p1501_p7, %p192_p8 }
   0xd   : > { %v1507_v0 = vld [vmem:[%s2180_s1 + $0x4] sm:$0xf] (!%p193_p9)  ;;  %vm279_vm0 = vcmask (!%p193_p9), 1043456   ;;  %v258_v1 = vld [vmem:[%s2180_s1] sm:$0xf] (!%p193_p9)  ;;  %v252_v2 = vlaneseq (!%p193_p9)  ;;  %v1841_v3 = vmov (!%p193_p9), 0.0  }
   0xe   : > { %196 = sbr.rel (%p193_p9) target bundleno = 559 (0x22f), region = 40  ;;  %1597 = vmatprep.subr.bf16.mxu0 (!%p193_p9), %v1841_v3  ;;  %v281_v4 = vsel (!%p193_p9), %vm279_vm0, %v1507_v0, 0  ;;  %1603 = vmatprep.subr.bf16.mxu1 (!%p193_p9), %v1841_v3  ;;  %v327_v5 = vsel (!%p193_p9), %vm279_vm0, %v258_v1, 0  ;;  %s1503_s9 = sshll.u32 (!%p193_p9), %s1898_s22, 2  ;;  %vm229_vm1 = vcmask (!%p193_p9), 64512   ;;  %vm1842_vm2 = vmmov (!%p193_p9), 0  }
   0xf   : > { %1598 = vmatpush3.bf16.msra.mxu0 (!%p193_p9), %v281_v4  ;;  %1604 = vmatpush3.bf16.msra.mxu1 (!%p193_p9), %v327_v5  ;;  %p1936_p10 = scmp.lt.s32.totalorder (!%p193_p9), %s1503_s9, 7  ;;  %230 = vst.msk [vmem:[#allocation2] sm:$0xff] (!%p193_p9), %vm229_vm1, %v1841_v3  ;;  %231 = vst.msk [vmem:[#allocation2 + $0x8] sm:$0xff] (!%p193_p9), %vm229_vm1, %v1841_v3  ;;  %v1843_v6 = vmov (!%p193_p9), 1983009808   ;;  %v253_v8 = vshrl.u32 (!%p193_p9), %v252_v2, 7 }
  0x10   : > { %234 = vst.msk [vmem:[#allocation2 + $0x18] sm:$0xff] (!%p193_p9), %vm229_vm1, %v1841_v3  ;;  %235 = vst.msk [vmem:[#allocation2 + $0x20] sm:$0xff] (!%p193_p9), %vm229_vm1, %v1841_v3  ;;  %1599 = vmatprep.mubr.msk.bf16.mxu0 (!%p193_p9), %vm1842_vm2, %v1841_v3  ;;  %1605 = vmatprep.mubr.msk.bf16.mxu1 (!%p193_p9), %vm1842_vm2, %v1841_v3  ;;  %v250_v7 = vunpack.c.l.s4 (!%p193_p9), %v1843_v6  ;;  %v1510_v11 = vld [vmem:[%s2180_s1 + $0x8] sm:$0xf] (!%p193_p9)  ;;  %v1514_v13 = vld [vmem:[%s2180_s1 + $0xc] sm:$0xf] (!%p193_p9) }
  0x11   : > { %237 = vst.msk [vmem:[#allocation2 + $0x30] sm:$0xff] (!%p193_p9), %vm229_vm1, %v1841_v3  ;;  %238 = vst.msk [vmem:[#allocation2 + $0x38] sm:$0xff] (!%p193_p9), %vm229_vm1, %v1841_v3  ;;  %1609 = vmatprep.subr.bf16.mxu0 (!%p193_p9), %v1841_v3  ;;  %1615 = vmatprep.subr.bf16.mxu1 (!%p193_p9), %v1841_v3  ;;  %v389_v18 = vsel (!%p193_p9), %vm279_vm0, %v1510_v11, 0  ;;  %v453_v20 = vsel (!%p193_p9), %vm279_vm0, %v1514_v13, 0  ;;  %v1518_v21 = vld [vmem:[%s2180_s1 + $0x10] sm:$0xf] (!%p193_p9) }
  0x12   : > { %240 = vst.msk [vmem:[#allocation2 + $0x48] sm:$0xff] (!%p193_p9), %vm229_vm1, %v1841_v3  ;;  %241 = vst.msk [vmem:[#allocation2 + $0x50] sm:$0xff] (!%p193_p9), %vm229_vm1, %v1841_v3  ;;  %v251_v9 = vunpack.c.0.s8 (!%p193_p9), %v250_v7  ;;  %v1522_v22 = vld [vmem:[%s2180_s1 + $0x14] sm:$0xf] (!%p193_p9)  ;;  %v517_v27 = vsel (!%p193_p9), %vm279_vm0, %v1518_v21, 0  ;;  %vm232_vm3 = vcmask (!%p193_p9), 58368  }
  0x13   : > { %v580_v28 = vsel (!%p193_p9), %vm279_vm0, %v1522_v22, 0  ;;  %v1526_v29 = vld [vmem:[%s2180_s1 + $0x18] sm:$0xf] (!%p193_p9)  ;;  %v1530_v31 = vld [vmem:[%s2180_s1 + $0x1c] sm:$0xf] (!%p193_p9)  ;;  %s218_s17 = sand.u32 (!%p193_p9), 1, %s1831_s19  }
  0x14   : > { %v1964_v10 = vsub.s32 (!%p193_p9), %v251_v9, %v253_v8  ;;  %v644_v35 = vsel (!%p193_p9), %vm279_vm0, %v1526_v29, 0  ;;  %v708_v36 = vsel (!%p193_p9), %vm279_vm0, %v1530_v31, 0  ;;  %v1534_v37 = vld [vmem:[%s2180_s1 + $0x20] sm:$0xf] (!%p193_p9)  ;;  %v1537_v43 = vld [vmem:[%s2182_s3 + $0x4] sm:$0xf] (!%p193_p9) }
  0x15   : > { %s2193_s9 = smov (!%p1936_p10, %s1503_s9), 7  ;;  %v771_v41 = vsel %vm279_vm0, %v1534_v37, 0  ;;  %v851_v44 = vld [vmem:[%s2182_s3] sm:$0xf]  ;;  %v872_v45 = vsel %vm279_vm0, %v1537_v43, 0  ;;  %s1502_s23 = sshll.u32 %s218_s17, 2 }
  0x16   : > { %s1705_s11 = smul.u32 12, %s2193_s9  ;;  %v918_v46 = vsel %vm279_vm0, %v851_v44, 0  ;;  %s1560_s30 = sshll.u32 %s1898_s22, 6 }
  0x17   : > { %s220_s6 = scalar_lea.vmem [#allocation3], %s1502_s23  ;;  %s2132_s10 = scalar_lea.hbm %s2184_s5, %s1560_s30 }
  0x18   : > { %s1969_s14 = scalar_lea.vmem %s2179_s0, %s1705_s11  ;;  %s1436_s7 = sshll.u32 %s220_s6, 4  ;;  %s2134_s7 = int_to_ptr.vmem [resolvable:$true] %s1436_s7 }
  0x19   : > { %v1768_v12 = vld.sshfl [vmem:[%s1969_s14 + $0xc] sm:$0xf pattern:$0x76325410]  ;;  %s2138_s22 = scalar_lea.sflag [#allocation4], %s218_s17  ;;  %s1777_s11 = scalar_lea.vmem %s2134_s7, 64 }
  0x1a   : > { %v1769_v14 = vld.sshfl [vmem:[%s1969_s14] sm:$0xf pattern:$0x76325410]  ;;  %v273_v17 = vpack.c.bf16 %v1768_v12, %v1768_v12  ;;  %p1778_p11 = scmp.ne.s32.totalorder %s2134_s7, %s1777_s11  ;;  %s1844_s12 = smov [#allocation3]  }
  0x1b   : > { %v1770_v15 = vld.sshfl [vmem:[%s1969_s14 + $0x1] sm:$0xf pattern:$0x76325410]  ;;  %v257_v19 = vpack.c.bf16 %v1769_v14, %v1769_v14  ;;  %s1781_s13 = sshll.u32 %s1844_s12, 4  ;;  %s1782_s13 = int_to_ptr.vmem [resolvable:$false] %s1781_s13 }
  0x1c   : > { %v1771_v16 = vld.sshfl [vmem:[%s1969_s14 + $0x18] sm:$0xf pattern:$0x76325410]  ;;  %1600 = vmatmul.mubr.msk.bf16.vlgmr.msra.gmra.mrb[0].mxu0 %vm229_vm1, %v273_v17  ;;  %v382_v24 = vpack.c.bf16 %v1770_v15, %v1770_v15  ;;  %p1779_p12 = pnand %p1778_p11, %p1915_p5  ;;  %p1784_p0 = scmp.lt.s32.totalorder %s2134_s7, %s1782_s13 }
  0x1d   : > { %1606 = vmatmul.mubr.msk.bf16.vlgmr.msra.gmra.mrb[0].mxu1 %vm229_vm1, %v257_v19  ;;  %1610 = vmatpush3.bf16.msra.mxu0 %v389_v18  ;;  %v1772_v23 = vld.sshfl [vmem:[%s1969_s14 + $0x24] sm:$0xf pattern:$0x76325410]  ;;  %v446_v25 = vpack.c.bf16 %v1771_v16, %v1771_v16 }
  0x1e   : > { %1616 = vmatpush3.bf16.msra.mxu1 %v453_v20  ;;  %1611 = vmatprep.mubr.msk.bf16.mxu0 %vm1842_vm2, %v1841_v3  ;;  %v1773_v26 = vld.sshfl [vmem:[%s1969_s14 + $0x19] sm:$0xf pattern:$0x76325410]  ;;  %v510_v30 = vpack.c.bf16 %v1772_v23, %v1772_v23  ;;  %p1780_p13 = pneg %p1779_p12 }
  0x1f   : > { %1621 = vmatprep.subr.bf16.mxu0 %v1841_v3  ;;  %1617 = vmatprep.mubr.msk.bf16.mxu1 %vm1842_vm2, %v1841_v3  ;;  %v1774_v32 = vld.sshfl [vmem:[%s1969_s14 + $0x4] sm:$0xf pattern:$0x76325410]  ;;  %v573_v33 = vpack.c.bf16 %v1773_v26, %v1773_v26 }
  0x20   : > { %1627 = vmatprep.subr.bf16.mxu1 %v1841_v3  ;;  %v1775_v34 = vld.sshfl [vmem:[%s1969_s14 + $0x10] sm:$0xf pattern:$0x76325410]  ;;  %v637_v38 = vpack.c.bf16 %v1774_v32, %v1774_v32 }
  0x21   : > { %v1776_v39 = vld.sshfl [vmem:[%s1969_s14 + $0x5] sm:$0xf pattern:$0x76325410]  ;;  %v701_v40 = vpack.c.bf16 %v1775_v34, %v1775_v34  ;;  %s1783_s14 = scalar_lea.vmem %s1782_s13, 128 }
  0x22   : > { %v764_v42 = vpack.c.bf16 %v1776_v39, %v1776_v39  ;;  %v1540_v34 = vld [vmem:[%s2182_s3 + $0x8] sm:$0xf]  ;;  %p1785_p1 = scmp.lt.s32.totalorder %s1783_s14, %s1777_s11 }
  0x24   : > { %1612 = vmatmul.mubr.msk.bf16.vlgmr.msra.gmra.mrb[4].mxu0 %vm229_vm1, %v382_v24  ;;  %v1536_v24 = vld [vmem:[%s2181_s2] ss:$0 sm:$0xff]  ;;  %p1786_p2 = por %p1785_p1, %p1784_p0 }
  0x25   : > { %1622 = vmatpush3.bf16.msra.mxu0 %v517_v27  ;;  %1618 = vmatmul.mubr.msk.bf16.vlgmr.msra.gmra.mrb[4].mxu1 %vm229_vm1, %v446_v25 }
  0x26   : > { %1628 = vmatpush3.bf16.msra.mxu1 %v580_v28  ;;  %1623 = vmatprep.mubr.msk.bf16.mxu0 %vm1842_vm2, %v1841_v3  ;;  %p1787_p3 = pnand %p1786_p2, %p1780_p13 }
  0x27   : > { %1633 = vmatprep.subr.bf16.mxu0 %v1841_v3  ;;  %1629 = vmatprep.mubr.msk.bf16.mxu1 %vm1842_vm2, %v1841_v3 }
  0x28   : > { %1639 = vmatprep.subr.bf16.mxu1 %v1841_v3 }
  0x2c   : > { %1624 = vmatmul.mubr.msk.bf16.vlgmr.msra.gmra.mrb[8].mxu0 %vm229_vm1, %v510_v30 }
  0x2d   : > { %1634 = vmatpush3.bf16.msra.mxu0 %v644_v35  ;;  %1630 = vmatmul.mubr.msk.bf16.vlgmr.msra.gmra.mrb[8].mxu1 %vm229_vm1, %v573_v33 }
  0x2e   : > { %1640 = vmatpush3.bf16.msra.mxu1 %v708_v36  ;;  %1635 = vmatprep.mubr.msk.bf16.mxu0 %vm1842_vm2, %v1841_v3 }
  0x2f   : > { %1645 = vmatprep.subr.bf16.mxu0 %v1841_v3  ;;  %1641 = vmatprep.mubr.msk.bf16.mxu1 %vm1842_vm2, %v1841_v3 }
  0x30   : > { %1651 = vmatprep.subr.bf16.mxu1 %v1841_v3 }
  0x34   : > { %1636 = vmatmul.mubr.msk.bf16.vlgmr.msra.gmra.mrb[12].mxu0 %vm229_vm1, %v637_v38  ;;  %v1542_v38 = vld [vmem:[%s2182_s3 + $0xc] sm:$0xf] }
  0x35   : > { %1646 = vmatpush3.bf16.msra.mxu0 %v771_v41  ;;  %1642 = vmatmul.mubr.msk.bf16.vlgmr.msra.gmra.mrb[12].mxu1 %vm229_vm1, %v701_v40  ;;  %v980_v41 = vsel %vm279_vm0, %v1540_v34, 0  ;;  %v1043_v44 = vsel %vm279_vm0, %v1542_v38, 0 }
  0x36   : > { %1647 = vmatprep.mubr.msk.bf16.mxu0 %vm1842_vm2, %v1841_v3  ;;  %1657 = vmatprep.subr.bf16.mxu0 %v1841_v3 }
  0x37   : > { %1653 = vmatprep.mubr.msk.bf16.mxu1 %vm1842_vm2, %v1841_v3  ;;  %1652 = vmatpush3.bf16.msra.mxu1 %v872_v45 }
  0x38   : > { %1663 = vmatprep.subr.bf16.mxu1 %v1841_v3 }
  0x3c   : > { %1648 = vmatmul.mubr.msk.bf16.vlgmr.msra.gmra.mrb[16].mxu0 %vm229_vm1, %v764_v42 }
  0x3d   : > { %1659 = vmatprep.mubr.msk.bf16.mxu0 %vm1842_vm2, %v1841_v3  ;;  %1658 = vmatpush3.bf16.msra.mxu0 %v918_v46 }
  0x3e   : > { %1669 = vmatprep.subr.bf16.mxu0 %v1841_v3 }
  0xef   : > { %v317_v47 = vpop.f32.mrb[0].mxu0 }
  0xf0   : > { %v363_v48 = vpop.f32.mrb[0].mxu1  ;;  %v1601_v49 = vpop.f32.mrb[1].mxu0 }
  0xf1   : > { %v364_v50 = vadd.f32 %v363_v48, %v317_v47  ;;  %v320_v51 = vpop.f32.mrb[2].mxu0  ;;  %v1607_v52 = vpop.f32.mrb[1].mxu1  ;;  %v1544_v48 = vld [vmem:[%s2182_s3 + $0x10] sm:$0xf]  ;;  %v1546_v49 = vld [vmem:[%s2182_s3 + $0x14] sm:$0xf] }
  0xf2   : > { %v1602_v53 = vpop.f32.mrb[3].mxu0  ;;  %v366_v54 = vpop.f32.mrb[2].mxu1  ;;  %v1106_v51 = vsel %vm279_vm0, %v1544_v48, 0 }
  0xf3   : > { %v1608_v55 = vpop.f32.mrb[3].mxu1  ;;  %v1169_v54 = vsel %vm279_vm0, %v1546_v49, 0 }
  0xf7   : > { %v425_v56 = vpop.f32.mrb[4].mxu0 }
  0xf8   : > { %v431_v57 = vadd.f32 %v425_v56, %v364_v50  ;;  %v1613_v58 = vpop.f32.mrb[5].mxu0  ;;  %v489_v59 = vpop.f32.mrb[4].mxu1 }
  0xf9   : > { %v428_v60 = vpop.f32.mrb[6].mxu0  ;;  %v1619_v61 = vpop.f32.mrb[5].mxu1  ;;  %v1548_v58 = vld [vmem:[%s2182_s3 + $0x18] sm:$0xf] }
  0xfa   : > { %v495_v62 = vadd.f32 %v489_v59, %v431_v57  ;;  %v1614_v63 = vpop.f32.mrb[7].mxu0  ;;  %v492_v0 = vpop.f32.mrb[6].mxu1  ;;  %v1550_v59 = vld [vmem:[%s2182_s3 + $0x1c] sm:$0xf]  ;;  %v1233_v61 = vsel %vm279_vm0, %v1548_v58, 0 }
  0xfb   : > { %v1620_v1 = vpop.f32.mrb[7].mxu1  ;;  %v1296_v0 = vsel %vm279_vm0, %v1550_v59, 0 }
  0xff   : > { %v553_v2 = vpop.f32.mrb[8].mxu0 }
 0x100   : > { %v559_v4 = vadd.f32 %v553_v2, %v495_v62  ;;  %v1625_v5 = vpop.f32.mrb[9].mxu0  ;;  %v616_v6 = vpop.f32.mrb[8].mxu1 }
 0x101   : > { %v556_v7 = vpop.f32.mrb[10].mxu0  ;;  %v1631_v8 = vpop.f32.mrb[9].mxu1  ;;  %v1552_v5 = vld [vmem:[%s2182_s3 + $0x20] sm:$0xf] }
 0x102   : > { %v622_v9 = vadd.f32 %v616_v6, %v559_v4  ;;  %v1626_v11 = vpop.f32.mrb[11].mxu0  ;;  %v619_v12 = vpop.f32.mrb[10].mxu1  ;;  %v1359_v7 = vsel %vm279_vm0, %v1552_v5, 0 }
 0x103   : > { %v1632_v13 = vpop.f32.mrb[11].mxu1 }
 0x107   : > { %v680_v14 = vpop.f32.mrb[12].mxu0 }
 0x108   : > { %v686_v15 = vadd.f32 %v680_v14, %v622_v9  ;;  %v1637_v16 = vpop.f32.mrb[13].mxu0  ;;  %v744_v17 = vpop.f32.mrb[12].mxu1 }
 0x109   : > { %v683_v18 = vpop.f32.mrb[14].mxu0  ;;  %v1643_v19 = vpop.f32.mrb[13].mxu1 }
 0x10a   : > { %v750_v20 = vadd.f32 %v744_v17, %v686_v15  ;;  %v1638_v21 = vpop.f32.mrb[15].mxu0  ;;  %v747_v22 = vpop.f32.mrb[14].mxu1 }
 0x10b   : > { %v1644_v23 = vpop.f32.mrb[15].mxu1 }
 0x10f   : > { %v807_v25 = vpop.f32.mrb[16].mxu0 }
 0x110   : > { %v813_v26 = vadd.f32 %v807_v25, %v750_v20  ;;  %v1649_v27 = vpop.f32.mrb[17].mxu0 }
 0x111   : > { %v810_v28 = vpop.f32.mrb[18].mxu0 }
 0x112   : > { %v820_v29 = vadd.f32 %v1536_v24, %v813_v26  ;;  %v1650_v30 = vpop.f32.mrb[19].mxu0 }
 0x114   : > { %v821_v31 = vmax.f32 %v820_v29, 0.0 }
 0x116   : > { %v829_v32 = vrot.slane %v821_v31, %v1964_v10 }
 0x118   : > { %v830_v33 = vcombine.high %v829_v32, %v829_v32  ;;  %834 = vst.msk [vmem:[#allocation2 + $0x20] sm:$0x3] %vm232_vm3, %v829_v32 }
 0x11a   : > { %835 = vst.msk [vmem:[#allocation2 + $0x38] sm:$0x3] %vm232_vm3, %v830_v33 }
 0x11f   : > { %v1759_v35 = vld [vmem:[#allocation2 + $0x8] ss:$24 sps:$4 sm:$0x33]  }
 0x120   : > { %v1760_v36 = vld [vmem:[#allocation2 + $0x7] ss:$24 sps:$4 sm:$0x33]   ;;  %v863_v37 = vrot.slane %v1759_v35, %v1964_v10  ;;  %v1761_v42 = vld [vmem:[#allocation2 + $0x9] ss:$24 sps:$4 sm:$0x33]  }
 0x121   : > { %v848_v39 = vrot.slane %v1760_v36, %v1964_v10  ;;  %v1762_v45 = vld [vmem:[#allocation2 + $0x1f] ss:$24 sps:$4 sm:$0x33]   ;;  %v971_v46 = vrot.slane %v1761_v42, %v1964_v10  ;;  %v1764_v55 = vld [vmem:[#allocation2 + $0x21] ss:$24 sps:$4 sm:$0x33]  }
 0x122   : > { %v865_v40 = vpack.c.bf16 %v863_v37, %v863_v37  ;;  %v1034_v47 = vrot.slane %v1762_v45, %v1964_v10  ;;  %v1763_v52 = vld [vmem:[#allocation2 + $0x20] ss:$24 sps:$4 sm:$0x33]   ;;  %v1160_v57 = vrot.slane %v1764_v55, %v1964_v10 }
 0x123   : > { %v850_v43 = vpack.c.bf16 %v848_v39, %v848_v39  ;;  %v973_v50 = vpack.c.bf16 %v971_v46, %v971_v46  ;;  %v1097_v56 = vrot.slane %v1763_v52, %v1964_v10  ;;  %v1765_v62 = vld [vmem:[#allocation2 + $0x37] ss:$24 sps:$4 sm:$0x33]   ;;  %v1767_v8 = vld [vmem:[#allocation2 + $0x39] ss:$24 sps:$4 sm:$0x33]  }
 0x124   : > { %1654 = vmatmul.mubr.msk.bf16.vlgmr.msra.gmra.mrb[16].mxu1 %vm229_vm1, %v865_v40  ;;  %v1036_v53 = vpack.c.bf16 %v1034_v47, %v1034_v47  ;;  %v1162_v63 = vpack.c.bf16 %v1160_v57, %v1160_v57  ;;  %v1766_v1 = vld [vmem:[#allocation2 + $0x38] ss:$24 sps:$4 sm:$0x33]   ;;  %v1224_v2 = vrot.slane %v1765_v62, %v1964_v10  ;;  %v1350_v11 = vrot.slane %v1767_v8, %v1964_v10 }
 0x125   : > { %1660 = vmatmul.mubr.msk.bf16.vlgmr.msra.gmra.mrb[20].mxu0 %vm229_vm1, %v850_v43  ;;  %1664 = vmatpush3.bf16.msra.mxu1 %v980_v41  ;;  %v1099_v60 = vpack.c.bf16 %v1097_v56, %v1097_v56  ;;  %v1287_v4 = vrot.slane %v1766_v1, %v1964_v10 }
 0x126   : > { %1670 = vmatpush3.bf16.msra.mxu0 %v1043_v44  ;;  %1665 = vmatprep.mubr.msk.bf16.mxu1 %vm1842_vm2, %v1841_v3  ;;  %v1226_v6 = vpack.c.bf16 %v1224_v2, %v1224_v2  ;;  %v1352_v12 = vpack.c.bf16 %v1350_v11, %v1350_v11 }
 0x127   : > { %1671 = vmatprep.mubr.msk.bf16.mxu0 %vm1842_vm2, %v1841_v3  ;;  %1675 = vmatprep.subr.bf16.mxu1 %v1841_v3  ;;  %v1289_v9 = vpack.c.bf16 %v1287_v4, %v1287_v4 }
 0x128   : > { %1681 = vmatprep.subr.bf16.mxu0 %v1841_v3 }
 0x12c   : > { %1666 = vmatmul.mubr.msk.bf16.vlgmr.msra.gmra.mrb[20].mxu1 %vm229_vm1, %v973_v50 }
 0x12d   : > { %1672 = vmatmul.mubr.msk.bf16.vlgmr.msra.gmra.mrb[24].mxu0 %vm229_vm1, %v1036_v53  ;;  %1676 = vmatpush3.bf16.msra.mxu1 %v1106_v51  ;;  %v1554_v51 = vld [vmem:[%s2183_s4] ss:$0 sm:$0xff] }
 0x12e   : > { %1682 = vmatpush3.bf16.msra.mxu0 %v1169_v54  ;;  %1677 = vmatprep.mubr.msk.bf16.mxu1 %vm1842_vm2, %v1841_v3 }
 0x12f   : > { %1683 = vmatprep.mubr.msk.bf16.mxu0 %vm1842_vm2, %v1841_v3  ;;  %1687 = vmatprep.subr.bf16.mxu1 %v1841_v3 }
 0x130   : > { %1693 = vmatprep.subr.bf16.mxu0 %v1841_v3 }
 0x134   : > { %1678 = vmatmul.mubr.msk.bf16.vlgmr.msra.gmra.mrb[24].mxu1 %vm229_vm1, %v1099_v60 }
 0x135   : > { %1684 = vmatmul.mubr.msk.bf16.vlgmr.msra.gmra.mrb[28].mxu0 %vm229_vm1, %v1162_v63  ;;  %1688 = vmatpush3.bf16.msra.mxu1 %v1233_v61 }
 0x136   : > { %1694 = vmatpush3.bf16.msra.mxu0 %v1296_v0  ;;  %1689 = vmatprep.mubr.msk.bf16.mxu1 %vm1842_vm2, %v1841_v3 }
 0x137   : > { %1695 = vmatprep.mubr.msk.bf16.mxu0 %vm1842_vm2, %v1841_v3  ;;  %1699 = vmatprep.subr.bf16.mxu1 %v1841_v3 }
 0x13c   : > { %1690 = vmatmul.mubr.msk.bf16.vlgmr.msra.gmra.mrb[28].mxu1 %vm229_vm1, %v1226_v6 }
 0x13d   : > { %1696 = vmatmul.mubr.msk.bf16.vlgmr.msra.gmra.mrb[32].mxu0 %vm229_vm1, %v1289_v9  ;;  %1700 = vmatpush3.bf16.msra.mxu1 %v1359_v7 }
 0x13e   : > { %1701 = vmatprep.mubr.msk.bf16.mxu1 %vm1842_vm2, %v1841_v3 }
 0x144   : > { %1702 = vmatmul.mubr.msk.bf16.vlgmr.msra.gmra.mrb[32].mxu1 %vm229_vm1, %v1352_v12 }
 0x1f7   : > { %v908_v13 = vpop.f32.mrb[16].mxu1 }
 0x1f8   : > { %v954_v14 = vpop.f32.mrb[20].mxu0  ;;  %v1655_v15 = vpop.f32.mrb[17].mxu1 }
 0x1f9   : > { %v955_v16 = vadd.f32 %v954_v14, %v908_v13  ;;  %v1661_v17 = vpop.f32.mrb[21].mxu0  ;;  %v911_v18 = vpop.f32.mrb[18].mxu1 }
 0x1fa   : > { %v957_v19 = vpop.f32.mrb[22].mxu0  ;;  %v1656_v20 = vpop.f32.mrb[19].mxu1 }
 0x1fb   : > { %v1662_v21 = vpop.f32.mrb[23].mxu0 }
 0x1ff   : > { %v1016_v22 = vpop.f32.mrb[20].mxu1 }
 0x200   : > { %v1022_v23 = vadd.f32 %v1016_v22, %v955_v16  ;;  %v1079_v24 = vpop.f32.mrb[24].mxu0  ;;  %v1667_v25 = vpop.f32.mrb[21].mxu1 }
 0x201   : > { %v1673_v26 = vpop.f32.mrb[25].mxu0  ;;  %v1019_v3 = vpop.f32.mrb[22].mxu1 }
 0x202   : > { %v1085_v27 = vadd.f32 %v1079_v24, %v1022_v23  ;;  %v1082_v28 = vpop.f32.mrb[26].mxu0  ;;  %v1668_v29 = vpop.f32.mrb[23].mxu1 }
 0x203   : > { %v1674_v30 = vpop.f32.mrb[27].mxu0 }
 0x207   : > { %v1142_v31 = vpop.f32.mrb[24].mxu1 }
 0x208   : > { %v1148_v32 = vadd.f32 %v1142_v31, %v1085_v27  ;;  %v1205_v33 = vpop.f32.mrb[28].mxu0  ;;  %v1679_v34 = vpop.f32.mrb[25].mxu1 }
 0x209   : > { %v1685_v35 = vpop.f32.mrb[29].mxu0  ;;  %v1145_v36 = vpop.f32.mrb[26].mxu1 }
 0x20a   : > { %v1211_v37 = vadd.f32 %v1205_v33, %v1148_v32  ;;  %v1208_v38 = vpop.f32.mrb[30].mxu0  ;;  %v1680_v39 = vpop.f32.mrb[27].mxu1 }
 0x20b   : > { %v1686_v40 = vpop.f32.mrb[31].mxu0 }
 0x20f   : > { %v1269_v41 = vpop.f32.mrb[28].mxu1 }
 0x210   : > { %v1275_v42 = vadd.f32 %v1269_v41, %v1211_v37  ;;  %v1332_v43 = vpop.f32.mrb[32].mxu0  ;;  %v1691_v44 = vpop.f32.mrb[29].mxu1 }
 0x211   : > { %v1697_v45 = vpop.f32.mrb[33].mxu0  ;;  %v1272_v46 = vpop.f32.mrb[30].mxu1 }
 0x212   : > { %v1338_v47 = vadd.f32 %v1332_v43, %v1275_v42  ;;  %v1335_v48 = vpop.f32.mrb[34].mxu0  ;;  %v1692_v49 = vpop.f32.mrb[31].mxu1 }
 0x213   : > { %v1698_v50 = vpop.f32.mrb[35].mxu0 }
 0x217   : > { %v1395_v52 = vpop.f32.mrb[32].mxu1 }
 0x218   : > { %v1401_v53 = vadd.f32 %v1395_v52, %v1338_v47  ;;  %v1703_v54 = vpop.f32.mrb[33].mxu1 }
 0x219   : > { %v1398_v55 = vpop.f32.mrb[34].mxu1 }
 0x21a   : > { %v1408_v56 = vadd.f32 %v1554_v51, %v1401_v53  ;;  %v1704_v57 = vpop.f32.mrb[35].mxu1 }
 0x21c   : > { %v1416_v58 = vrot.slane %v1408_v56, %v1964_v10 }
 0x21e   : > { %v1417_v59 = vcombine.high %v1416_v58, %v1416_v58  ;;  %1420 = vst.msk [vmem:[%s220_s6] sm:$0x3] %vm232_vm3, %v1416_v58 }
 0x220   : > { %1421 = vst.msk [vmem:[%s220_s6 + $0x2] sm:$0x3] %vm232_vm3, %v1417_v59 }
 0x221   : > { %1790 = shalt.err (!%p1787_p3)
}
 0x222   : > { %s1791_s15 = scalar_lea.hbm %s2132_s10, 64  ;;  %s1795_s23 = scalar_lea.hbm %s2184_s5, 128 }
 0x223   : > { %p1792_p4 = scmp.ne.s32.totalorder %s2132_s10, %s1791_s15  ;;  %p1796_p9 = scmp.lt.u32.totalorder %s2132_s10, %s2184_s5 }
 0x224   : > { %p1797_p10 = scmp.lt.u32.totalorder %s1795_s23, %s1791_s15  ;;  %p1799_p12 = scmp.lt.u32.totalorder %s1791_s15, %s2132_s10 }
 0x225   : > { %p1793_p7 = pnand %p1792_p4, %p1915_p5 }
 0x226   : > { %p1798_p11 = por %p1797_p10, %p1796_p9 }
 0x227   : > { %p1794_p8 = pneg %p1793_p7 }
 0x228   : > { %p1800_p13 = por %p1799_p12, %p1798_p11 }
 0x22a   : > { %p1801_p0 = pnand %p1800_p13, %p1794_p8 }
 0x22c   : > { %1804 = shalt.err (!%p1801_p0)
}
 0x22d   : > { %s1845_s30 = smov 32   ;;  %s1846_s6 = smov 2  }
 0x22e   : > { %1706 = dma.vmem_to_hbm [thread:$0]  (%p1915_p5), %s2134_s7, 64, %s2132_s10, %s2138_s22, %s1845_s30, %s1845_s30, %s1846_s6  }
 0x22f PF: > { %p1712_p1 = scmp.ge.s32.totalorder %s1839_s21, 2  ;;  %s1451_s8 = sand.u32 1, %s1827_s18  }
 0x230   : > { %s1452_s9 = scalar_lea.sflag [#allocation4], %s1451_s8 }
 0x231   : > { %p1709_p2 = pnand %p1712_p1, %p1919_p6 }
 0x233   : > { %1822 = dma.done.wait (!%p1709_p2), %s1452_s9, 64  }
 0x234   : > { %1824 = vsyncadd (!%p1709_p2), %s1452_s9, 4294967232  ;;  %p15_p3 = scmp.ge.s32.totalorder %s1902_s24, 4   ;;  %s2188_s18 = smov %s1831_s19 }
 0x235   : > { %s2189_s19 = smov %s1835_s20  ;;  %s2190_s20 = smov %s1913_s27 }
 0x236   : > { %s2191_s21 = smov %s1902_s24  ;;  %17 = sbr.rel (!%p15_p3) target bundleno = 3 (0x3), region = 98 }
 0x23d   :  { %1457 = vsyncpa [#allocation4], 1 }
 0x23e   :  { %1459 = vsyncpa [#allocation4 + $0x1], 1 }

// kernel: se_forward.4
= control target key start
LH: loop header
LB: loop body
LE: loop exit
PB: predicated region body
PF: predicated region fallthrough
CT: control target
= control target key end

     0   :  { %s22257_s24 = smov 0   ;;  %s25718_s0 = inlined_call_operand.vmem [shape: f32[2,18,18,6], index: 0, kind: input, shape index: {}]   ;;  %s25719_s1 = inlined_call_operand.vmem [shape: bf16[9,6,8], index: 1, kind: input, shape index: {}]   ;;  %s25720_s2 = inlined_call_operand.vmem [shape: f32[1,8], index: 2, kind: input, shape index: {}]   ;;  %s25721_s3 = inlined_call_operand.vmem [shape: bf16[4,9,8,8], index: 3, kind: input, shape index: {}]   ;;  %s25722_s4 = inlined_call_operand.vmem [shape: f32[4,1,8], index: 4, kind: input, shape index: {}]   ;;  %s25723_s5 = inlined_call_operand.vmem [shape: bf16[9,8,8], index: 5, kind: input, shape index: {}]   ;;  %s25724_s6 = inlined_call_operand.vmem [shape: f32[1,8], index: 6, kind: input, shape index: {}]   ;;  %s25725_s7 = inlined_call_operand.vmem [shape: f32[2,16,16,8], index: 7, kind: output, shape index: {}]  }
   0x1 LB: > { %s16727_s25 = sadd.s32 4294967295, %s22214_s24   ;;  %p16731_p0 = scmp.ge.s32.totalorder %s22214_s24, 1  ;;  %s22214_s24 = sphi %s22257_s24, %s17_s24  }
   0x2   : > { %p237_p1 = scmp.lt.s32.totalorder %s22214_s24, 3 }
   0x4   : > { %p238_p2 = pnand %p16731_p0, %p237_p1 }
   0x5   : > { %v16735_v0 = vld [vmem:[%s25719_s1 + $0x4] sm:$0x7] (!%p238_p2)  ;;  %vm574_vm0 = vcmask (!%p238_p2), 1042432   ;;  %p269_p3 = scmp.lt.s32.totalorder (!%p238_p2), %s16727_s25, 1  ;;  %v474_v2 = vld [vmem:[%s25719_s1] sm:$0x7] (!%p238_p2) }
   0x6   : > { %241 = sbr.rel (%p238_p2) target bundleno = 4514 (0x11a2), region = 48  ;;  %22144 = vmatprep.subr.msk.bf16.mxu0 (!%p238_p2), %vm574_vm0, %v16735_v0  ;;  %v576_v1 = vsel (!%p238_p2), %vm574_vm0, %v16735_v0, 0  ;;  %vm525_vm1 = vcmask (!%p238_p2), 48128   ;;  %v788_v11 = vsel (!%p238_p2), %vm574_vm0, %v474_v2, 0  ;;  %v22297_v13 = vld [vmem:[%s25719_s1 + $0x8] sm:$0x7] (!%p238_p2) }
   0x7   : > { %18773 = vmatpush3.bf16.msra.mxu0 (!%p238_p2), %v576_v1  ;;  %v1050_v62 = vsel (!%p238_p2), %vm574_vm0, %v22297_v13, 0  ;;  %v22399_v63 = vld [vmem:[%s25719_s1 + $0xc] sm:$0x7] (!%p238_p2)  ;;  %vm280_vm2 = vcmask (!%p238_p2), 64512   ;;  %vm3294_vm3 = vcmask (!%p238_p2), 1043456  }
   0x8   : > { %22145 = vmatprep.subr.msk.bf16.mxu0 (!%p238_p2), %vm574_vm0, %v474_v2 }
   0xd   : > { %s25727_s25 = smov (!%p269_p3, %s16727_s25), 1 }
   0xe   : > { %s22198_s30 = smul.u32 432, %s25727_s25  ;;  %s17853_s22 = sshll.u32 %s25727_s25, 8 }
   0xf   : > { %s25618_s27 = scalar_lea.vmem %s25725_s7, %s17853_s22 }
  0x10   : > { %s22280_s10 = scalar_lea.vmem %s25718_s0, %s22198_s30 }
  0x11   : > { %v475_v3 = vld [vmem:[%s22280_s10 + $0x1] sm:$0xff]  ;;  %v476_v4 = vld [vmem:[%s22280_s10 + $0x9] sm:$0xff]  ;;  %v477_v5 = vld [vmem:[%s22280_s10 + $0x19] sm:$0xff] }
  0x12   : > { %v507_v6 = vpack.c.bf16 %v476_v4, %v475_v3  ;;  %v478_v7 = vld [vmem:[%s22280_s10 + $0x21] sm:$0xff]  ;;  %v479_v8 = vld [vmem:[%s22280_s10 + $0x31] sm:$0xff]  ;;  %v480_v9 = vld [vmem:[%s22280_s10 + $0x39] sm:$0xff] }
  0x13   : > { %v22288_v10 = vpack.c.bf16 %v478_v7, %v477_v5  ;;  %v22291_v12 = vpack.c.bf16 %v480_v9, %v479_v8  ;;  %v481_v14 = vld [vmem:[%s22280_s10 + $0x49] sm:$0xff]  ;;  %v482_v15 = vld [vmem:[%s22280_s10 + $0x51] sm:$0xff]  ;;  %v483_v16 = vld [vmem:[%s22280_s10 + $0x61] sm:$0xff] }
  0x14   : > { %18774 = vmatprep.mubr.msk.bf16.mxu0 %vm525_vm1, %v507_v6  ;;  %v484_v17 = vld [vmem:[%s22280_s10 + $0x69] sm:$0xff]  ;;  %v22309_v18 = vpack.c.bf16 %v482_v15, %v481_v14  ;;  %v485_v20 = vld [vmem:[%s22280_s10 + $0x79] sm:$0xff]  ;;  %v486_v21 = vld [vmem:[%s22280_s10 + $0x81] sm:$0xff] }
  0x15   : > { %18775 = vmatmul.mubr.msk.bf16.vlgmr.msra.gmra.mrb[0].mxu0 %vm525_vm1, %v22288_v10  ;;  %v22311_v19 = vpack.c.bf16 %v484_v17, %v483_v16  ;;  %v487_v22 = vld [vmem:[%s22280_s10 + $0x91] sm:$0xff]  ;;  %v488_v23 = vld [vmem:[%s22280_s10 + $0x99] sm:$0xff]  ;;  %v22321_v24 = vpack.c.bf16 %v486_v21, %v485_v20  ;;  %v489_v26 = vld [vmem:[%s22280_s10 + $0xa9] sm:$0xff] }
  0x16   : > { %18807 = vmatpush3.bf16.msra.mxu0 %v788_v11  ;;  %18778 = vmatprep.mubr.msk.bf16.mxu0 %vm525_vm1, %v22291_v12  ;;  %v22323_v25 = vpack.c.bf16 %v488_v23, %v487_v22  ;;  %v490_v27 = vld [vmem:[%s22280_s10 + $0xb1] sm:$0xff]  ;;  %v491_v28 = vld [vmem:[%s22280_s10 + $0xc1] sm:$0xff]  ;;  %v492_v29 = vld [vmem:[%s22280_s10 + $0xc9] sm:$0xff] }
  0x17   : > { %22146 = vmatprep.subr.msk.bf16.mxu0 %vm574_vm0, %v22297_v13  ;;  %v22333_v30 = vpack.c.bf16 %v490_v27, %v489_v26  ;;  %v22335_v31 = vpack.c.bf16 %v492_v29, %v491_v28  ;;  %v493_v32 = vld [vmem:[%s22280_s10 + $0xd9] sm:$0xff]  ;;  %v494_v33 = vld [vmem:[%s22280_s10 + $0xe1] sm:$0xff]  ;;  %v495_v34 = vld [vmem:[%s22280_s10 + $0xf1] sm:$0xff] }
  0x18   : > { %v496_v35 = vld [vmem:[%s22280_s10 + $0xf9] sm:$0xff]  ;;  %v22345_v36 = vpack.c.bf16 %v494_v33, %v493_v32  ;;  %v497_v38 = vld [vmem:[%s22280_s10 + $0x109] sm:$0xff]  ;;  %v498_v39 = vld [vmem:[%s22280_s10 + $0x111] sm:$0xff] }
  0x19   : > { %v22347_v37 = vpack.c.bf16 %v496_v35, %v495_v34  ;;  %v499_v40 = vld [vmem:[%s22280_s10 + $0x121] sm:$0xff]  ;;  %v500_v41 = vld [vmem:[%s22280_s10 + $0x129] sm:$0xff]  ;;  %v22357_v42 = vpack.c.bf16 %v498_v39, %v497_v38  ;;  %v501_v44 = vld [vmem:[%s22280_s10 + $0x139] sm:$0xff] }
  0x1a   : > { %v22359_v43 = vpack.c.bf16 %v500_v41, %v499_v40  ;;  %v502_v45 = vld [vmem:[%s22280_s10 + $0x141] sm:$0xff]  ;;  %v503_v46 = vld [vmem:[%s22280_s10 + $0x151] sm:$0xff]  ;;  %v504_v47 = vld [vmem:[%s22280_s10 + $0x159] sm:$0xff] }
  0x1b   : > { %v22369_v48 = vpack.c.bf16 %v502_v45, %v501_v44  ;;  %v22371_v49 = vpack.c.bf16 %v504_v47, %v503_v46  ;;  %v505_v50 = vld [vmem:[%s22280_s10 + $0x169] sm:$0xff]  ;;  %v506_v51 = vld [vmem:[%s22280_s10 + $0x171] sm:$0xff]  ;;  %v426_v52 = vld [vmem:[%s22280_s10] sm:$0xff] }
  0x1c   : > { %v427_v53 = vld [vmem:[%s22280_s10 + $0x8] sm:$0xff]  ;;  %v22381_v54 = vpack.c.bf16 %v506_v51, %v505_v50  ;;  %v428_v56 = vld [vmem:[%s22280_s10 + $0x18] sm:$0xff]  ;;  %v429_v57 = vld [vmem:[%s22280_s10 + $0x20] sm:$0xff] }
  0x1d   : > { %18779 = vmatmul.mubr.msk.bf16.gmra.mrb[4].mxu0 %vm525_vm1, %v22309_v18  ;;  %v458_v55 = vpack.c.bf16 %v427_v53, %v426_v52  ;;  %v430_v58 = vld [vmem:[%s22280_s10 + $0x30] sm:$0xff]  ;;  %v431_v59 = vld [vmem:[%s22280_s10 + $0x38] sm:$0xff]  ;;  %v22390_v60 = vpack.c.bf16 %v429_v57, %v428_v56  ;;  %v432_v0 = vld [vmem:[%s22280_s10 + $0x48] sm:$0xff] }
  0x1e   : > { %18782 = vmatprep.mubr.msk.bf16.mxu0 %vm525_vm1, %v22311_v19  ;;  %v22392_v61 = vpack.c.bf16 %v431_v59, %v430_v58  ;;  %v433_v1 = vld [vmem:[%s22280_s10 + $0x50] sm:$0xff]  ;;  %v434_v2 = vld [vmem:[%s22280_s10 + $0x60] sm:$0xff]  ;;  %v435_v3 = vld [vmem:[%s22280_s10 + $0x68] sm:$0xff] }
  0x1f   : > { %v22411_v4 = vpack.c.bf16 %v433_v1, %v432_v0  ;;  %v22413_v5 = vpack.c.bf16 %v435_v3, %v434_v2  ;;  %v436_v6 = vld [vmem:[%s22280_s10 + $0x78] sm:$0xff]  ;;  %v437_v7 = vld [vmem:[%s22280_s10 + $0x80] sm:$0xff]  ;;  %v438_v8 = vld [vmem:[%s22280_s10 + $0x90] sm:$0xff]  ;;  %v1345_v2 = vsel %vm574_vm0, %v22399_v63, 0 }
  0x20   : > { %v439_v9 = vld [vmem:[%s22280_s10 + $0x98] sm:$0xff]  ;;  %v22423_v11 = vpack.c.bf16 %v437_v7, %v436_v6  ;;  %v440_v14 = vld [vmem:[%s22280_s10 + $0xa8] sm:$0xff]  ;;  %v441_v15 = vld [vmem:[%s22280_s10 + $0xb0] sm:$0xff] }
  0x21   : > { %v22425_v13 = vpack.c.bf16 %v439_v9, %v438_v8  ;;  %v442_v16 = vld [vmem:[%s22280_s10 + $0xc0] sm:$0xff]  ;;  %v443_v17 = vld [vmem:[%s22280_s10 + $0xc8] sm:$0xff]  ;;  %v22435_v20 = vpack.c.bf16 %v441_v15, %v440_v14  ;;  %v444_v22 = vld [vmem:[%s22280_s10 + $0xd8] sm:$0xff] }
  0x22   : > { %v22437_v21 = vpack.c.bf16 %v443_v17, %v442_v16  ;;  %v445_v23 = vld [vmem:[%s22280_s10 + $0xe0] sm:$0xff]  ;;  %v446_v26 = vld [vmem:[%s22280_s10 + $0xf0] sm:$0xff]  ;;  %v447_v27 = vld [vmem:[%s22280_s10 + $0xf8] sm:$0xff] }
  0x23   : > { %v22447_v28 = vpack.c.bf16 %v445_v23, %v444_v22  ;;  %v22449_v29 = vpack.c.bf16 %v447_v27, %v446_v26  ;;  %v448_v32 = vld [vmem:[%s22280_s10 + $0x108] sm:$0xff]  ;;  %v449_v33 = vld [vmem:[%s22280_s10 + $0x110] sm:$0xff]  ;;  %v450_v34 = vld [vmem:[%s22280_s10 + $0x120] sm:$0xff] }
  0x24   : > { %v451_v35 = vld [vmem:[%s22280_s10 + $0x128] sm:$0xff]  ;;  %v22459_v38 = vpack.c.bf16 %v449_v33, %v448_v32  ;;  %v452_v40 = vld [vmem:[%s22280_s10 + $0x138] sm:$0xff]  ;;  %v453_v41 = vld [vmem:[%s22280_s10 + $0x140] sm:$0xff] }
  0x25   : > { %18783 = vmatmul.mubr.msk.bf16.gmra.mrb[8].mxu0 %vm525_vm1, %v22321_v24  ;;  %v22461_v39 = vpack.c.bf16 %v451_v35, %v450_v34  ;;  %v454_v44 = vld [vmem:[%s22280_s10 + $0x150] sm:$0xff]  ;;  %v455_v45 = vld [vmem:[%s22280_s10 + $0x158] sm:$0xff]  ;;  %v22471_v46 = vpack.c.bf16 %v453_v41, %v452_v40  ;;  %v456_v50 = vld [vmem:[%s22280_s10 + $0x168] sm:$0xff] }
  0x26   : > { %18786 = vmatprep.mubr.msk.bf16.mxu0 %vm525_vm1, %v22323_v25  ;;  %v22473_v47 = vpack.c.bf16 %v455_v45, %v454_v44  ;;  %v457_v51 = vld [vmem:[%s22280_s10 + $0x170] sm:$0xff]  ;;  %v951_v52 = vld [vmem:[%s22280_s10 + $0x2] sm:$0xff]  ;;  %v953_v57 = vld [vmem:[%s22280_s10 + $0x1a] sm:$0xff] }
  0x27   : > { %v952_v53 = vld [vmem:[%s22280_s10 + $0xa] sm:$0xff]  ;;  %v954_v58 = vld [vmem:[%s22280_s10 + $0x22] sm:$0xff]  ;;  %v955_v59 = vld [vmem:[%s22280_s10 + $0x32] sm:$0xff] }
  0x28   : > { %v983_v56 = vpack.c.bf16 %v952_v53, %v951_v52  ;;  %v22492_v0 = vpack.c.bf16 %v954_v58, %v953_v57  ;;  %v16866_v3 = vld [vmem:[%s25719_s1 + $0x10] sm:$0x7]  ;;  %v959_v8 = vld [vmem:[%s22280_s10 + $0x62] sm:$0xff]  ;;  %v961_v15 = vld [vmem:[%s22280_s10 + $0x7a] sm:$0xff] }
  0x29   : > { %v957_v6 = vld [vmem:[%s22280_s10 + $0x4a] sm:$0xff]  ;;  %v958_v7 = vld [vmem:[%s22280_s10 + $0x52] sm:$0xff]  ;;  %v962_v16 = vld [vmem:[%s22280_s10 + $0x82] sm:$0xff] }
  0x2a   : > { %v960_v9 = vld [vmem:[%s22280_s10 + $0x6a] sm:$0xff]  ;;  %v963_v17 = vld [vmem:[%s22280_s10 + $0x92] sm:$0xff]  ;;  %v964_v22 = vld [vmem:[%s22280_s10 + $0x9a] sm:$0xff]  ;;  %v22522_v23 = vpack.c.bf16 %v962_v16, %v961_v15 }
  0x2b   : > { %v22512_v14 = vpack.c.bf16 %v960_v9, %v959_v8  ;;  %v22524_v26 = vpack.c.bf16 %v964_v22, %v963_v17  ;;  %v965_v27 = vld [vmem:[%s22280_s10 + $0xaa] sm:$0xff]  ;;  %v966_v32 = vld [vmem:[%s22280_s10 + $0xb2] sm:$0xff]  ;;  %v967_v33 = vld [vmem:[%s22280_s10 + $0xc2] sm:$0xff] }
  0x2c   : > { %v968_v34 = vld [vmem:[%s22280_s10 + $0xca] sm:$0xff]  ;;  %v22534_v35 = vpack.c.bf16 %v966_v32, %v965_v27  ;;  %v969_v41 = vld [vmem:[%s22280_s10 + $0xda] sm:$0xff]  ;;  %v970_v44 = vld [vmem:[%s22280_s10 + $0xe2] sm:$0xff]  ;;  %v1639_v27 = vsel %vm574_vm0, %v16866_v3, 0 }
  0x2d   : > { %18787 = vmatmul.mubr.msk.bf16.gmra.mrb[12].mxu0 %vm525_vm1, %v22333_v30  ;;  %v22536_v40 = vpack.c.bf16 %v968_v34, %v967_v33  ;;  %v971_v45 = vld [vmem:[%s22280_s10 + $0xf2] sm:$0xff]  ;;  %v973_v53 = vld [vmem:[%s22280_s10 + $0x10a] sm:$0xff]  ;;  %v975_v57 = vld [vmem:[%s22280_s10 + $0x122] sm:$0xff] }
  0x2e   : > { %18790 = vmatprep.mubr.msk.bf16.mxu0 %vm525_vm1, %v22335_v31  ;;  %v976_v58 = vld [vmem:[%s22280_s10 + $0x12a] sm:$0xff]  ;;  %v980_v8 = vld [vmem:[%s22280_s10 + $0x15a] sm:$0xff]  ;;  %v982_v17 = vld [vmem:[%s22280_s10 + $0x172] sm:$0xff] }
  0x2f   : > { %v981_v16 = vld [vmem:[%s22280_s10 + $0x16a] sm:$0xff]  ;;  %v16915_v32 = vld [vmem:[%s25719_s1 + $0x14] sm:$0x7] }
  0x30   : > { %v22580_v22 = vpack.c.bf16 %v982_v17, %v981_v16  ;;  %v1933_v34 = vsel %vm574_vm0, %v16915_v32, 0 }
  0x35   : > { %18791 = vmatmul.mubr.msk.bf16.gmra.mrb[16].mxu0 %vm525_vm1, %v22345_v36 }
  0x36   : > { %18794 = vmatprep.mubr.msk.bf16.mxu0 %vm525_vm1, %v22347_v37 }
  0x3d   : > { %18795 = vmatmul.mubr.msk.bf16.gmra.mrb[20].mxu0 %vm525_vm1, %v22357_v42 }
  0x3e   : > { %18798 = vmatprep.mubr.msk.bf16.mxu0 %vm525_vm1, %v22359_v43 }
  0x45   : > { %18799 = vmatmul.mubr.msk.bf16.gmra.mrb[24].mxu0 %vm525_vm1, %v22369_v48 }
  0x46   : > { %18802 = vmatprep.mubr.msk.bf16.mxu0 %vm525_vm1, %v22371_v49 }
  0x4d   : > { %18803 = vmatmul.mubr.msk.bf16.gmra.mrb[28].mxu0 %vm525_vm1, %v22381_v54 }
  0x4e   : > { %18808 = vmatprep.mubr.msk.bf16.mxu0 %vm525_vm1, %v458_v55  ;;  %v22483_v55 = vpack.c.bf16 %v457_v51, %v456_v50  ;;  %v972_v50 = vld [vmem:[%s22280_s10 + $0xfa] sm:$0xff]  ;;  %v22546_v51 = vpack.c.bf16 %v970_v44, %v969_v41  ;;  %v16865_v44 = vld [vmem:[%s22280_s10 + $0x189] sm:$0xff] }
  0x4f   : > { %v22548_v52 = vpack.c.bf16 %v972_v50, %v971_v45  ;;  %v16964_v41 = vld [vmem:[%s25719_s1 + $0x18] sm:$0x7] }
  0x50   : > { %v2228_v50 = vsel %vm574_vm0, %v16964_v41, 0 }
  0x55   : > { %18809 = vmatmul.mubr.msk.bf16.vlgmr.msra.gmra.mrb[0].mxu0 %vm525_vm1, %v22390_v60 }
  0x56   : > { %18841 = vmatpush3.bf16.msra.mxu0 %v1050_v62  ;;  %18812 = vmatprep.mubr.msk.bf16.mxu0 %vm525_vm1, %v22392_v61  ;;  %v956_v62 = vld [vmem:[%s22280_s10 + $0x3a] sm:$0xff] }
  0x57   : > { %22147 = vmatprep.subr.msk.bf16.mxu0 %vm574_vm0, %v22399_v63  ;;  %v22494_v1 = vpack.c.bf16 %v956_v62, %v955_v59  ;;  %v22510_v63 = vpack.c.bf16 %v958_v7, %v957_v6  ;;  %v22560_v62 = vpack.c.bf16 %v976_v58, %v975_v57  ;;  %v978_v6 = vld [vmem:[%s22280_s10 + $0x142] sm:$0xff]  ;;  %v979_v7 = vld [vmem:[%s22280_s10 + $0x152] sm:$0xff] }
  0x58   : > { %v22572_v15 = vpack.c.bf16 %v980_v8, %v979_v7 }
  0x5d   : > { %18813 = vmatmul.mubr.msk.bf16.gmra.mrb[4].mxu0 %vm525_vm1, %v22411_v4 }
  0x5e   : > { %18816 = vmatprep.mubr.msk.bf16.mxu0 %vm525_vm1, %v22413_v5 }
  0x65   : > { %18817 = vmatmul.mubr.msk.bf16.gmra.mrb[8].mxu0 %vm525_vm1, %v22423_v11 }
  0x66   : > { %18820 = vmatprep.mubr.msk.bf16.mxu0 %vm525_vm1, %v22425_v13 }
  0x6d   : > { %18821 = vmatmul.mubr.msk.bf16.gmra.mrb[12].mxu0 %vm525_vm1, %v22435_v20 }
  0x6e   : > { %18824 = vmatprep.mubr.msk.bf16.mxu0 %vm525_vm1, %v22437_v21 }
  0x75   : > { %18825 = vmatmul.mubr.msk.bf16.gmra.mrb[16].mxu0 %vm525_vm1, %v22447_v28 }
  0x76   : > { %18828 = vmatprep.mubr.msk.bf16.mxu0 %vm525_vm1, %v22449_v29 }
  0x7d   : > { %18829 = vmatmul.mubr.msk.bf16.gmra.mrb[20].mxu0 %vm525_vm1, %v22459_v38 }
  0x7e   : > { %18832 = vmatprep.mubr.msk.bf16.mxu0 %vm525_vm1, %v22461_v39 }
  0x85   : > { %18833 = vmatmul.mubr.msk.bf16.gmra.mrb[24].mxu0 %vm525_vm1, %v22471_v46 }
  0x86   : > { %18836 = vmatprep.mubr.msk.bf16.mxu0 %vm525_vm1, %v22473_v47 }
  0x8d   : > { %18837 = vmatmul.mubr.msk.bf16.gmra.mrb[28].mxu0 %vm525_vm1, %v22483_v55 }
  0x8e   : > { %18842 = vmatprep.mubr.msk.bf16.mxu0 %vm525_vm1, %v983_v56  ;;  %v974_v56 = vld [vmem:[%s22280_s10 + $0x112] sm:$0xff] }
  0x8f   : > { %v22558_v59 = vpack.c.bf16 %v974_v56, %v973_v53  ;;  %v17013_v53 = vld [vmem:[%s25719_s1 + $0x1c] sm:$0x7]  ;;  %v16914_v56 = vld [vmem:[%s22280_s10 + $0x18a] sm:$0xff] }
  0x90   : > { %v2522_v58 = vsel %vm574_vm0, %v17013_v53, 0 }
  0x95   : > { %18843 = vmatmul.mubr.msk.bf16.vlgmr.msra.gmra.mrb[0].mxu0 %vm525_vm1, %v22492_v0 }
  0x96   : > { %18875 = vmatpush3.bf16.msra.mxu0 %v1345_v2  ;;  %18846 = vmatprep.mubr.msk.bf16.mxu0 %vm525_vm1, %v22494_v1  ;;  %v977_v2 = vld [vmem:[%s22280_s10 + $0x13a] sm:$0xff] }
  0x97   : > { %22148 = vmatprep.subr.msk.bf16.mxu0 %vm574_vm0, %v16866_v3  ;;  %v22570_v9 = vpack.c.bf16 %v978_v6, %v977_v2  ;;  %v16816_v3 = vld [vmem:[%s22280_s10 + $0x188] sm:$0xff]  ;;  %v22713_v2 = vld [vmem:[%s25719_s1 + $0x20] sm:$0x7] }
  0x9d   : > { %18847 = vmatmul.mubr.msk.bf16.gmra.mrb[4].mxu0 %vm525_vm1, %v22510_v63 }
  0x9e   : > { %18850 = vmatprep.mubr.msk.bf16.mxu0 %vm525_vm1, %v22512_v14 }
  0xa5   : > { %18851 = vmatmul.mubr.msk.bf16.gmra.mrb[8].mxu0 %vm525_vm1, %v22522_v23 }
  0xa6   : > { %18854 = vmatprep.mubr.msk.bf16.mxu0 %vm525_vm1, %v22524_v26 }
  0xad   : > { %18855 = vmatmul.mubr.msk.bf16.gmra.mrb[12].mxu0 %vm525_vm1, %v22534_v35 }
  0xae   : > { %18858 = vmatprep.mubr.msk.bf16.mxu0 %vm525_vm1, %v22536_v40 }
  0xb5   : > { %18859 = vmatmul.mubr.msk.bf16.gmra.mrb[16].mxu0 %vm525_vm1, %v22546_v51 }
  0xb6   : > { %18862 = vmatprep.mubr.msk.bf16.mxu0 %vm525_vm1, %v22548_v52 }
  0xbd   : > { %18863 = vmatmul.mubr.msk.bf16.gmra.mrb[20].mxu0 %vm525_vm1, %v22558_v59 }
  0xbe   : > { %18866 = vmatprep.mubr.msk.bf16.mxu0 %vm525_vm1, %v22560_v62 }
  0xc5   : > { %18867 = vmatmul.mubr.msk.bf16.gmra.mrb[24].mxu0 %vm525_vm1, %v22570_v9 }
  0xc6   : > { %18870 = vmatprep.mubr.msk.bf16.mxu0 %vm525_vm1, %v22572_v15 }
  0xcd   : > { %18871 = vmatmul.mubr.msk.bf16.gmra.mrb[28].mxu0 %vm525_vm1, %v22580_v22 }
  0xce   : > { %18876 = vmatprep.mubr.msk.bf16.mxu0 %vm525_vm1, %v22390_v60  ;;  %v16815_v60 = vld [vmem:[%s22280_s10 + $0x180] sm:$0xff] }
  0xcf   : > { %v22621_v33 = vpack.c.bf16 %v16816_v3, %v16815_v60 }
  0xd5   : > { %18877 = vmatmul.mubr.msk.bf16.vlgmr.msra.gmra.mrb[0].mxu0 %vm525_vm1, %v22392_v61 }
  0xd6   : > { %18909 = vmatpush3.bf16.msra.mxu0 %v1639_v27  ;;  %18880 = vmatprep.mubr.msk.bf16.mxu0 %vm525_vm1, %v22411_v4 }
  0xd7   : > { %22149 = vmatprep.subr.msk.bf16.mxu0 %vm574_vm0, %v16915_v32 }
  0xdd   : > { %18881 = vmatmul.mubr.msk.bf16.gmra.mrb[4].mxu0 %vm525_vm1, %v22413_v5 }
  0xde   : > { %18884 = vmatprep.mubr.msk.bf16.mxu0 %vm525_vm1, %v22423_v11 }
  0xe5   : > { %18885 = vmatmul.mubr.msk.bf16.gmra.mrb[8].mxu0 %vm525_vm1, %v22425_v13 }
  0xe6   : > { %18888 = vmatprep.mubr.msk.bf16.mxu0 %vm525_vm1, %v22435_v20 }
  0xed   : > { %18889 = vmatmul.mubr.msk.bf16.gmra.mrb[12].mxu0 %vm525_vm1, %v22437_v21 }
  0xee   : > { %18892 = vmatprep.mubr.msk.bf16.mxu0 %vm525_vm1, %v22447_v28 }
  0xf5   : > { %18893 = vmatmul.mubr.msk.bf16.gmra.mrb[16].mxu0 %vm525_vm1, %v22449_v29 }
  0xf6   : > { %18896 = vmatprep.mubr.msk.bf16.mxu0 %vm525_vm1, %v22459_v38 }
  0xfd   : > { %18897 = vmatmul.mubr.msk.bf16.gmra.mrb[20].mxu0 %vm525_vm1, %v22461_v39 }
  0xfe   : > { %18900 = vmatprep.mubr.msk.bf16.mxu0 %vm525_vm1, %v22471_v46 }
 0x105   : > { %18901 = vmatmul.mubr.msk.bf16.gmra.mrb[24].mxu0 %vm525_vm1, %v22473_v47 }
 0x106   : > { %18904 = vmatprep.mubr.msk.bf16.mxu0 %vm525_vm1, %v22483_v55 }
 0x10d   : > { %18905 = vmatmul.mubr.msk.bf16.gmra.mrb[28].mxu0 %vm525_vm1, %v22621_v33 }
 0x10e   : > { %18910 = vmatprep.mubr.msk.bf16.mxu0 %vm525_vm1, %v22288_v10  ;;  %v16864_v10 = vld [vmem:[%s22280_s10 + $0x181] sm:$0xff] }
 0x10f   : > { %v22662_v45 = vpack.c.bf16 %v16865_v44, %v16864_v10 }
 0x115   : > { %18911 = vmatmul.mubr.msk.bf16.vlgmr.msra.gmra.mrb[0].mxu0 %vm525_vm1, %v22291_v12 }
 0x116   : > { %18943 = vmatpush3.bf16.msra.mxu0 %v1933_v34  ;;  %18914 = vmatprep.mubr.msk.bf16.mxu0 %vm525_vm1, %v22309_v18  ;;  %v23152_v34 = vld [vmem:[%s25721_s3 + $0x8] sm:$0xf] }
 0x117   : > { %22150 = vmatprep.subr.msk.bf16.mxu0 %vm574_vm0, %v16964_v41 }
 0x11d   : > { %18915 = vmatmul.mubr.msk.bf16.gmra.mrb[4].mxu0 %vm525_vm1, %v22311_v19 }
 0x11e   : > { %18918 = vmatprep.mubr.msk.bf16.mxu0 %vm525_vm1, %v22321_v24 }
 0x125   : > { %18919 = vmatmul.mubr.msk.bf16.gmra.mrb[8].mxu0 %vm525_vm1, %v22323_v25 }
 0x126   : > { %18922 = vmatprep.mubr.msk.bf16.mxu0 %vm525_vm1, %v22333_v30 }
 0x12d   : > { %18923 = vmatmul.mubr.msk.bf16.gmra.mrb[12].mxu0 %vm525_vm1, %v22335_v31 }
 0x12e   : > { %18926 = vmatprep.mubr.msk.bf16.mxu0 %vm525_vm1, %v22345_v36 }
 0x135   : > { %18927 = vmatmul.mubr.msk.bf16.gmra.mrb[16].mxu0 %vm525_vm1, %v22347_v37 }
 0x136   : > { %18930 = vmatprep.mubr.msk.bf16.mxu0 %vm525_vm1, %v22357_v42 }
 0x13d   : > { %18931 = vmatmul.mubr.msk.bf16.gmra.mrb[20].mxu0 %vm525_vm1, %v22359_v43 }
 0x13e   : > { %18934 = vmatprep.mubr.msk.bf16.mxu0 %vm525_vm1, %v22369_v48 }
 0x145   : > { %18935 = vmatmul.mubr.msk.bf16.gmra.mrb[24].mxu0 %vm525_vm1, %v22371_v49 }
 0x146   : > { %18938 = vmatprep.mubr.msk.bf16.mxu0 %vm525_vm1, %v22381_v54 }
 0x14d   : > { %18939 = vmatmul.mubr.msk.bf16.gmra.mrb[28].mxu0 %vm525_vm1, %v22662_v45 }
 0x14e   : > { %18944 = vmatprep.mubr.msk.bf16.mxu0 %vm525_vm1, %v22492_v0  ;;  %v16913_v0 = vld [vmem:[%s22280_s10 + $0x182] sm:$0xff] }
 0x14f   : > { %v22703_v57 = vpack.c.bf16 %v16914_v56, %v16913_v0 }
 0x155   : > { %18945 = vmatmul.mubr.msk.bf16.vlgmr.msra.gmra.mrb[0].mxu0 %vm525_vm1, %v22494_v1 }
 0x156   : > { %18977 = vmatpush3.bf16.msra.mxu0 %v2228_v50  ;;  %18948 = vmatprep.mubr.msk.bf16.mxu0 %vm525_vm1, %v22510_v63 }
 0x157   : > { %22151 = vmatprep.subr.msk.bf16.mxu0 %vm574_vm0, %v17013_v53 }
 0x15d   : > { %18949 = vmatmul.mubr.msk.bf16.gmra.mrb[4].mxu0 %vm525_vm1, %v22512_v14 }
 0x15e   : > { %18952 = vmatprep.mubr.msk.bf16.mxu0 %vm525_vm1, %v22522_v23 }
 0x165   : > { %18953 = vmatmul.mubr.msk.bf16.gmra.mrb[8].mxu0 %vm525_vm1, %v22524_v26 }
 0x166   : > { %18956 = vmatprep.mubr.msk.bf16.mxu0 %vm525_vm1, %v22534_v35 }
 0x16d   : > { %18957 = vmatmul.mubr.msk.bf16.gmra.mrb[12].mxu0 %vm525_vm1, %v22536_v40 }
 0x16e   : > { %18960 = vmatprep.mubr.msk.bf16.mxu0 %vm525_vm1, %v22546_v51 }
 0x175   : > { %18961 = vmatmul.mubr.msk.bf16.gmra.mrb[16].mxu0 %vm525_vm1, %v22548_v52 }
 0x176   : > { %18964 = vmatprep.mubr.msk.bf16.mxu0 %vm525_vm1, %v22558_v59 }
 0x17d   : > { %18965 = vmatmul.mubr.msk.bf16.gmra.mrb[20].mxu0 %vm525_vm1, %v22560_v62 }
 0x17e   : > { %18968 = vmatprep.mubr.msk.bf16.mxu0 %vm525_vm1, %v22570_v9 }
 0x185   : > { %18969 = vmatmul.mubr.msk.bf16.gmra.mrb[24].mxu0 %vm525_vm1, %v22572_v15 }
 0x186   : > { %18972 = vmatprep.mubr.msk.bf16.mxu0 %vm525_vm1, %v22580_v22 }
 0x18d   : > { %18973 = vmatmul.mubr.msk.bf16.gmra.mrb[28].mxu0 %vm525_vm1, %v22703_v57 }
 0x18e   : > { %18978 = vmatprep.mubr.msk.bf16.mxu0 %vm525_vm1, %v22392_v61  ;;  %v16962_v61 = vld [vmem:[%s22280_s10 + $0x198] sm:$0xff] }
 0x195   : > { %18979 = vmatmul.mubr.msk.bf16.vlgmr.msra.gmra.mrb[0].mxu0 %vm525_vm1, %v22411_v4  ;;  %v16963_v4 = vld [vmem:[%s22280_s10 + $0x1a0] sm:$0xff] }
 0x196   : > { %19011 = vmatpush3.bf16.msra.mxu0 %v2522_v58  ;;  %18982 = vmatprep.mubr.msk.bf16.mxu0 %vm525_vm1, %v22413_v5  ;;  %v2176_v5 = vpack.c.bf16 %v16963_v4, %v16962_v61 }
 0x197   : > { %22152 = vmatprep.subr.msk.bf16.mxu0 %vm574_vm0, %v22713_v2 }
 0x19d   : > { %18983 = vmatmul.mubr.msk.bf16.gmra.mrb[4].mxu0 %vm525_vm1, %v22423_v11  ;;  %v22216_v11 = vmov 0.0  }
 0x19e   : > { %18986 = vmatprep.mubr.msk.bf16.mxu0 %vm525_vm1, %v22425_v13  ;;  %290 = vst.msk [vmem:[#allocation2 + $0x48] sm:$0xff] %vm280_vm2, %v22216_v11  ;;  %281 = vst.msk [vmem:[#allocation2] sm:$0xff] %vm280_vm2, %v22216_v11 }
 0x19f   : > { %282 = vst.msk [vmem:[#allocation2 + $0x8] sm:$0xff] %vm280_vm2, %v22216_v11  ;;  %283 = vst.msk [vmem:[#allocation2 + $0x10] sm:$0xff] %vm280_vm2, %v22216_v11 }
 0x1a0   : > { %284 = vst.msk [vmem:[#allocation2 + $0x18] sm:$0xff] %vm280_vm2, %v22216_v11  ;;  %285 = vst.msk [vmem:[#allocation2 + $0x20] sm:$0xff] %vm280_vm2, %v22216_v11 }
 0x1a1   : > { %286 = vst.msk [vmem:[#allocation2 + $0x28] sm:$0xff] %vm280_vm2, %v22216_v11  ;;  %287 = vst.msk [vmem:[#allocation2 + $0x30] sm:$0xff] %vm280_vm2, %v22216_v11 }
 0x1a2   : > { %288 = vst.msk [vmem:[#allocation2 + $0x38] sm:$0xff] %vm280_vm2, %v22216_v11  ;;  %289 = vst.msk [vmem:[#allocation2 + $0x40] sm:$0xff] %vm280_vm2, %v22216_v11 }
 0x1a3   : > { %291 = vst.msk [vmem:[#allocation2 + $0x50] sm:$0xff] %vm280_vm2, %v22216_v11  ;;  %292 = vst.msk [vmem:[#allocation2 + $0x58] sm:$0xff] %vm280_vm2, %v22216_v11 }
 0x1a4   : > { %293 = vst.msk [vmem:[#allocation2 + $0x60] sm:$0xff] %vm280_vm2, %v22216_v11  ;;  %294 = vst.msk [vmem:[#allocation2 + $0x68] sm:$0xff] %vm280_vm2, %v22216_v11 }
 0x1a5   : > { %18987 = vmatmul.mubr.msk.bf16.gmra.mrb[8].mxu0 %vm525_vm1, %v22435_v20  ;;  %295 = vst.msk [vmem:[#allocation2 + $0x70] sm:$0xff] %vm280_vm2, %v22216_v11  ;;  %296 = vst.msk [vmem:[#allocation2 + $0x78] sm:$0xff] %vm280_vm2, %v22216_v11 }
 0x1a6   : > { %18990 = vmatprep.mubr.msk.bf16.mxu0 %vm525_vm1, %v22437_v21  ;;  %297 = vst.msk [vmem:[#allocation2 + $0x80] sm:$0xff] %vm280_vm2, %v22216_v11  ;;  %298 = vst.msk [vmem:[#allocation2 + $0x88] sm:$0xff] %vm280_vm2, %v22216_v11 }
 0x1a7   : > { %299 = vst.msk [vmem:[#allocation2 + $0x90] sm:$0xff] %vm280_vm2, %v22216_v11  ;;  %300 = vst.msk [vmem:[#allocation2 + $0x98] sm:$0xff] %vm280_vm2, %v22216_v11 }
 0x1a8   : > { %301 = vst.msk [vmem:[#allocation2 + $0xa0] sm:$0xff] %vm280_vm2, %v22216_v11  ;;  %302 = vst.msk [vmem:[#allocation2 + $0xa8] sm:$0xff] %vm280_vm2, %v22216_v11 }
 0x1a9   : > { %303 = vst.msk [vmem:[#allocation2 + $0xb0] sm:$0xff] %vm280_vm2, %v22216_v11  ;;  %304 = vst.msk [vmem:[#allocation2 + $0xb8] sm:$0xff] %vm280_vm2, %v22216_v11 }
 0x1aa   : > { %305 = vst.msk [vmem:[#allocation2 + $0xc0] sm:$0xff] %vm280_vm2, %v22216_v11  ;;  %306 = vst.msk [vmem:[#allocation2 + $0xc8] sm:$0xff] %vm280_vm2, %v22216_v11 }
 0x1ab   : > { %307 = vst.msk [vmem:[#allocation2 + $0xd0] sm:$0xff] %vm280_vm2, %v22216_v11  ;;  %308 = vst.msk [vmem:[#allocation2 + $0xd8] sm:$0xff] %vm280_vm2, %v22216_v11 }
 0x1ac   : > { %309 = vst.msk [vmem:[#allocation2 + $0xe0] sm:$0xff] %vm280_vm2, %v22216_v11  ;;  %310 = vst.msk [vmem:[#allocation2 + $0xe8] sm:$0xff] %vm280_vm2, %v22216_v11 }
 0x1ad   : > { %18991 = vmatmul.mubr.msk.bf16.gmra.mrb[12].mxu0 %vm525_vm1, %v22447_v28  ;;  %311 = vst.msk [vmem:[#allocation2 + $0xf0] sm:$0xff] %vm280_vm2, %v22216_v11  ;;  %312 = vst.msk [vmem:[#allocation2 + $0xf8] sm:$0xff] %vm280_vm2, %v22216_v11 }
 0x1ae   : > { %18994 = vmatprep.mubr.msk.bf16.mxu0 %vm525_vm1, %v22449_v29  ;;  %313 = vst.msk [vmem:[#allocation2 + $0x100] sm:$0xff] %vm280_vm2, %v22216_v11  ;;  %314 = vst.msk [vmem:[#allocation2 + $0x108] sm:$0xff] %vm280_vm2, %v22216_v11 }
 0x1af   : > { %315 = vst.msk [vmem:[#allocation2 + $0x110] sm:$0xff] %vm280_vm2, %v22216_v11  ;;  %316 = vst.msk [vmem:[#allocation2 + $0x118] sm:$0xff] %vm280_vm2, %v22216_v11 }
 0x1b0   : > { %317 = vst.msk [vmem:[#allocation2 + $0x120] sm:$0xff] %vm280_vm2, %v22216_v11  ;;  %318 = vst.msk [vmem:[#allocation2 + $0x128] sm:$0xff] %vm280_vm2, %v22216_v11 }
 0x1b1   : > { %319 = vst.msk [vmem:[#allocation2 + $0x130] sm:$0xff] %vm280_vm2, %v22216_v11  ;;  %320 = vst.msk [vmem:[#allocation2 + $0x138] sm:$0xff] %vm280_vm2, %v22216_v11 }
 0x1b2   : > { %321 = vst.msk [vmem:[#allocation2 + $0x140] sm:$0xff] %vm280_vm2, %v22216_v11  ;;  %322 = vst.msk [vmem:[#allocation2 + $0x148] sm:$0xff] %vm280_vm2, %v22216_v11 }
 0x1b3   : > { %323 = vst.msk [vmem:[#allocation2 + $0x150] sm:$0xff] %vm280_vm2, %v22216_v11  ;;  %324 = vst.msk [vmem:[#allocation2 + $0x158] sm:$0xff] %vm280_vm2, %v22216_v11 }
 0x1b4   : > { %325 = vst.msk [vmem:[#allocation2 + $0x160] sm:$0xff] %vm280_vm2, %v22216_v11  ;;  %326 = vst.msk [vmem:[#allocation2 + $0x168] sm:$0xff] %vm280_vm2, %v22216_v11 }
 0x1b5   : > { %18995 = vmatmul.mubr.msk.bf16.gmra.mrb[16].mxu0 %vm525_vm1, %v22459_v38  ;;  %327 = vst.msk [vmem:[#allocation2 + $0x170] sm:$0xff] %vm280_vm2, %v22216_v11  ;;  %328 = vst.msk [vmem:[#allocation2 + $0x178] sm:$0xff] %vm280_vm2, %v22216_v11 }
 0x1b6   : > { %18998 = vmatprep.mubr.msk.bf16.mxu0 %vm525_vm1, %v22461_v39  ;;  %329 = vst.msk [vmem:[#allocation2 + $0x180] sm:$0xff] %vm280_vm2, %v22216_v11  ;;  %330 = vst.msk [vmem:[#allocation2 + $0x188] sm:$0xff] %vm280_vm2, %v22216_v11 }
 0x1b7   : > { %331 = vst.msk [vmem:[#allocation2 + $0x190] sm:$0xff] %vm280_vm2, %v22216_v11  ;;  %332 = vst.msk [vmem:[#allocation2 + $0x198] sm:$0xff] %vm280_vm2, %v22216_v11 }
 0x1b8   : > { %333 = vst.msk [vmem:[#allocation2 + $0x1a0] sm:$0xff] %vm280_vm2, %v22216_v11  ;;  %334 = vst.msk [vmem:[#allocation2 + $0x1a8] sm:$0xff] %vm280_vm2, %v22216_v11 }
 0x1b9   : > { %335 = vst.msk [vmem:[#allocation2 + $0x1b0] sm:$0xff] %vm280_vm2, %v22216_v11  ;;  %336 = vst.msk [vmem:[#allocation2 + $0x1b8] sm:$0xff] %vm280_vm2, %v22216_v11 }
 0x1ba   : > { %337 = vst.msk [vmem:[#allocation2 + $0x1c0] sm:$0xff] %vm280_vm2, %v22216_v11  ;;  %338 = vst.msk [vmem:[#allocation2 + $0x1c8] sm:$0xff] %vm280_vm2, %v22216_v11 }
 0x1bb   : > { %339 = vst.msk [vmem:[#allocation2 + $0x1d0] sm:$0xff] %vm280_vm2, %v22216_v11  ;;  %340 = vst.msk [vmem:[#allocation2 + $0x1d8] sm:$0xff] %vm280_vm2, %v22216_v11 }
 0x1bc   : > { %341 = vst.msk [vmem:[#allocation2 + $0x1e0] sm:$0xff] %vm280_vm2, %v22216_v11  ;;  %342 = vst.msk [vmem:[#allocation2 + $0x1e8] sm:$0xff] %vm280_vm2, %v22216_v11 }
 0x1bd   : > { %18999 = vmatmul.mubr.msk.bf16.gmra.mrb[20].mxu0 %vm525_vm1, %v22471_v46  ;;  %343 = vst.msk [vmem:[#allocation2 + $0x1f0] sm:$0xff] %vm280_vm2, %v22216_v11  ;;  %344 = vst.msk [vmem:[#allocation2 + $0x1f8] sm:$0xff] %vm280_vm2, %v22216_v11 }
 0x1be   : > { %19002 = vmatprep.mubr.msk.bf16.mxu0 %vm525_vm1, %v22473_v47  ;;  %345 = vst.msk [vmem:[#allocation2 + $0x200] sm:$0xff] %vm280_vm2, %v22216_v11  ;;  %346 = vst.msk [vmem:[#allocation2 + $0x208] sm:$0xff] %vm280_vm2, %v22216_v11 }
 0x1bf   : > { %347 = vst.msk [vmem:[#allocation2 + $0x210] sm:$0xff] %vm280_vm2, %v22216_v11  ;;  %348 = vst.msk [vmem:[#allocation2 + $0x218] sm:$0xff] %vm280_vm2, %v22216_v11 }
 0x1c0   : > { %349 = vst.msk [vmem:[#allocation2 + $0x220] sm:$0xff] %vm280_vm2, %v22216_v11  ;;  %350 = vst.msk [vmem:[#allocation2 + $0x228] sm:$0xff] %vm280_vm2, %v22216_v11 }
 0x1c1   : > { %351 = vst.msk [vmem:[#allocation2 + $0x230] sm:$0xff] %vm280_vm2, %v22216_v11  ;;  %352 = vst.msk [vmem:[#allocation2 + $0x238] sm:$0xff] %vm280_vm2, %v22216_v11 }
 0x1c2   : > { %353 = vst.msk [vmem:[#allocation3] sm:$0xff] %vm280_vm2, %v22216_v11  ;;  %354 = vst.msk [vmem:[#allocation3 + $0x8] sm:$0xff] %vm280_vm2, %v22216_v11 }
 0x1c3   : > { %355 = vst.msk [vmem:[#allocation3 + $0x10] sm:$0xff] %vm280_vm2, %v22216_v11  ;;  %356 = vst.msk [vmem:[#allocation3 + $0x18] sm:$0xff] %vm280_vm2, %v22216_v11 }
 0x1c4   : > { %357 = vst.msk [vmem:[#allocation3 + $0x20] sm:$0xff] %vm280_vm2, %v22216_v11  ;;  %358 = vst.msk [vmem:[#allocation3 + $0x28] sm:$0xff] %vm280_vm2, %v22216_v11 }
 0x1c5   : > { %19003 = vmatmul.mubr.msk.bf16.gmra.mrb[24].mxu0 %vm525_vm1, %v22483_v55  ;;  %359 = vst.msk [vmem:[#allocation3 + $0x30] sm:$0xff] %vm280_vm2, %v22216_v11  ;;  %360 = vst.msk [vmem:[#allocation3 + $0x38] sm:$0xff] %vm280_vm2, %v22216_v11 }
 0x1c6   : > { %19006 = vmatprep.mubr.msk.bf16.mxu0 %vm525_vm1, %v22621_v33  ;;  %361 = vst.msk [vmem:[#allocation3 + $0x40] sm:$0xff] %vm280_vm2, %v22216_v11  ;;  %362 = vst.msk [vmem:[#allocation3 + $0x48] sm:$0xff] %vm280_vm2, %v22216_v11 }
 0x1c7   : > { %363 = vst.msk [vmem:[#allocation3 + $0x50] sm:$0xff] %vm280_vm2, %v22216_v11  ;;  %364 = vst.msk [vmem:[#allocation3 + $0x58] sm:$0xff] %vm280_vm2, %v22216_v11 }
 0x1c8   : > { %365 = vst.msk [vmem:[#allocation3 + $0x60] sm:$0xff] %vm280_vm2, %v22216_v11  ;;  %366 = vst.msk [vmem:[#allocation3 + $0x68] sm:$0xff] %vm280_vm2, %v22216_v11 }
 0x1c9   : > { %367 = vst.msk [vmem:[#allocation3 + $0x70] sm:$0xff] %vm280_vm2, %v22216_v11  ;;  %368 = vst.msk [vmem:[#allocation3 + $0x78] sm:$0xff] %vm280_vm2, %v22216_v11 }
 0x1ca   : > { %369 = vst.msk [vmem:[#allocation3 + $0x80] sm:$0xff] %vm280_vm2, %v22216_v11  ;;  %370 = vst.msk [vmem:[#allocation3 + $0x88] sm:$0xff] %vm280_vm2, %v22216_v11 }
 0x1cb   : > { %371 = vst.msk [vmem:[#allocation3 + $0x90] sm:$0xff] %vm280_vm2, %v22216_v11  ;;  %372 = vst.msk [vmem:[#allocation3 + $0x98] sm:$0xff] %vm280_vm2, %v22216_v11 }
 0x1cc   : > { %373 = vst.msk [vmem:[#allocation3 + $0xa0] sm:$0xff] %vm280_vm2, %v22216_v11  ;;  %374 = vst.msk [vmem:[#allocation3 + $0xa8] sm:$0xff] %vm280_vm2, %v22216_v11 }
 0x1cd   : > { %19007 = vmatmul.mubr.msk.bf16.gmra.mrb[28].mxu0 %vm525_vm1, %v2176_v5  ;;  %375 = vst.msk [vmem:[#allocation3 + $0xb0] sm:$0xff] %vm280_vm2, %v22216_v11  ;;  %376 = vst.msk [vmem:[#allocation3 + $0xb8] sm:$0xff] %vm280_vm2, %v22216_v11 }
 0x1ce   : > { %19012 = vmatprep.mubr.msk.bf16.mxu0 %vm525_vm1, %v22291_v12  ;;  %377 = vst.msk [vmem:[#allocation3 + $0xc0] sm:$0xff] %vm280_vm2, %v22216_v11  ;;  %378 = vst.msk [vmem:[#allocation3 + $0xc8] sm:$0xff] %vm280_vm2, %v22216_v11  ;;  %v2816_v12 = vsel %vm574_vm0, %v22713_v2, 0 }
 0x1cf   : > { %379 = vst.msk [vmem:[#allocation3 + $0xd0] sm:$0xff] %vm280_vm2, %v22216_v11  ;;  %380 = vst.msk [vmem:[#allocation3 + $0xd8] sm:$0xff] %vm280_vm2, %v22216_v11 }
 0x1d0   : > { %381 = vst.msk [vmem:[#allocation3 + $0xe0] sm:$0xff] %vm280_vm2, %v22216_v11  ;;  %382 = vst.msk [vmem:[#allocation3 + $0xe8] sm:$0xff] %vm280_vm2, %v22216_v11 }
 0x1d1   : > { %383 = vst.msk [vmem:[#allocation3 + $0xf0] sm:$0xff] %vm280_vm2, %v22216_v11  ;;  %384 = vst.msk [vmem:[#allocation3 + $0xf8] sm:$0xff] %vm280_vm2, %v22216_v11 }
 0x1d2   : > { %385 = vst.msk [vmem:[#allocation3 + $0x100] sm:$0xff] %vm280_vm2, %v22216_v11  ;;  %386 = vst.msk [vmem:[#allocation3 + $0x108] sm:$0xff] %vm280_vm2, %v22216_v11 }
 0x1d3   : > { %387 = vst.msk [vmem:[#allocation3 + $0x110] sm:$0xff] %vm280_vm2, %v22216_v11  ;;  %388 = vst.msk [vmem:[#allocation3 + $0x118] sm:$0xff] %vm280_vm2, %v22216_v11 }
 0x1d4   : > { %389 = vst.msk [vmem:[#allocation3 + $0x120] sm:$0xff] %vm280_vm2, %v22216_v11  ;;  %390 = vst.msk [vmem:[#allocation3 + $0x128] sm:$0xff] %vm280_vm2, %v22216_v11 }
 0x1d5   : > { %391 = vst.msk [vmem:[#allocation3 + $0x130] sm:$0xff] %vm280_vm2, %v22216_v11  ;;  %392 = vst.msk [vmem:[#allocation3 + $0x138] sm:$0xff] %vm280_vm2, %v22216_v11  ;;  %19013 = vmatmul.mubr.msk.bf16.vlgmr.msra.gmra.mrb[0].mxu0 %vm525_vm1, %v22309_v18  ;;  %v17011_v18 = vld [vmem:[%s22280_s10 + $0x199] sm:$0xff] }
 0x1d6   : > { %393 = vst.msk [vmem:[#allocation3 + $0x140] sm:$0xff] %vm280_vm2, %v22216_v11  ;;  %394 = vst.msk [vmem:[#allocation3 + $0x148] sm:$0xff] %vm280_vm2, %v22216_v11  ;;  %19045 = vmatpush3.bf16.msra.mxu0 %v2816_v12  ;;  %19016 = vmatprep.mubr.msk.bf16.mxu0 %vm525_vm1, %v22311_v19  ;;  %v17012_v19 = vld [vmem:[%s22280_s10 + $0x1a1] sm:$0xff] }
 0x1d7   : > { %395 = vst.msk [vmem:[#allocation3 + $0x150] sm:$0xff] %vm280_vm2, %v22216_v11  ;;  %396 = vst.msk [vmem:[#allocation3 + $0x158] sm:$0xff] %vm280_vm2, %v22216_v11 }
 0x1d8   : > { %397 = vst.msk [vmem:[#allocation3 + $0x160] sm:$0xff] %vm280_vm2, %v22216_v11  ;;  %398 = vst.msk [vmem:[#allocation3 + $0x168] sm:$0xff] %vm280_vm2, %v22216_v11 }
 0x1d9   : > { %399 = vst.msk [vmem:[#allocation3 + $0x170] sm:$0xff] %vm280_vm2, %v22216_v11  ;;  %400 = vst.msk [vmem:[#allocation3 + $0x178] sm:$0xff] %vm280_vm2, %v22216_v11 }
 0x1da   : > { %401 = vst.msk [vmem:[#allocation3 + $0x180] sm:$0xff] %vm280_vm2, %v22216_v11  ;;  %402 = vst.msk [vmem:[#allocation3 + $0x188] sm:$0xff] %vm280_vm2, %v22216_v11 }
 0x1db   : > { %403 = vst.msk [vmem:[#allocation3 + $0x190] sm:$0xff] %vm280_vm2, %v22216_v11  ;;  %404 = vst.msk [vmem:[#allocation3 + $0x198] sm:$0xff] %vm280_vm2, %v22216_v11 }
 0x1dc   : > { %405 = vst.msk [vmem:[#allocation3 + $0x1a0] sm:$0xff] %vm280_vm2, %v22216_v11  ;;  %406 = vst.msk [vmem:[#allocation3 + $0x1a8] sm:$0xff] %vm280_vm2, %v22216_v11 }
 0x1dd   : > { %407 = vst.msk [vmem:[#allocation3 + $0x1b0] sm:$0xff] %vm280_vm2, %v22216_v11  ;;  %408 = vst.msk [vmem:[#allocation3 + $0x1b8] sm:$0xff] %vm280_vm2, %v22216_v11  ;;  %19017 = vmatmul.mubr.msk.bf16.gmra.mrb[4].mxu0 %vm525_vm1, %v22321_v24  ;;  %v2470_v24 = vpack.c.bf16 %v17012_v19, %v17011_v18 }
 0x1de   : > { %409 = vst.msk [vmem:[#allocation3 + $0x1c0] sm:$0xff] %vm280_vm2, %v22216_v11  ;;  %410 = vst.msk [vmem:[#allocation3 + $0x1c8] sm:$0xff] %vm280_vm2, %v22216_v11  ;;  %19020 = vmatprep.mubr.msk.bf16.mxu0 %vm525_vm1, %v22323_v25  ;;  %v17060_v25 = vld [vmem:[%s22280_s10 + $0x19a] sm:$0xff] }
 0x1df   : > { %411 = vst.msk [vmem:[#allocation3 + $0x1d0] sm:$0xff] %vm280_vm2, %v22216_v11  ;;  %412 = vst.msk [vmem:[#allocation3 + $0x1d8] sm:$0xff] %vm280_vm2, %v22216_v11 }
 0x1e0   : > { %413 = vst.msk [vmem:[#allocation3 + $0x1e0] sm:$0xff] %vm280_vm2, %v22216_v11  ;;  %414 = vst.msk [vmem:[#allocation3 + $0x1e8] sm:$0xff] %vm280_vm2, %v22216_v11 }
 0x1e1   : > { %415 = vst.msk [vmem:[#allocation3 + $0x1f0] sm:$0xff] %vm280_vm2, %v22216_v11  ;;  %416 = vst.msk [vmem:[#allocation3 + $0x1f8] sm:$0xff] %vm280_vm2, %v22216_v11 }
 0x1e2   : > { %417 = vst.msk [vmem:[#allocation3 + $0x200] sm:$0xff] %vm280_vm2, %v22216_v11  ;;  %418 = vst.msk [vmem:[#allocation3 + $0x208] sm:$0xff] %vm280_vm2, %v22216_v11 }
 0x1e3   : > { %419 = vst.msk [vmem:[#allocation3 + $0x210] sm:$0xff] %vm280_vm2, %v22216_v11  ;;  %420 = vst.msk [vmem:[#allocation3 + $0x218] sm:$0xff] %vm280_vm2, %v22216_v11 }
 0x1e4   : > { %421 = vst.msk [vmem:[#allocation3 + $0x220] sm:$0xff] %vm280_vm2, %v22216_v11  ;;  %422 = vst.msk [vmem:[#allocation3 + $0x228] sm:$0xff] %vm280_vm2, %v22216_v11 }
 0x1e5   : > { %423 = vst.msk [vmem:[#allocation3 + $0x230] sm:$0xff] %vm280_vm2, %v22216_v11  ;;  %424 = vst.msk [vmem:[#allocation3 + $0x238] sm:$0xff] %vm280_vm2, %v22216_v11  ;;  %19021 = vmatmul.mubr.msk.bf16.gmra.mrb[8].mxu0 %vm525_vm1, %v22333_v30  ;;  %v17061_v30 = vld [vmem:[%s22280_s10 + $0x1a2] sm:$0xff] }
 0x1e6   : > { %19024 = vmatprep.mubr.msk.bf16.mxu0 %vm525_vm1, %v22335_v31  ;;  %v2764_v31 = vpack.c.bf16 %v17061_v30, %v17060_v25 }
 0x1ed   : > { %19025 = vmatmul.mubr.msk.bf16.gmra.mrb[12].mxu0 %vm525_vm1, %v22345_v36  ;;  %v17080_v36 = vld [vmem:[%s25721_s3 + $0x4] sm:$0xf] }
 0x1ee   : > { %19028 = vmatprep.mubr.msk.bf16.mxu0 %vm525_vm1, %v22347_v37  ;;  %22153 = vmatprep.subr.msk.bf16.mxu1 %vm3294_vm3, %v17080_v36  ;;  %v3296_v37 = vsel %vm3294_vm3, %v17080_v36, 0 }
 0x1ef   : > { %19079 = vmatpush3.bf16.msra.mxu1 %v3296_v37 }
 0x1f5   : > { %19029 = vmatmul.mubr.msk.bf16.gmra.mrb[16].mxu0 %vm525_vm1, %v22357_v42  ;;  %v3196_v42 = vld [vmem:[#allocation2 + $0x8] sm:$0xff] }
 0x1f6   : > { %19032 = vmatprep.mubr.msk.bf16.mxu0 %vm525_vm1, %v22359_v43  ;;  %v3197_v43 = vld [vmem:[#allocation2 + $0x10] sm:$0xff] }
 0x1fd   : > { %19033 = vmatmul.mubr.msk.bf16.gmra.mrb[20].mxu0 %vm525_vm1, %v22369_v48  ;;  %v3228_v48 = vpack.c.bf16 %v3197_v43, %v3196_v42 }
 0x1fe   : > { %19036 = vmatprep.mubr.msk.bf16.mxu0 %vm525_vm1, %v22371_v49  ;;  %v3195_v49 = vld [vmem:[%s25721_s3] sm:$0xf] }
 0x1ff   : > { %19080 = vmatprep.mubr.msk.bf16.mxu1 %vm280_vm2, %v3228_v48  ;;  %22154 = vmatprep.subr.msk.bf16.mxu1 %vm3294_vm3, %v3195_v49  ;;  %v3508_v27 = vsel %vm3294_vm3, %v3195_v49, 0 }
 0x205   : > { %19037 = vmatmul.mubr.msk.bf16.gmra.mrb[24].mxu0 %vm525_vm1, %v22381_v54  ;;  %v23117_v54 = vld [vmem:[%s25720_s2] ss:$0 sm:$0xff] }
 0x206   : > { %19040 = vmatprep.mubr.msk.bf16.mxu0 %vm525_vm1, %v22662_v45 }
 0x20d   : > { %19041 = vmatmul.mubr.msk.bf16.gmra.mrb[28].mxu0 %vm525_vm1, %v2470_v24 }
 0x20e   : > { %19046 = vmatprep.mubr.msk.bf16.mxu0 %vm525_vm1, %v22494_v1 }
 0x215   : > { %19047 = vmatmul.mubr.msk.bf16.vlgmr.msra.gmra.mrb[0].mxu0 %vm525_vm1, %v22510_v63 }
 0x216   : > { %19050 = vmatprep.mubr.msk.bf16.mxu0 %vm525_vm1, %v22512_v14 }
 0x21d   : > { %19051 = vmatmul.mubr.msk.bf16.gmra.mrb[4].mxu0 %vm525_vm1, %v22522_v23 }
 0x21e   : > { %19054 = vmatprep.mubr.msk.bf16.mxu0 %vm525_vm1, %v22524_v26 }
 0x225   : > { %19055 = vmatmul.mubr.msk.bf16.gmra.mrb[8].mxu0 %vm525_vm1, %v22534_v35 }
 0x226   : > { %19058 = vmatprep.mubr.msk.bf16.mxu0 %vm525_vm1, %v22536_v40 }
 0x22d   : > { %19059 = vmatmul.mubr.msk.bf16.gmra.mrb[12].mxu0 %vm525_vm1, %v22546_v51 }
 0x22e   : > { %19062 = vmatprep.mubr.msk.bf16.mxu0 %vm525_vm1, %v22548_v52 }
 0x235   : > { %19063 = vmatmul.mubr.msk.bf16.gmra.mrb[16].mxu0 %vm525_vm1, %v22558_v59 }
 0x236   : > { %19066 = vmatprep.mubr.msk.bf16.mxu0 %vm525_vm1, %v22560_v62 }
 0x23d   : > { %19067 = vmatmul.mubr.msk.bf16.gmra.mrb[20].mxu0 %vm525_vm1, %v22570_v9 }
 0x23e   : > { %19070 = vmatprep.mubr.msk.bf16.mxu0 %vm525_vm1, %v22572_v15 }
 0x245   : > { %19071 = vmatmul.mubr.msk.bf16.gmra.mrb[24].mxu0 %vm525_vm1, %v22580_v22 }
 0x246   : > { %19074 = vmatprep.mubr.msk.bf16.mxu0 %vm525_vm1, %v22703_v57 }
 0x24d   : > { %19075 = vmatmul.mubr.msk.bf16.gmra.mrb[28].mxu0 %vm525_vm1, %v2764_v31 }
 0x2e8   : > { %v19048_v13 = vpop.f32.mrb[0].mxu0 }
 0x2e9   : > { %v3019_v20 = vadd.f32 %v19048_v13, %v23117_v54  ;;  %v2852_v21 = vpop.f32.mrb[1].mxu0 }
 0x2ea   : > { %v3017_v28 = vadd.f32 %v23117_v54, %v2852_v21  ;;  %v19049_v29 = vpop.f32.mrb[2].mxu0 }
 0x2eb   : > { %v3051_v38 = vmax.f32 %v3019_v20, 0.0  ;;  %v3020_v39 = vadd.f32 %v19049_v29, %v23117_v54  ;;  %v2855_v46 = vpop.f32.mrb[3].mxu0 }
 0x2ec   : > { %v3049_v47 = vmax.f32 %v3017_v28, 0.0  ;;  %v3018_v55 = vadd.f32 %v23117_v54, %v2855_v46 }
 0x2ed   : > { %3083 = vst.msk [vmem:[#allocation4 + $0x10] sm:$0xff] %vm280_vm2, %v3051_v38  ;;  %3116 = vst.msk [vmem:[#allocation2 + $0x48] sm:$0xff] %vm280_vm2, %v3051_v38  ;;  %v3052_v1 = vmax.f32 %v3020_v39, 0.0 }
 0x2ee   : > { %3081 = vst.msk [vmem:[#allocation4] sm:$0xff] %vm280_vm2, %v3049_v47  ;;  %3114 = vst.msk [vmem:[#allocation2 + $0x28] sm:$0xff] %vm280_vm2, %v3049_v47  ;;  %v3050_v63 = vmax.f32 %v3018_v55, 0.0 }
 0x2ef   : > { %3084 = vst.msk [vmem:[#allocation4 + $0x18] sm:$0xff] %vm280_vm2, %v3052_v1  ;;  %3117 = vst.msk [vmem:[#allocation2 + $0x50] sm:$0xff] %vm280_vm2, %v3052_v1 }
 0x2f0   : > { %3082 = vst.msk [vmem:[#allocation4 + $0x8] sm:$0xff] %vm280_vm2, %v3050_v63  ;;  %3115 = vst.msk [vmem:[#allocation2 + $0x30] sm:$0xff] %vm280_vm2, %v3050_v63  ;;  %v19052_v14 = vpop.f32.mrb[4].mxu0 }
 0x2f1   : > { %v3023_v23 = vadd.f32 %v19052_v14, %v23117_v54  ;;  %v2868_v26 = vpop.f32.mrb[5].mxu0 }
 0x2f2   : > { %v3021_v35 = vadd.f32 %v23117_v54, %v2868_v26  ;;  %v19053_v40 = vpop.f32.mrb[6].mxu0 }
 0x2f3   : > { %v3055_v51 = vmax.f32 %v3023_v23, 0.0  ;;  %v3024_v52 = vadd.f32 %v19053_v40, %v23117_v54  ;;  %v2871_v59 = vpop.f32.mrb[7].mxu0 }
 0x2f4   : > { %v3053_v62 = vmax.f32 %v3021_v35, 0.0  ;;  %v3022_v6 = vadd.f32 %v23117_v54, %v2871_v59  ;;  %v3200_v32 = vld [vmem:[#allocation2 + $0x48] sm:$0xff] }
 0x2f5   : > { %3087 = vst.msk [vmem:[#allocation4 + $0x30] sm:$0xff] %vm280_vm2, %v3055_v51  ;;  %3120 = vst.msk [vmem:[#allocation2 + $0x88] sm:$0xff] %vm280_vm2, %v3055_v51  ;;  %v3056_v7 = vmax.f32 %v3024_v52, 0.0  ;;  %v3198_v15 = vld [vmem:[#allocation2 + $0x28] sm:$0xff] }
 0x2f6   : > { %3085 = vst.msk [vmem:[#allocation4 + $0x20] sm:$0xff] %vm280_vm2, %v3053_v62  ;;  %3118 = vst.msk [vmem:[#allocation2 + $0x68] sm:$0xff] %vm280_vm2, %v3053_v62  ;;  %v3054_v8 = vmax.f32 %v3022_v6, 0.0  ;;  %v3201_v9 = vld [vmem:[#allocation2 + $0x50] sm:$0xff] }
 0x2f7   : > { %3088 = vst.msk [vmem:[#allocation4 + $0x38] sm:$0xff] %vm280_vm2, %v3056_v7  ;;  %3121 = vst.msk [vmem:[#allocation2 + $0x90] sm:$0xff] %vm280_vm2, %v3056_v7  ;;  %v3199_v16 = vld [vmem:[#allocation2 + $0x30] sm:$0xff]  ;;  %v23147_v33 = vpack.c.bf16 %v3201_v9, %v3200_v32 }
 0x2f8   : > { %3086 = vst.msk [vmem:[#allocation4 + $0x28] sm:$0xff] %vm280_vm2, %v3054_v8  ;;  %3119 = vst.msk [vmem:[#allocation2 + $0x70] sm:$0xff] %vm280_vm2, %v3054_v8  ;;  %v19056_v17 = vpop.f32.mrb[8].mxu0  ;;  %v23143_v22 = vpack.c.bf16 %v3199_v16, %v3198_v15 }
 0x2f9   : > { %v3027_v60 = vadd.f32 %v19056_v17, %v23117_v54  ;;  %v2884_v3 = vpop.f32.mrb[9].mxu0 }
 0x2fa   : > { %v3025_v41 = vadd.f32 %v23117_v54, %v2884_v3  ;;  %v19057_v10 = vpop.f32.mrb[10].mxu0  ;;  %19081 = vmatmul.mubr.msk.bf16.vlgmr.msra.gmra.mrb[0].mxu1 %vm280_vm2, %v23143_v22 }
 0x2fb   : > { %v3059_v44 = vmax.f32 %v3027_v60, 0.0  ;;  %v3028_v45 = vadd.f32 %v19057_v10, %v23117_v54  ;;  %19113 = vmatpush3.bf16.msra.mxu1 %v3508_v27  ;;  %v2887_v50 = vpop.f32.mrb[11].mxu0  ;;  %19084 = vmatprep.mubr.msk.bf16.mxu1 %vm280_vm2, %v23147_v33 }
 0x2fc   : > { %v3057_v53 = vmax.f32 %v3025_v41, 0.0  ;;  %v3026_v0 = vadd.f32 %v23117_v54, %v2887_v50  ;;  %22155 = vmatprep.subr.msk.bf16.mxu1 %vm3294_vm3, %v23152_v34  ;;  %v3204_v11 = vld [vmem:[#allocation2 + $0x88] sm:$0xff] }
 0x2fd   : > { %3091 = vst.msk [vmem:[#allocation4 + $0x50] sm:$0xff] %vm280_vm2, %v3059_v44  ;;  %3124 = vst.msk [vmem:[#allocation2 + $0xc8] sm:$0xff] %vm280_vm2, %v3059_v44  ;;  %v3060_v56 = vmax.f32 %v3028_v45, 0.0  ;;  %v3202_v2 = vld [vmem:[#allocation2 + $0x68] sm:$0xff] }
 0x2fe   : > { %3089 = vst.msk [vmem:[#allocation4 + $0x40] sm:$0xff] %vm280_vm2, %v3057_v53  ;;  %3122 = vst.msk [vmem:[#allocation2 + $0xa8] sm:$0xff] %vm280_vm2, %v3057_v53  ;;  %v3058_v57 = vmax.f32 %v3026_v0, 0.0  ;;  %v3205_v58 = vld [vmem:[#allocation2 + $0x90] sm:$0xff] }
 0x2ff   : > { %3092 = vst.msk [vmem:[#allocation4 + $0x58] sm:$0xff] %vm280_vm2, %v3060_v56  ;;  %3125 = vst.msk [vmem:[#allocation2 + $0xd0] sm:$0xff] %vm280_vm2, %v3060_v56  ;;  %v3203_v61 = vld [vmem:[#allocation2 + $0x70] sm:$0xff]  ;;  %v23174_v19 = vpack.c.bf16 %v3205_v58, %v3204_v11 }
 0x300   : > { %3090 = vst.msk [vmem:[#allocation4 + $0x48] sm:$0xff] %vm280_vm2, %v3058_v57  ;;  %3123 = vst.msk [vmem:[#allocation2 + $0xb0] sm:$0xff] %vm280_vm2, %v3058_v57  ;;  %v19060_v4 = vpop.f32.mrb[12].mxu0  ;;  %v23171_v5 = vpack.c.bf16 %v3203_v61, %v3202_v2 }
 0x301   : > { %v3031_v12 = vadd.f32 %v19060_v4, %v23117_v54  ;;  %v2900_v18 = vpop.f32.mrb[13].mxu0 }
 0x302   : > { %v3029_v24 = vadd.f32 %v23117_v54, %v2900_v18  ;;  %v19061_v25 = vpop.f32.mrb[14].mxu0  ;;  %19085 = vmatmul.mubr.msk.bf16.gmra.mrb[4].mxu1 %vm280_vm2, %v23171_v5 }
 0x303   : > { %v3063_v30 = vmax.f32 %v3031_v12, 0.0  ;;  %v3032_v31 = vadd.f32 %v19061_v25, %v23117_v54  ;;  %v2903_v36 = vpop.f32.mrb[15].mxu0  ;;  %19088 = vmatprep.mubr.msk.bf16.mxu1 %vm280_vm2, %v23174_v19 }
 0x304   : > { %v3061_v37 = vmax.f32 %v3029_v24, 0.0  ;;  %v3030_v42 = vadd.f32 %v23117_v54, %v2903_v36  ;;  %v3208_v29 = vld [vmem:[#allocation2 + $0xc8] sm:$0xff] }
 0x305   : > { %3095 = vst.msk [vmem:[#allocation4 + $0x70] sm:$0xff] %vm280_vm2, %v3063_v30  ;;  %3128 = vst.msk [vmem:[#allocation2 + $0x108] sm:$0xff] %vm280_vm2, %v3063_v30  ;;  %v3064_v43 = vmax.f32 %v3032_v31, 0.0  ;;  %v3206_v13 = vld [vmem:[#allocation2 + $0xa8] sm:$0xff] }
 0x306   : > { %3093 = vst.msk [vmem:[#allocation4 + $0x60] sm:$0xff] %vm280_vm2, %v3061_v37  ;;  %3126 = vst.msk [vmem:[#allocation2 + $0xe8] sm:$0xff] %vm280_vm2, %v3061_v37  ;;  %v3062_v48 = vmax.f32 %v3030_v42, 0.0  ;;  %v3209_v49 = vld [vmem:[#allocation2 + $0xd0] sm:$0xff] }
 0x307   : > { %3096 = vst.msk [vmem:[#allocation4 + $0x78] sm:$0xff] %vm280_vm2, %v3064_v43  ;;  %3129 = vst.msk [vmem:[#allocation2 + $0x110] sm:$0xff] %vm280_vm2, %v3064_v43  ;;  %v3207_v20 = vld [vmem:[#allocation2 + $0xb0] sm:$0xff]  ;;  %v23194_v46 = vpack.c.bf16 %v3209_v49, %v3208_v29 }
 0x308   : > { %3094 = vst.msk [vmem:[#allocation4 + $0x68] sm:$0xff] %vm280_vm2, %v3062_v48  ;;  %3127 = vst.msk [vmem:[#allocation2 + $0xf0] sm:$0xff] %vm280_vm2, %v3062_v48  ;;  %v19064_v21 = vpop.f32.mrb[16].mxu0  ;;  %v23191_v28 = vpack.c.bf16 %v3207_v20, %v3206_v13 }
 0x309   : > { %v3035_v38 = vadd.f32 %v19064_v21, %v23117_v54  ;;  %v2916_v39 = vpop.f32.mrb[17].mxu0 }
 0x30a   : > { %v3033_v47 = vadd.f32 %v23117_v54, %v2916_v39  ;;  %v19065_v55 = vpop.f32.mrb[18].mxu0  ;;  %19089 = vmatmul.mubr.msk.bf16.gmra.mrb[8].mxu1 %vm280_vm2, %v23191_v28 }
 0x30b   : > { %v3067_v1 = vmax.f32 %v3035_v38, 0.0  ;;  %v3036_v63 = vadd.f32 %v19065_v55, %v23117_v54  ;;  %v2919_v14 = vpop.f32.mrb[19].mxu0  ;;  %19092 = vmatprep.mubr.msk.bf16.mxu1 %vm280_vm2, %v23194_v46 }
 0x30c   : > { %v3065_v23 = vmax.f32 %v3033_v47, 0.0  ;;  %v3034_v26 = vadd.f32 %v23117_v54, %v2919_v14  ;;  %v3212_v7 = vld [vmem:[#allocation2 + $0x108] sm:$0xff] }
 0x30d   : > { %3099 = vst.msk [vmem:[#allocation4 + $0x90] sm:$0xff] %vm280_vm2, %v3067_v1  ;;  %3132 = vst.msk [vmem:[#allocation2 + $0x148] sm:$0xff] %vm280_vm2, %v3067_v1  ;;  %v3068_v35 = vmax.f32 %v3036_v63, 0.0  ;;  %v3210_v52 = vld [vmem:[#allocation2 + $0xe8] sm:$0xff] }
 0x30e   : > { %3097 = vst.msk [vmem:[#allocation4 + $0x80] sm:$0xff] %vm280_vm2, %v3065_v23  ;;  %3130 = vst.msk [vmem:[#allocation2 + $0x128] sm:$0xff] %vm280_vm2, %v3065_v23  ;;  %v3066_v40 = vmax.f32 %v3034_v26, 0.0  ;;  %v3213_v51 = vld [vmem:[#allocation2 + $0x110] sm:$0xff] }
 0x30f   : > { %3100 = vst.msk [vmem:[#allocation4 + $0x98] sm:$0xff] %vm280_vm2, %v3068_v35  ;;  %3133 = vst.msk [vmem:[#allocation2 + $0x150] sm:$0xff] %vm280_vm2, %v3068_v35  ;;  %v3211_v59 = vld [vmem:[#allocation2 + $0xf0] sm:$0xff]  ;;  %v23214_v15 = vpack.c.bf16 %v3213_v51, %v3212_v7 }
 0x310   : > { %3098 = vst.msk [vmem:[#allocation4 + $0x88] sm:$0xff] %vm280_vm2, %v3066_v40  ;;  %3131 = vst.msk [vmem:[#allocation2 + $0x130] sm:$0xff] %vm280_vm2, %v3066_v40  ;;  %v19068_v62 = vpop.f32.mrb[20].mxu0  ;;  %v23211_v6 = vpack.c.bf16 %v3211_v59, %v3210_v52  ;;  %v3148_v7 = vld [vmem:[#allocation2 + $0xf] sm:$0xff] }
 0x311   : > { %v3039_v8 = vadd.f32 %v19068_v62, %v23117_v54  ;;  %v2932_v9 = vpop.f32.mrb[21].mxu0  ;;  %v3147_v62 = vld [vmem:[#allocation2 + $0x7] sm:$0xff] }
 0x312   : > { %v3037_v16 = vadd.f32 %v23117_v54, %v2932_v9  ;;  %v19069_v17 = vpop.f32.mrb[22].mxu0  ;;  %19093 = vmatmul.mubr.msk.bf16.gmra.mrb[12].mxu1 %vm280_vm2, %v23211_v6 }
 0x313   : > { %v3071_v27 = vmax.f32 %v3039_v8, 0.0  ;;  %v3040_v32 = vadd.f32 %v19069_v17, %v23117_v54  ;;  %v2935_v60 = vpop.f32.mrb[23].mxu0  ;;  %19096 = vmatprep.mubr.msk.bf16.mxu1 %vm280_vm2, %v23214_v15 }
 0x314   : > { %v3069_v3 = vmax.f32 %v3037_v16, 0.0  ;;  %v3038_v41 = vadd.f32 %v23117_v54, %v2935_v60  ;;  %v3216_v57 = vld [vmem:[#allocation2 + $0x148] sm:$0xff]  ;;  %v3179_v16 = vpack.c.bf16 %v3148_v7, %v3147_v62  ;;  %v3672_v7 = vld [vmem:[#allocation2 + $0x11] sm:$0xff] }
 0x315   : > { %3103 = vst.msk [vmem:[#allocation4 + $0xb0] sm:$0xff] %vm280_vm2, %v3071_v27  ;;  %3136 = vst.msk [vmem:[#allocation2 + $0x188] sm:$0xff] %vm280_vm2, %v3071_v27  ;;  %v3072_v10 = vmax.f32 %v3040_v32, 0.0  ;;  %v3214_v50 = vld [vmem:[#allocation2 + $0x128] sm:$0xff] }
 0x316   : > { %3101 = vst.msk [vmem:[#allocation4 + $0xa0] sm:$0xff] %vm280_vm2, %v3069_v3  ;;  %3134 = vst.msk [vmem:[#allocation2 + $0x168] sm:$0xff] %vm280_vm2, %v3069_v3  ;;  %v3070_v44 = vmax.f32 %v3038_v41, 0.0  ;;  %v3217_v45 = vld [vmem:[#allocation2 + $0x150] sm:$0xff]  ;;  %v3149_v60 = vld [vmem:[#allocation2 + $0x27] sm:$0xff]  ;;  %v3770_v41 = vsel %vm3294_vm3, %v23152_v34, 0 }
 0x317   : > { %3104 = vst.msk [vmem:[#allocation4 + $0xb8] sm:$0xff] %vm280_vm2, %v3072_v10  ;;  %3137 = vst.msk [vmem:[#allocation2 + $0x190] sm:$0xff] %vm280_vm2, %v3072_v10  ;;  %v3215_v53 = vld [vmem:[#allocation2 + $0x130] sm:$0xff]  ;;  %v23234_v61 = vpack.c.bf16 %v3217_v45, %v3216_v57  ;;  %v3151_v10 = vld [vmem:[#allocation2 + $0x47] sm:$0xff] }
 0x318   : > { %3102 = vst.msk [vmem:[#allocation4 + $0xa8] sm:$0xff] %vm280_vm2, %v3070_v44  ;;  %3135 = vst.msk [vmem:[#allocation2 + $0x170] sm:$0xff] %vm280_vm2, %v3070_v44  ;;  %v19072_v0 = vpop.f32.mrb[24].mxu0  ;;  %v23231_v56 = vpack.c.bf16 %v3215_v53, %v3214_v50  ;;  %v3150_v27 = vld [vmem:[#allocation2 + $0x2f] sm:$0xff]  ;;  %v3153_v53 = vld [vmem:[#allocation2 + $0x67] sm:$0xff] }
 0x319   : > { %v3043_v58 = vadd.f32 %v19072_v0, %v23117_v54  ;;  %v2948_v2 = vpop.f32.mrb[25].mxu0  ;;  %v3152_v32 = vld [vmem:[#allocation2 + $0x4f] sm:$0xff]  ;;  %v23284_v3 = vpack.c.bf16 %v3150_v27, %v3149_v60  ;;  %v3155_v57 = vld [vmem:[#allocation2 + $0x87] sm:$0xff] }
 0x31a   : > { %v3041_v4 = vadd.f32 %v23117_v54, %v2948_v2  ;;  %v19073_v11 = vpop.f32.mrb[26].mxu0  ;;  %19097 = vmatmul.mubr.msk.bf16.gmra.mrb[16].mxu1 %vm280_vm2, %v23231_v56  ;;  %v23288_v44 = vpack.c.bf16 %v3152_v32, %v3151_v10  ;;  %v23293_v45 = vld [vmem:[%s25721_s3 + $0xc] sm:$0xf]  ;;  %v3674_v60 = vld [vmem:[#allocation2 + $0x31] sm:$0xff] }
 0x31b   : > { %v3075_v12 = vmax.f32 %v3043_v58, 0.0  ;;  %v3044_v18 = vadd.f32 %v19073_v11, %v23117_v54  ;;  %v2951_v24 = vpop.f32.mrb[27].mxu0  ;;  %19100 = vmatprep.mubr.msk.bf16.mxu1 %vm280_vm2, %v23234_v61  ;;  %v3154_v50 = vld [vmem:[#allocation2 + $0x6f] sm:$0xff]  ;;  %v3157_v11 = vld [vmem:[#allocation2 + $0xa7] sm:$0xff] }
 0x31c   : > { %v3073_v25 = vmax.f32 %v3041_v4, 0.0  ;;  %v3042_v30 = vadd.f32 %v23117_v54, %v2951_v24  ;;  %v3220_v13 = vld [vmem:[#allocation2 + $0x188] sm:$0xff]  ;;  %v23301_v0 = vpack.c.bf16 %v3154_v50, %v3153_v53  ;;  %v3676_v10 = vld [vmem:[#allocation2 + $0x51] sm:$0xff] }
 0x31d   : > { %3107 = vst.msk [vmem:[#allocation4 + $0xd0] sm:$0xff] %vm280_vm2, %v3075_v12  ;;  %3140 = vst.msk [vmem:[#allocation2 + $0x1c8] sm:$0xff] %vm280_vm2, %v3075_v12  ;;  %v3076_v31 = vmax.f32 %v3044_v18, 0.0  ;;  %v3218_v42 = vld [vmem:[#allocation2 + $0x168] sm:$0xff] }
 0x31e   : > { %3105 = vst.msk [vmem:[#allocation4 + $0xc0] sm:$0xff] %vm280_vm2, %v3073_v25  ;;  %3138 = vst.msk [vmem:[#allocation2 + $0x1a8] sm:$0xff] %vm280_vm2, %v3073_v25  ;;  %v3074_v36 = vmax.f32 %v3042_v30, 0.0  ;;  %v3221_v37 = vld [vmem:[#allocation2 + $0x190] sm:$0xff]  ;;  %v3159_v18 = vld [vmem:[#allocation2 + $0xc7] sm:$0xff] }
 0x31f   : > { %3108 = vst.msk [vmem:[#allocation4 + $0xd8] sm:$0xff] %vm280_vm2, %v3076_v31  ;;  %3141 = vst.msk [vmem:[#allocation2 + $0x1d0] sm:$0xff] %vm280_vm2, %v3076_v31  ;;  %v3219_v43 = vld [vmem:[#allocation2 + $0x170] sm:$0xff]  ;;  %v23254_v29 = vpack.c.bf16 %v3221_v37, %v3220_v13  ;;  %v3161_v31 = vld [vmem:[#allocation2 + $0xe7] sm:$0xff] }
 0x320   : > { %3106 = vst.msk [vmem:[#allocation4 + $0xc8] sm:$0xff] %vm280_vm2, %v3074_v36  ;;  %3139 = vst.msk [vmem:[#allocation2 + $0x1b0] sm:$0xff] %vm280_vm2, %v3074_v36  ;;  %v19076_v48 = vpop.f32.mrb[28].mxu0  ;;  %v23251_v49 = vpack.c.bf16 %v3219_v43, %v3218_v42  ;;  %v3156_v34 = vld [vmem:[#allocation2 + $0x8f] sm:$0xff]  ;;  %v3163_v37 = vld [vmem:[#allocation2 + $0x107] sm:$0xff] }
 0x321   : > { %v3047_v20 = vadd.f32 %v19076_v48, %v23117_v54  ;;  %v2964_v21 = vpop.f32.mrb[29].mxu0  ;;  %v23303_v58 = vpack.c.bf16 %v3156_v34, %v3155_v57  ;;  %v3158_v2 = vld [vmem:[#allocation2 + $0xaf] sm:$0xff]  ;;  %v3165_v13 = vld [vmem:[#allocation2 + $0x127] sm:$0xff]  ;;  %v4064_v34 = vsel %vm3294_vm3, %v23293_v45, 0 }
 0x322   : > { %v3045_v38 = vadd.f32 %v23117_v54, %v2964_v21  ;;  %v19077_v39 = vpop.f32.mrb[30].mxu0  ;;  %19101 = vmatmul.mubr.msk.bf16.gmra.mrb[20].mxu1 %vm280_vm2, %v23251_v49  ;;  %v3160_v4 = vld [vmem:[#allocation2 + $0xcf] sm:$0xff]  ;;  %v23309_v12 = vpack.c.bf16 %v3158_v2, %v3157_v11  ;;  %v3167_v21 = vld [vmem:[#allocation2 + $0x147] sm:$0xff] }
 0x323   : > { %v3079_v47 = vmax.f32 %v3047_v20, 0.0  ;;  %v3048_v55 = vadd.f32 %v19077_v39, %v23117_v54  ;;  %v2967_v1 = vpop.f32.mrb[31].mxu0  ;;  %19104 = vmatprep.mubr.msk.bf16.mxu1 %vm280_vm2, %v23254_v29  ;;  %v23311_v24 = vpack.c.bf16 %v3160_v4, %v3159_v18  ;;  %v3162_v25 = vld [vmem:[#allocation2 + $0xef] sm:$0xff] }
 0x324   : > { %v3077_v63 = vmax.f32 %v3045_v38, 0.0  ;;  %v3046_v14 = vadd.f32 %v23117_v54, %v2967_v1  ;;  %v3224_v52 = vld [vmem:[#allocation2 + $0x1c8] sm:$0xff]  ;;  %v23317_v36 = vpack.c.bf16 %v3162_v25, %v3161_v31  ;;  %v17147_v57 = vld [vmem:[%s25721_s3 + $0x10] sm:$0xf] }
 0x325   : > { %3111 = vst.msk [vmem:[#allocation4 + $0xf0] sm:$0xff] %vm280_vm2, %v3079_v47  ;;  %3144 = vst.msk [vmem:[#allocation2 + $0x208] sm:$0xff] %vm280_vm2, %v3079_v47  ;;  %v3080_v23 = vmax.f32 %v3048_v55, 0.0  ;;  %v3222_v40 = vld [vmem:[#allocation2 + $0x1a8] sm:$0xff]  ;;  %v3678_v4 = vld [vmem:[#allocation2 + $0x71] sm:$0xff] }
 0x326   : > { %3109 = vst.msk [vmem:[#allocation4 + $0xe0] sm:$0xff] %vm280_vm2, %v3077_v63  ;;  %3142 = vst.msk [vmem:[#allocation2 + $0x1e8] sm:$0xff] %vm280_vm2, %v3077_v63  ;;  %v3078_v26 = vmax.f32 %v3046_v14, 0.0  ;;  %v3225_v35 = vld [vmem:[#allocation2 + $0x1d0] sm:$0xff]  ;;  %v3169_v55 = vld [vmem:[#allocation2 + $0x167] sm:$0xff] }
 0x327   : > { %3112 = vst.msk [vmem:[#allocation4 + $0xf8] sm:$0xff] %vm280_vm2, %v3080_v23  ;;  %3145 = vst.msk [vmem:[#allocation2 + $0x210] sm:$0xff] %vm280_vm2, %v3080_v23  ;;  %v3223_v51 = vld [vmem:[#allocation2 + $0x1b0] sm:$0xff]  ;;  %v23273_v59 = vpack.c.bf16 %v3225_v35, %v3224_v52  ;;  %v3171_v63 = vld [vmem:[#allocation2 + $0x187] sm:$0xff] }
 0x328   : > { %3110 = vst.msk [vmem:[#allocation4 + $0xe8] sm:$0xff] %vm280_vm2, %v3078_v26  ;;  %3143 = vst.msk [vmem:[#allocation2 + $0x1f0] sm:$0xff] %vm280_vm2, %v3078_v26  ;;  %v23271_v54 = vpack.c.bf16 %v3223_v51, %v3222_v40  ;;  %v3164_v30 = vld [vmem:[#allocation2 + $0x10f] sm:$0xff]  ;;  %v3173_v35 = vld [vmem:[#allocation2 + $0x1a7] sm:$0xff] }
 0x329   : > { %v23319_v42 = vpack.c.bf16 %v3164_v30, %v3163_v37  ;;  %v3166_v43 = vld [vmem:[#allocation2 + $0x12f] sm:$0xff]  ;;  %v3175_v51 = vld [vmem:[#allocation2 + $0x1c7] sm:$0xff] }
 0x32a   : > { %19105 = vmatmul.mubr.msk.bf16.gmra.mrb[24].mxu1 %vm280_vm2, %v23271_v54  ;;  %v3168_v48 = vld [vmem:[#allocation2 + $0x14f] sm:$0xff]  ;;  %v23325_v20 = vpack.c.bf16 %v3166_v43, %v3165_v13 }
 0x32b   : > { %19108 = vmatprep.mubr.msk.bf16.mxu1 %vm280_vm2, %v23273_v59  ;;  %v23327_v38 = vpack.c.bf16 %v3168_v48, %v3167_v21  ;;  %v3170_v39 = vld [vmem:[#allocation2 + $0x16f] sm:$0xff] }
 0x32c   : > { %v3172_v47 = vld [vmem:[#allocation2 + $0x18f] sm:$0xff]  ;;  %v23333_v1 = vpack.c.bf16 %v3170_v39, %v3169_v55 }
 0x32d   : > { %v3226_v8 = vld [vmem:[#allocation2 + $0x1e8] sm:$0xff]  ;;  %v23335_v14 = vpack.c.bf16 %v3172_v47, %v3171_v63  ;;  %v3680_v18 = vld [vmem:[#allocation2 + $0x91] sm:$0xff] }
 0x32e   : > { %v3174_v23 = vld [vmem:[#allocation2 + $0x1af] sm:$0xff] }
 0x32f   : > { %v3227_v9 = vld [vmem:[#allocation2 + $0x1f0] sm:$0xff]  ;;  %v23341_v40 = vpack.c.bf16 %v3174_v23, %v3173_v35 }
 0x330   : > { %v23279_v17 = vpack.c.bf16 %v3227_v9, %v3226_v8  ;;  %v3176_v26 = vld [vmem:[#allocation2 + $0x1cf] sm:$0xff]  ;;  %v3177_v9 = vld [vmem:[#allocation2 + $0x1e7] sm:$0xff] }
 0x331   : > { %v23343_v52 = vpack.c.bf16 %v3176_v26, %v3175_v51  ;;  %v3671_v62 = vld [vmem:[#allocation2 + $0x9] sm:$0xff]  ;;  %v3682_v31 = vld [vmem:[#allocation2 + $0xb1] sm:$0xff] }
 0x332   : > { %19109 = vmatmul.mubr.msk.bf16.gmra.mrb[28].mxu1 %vm280_vm2, %v23279_v17  ;;  %v3178_v8 = vld [vmem:[#allocation2 + $0x1ef] sm:$0xff] }
 0x333   : > { %19114 = vmatprep.mubr.msk.bf16.mxu1 %vm280_vm2, %v3179_v16  ;;  %v3703_v16 = vpack.c.bf16 %v3672_v7, %v3671_v62  ;;  %v23349_v27 = vpack.c.bf16 %v3178_v8, %v3177_v9  ;;  %v3673_v32 = vld [vmem:[#allocation2 + $0x29] sm:$0xff]  ;;  %v3684_v43 = vld [vmem:[#allocation2 + $0xd1] sm:$0xff] }
 0x334   : > { %v23354_v50 = vpack.c.bf16 %v3674_v60, %v3673_v32  ;;  %v3677_v2 = vld [vmem:[#allocation2 + $0x69] sm:$0xff]  ;;  %v3686_v39 = vld [vmem:[#allocation2 + $0xf1] sm:$0xff] }
 0x335   : > { %v3679_v11 = vld [vmem:[#allocation2 + $0x89] sm:$0xff]  ;;  %v3688_v55 = vld [vmem:[#allocation2 + $0x111] sm:$0xff] }
 0x336   : > { %v23370_v25 = vpack.c.bf16 %v3680_v18, %v3679_v11  ;;  %v3681_v30 = vld [vmem:[#allocation2 + $0xa9] sm:$0xff]  ;;  %v3690_v35 = vld [vmem:[#allocation2 + $0x131] sm:$0xff] }
 0x337   : > { %v3683_v37 = vld [vmem:[#allocation2 + $0xc9] sm:$0xff]  ;;  %v23376_v48 = vpack.c.bf16 %v3682_v31, %v3681_v30  ;;  %v3692_v62 = vld [vmem:[#allocation2 + $0x151] sm:$0xff] }
 0x338   : > { %v23378_v13 = vpack.c.bf16 %v3684_v43, %v3683_v37  ;;  %v3685_v21 = vld [vmem:[#allocation2 + $0xe9] sm:$0xff]  ;;  %v3696_v60 = vld [vmem:[#allocation2 + $0x191] sm:$0xff] }
 0x339   : > { %v3687_v47 = vld [vmem:[#allocation2 + $0x109] sm:$0xff]  ;;  %v23384_v63 = vpack.c.bf16 %v3686_v39, %v3685_v21  ;;  %v3700_v11 = vld [vmem:[#allocation2 + $0x1d1] sm:$0xff]  ;;  %v4358_v21 = vsel %vm3294_vm3, %v17147_v57, 0 }
 0x33a   : > { %19115 = vmatmul.mubr.msk.bf16.vlgmr.msra.gmra.mrb[0].mxu1 %vm280_vm2, %v23284_v3  ;;  %v23386_v23 = vpack.c.bf16 %v3688_v55, %v3687_v47  ;;  %v3689_v26 = vld [vmem:[#allocation2 + $0x129] sm:$0xff]  ;;  %v3702_v37 = vld [vmem:[#allocation2 + $0x1f1] sm:$0xff] }
 0x33b   : > { %19147 = vmatpush3.bf16.msra.mxu1 %v3770_v41  ;;  %19118 = vmatprep.mubr.msk.bf16.mxu1 %vm280_vm2, %v23288_v44  ;;  %v3675_v41 = vld [vmem:[#allocation2 + $0x49] sm:$0xff]  ;;  %v23392_v7 = vpack.c.bf16 %v3690_v35, %v3689_v26  ;;  %v17164_v39 = vld [vmem:[%s25721_s3 + $0x14] sm:$0xf]  ;;  %v17181_v26 = vld [vmem:[%s25721_s3 + $0x18] sm:$0xf] }
 0x33c   : > { %22156 = vmatprep.subr.msk.bf16.mxu1 %vm3294_vm3, %v23293_v45  ;;  %v23358_v53 = vpack.c.bf16 %v3676_v10, %v3675_v41  ;;  %v23368_v45 = vpack.c.bf16 %v3678_v4, %v3677_v2  ;;  %v3691_v51 = vld [vmem:[#allocation2 + $0x149] sm:$0xff]  ;;  %v3698_v2 = vld [vmem:[#allocation2 + $0x1b1] sm:$0xff]  ;;  %v4652_v55 = vsel %vm3294_vm3, %v17164_v39, 0 }
 0x33d   : > { %v23394_v8 = vpack.c.bf16 %v3692_v62, %v3691_v51  ;;  %v3693_v9 = vld [vmem:[#allocation2 + $0x169] sm:$0xff]  ;;  %v17215_v51 = vld [vmem:[%s25721_s3 + $0x20] sm:$0xf] }
 0x33e   : > { %v3695_v32 = vld [vmem:[#allocation2 + $0x189] sm:$0xff] }
 0x33f   : > { %v23402_v10 = vpack.c.bf16 %v3696_v60, %v3695_v32  ;;  %v3699_v4 = vld [vmem:[#allocation2 + $0x1c9] sm:$0xff] }
 0x340   : > { %v23410_v30 = vpack.c.bf16 %v3700_v11, %v3699_v4  ;;  %v3701_v31 = vld [vmem:[#allocation2 + $0x1e9] sm:$0xff] }
 0x341   : > { %v23416_v43 = vpack.c.bf16 %v3702_v37, %v3701_v31  ;;  %v5148_v32 = vld [vmem:[#allocation2 + $0xa8] sm:$0xff]  ;;  %v5153_v4 = vld [vmem:[#allocation2 + $0xf0] sm:$0xff] }
 0x342   : > { %19119 = vmatmul.mubr.msk.bf16.gmra.mrb[4].mxu1 %vm280_vm2, %v23301_v0  ;;  %v5152_v11 = vld [vmem:[#allocation2 + $0xe8] sm:$0xff] }
 0x343   : > { %19122 = vmatprep.mubr.msk.bf16.mxu1 %vm280_vm2, %v23303_v58  ;;  %v5179_v31 = vpack.c.bf16 %v5153_v4, %v5152_v11 }
 0x34a   : > { %19123 = vmatmul.mubr.msk.bf16.gmra.mrb[8].mxu1 %vm280_vm2, %v23309_v12 }
 0x34b   : > { %19126 = vmatprep.mubr.msk.bf16.mxu1 %vm280_vm2, %v23311_v24 }
 0x352   : > { %19127 = vmatmul.mubr.msk.bf16.gmra.mrb[12].mxu1 %vm280_vm2, %v23317_v36 }
 0x353   : > { %19130 = vmatprep.mubr.msk.bf16.mxu1 %vm280_vm2, %v23319_v42 }
 0x35a   : > { %19131 = vmatmul.mubr.msk.bf16.gmra.mrb[16].mxu1 %vm280_vm2, %v23325_v20 }
 0x35b   : > { %19134 = vmatprep.mubr.msk.bf16.mxu1 %vm280_vm2, %v23327_v38 }
 0x362   : > { %19135 = vmatmul.mubr.msk.bf16.gmra.mrb[20].mxu1 %vm280_vm2, %v23333_v1 }
 0x363   : > { %19138 = vmatprep.mubr.msk.bf16.mxu1 %vm280_vm2, %v23335_v14 }
 0x36a   : > { %19139 = vmatmul.mubr.msk.bf16.gmra.mrb[24].mxu1 %vm280_vm2, %v23341_v40 }
 0x36b   : > { %19142 = vmatprep.mubr.msk.bf16.mxu1 %vm280_vm2, %v23343_v52 }
 0x372   : > { %19143 = vmatmul.mubr.msk.bf16.gmra.mrb[28].mxu1 %vm280_vm2, %v23349_v27 }
 0x373   : > { %19148 = vmatprep.mubr.msk.bf16.mxu1 %vm280_vm2, %v3703_v16  ;;  %v3694_v16 = vld [vmem:[#allocation2 + $0x171] sm:$0xff] }
 0x374   : > { %v23400_v41 = vpack.c.bf16 %v3694_v16, %v3693_v9  ;;  %v5149_v9 = vld [vmem:[#allocation2 + $0xb0] sm:$0xff] }
 0x375   : > { %v5151_v16 = vld [vmem:[#allocation2 + $0xd0] sm:$0xff]  ;;  %v5177_v60 = vpack.c.bf16 %v5149_v9, %v5148_v32 }
 0x37a   : > { %19149 = vmatmul.mubr.msk.bf16.vlgmr.msra.gmra.mrb[0].mxu1 %vm280_vm2, %v23354_v50 }
 0x37b   : > { %19181 = vmatpush3.bf16.msra.mxu1 %v4064_v34  ;;  %19152 = vmatprep.mubr.msk.bf16.mxu1 %vm280_vm2, %v23358_v53  ;;  %v3697_v34 = vld [vmem:[#allocation2 + $0x1a9] sm:$0xff] }
 0x37c   : > { %22157 = vmatprep.subr.msk.bf16.mxu1 %vm3294_vm3, %v17147_v57  ;;  %v23408_v18 = vpack.c.bf16 %v3698_v2, %v3697_v34  ;;  %v3995_v57 = vld [vmem:[#allocation2 + $0x207] sm:$0xff] }
 0x37d   : > { %v5150_v34 = vld [vmem:[#allocation2 + $0xc8] sm:$0xff] }
 0x37e   : > { %v5178_v2 = vpack.c.bf16 %v5151_v16, %v5150_v34 }
 0x382   : > { %19153 = vmatmul.mubr.msk.bf16.gmra.mrb[4].mxu1 %vm280_vm2, %v23368_v45 }
 0x383   : > { %19156 = vmatprep.mubr.msk.bf16.mxu1 %vm280_vm2, %v23370_v25 }
 0x38a   : > { %19157 = vmatmul.mubr.msk.bf16.gmra.mrb[8].mxu1 %vm280_vm2, %v23376_v48 }
 0x38b   : > { %19160 = vmatprep.mubr.msk.bf16.mxu1 %vm280_vm2, %v23378_v13 }
 0x392   : > { %19161 = vmatmul.mubr.msk.bf16.gmra.mrb[12].mxu1 %vm280_vm2, %v23384_v63 }
 0x393   : > { %19164 = vmatprep.mubr.msk.bf16.mxu1 %vm280_vm2, %v23386_v23 }
 0x39a   : > { %19165 = vmatmul.mubr.msk.bf16.gmra.mrb[16].mxu1 %vm280_vm2, %v23392_v7 }
 0x39b   : > { %19168 = vmatprep.mubr.msk.bf16.mxu1 %vm280_vm2, %v23394_v8 }
 0x3a2   : > { %19169 = vmatmul.mubr.msk.bf16.gmra.mrb[20].mxu1 %vm280_vm2, %v23400_v41 }
 0x3a3   : > { %19172 = vmatprep.mubr.msk.bf16.mxu1 %vm280_vm2, %v23402_v10 }
 0x3aa   : > { %19173 = vmatmul.mubr.msk.bf16.gmra.mrb[24].mxu1 %vm280_vm2, %v23408_v18 }
 0x3ab   : > { %19176 = vmatprep.mubr.msk.bf16.mxu1 %vm280_vm2, %v23410_v30 }
 0x3b2   : > { %19177 = vmatmul.mubr.msk.bf16.gmra.mrb[28].mxu1 %vm280_vm2, %v23416_v43 }
 0x3b3   : > { %19182 = vmatprep.mubr.msk.bf16.mxu1 %vm280_vm2, %v23284_v3  ;;  %v3996_v3 = vld [vmem:[#allocation2 + $0x20f] sm:$0xff] }
 0x3b4   : > { %v23455_v47 = vpack.c.bf16 %v3996_v3, %v3995_v57 }
 0x3ba   : > { %19183 = vmatmul.mubr.msk.bf16.vlgmr.msra.gmra.mrb[0].mxu1 %vm280_vm2, %v23288_v44 }
 0x3bb   : > { %19215 = vmatpush3.bf16.msra.mxu1 %v4358_v21  ;;  %19186 = vmatprep.mubr.msk.bf16.mxu1 %vm280_vm2, %v23301_v0 }
 0x3bc   : > { %22158 = vmatprep.subr.msk.bf16.mxu1 %vm3294_vm3, %v17164_v39 }
 0x3c2   : > { %19187 = vmatmul.mubr.msk.bf16.gmra.mrb[4].mxu1 %vm280_vm2, %v23303_v58 }
 0x3c3   : > { %19190 = vmatprep.mubr.msk.bf16.mxu1 %vm280_vm2, %v23309_v12 }
 0x3ca   : > { %19191 = vmatmul.mubr.msk.bf16.gmra.mrb[8].mxu1 %vm280_vm2, %v23311_v24 }
 0x3cb   : > { %19194 = vmatprep.mubr.msk.bf16.mxu1 %vm280_vm2, %v23317_v36 }
 0x3d2   : > { %19195 = vmatmul.mubr.msk.bf16.gmra.mrb[12].mxu1 %vm280_vm2, %v23319_v42 }
 0x3d3   : > { %19198 = vmatprep.mubr.msk.bf16.mxu1 %vm280_vm2, %v23325_v20 }
 0x3da   : > { %19199 = vmatmul.mubr.msk.bf16.gmra.mrb[16].mxu1 %vm280_vm2, %v23327_v38 }
 0x3db   : > { %19202 = vmatprep.mubr.msk.bf16.mxu1 %vm280_vm2, %v23333_v1 }
 0x3e2   : > { %19203 = vmatmul.mubr.msk.bf16.gmra.mrb[20].mxu1 %vm280_vm2, %v23335_v14 }
 0x3e3   : > { %19206 = vmatprep.mubr.msk.bf16.mxu1 %vm280_vm2, %v23341_v40 }
 0x3ea   : > { %19207 = vmatmul.mubr.msk.bf16.gmra.mrb[24].mxu1 %vm280_vm2, %v23343_v52 }
 0x3eb   : > { %19210 = vmatprep.mubr.msk.bf16.mxu1 %vm280_vm2, %v23349_v27 }
 0x3f2   : > { %19211 = vmatmul.mubr.msk.bf16.gmra.mrb[28].mxu1 %vm280_vm2, %v23455_v47 }
 0x3f3   : > { %19216 = vmatprep.mubr.msk.bf16.mxu1 %vm280_vm2, %v23143_v22  ;;  %v4290_v22 = vld [vmem:[#allocation2 + $0x210] sm:$0xff] }
 0x3fa   : > { %19217 = vmatmul.mubr.msk.bf16.vlgmr.msra.gmra.mrb[0].mxu1 %vm280_vm2, %v23147_v33  ;;  %v4289_v33 = vld [vmem:[#allocation2 + $0x208] sm:$0xff] }
 0x3fb   : > { %19249 = vmatpush3.bf16.msra.mxu1 %v4652_v55  ;;  %19220 = vmatprep.mubr.msk.bf16.mxu1 %vm280_vm2, %v23171_v5  ;;  %v23494_v5 = vpack.c.bf16 %v4290_v22, %v4289_v33 }
 0x3fc   : > { %22159 = vmatprep.subr.msk.bf16.mxu1 %vm3294_vm3, %v17181_v26 }
 0x402   : > { %19221 = vmatmul.mubr.msk.bf16.gmra.mrb[4].mxu1 %vm280_vm2, %v23174_v19  ;;  %v4947_v19 = vsel %vm3294_vm3, %v17181_v26, 0 }
 0x403   : > { %19224 = vmatprep.mubr.msk.bf16.mxu1 %vm280_vm2, %v23191_v28  ;;  %v17198_v28 = vld [vmem:[%s25721_s3 + $0x1c] sm:$0xf] }
 0x404   : > { %v5241_v35 = vsel %vm3294_vm3, %v17198_v28, 0 }
 0x40a   : > { %19225 = vmatmul.mubr.msk.bf16.gmra.mrb[8].mxu1 %vm280_vm2, %v23194_v46  ;;  %v4583_v46 = vld [vmem:[#allocation2 + $0x209] sm:$0xff] }
 0x40b   : > { %19228 = vmatprep.mubr.msk.bf16.mxu1 %vm280_vm2, %v23211_v6  ;;  %v4584_v6 = vld [vmem:[#allocation2 + $0x211] sm:$0xff] }
 0x412   : > { %19229 = vmatmul.mubr.msk.bf16.gmra.mrb[12].mxu1 %vm280_vm2, %v23214_v15 }
 0x413   : > { %19232 = vmatprep.mubr.msk.bf16.mxu1 %vm280_vm2, %v23231_v56 }
 0x41a   : > { %19233 = vmatmul.mubr.msk.bf16.gmra.mrb[16].mxu1 %vm280_vm2, %v23234_v61 }
 0x41b   : > { %19236 = vmatprep.mubr.msk.bf16.mxu1 %vm280_vm2, %v23251_v49 }
 0x422   : > { %19237 = vmatmul.mubr.msk.bf16.gmra.mrb[20].mxu1 %vm280_vm2, %v23254_v29 }
 0x423   : > { %19240 = vmatprep.mubr.msk.bf16.mxu1 %vm280_vm2, %v23271_v54 }
 0x42a   : > { %19241 = vmatmul.mubr.msk.bf16.gmra.mrb[24].mxu1 %vm280_vm2, %v23273_v59 }
 0x42b   : > { %19244 = vmatprep.mubr.msk.bf16.mxu1 %vm280_vm2, %v23279_v17 }
 0x432   : > { %19245 = vmatmul.mubr.msk.bf16.gmra.mrb[28].mxu1 %vm280_vm2, %v23494_v5 }
 0x433   : > { %19250 = vmatprep.mubr.msk.bf16.mxu1 %vm280_vm2, %v23354_v50  ;;  %v23533_v50 = vpack.c.bf16 %v4584_v6, %v4583_v46 }
 0x43a   : > { %19251 = vmatmul.mubr.msk.bf16.vlgmr.msra.gmra.mrb[0].mxu1 %vm280_vm2, %v23358_v53 }
 0x43b   : > { %19283 = vmatpush3.bf16.msra.mxu1 %v4947_v19  ;;  %19254 = vmatprep.mubr.msk.bf16.mxu1 %vm280_vm2, %v23368_v45 }
 0x43c   : > { %22160 = vmatprep.subr.msk.bf16.mxu1 %vm3294_vm3, %v17198_v28 }
 0x442   : > { %19255 = vmatmul.mubr.msk.bf16.gmra.mrb[4].mxu1 %vm280_vm2, %v23370_v25 }
 0x443   : > { %19258 = vmatprep.mubr.msk.bf16.mxu1 %vm280_vm2, %v23376_v48 }
 0x44a   : > { %19259 = vmatmul.mubr.msk.bf16.gmra.mrb[8].mxu1 %vm280_vm2, %v23378_v13 }
 0x44b   : > { %19262 = vmatprep.mubr.msk.bf16.mxu1 %vm280_vm2, %v23384_v63 }
 0x452   : > { %19263 = vmatmul.mubr.msk.bf16.gmra.mrb[12].mxu1 %vm280_vm2, %v23386_v23 }
 0x453   : > { %19266 = vmatprep.mubr.msk.bf16.mxu1 %vm280_vm2, %v23392_v7 }
 0x45a   : > { %19267 = vmatmul.mubr.msk.bf16.gmra.mrb[16].mxu1 %vm280_vm2, %v23394_v8 }
 0x45b   : > { %19270 = vmatprep.mubr.msk.bf16.mxu1 %vm280_vm2, %v23400_v41 }
 0x462   : > { %19271 = vmatmul.mubr.msk.bf16.gmra.mrb[20].mxu1 %vm280_vm2, %v23402_v10 }
 0x463   : > { %19274 = vmatprep.mubr.msk.bf16.mxu1 %vm280_vm2, %v23408_v18 }
 0x46a   : > { %19275 = vmatmul.mubr.msk.bf16.gmra.mrb[24].mxu1 %vm280_vm2, %v23410_v30 }
 0x46b   : > { %19278 = vmatprep.mubr.msk.bf16.mxu1 %vm280_vm2, %v23416_v43 }
 0x472   : > { %19279 = vmatmul.mubr.msk.bf16.gmra.mrb[28].mxu1 %vm280_vm2, %v23533_v50 }
 0x473   : > { %19284 = vmatprep.mubr.msk.bf16.mxu1 %vm280_vm2, %v23288_v44  ;;  %v4878_v44 = vld [vmem:[#allocation2 + $0x227] sm:$0xff] }
 0x47a   : > { %19285 = vmatmul.mubr.msk.bf16.vlgmr.msra.gmra.mrb[0].mxu1 %vm280_vm2, %v23301_v0  ;;  %v4879_v0 = vld [vmem:[#allocation2 + $0x22f] sm:$0xff] }
 0x47b   : > { %19317 = vmatpush3.bf16.msra.mxu1 %v5241_v35  ;;  %19288 = vmatprep.mubr.msk.bf16.mxu1 %vm280_vm2, %v23303_v58  ;;  %v4895_v58 = vpack.c.bf16 %v4879_v0, %v4878_v44 }
 0x47c   : > { %22161 = vmatprep.subr.msk.bf16.mxu1 %vm3294_vm3, %v17215_v51 }
 0x482   : > { %19289 = vmatmul.mubr.msk.bf16.gmra.mrb[4].mxu1 %vm280_vm2, %v23309_v12  ;;  %v5143_v12 = vld [vmem:[#allocation2 + $0x50] sm:$0xff] }
 0x483   : > { %19292 = vmatprep.mubr.msk.bf16.mxu1 %vm280_vm2, %v23311_v24  ;;  %v5142_v24 = vld [vmem:[#allocation2 + $0x48] sm:$0xff] }
 0x48a   : > { %19293 = vmatmul.mubr.msk.bf16.gmra.mrb[8].mxu1 %vm280_vm2, %v23317_v36  ;;  %v5174_v36 = vpack.c.bf16 %v5143_v12, %v5142_v24 }
 0x48b   : > { %19296 = vmatprep.mubr.msk.bf16.mxu1 %vm280_vm2, %v23319_v42  ;;  %v17235_v42 = vld [vmem:[%s25721_s3 + $0x28] sm:$0xf] }
 0x48c   : > { %22162 = vmatprep.subr.msk.bf16.mxu0 %vm3294_vm3, %v17235_v42 }
 0x492   : > { %19297 = vmatmul.mubr.msk.bf16.gmra.mrb[12].mxu1 %vm280_vm2, %v23325_v20  ;;  %v5984_v20 = vsel %vm3294_vm3, %v17235_v42, 0 }
 0x493   : > { %19300 = vmatprep.mubr.msk.bf16.mxu1 %vm280_vm2, %v23327_v38  ;;  %19385 = vmatpush3.bf16.msra.mxu0 %v5984_v20  ;;  %v5145_v38 = vld [vmem:[#allocation2 + $0x70] sm:$0xff] }
 0x49a   : > { %19301 = vmatmul.mubr.msk.bf16.gmra.mrb[16].mxu1 %vm280_vm2, %v23333_v1  ;;  %v5147_v1 = vld [vmem:[#allocation2 + $0x90] sm:$0xff] }
 0x49b   : > { %19304 = vmatprep.mubr.msk.bf16.mxu1 %vm280_vm2, %v23335_v14  ;;  %v5144_v14 = vld [vmem:[#allocation2 + $0x68] sm:$0xff] }
 0x4a2   : > { %19305 = vmatmul.mubr.msk.bf16.gmra.mrb[20].mxu1 %vm280_vm2, %v23341_v40  ;;  %v5175_v40 = vpack.c.bf16 %v5145_v38, %v5144_v14 }
 0x4a3   : > { %19308 = vmatprep.mubr.msk.bf16.mxu1 %vm280_vm2, %v23343_v52  ;;  %v5535_v52 = vsel %vm3294_vm3, %v17215_v51, 0 }
 0x4aa   : > { %19309 = vmatmul.mubr.msk.bf16.gmra.mrb[24].mxu1 %vm280_vm2, %v23349_v27  ;;  %v5146_v27 = vld [vmem:[#allocation2 + $0x88] sm:$0xff] }
 0x4ab   : > { %19312 = vmatprep.mubr.msk.bf16.mxu1 %vm280_vm2, %v23455_v47  ;;  %v5176_v62 = vpack.c.bf16 %v5147_v1, %v5146_v27 }
 0x4b2   : > { %19313 = vmatmul.mubr.msk.bf16.gmra.mrb[28].mxu1 %vm280_vm2, %v4895_v58 }
 0x4b3   : > { %19318 = vmatprep.mubr.msk.bf16.mxu1 %vm280_vm2, %v5174_v36  ;;  %v23670_v36 = vld [vmem:[%s25721_s3 + $0x2c] sm:$0xf] }
 0x4ba   : > { %19319 = vmatmul.mubr.msk.bf16.vlgmr.msra.gmra.mrb[0].mxu1 %vm280_vm2, %v5175_v40 }
 0x4bb   : > { %19351 = vmatpush3.bf16.msra.mxu1 %v5535_v52  ;;  %19322 = vmatprep.mubr.msk.bf16.mxu1 %vm280_vm2, %v5176_v62 }
 0x4c2   : > { %19323 = vmatmul.mubr.msk.bf16.gmra.mrb[4].mxu1 %vm280_vm2, %v5177_v60 }
 0x4c3   : > { %19326 = vmatprep.mubr.msk.bf16.mxu1 %vm280_vm2, %v5178_v2 }
 0x4ca   : > { %19327 = vmatmul.mubr.msk.bf16.gmra.mrb[8].mxu1 %vm280_vm2, %v5179_v31 }
 0x4cb   : > { %19330 = vmatprep.mubr.msk.bf16.mxu1 %vm280_vm2, %v23214_v15  ;;  %v5172_v15 = vld [vmem:[#allocation2 + $0x228] sm:$0xff] }
 0x4d2   : > { %19331 = vmatmul.mubr.msk.bf16.gmra.mrb[12].mxu1 %vm280_vm2, %v23231_v56  ;;  %v5173_v56 = vld [vmem:[#allocation2 + $0x230] sm:$0xff] }
 0x4d3   : > { %19334 = vmatprep.mubr.msk.bf16.mxu1 %vm280_vm2, %v23234_v61  ;;  %v5189_v61 = vpack.c.bf16 %v5173_v56, %v5172_v15 }
 0x4da   : > { %19335 = vmatmul.mubr.msk.bf16.gmra.mrb[16].mxu1 %vm280_vm2, %v23251_v49  ;;  %v5466_v49 = vld [vmem:[#allocation2 + $0x229] sm:$0xff] }
 0x4db   : > { %19338 = vmatprep.mubr.msk.bf16.mxu1 %vm280_vm2, %v23254_v29  ;;  %v5467_v29 = vld [vmem:[#allocation2 + $0x231] sm:$0xff] }
 0x4e2   : > { %19339 = vmatmul.mubr.msk.bf16.gmra.mrb[20].mxu1 %vm280_vm2, %v23271_v54  ;;  %v5483_v54 = vpack.c.bf16 %v5467_v29, %v5466_v49 }
 0x4e3   : > { %19342 = vmatprep.mubr.msk.bf16.mxu1 %vm280_vm2, %v23273_v59  ;;  %v5885_v59 = vld [vmem:[#allocation3 + $0x8] sm:$0xff] }
 0x4ea   : > { %19343 = vmatmul.mubr.msk.bf16.gmra.mrb[24].mxu1 %vm280_vm2, %v23279_v17  ;;  %v5886_v17 = vld [vmem:[#allocation3 + $0x10] sm:$0xff] }
 0x4eb   : > { %19346 = vmatprep.mubr.msk.bf16.mxu1 %vm280_vm2, %v23494_v5 }
 0x4f2   : > { %19347 = vmatmul.mubr.msk.bf16.gmra.mrb[28].mxu1 %vm280_vm2, %v5189_v61 }
 0x4f3   : > { %19352 = vmatprep.mubr.msk.bf16.mxu1 %vm280_vm2, %v23358_v53  ;;  %v5917_v53 = vpack.c.bf16 %v5886_v17, %v5885_v59 }
 0x4f5   : > { %19386 = vmatprep.mubr.msk.bf16.mxu0 %vm280_vm2, %v5917_v53 }
 0x4fa   : > { %19353 = vmatmul.mubr.msk.bf16.vlgmr.msra.gmra.mrb[0].mxu1 %vm280_vm2, %v23368_v45  ;;  %v17234_v45 = vld [vmem:[%s25721_s3 + $0x24] sm:$0xf] }
 0x4fb   : > { %19356 = vmatprep.mubr.msk.bf16.mxu1 %vm280_vm2, %v23370_v25  ;;  %22163 = vmatprep.subr.msk.bf16.mxu0 %vm3294_vm3, %v17234_v45  ;;  %v23643_v25 = vld [vmem:[%s25722_s4] ss:$0 sm:$0xff]  ;;  %v6196_v44 = vsel %vm3294_vm3, %v17234_v45, 0 }
 0x502   : > { %19357 = vmatmul.mubr.msk.bf16.gmra.mrb[4].mxu1 %vm280_vm2, %v23376_v48 }
 0x503   : > { %19360 = vmatprep.mubr.msk.bf16.mxu1 %vm280_vm2, %v23378_v13 }
 0x50a   : > { %19361 = vmatmul.mubr.msk.bf16.gmra.mrb[8].mxu1 %vm280_vm2, %v23384_v63 }
 0x50b   : > { %19364 = vmatprep.mubr.msk.bf16.mxu1 %vm280_vm2, %v23386_v23 }
 0x512   : > { %19365 = vmatmul.mubr.msk.bf16.gmra.mrb[12].mxu1 %vm280_vm2, %v23392_v7 }
 0x513   : > { %19368 = vmatprep.mubr.msk.bf16.mxu1 %vm280_vm2, %v23394_v8 }
 0x51a   : > { %19369 = vmatmul.mubr.msk.bf16.gmra.mrb[16].mxu1 %vm280_vm2, %v23400_v41 }
 0x51b   : > { %19372 = vmatprep.mubr.msk.bf16.mxu1 %vm280_vm2, %v23402_v10 }
 0x522   : > { %19373 = vmatmul.mubr.msk.bf16.gmra.mrb[20].mxu1 %vm280_vm2, %v23408_v18 }
 0x523   : > { %19376 = vmatprep.mubr.msk.bf16.mxu1 %vm280_vm2, %v23410_v30 }
 0x52a   : > { %19377 = vmatmul.mubr.msk.bf16.gmra.mrb[24].mxu1 %vm280_vm2, %v23416_v43 }
 0x52b   : > { %19380 = vmatprep.mubr.msk.bf16.mxu1 %vm280_vm2, %v23533_v50 }
 0x532   : > { %19381 = vmatmul.mubr.msk.bf16.gmra.mrb[28].mxu1 %vm280_vm2, %v5483_v54 }
 0x5cd   : > { %v19354_v48 = vpop.f32.mrb[0].mxu1 }
 0x5ce   : > { %v5738_v13 = vadd.f32 %v19354_v48, %v23643_v25  ;;  %v5571_v63 = vpop.f32.mrb[1].mxu1 }
 0x5cf   : > { %v5736_v23 = vadd.f32 %v23643_v25, %v5571_v63  ;;  %v19355_v7 = vpop.f32.mrb[2].mxu1 }
 0x5d0   : > { %v5770_v8 = vmax.f32 %v5738_v13, 0.0  ;;  %v5739_v41 = vadd.f32 %v19355_v7, %v23643_v25  ;;  %v5574_v10 = vpop.f32.mrb[3].mxu1 }
 0x5d1   : > { %v5768_v18 = vmax.f32 %v5736_v23, 0.0  ;;  %v5737_v30 = vadd.f32 %v23643_v25, %v5574_v10 }
 0x5d2   : > { %5803 = vst.msk [vmem:[#allocation3 + $0x48] sm:$0xff] %vm280_vm2, %v5770_v8  ;;  %v5771_v37 = vmax.f32 %v5739_v41, 0.0 }
 0x5d3   : > { %5801 = vst.msk [vmem:[#allocation3 + $0x28] sm:$0xff] %vm280_vm2, %v5768_v18  ;;  %v5769_v43 = vmax.f32 %v5737_v30, 0.0 }
 0x5d4   : > { %5804 = vst.msk [vmem:[#allocation3 + $0x50] sm:$0xff] %vm280_vm2, %v5771_v37 }
 0x5d5   : > { %5802 = vst.msk [vmem:[#allocation3 + $0x30] sm:$0xff] %vm280_vm2, %v5769_v43  ;;  %v19358_v21 = vpop.f32.mrb[4].mxu1 }
 0x5d6   : > { %v5742_v39 = vadd.f32 %v19358_v21, %v23643_v25  ;;  %v5587_v3 = vpop.f32.mrb[5].mxu1 }
 0x5d7   : > { %v5740_v57 = vadd.f32 %v23643_v25, %v5587_v3  ;;  %v19359_v47 = vpop.f32.mrb[6].mxu1 }
 0x5d8   : > { %v5774_v55 = vmax.f32 %v5742_v39, 0.0  ;;  %v5743_v26 = vadd.f32 %v19359_v47, %v23643_v25  ;;  %v5590_v22 = vpop.f32.mrb[7].mxu1 }
 0x5d9   : > { %v5772_v33 = vmax.f32 %v5740_v57, 0.0  ;;  %v5741_v5 = vadd.f32 %v23643_v25, %v5590_v22  ;;  %v5889_v0 = vld [vmem:[#allocation3 + $0x48] sm:$0xff] }
 0x5da   : > { %5807 = vst.msk [vmem:[#allocation3 + $0x88] sm:$0xff] %vm280_vm2, %v5774_v55  ;;  %v5775_v19 = vmax.f32 %v5743_v26, 0.0  ;;  %v5887_v6 = vld [vmem:[#allocation3 + $0x28] sm:$0xff] }
 0x5db   : > { %5805 = vst.msk [vmem:[#allocation3 + $0x68] sm:$0xff] %vm280_vm2, %v5772_v33  ;;  %v5773_v28 = vmax.f32 %v5741_v5, 0.0  ;;  %v5890_v46 = vld [vmem:[#allocation3 + $0x50] sm:$0xff] }
 0x5dc   : > { %5808 = vst.msk [vmem:[#allocation3 + $0x90] sm:$0xff] %vm280_vm2, %v5775_v19  ;;  %v5888_v50 = vld [vmem:[#allocation3 + $0x30] sm:$0xff]  ;;  %v23665_v24 = vpack.c.bf16 %v5890_v46, %v5889_v0 }
 0x5dd   : > { %5806 = vst.msk [vmem:[#allocation3 + $0x70] sm:$0xff] %vm280_vm2, %v5773_v28  ;;  %v19362_v35 = vpop.f32.mrb[8].mxu1  ;;  %v23661_v51 = vpack.c.bf16 %v5888_v50, %v5887_v6 }
 0x5de   : > { %v5746_v58 = vadd.f32 %v19362_v35, %v23643_v25  ;;  %v5603_v12 = vpop.f32.mrb[9].mxu1 }
 0x5df   : > { %v5744_v42 = vadd.f32 %v23643_v25, %v5603_v12  ;;  %v19363_v20 = vpop.f32.mrb[10].mxu1  ;;  %19387 = vmatmul.mubr.msk.bf16.vlgmr.msra.gmra.mrb[32].mxu0 %vm280_vm2, %v23661_v51 }
 0x5e0   : > { %v5778_v38 = vmax.f32 %v5746_v58, 0.0  ;;  %v5747_v1 = vadd.f32 %v19363_v20, %v23643_v25  ;;  %19419 = vmatpush3.bf16.msra.mxu0 %v6196_v44  ;;  %v5606_v14 = vpop.f32.mrb[11].mxu1  ;;  %19390 = vmatprep.mubr.msk.bf16.mxu0 %vm280_vm2, %v23665_v24 }
 0x5e1   : > { %v5776_v40 = vmax.f32 %v5744_v42, 0.0  ;;  %v5745_v52 = vadd.f32 %v23643_v25, %v5606_v14  ;;  %22164 = vmatprep.subr.msk.bf16.mxu0 %vm3294_vm3, %v23670_v36  ;;  %v5893_v2 = vld [vmem:[#allocation3 + $0x88] sm:$0xff] }
 0x5e2   : > { %5811 = vst.msk [vmem:[#allocation3 + $0xc8] sm:$0xff] %vm280_vm2, %v5778_v38  ;;  %v5779_v27 = vmax.f32 %v5747_v1, 0.0  ;;  %v5891_v16 = vld [vmem:[#allocation3 + $0x68] sm:$0xff] }
 0x5e3   : > { %5809 = vst.msk [vmem:[#allocation3 + $0xa8] sm:$0xff] %vm280_vm2, %v5776_v40  ;;  %v5777_v62 = vmax.f32 %v5745_v52, 0.0  ;;  %v5894_v9 = vld [vmem:[#allocation3 + $0x90] sm:$0xff] }
 0x5e4   : > { %5812 = vst.msk [vmem:[#allocation3 + $0xd0] sm:$0xff] %vm280_vm2, %v5779_v27  ;;  %v5892_v32 = vld [vmem:[#allocation3 + $0x70] sm:$0xff]  ;;  %v23688_v31 = vpack.c.bf16 %v5894_v9, %v5893_v2 }
 0x5e5   : > { %5810 = vst.msk [vmem:[#allocation3 + $0xb0] sm:$0xff] %vm280_vm2, %v5777_v62  ;;  %v19366_v60 = vpop.f32.mrb[12].mxu1  ;;  %v23685_v34 = vpack.c.bf16 %v5892_v32, %v5891_v16 }
 0x5e6   : > { %v5750_v4 = vadd.f32 %v19366_v60, %v23643_v25  ;;  %v5619_v11 = vpop.f32.mrb[13].mxu1 }
 0x5e7   : > { %v5748_v15 = vadd.f32 %v23643_v25, %v5619_v11  ;;  %v19367_v56 = vpop.f32.mrb[14].mxu1  ;;  %19391 = vmatmul.mubr.msk.bf16.gmra.mrb[36].mxu0 %vm280_vm2, %v23685_v34 }
 0x5e8   : > { %v5782_v61 = vmax.f32 %v5750_v4, 0.0  ;;  %v5751_v49 = vadd.f32 %v19367_v56, %v23643_v25  ;;  %v5622_v29 = vpop.f32.mrb[15].mxu1  ;;  %19394 = vmatprep.mubr.msk.bf16.mxu0 %vm280_vm2, %v23688_v31 }
 0x5e9   : > { %v5780_v54 = vmax.f32 %v5748_v15, 0.0  ;;  %v5749_v59 = vadd.f32 %v23643_v25, %v5622_v29  ;;  %v5897_v7 = vld [vmem:[#allocation3 + $0xc8] sm:$0xff] }
 0x5ea   : > { %5815 = vst.msk [vmem:[#allocation3 + $0x108] sm:$0xff] %vm280_vm2, %v5782_v61  ;;  %v5783_v17 = vmax.f32 %v5751_v49, 0.0  ;;  %v5895_v48 = vld [vmem:[#allocation3 + $0xa8] sm:$0xff] }
 0x5eb   : > { %5813 = vst.msk [vmem:[#allocation3 + $0xe8] sm:$0xff] %vm280_vm2, %v5780_v54  ;;  %v5781_v53 = vmax.f32 %v5749_v59, 0.0  ;;  %v5898_v45 = vld [vmem:[#allocation3 + $0xd0] sm:$0xff] }
 0x5ec   : > { %5816 = vst.msk [vmem:[#allocation3 + $0x110] sm:$0xff] %vm280_vm2, %v5783_v17  ;;  %v5896_v13 = vld [vmem:[#allocation3 + $0xb0] sm:$0xff]  ;;  %v23704_v10 = vpack.c.bf16 %v5898_v45, %v5897_v7 }
 0x5ed   : > { %5814 = vst.msk [vmem:[#allocation3 + $0xf0] sm:$0xff] %vm280_vm2, %v5781_v53  ;;  %v19370_v63 = vpop.f32.mrb[16].mxu1  ;;  %v23701_v23 = vpack.c.bf16 %v5896_v13, %v5895_v48 }
 0x5ee   : > { %v5754_v8 = vadd.f32 %v19370_v63, %v23643_v25  ;;  %v5635_v41 = vpop.f32.mrb[17].mxu1 }
 0x5ef   : > { %v5752_v18 = vadd.f32 %v23643_v25, %v5635_v41  ;;  %v19371_v30 = vpop.f32.mrb[18].mxu1  ;;  %19395 = vmatmul.mubr.msk.bf16.gmra.mrb[40].mxu0 %vm280_vm2, %v23701_v23 }
 0x5f0   : > { %v5786_v37 = vmax.f32 %v5754_v8, 0.0  ;;  %v5755_v43 = vadd.f32 %v19371_v30, %v23643_v25  ;;  %v5638_v21 = vpop.f32.mrb[19].mxu1  ;;  %19398 = vmatprep.mubr.msk.bf16.mxu0 %vm280_vm2, %v23704_v10 }
 0x5f1   : > { %v5784_v39 = vmax.f32 %v5752_v18, 0.0  ;;  %v5753_v3 = vadd.f32 %v23643_v25, %v5638_v21  ;;  %v5901_v19 = vld [vmem:[#allocation3 + $0x108] sm:$0xff] }
 0x5f2   : > { %5819 = vst.msk [vmem:[#allocation3 + $0x148] sm:$0xff] %vm280_vm2, %v5786_v37  ;;  %v5787_v57 = vmax.f32 %v5755_v43, 0.0  ;;  %v5899_v26 = vld [vmem:[#allocation3 + $0xe8] sm:$0xff] }
 0x5f3   : > { %5817 = vst.msk [vmem:[#allocation3 + $0x128] sm:$0xff] %vm280_vm2, %v5784_v39  ;;  %v5785_v47 = vmax.f32 %v5753_v3, 0.0  ;;  %v5902_v55 = vld [vmem:[#allocation3 + $0x110] sm:$0xff] }
 0x5f4   : > { %5820 = vst.msk [vmem:[#allocation3 + $0x150] sm:$0xff] %vm280_vm2, %v5787_v57  ;;  %v5900_v22 = vld [vmem:[#allocation3 + $0xf0] sm:$0xff]  ;;  %v23720_v6 = vpack.c.bf16 %v5902_v55, %v5901_v19 }
 0x5f5   : > { %5818 = vst.msk [vmem:[#allocation3 + $0x130] sm:$0xff] %vm280_vm2, %v5785_v47  ;;  %v19374_v33 = vpop.f32.mrb[20].mxu1  ;;  %v23717_v5 = vpack.c.bf16 %v5900_v22, %v5899_v26  ;;  %v5836_v19 = vld [vmem:[#allocation3 + $0xf] sm:$0xff] }
 0x5f6   : > { %v5758_v28 = vadd.f32 %v19374_v33, %v23643_v25  ;;  %v5651_v46 = vpop.f32.mrb[21].mxu1 }
 0x5f7   : > { %v5756_v50 = vadd.f32 %v23643_v25, %v5651_v46  ;;  %v19375_v35 = vpop.f32.mrb[22].mxu1  ;;  %19399 = vmatmul.mubr.msk.bf16.gmra.mrb[44].mxu0 %vm280_vm2, %v23717_v5 }
 0x5f8   : > { %v5790_v44 = vmax.f32 %v5758_v28, 0.0  ;;  %v5759_v0 = vadd.f32 %v19375_v35, %v23643_v25  ;;  %v5654_v58 = vpop.f32.mrb[23].mxu1  ;;  %19402 = vmatprep.mubr.msk.bf16.mxu0 %vm280_vm2, %v23720_v6 }
 0x5f9   : > { %v5788_v12 = vmax.f32 %v5756_v50, 0.0  ;;  %v5757_v42 = vadd.f32 %v23643_v25, %v5654_v58  ;;  %v5905_v62 = vld [vmem:[#allocation3 + $0x148] sm:$0xff] }
 0x5fa   : > { %5823 = vst.msk [vmem:[#allocation3 + $0x188] sm:$0xff] %vm280_vm2, %v5790_v44  ;;  %v5791_v20 = vmax.f32 %v5759_v0, 0.0  ;;  %v5903_v14 = vld [vmem:[#allocation3 + $0x128] sm:$0xff] }
 0x5fb   : > { %5821 = vst.msk [vmem:[#allocation3 + $0x168] sm:$0xff] %vm280_vm2, %v5788_v12  ;;  %v5789_v38 = vmax.f32 %v5757_v42, 0.0  ;;  %v5906_v1 = vld [vmem:[#allocation3 + $0x150] sm:$0xff]  ;;  %v5837_v58 = vld [vmem:[#allocation3 + $0x27] sm:$0xff]  ;;  %v6458_v42 = vsel %vm3294_vm3, %v23670_v36, 0 }
 0x5fc   : > { %5824 = vst.msk [vmem:[#allocation3 + $0x190] sm:$0xff] %vm280_vm2, %v5791_v20  ;;  %v5904_v40 = vld [vmem:[#allocation3 + $0x130] sm:$0xff]  ;;  %v23736_v32 = vpack.c.bf16 %v5906_v1, %v5905_v62  ;;  %v5839_v20 = vld [vmem:[#allocation3 + $0x47] sm:$0xff] }
 0x5fd   : > { %5822 = vst.msk [vmem:[#allocation3 + $0x170] sm:$0xff] %vm280_vm2, %v5789_v38  ;;  %v19378_v52 = vpop.f32.mrb[24].mxu1  ;;  %v23733_v27 = vpack.c.bf16 %v5904_v40, %v5903_v14  ;;  %v5838_v44 = vld [vmem:[#allocation3 + $0x2f] sm:$0xff]  ;;  %v5841_v40 = vld [vmem:[#allocation3 + $0x67] sm:$0xff] }
 0x5fe   : > { %v5762_v9 = vadd.f32 %v19378_v52, %v23643_v25  ;;  %v5667_v16 = vpop.f32.mrb[25].mxu1  ;;  %v5840_v0 = vld [vmem:[#allocation3 + $0x4f] sm:$0xff]  ;;  %v23778_v12 = vpack.c.bf16 %v5838_v44, %v5837_v58  ;;  %v5843_v62 = vld [vmem:[#allocation3 + $0x87] sm:$0xff] }
 0x5ff   : > { %v5760_v60 = vadd.f32 %v23643_v25, %v5667_v16  ;;  %v19379_v2 = vpop.f32.mrb[26].mxu1  ;;  %19403 = vmatmul.mubr.msk.bf16.gmra.mrb[48].mxu0 %vm280_vm2, %v23733_v27  ;;  %v23782_v38 = vpack.c.bf16 %v5840_v0, %v5839_v20  ;;  %v23787_v1 = vld [vmem:[%s25721_s3 + $0x30] sm:$0xf] }
 0x600   : > { %v5794_v4 = vmax.f32 %v5762_v9, 0.0  ;;  %v5763_v11 = vadd.f32 %v19379_v2, %v23643_v25  ;;  %v5670_v15 = vpop.f32.mrb[27].mxu1  ;;  %19406 = vmatprep.mubr.msk.bf16.mxu0 %vm280_vm2, %v23736_v32  ;;  %v5842_v14 = vld [vmem:[#allocation3 + $0x6f] sm:$0xff]  ;;  %v5845_v2 = vld [vmem:[#allocation3 + $0xa7] sm:$0xff] }
 0x601   : > { %v5792_v56 = vmax.f32 %v5760_v60, 0.0  ;;  %v5761_v61 = vadd.f32 %v23643_v25, %v5670_v15  ;;  %v5909_v48 = vld [vmem:[#allocation3 + $0x188] sm:$0xff]  ;;  %v23795_v52 = vpack.c.bf16 %v5842_v14, %v5841_v40  ;;  %v6362_v58 = vld [vmem:[#allocation3 + $0x31] sm:$0xff] }
 0x602   : > { %5827 = vst.msk [vmem:[#allocation3 + $0x1c8] sm:$0xff] %vm280_vm2, %v5794_v4  ;;  %v5795_v49 = vmax.f32 %v5763_v11, 0.0  ;;  %v5907_v59 = vld [vmem:[#allocation3 + $0x168] sm:$0xff]  ;;  %v6364_v20 = vld [vmem:[#allocation3 + $0x51] sm:$0xff] }
 0x603   : > { %5825 = vst.msk [vmem:[#allocation3 + $0x1a8] sm:$0xff] %vm280_vm2, %v5792_v56  ;;  %v5793_v29 = vmax.f32 %v5761_v61, 0.0  ;;  %v5910_v54 = vld [vmem:[#allocation3 + $0x190] sm:$0xff]  ;;  %v5847_v11 = vld [vmem:[#allocation3 + $0xc7] sm:$0xff] }
 0x604   : > { %5828 = vst.msk [vmem:[#allocation3 + $0x1d0] sm:$0xff] %vm280_vm2, %v5795_v49  ;;  %v5908_v17 = vld [vmem:[#allocation3 + $0x170] sm:$0xff]  ;;  %v23752_v7 = vpack.c.bf16 %v5910_v54, %v5909_v48  ;;  %v5849_v49 = vld [vmem:[#allocation3 + $0xe7] sm:$0xff] }
 0x605   : > { %5826 = vst.msk [vmem:[#allocation3 + $0x1b0] sm:$0xff] %vm280_vm2, %v5793_v29  ;;  %v19382_v53 = vpop.f32.mrb[28].mxu1  ;;  %v23749_v45 = vpack.c.bf16 %v5908_v17, %v5907_v59  ;;  %v5844_v36 = vld [vmem:[#allocation3 + $0x8f] sm:$0xff]  ;;  %v5851_v54 = vld [vmem:[#allocation3 + $0x107] sm:$0xff] }
 0x606   : > { %v5766_v13 = vadd.f32 %v19382_v53, %v23643_v25  ;;  %v5683_v63 = vpop.f32.mrb[29].mxu1  ;;  %v23797_v9 = vpack.c.bf16 %v5844_v36, %v5843_v62  ;;  %v5846_v16 = vld [vmem:[#allocation3 + $0xaf] sm:$0xff]  ;;  %v5853_v48 = vld [vmem:[#allocation3 + $0x127] sm:$0xff]  ;;  %v6752_v36 = vsel %vm3294_vm3, %v23787_v1, 0 }
 0x607   : > { %v5764_v8 = vadd.f32 %v23643_v25, %v5683_v63  ;;  %v19383_v41 = vpop.f32.mrb[30].mxu1  ;;  %19407 = vmatmul.mubr.msk.bf16.gmra.mrb[52].mxu0 %vm280_vm2, %v23749_v45  ;;  %v5848_v60 = vld [vmem:[#allocation3 + $0xcf] sm:$0xff]  ;;  %v23803_v4 = vpack.c.bf16 %v5846_v16, %v5845_v2  ;;  %v5855_v63 = vld [vmem:[#allocation3 + $0x147] sm:$0xff] }
 0x608   : > { %v5798_v18 = vmax.f32 %v5766_v13, 0.0  ;;  %v5767_v30 = vadd.f32 %v19383_v41, %v23643_v25  ;;  %v5686_v37 = vpop.f32.mrb[31].mxu1  ;;  %19410 = vmatprep.mubr.msk.bf16.mxu0 %vm280_vm2, %v23752_v7  ;;  %v23805_v15 = vpack.c.bf16 %v5848_v60, %v5847_v11  ;;  %v5850_v56 = vld [vmem:[#allocation3 + $0xef] sm:$0xff] }
 0x609   : > { %v5796_v43 = vmax.f32 %v5764_v8, 0.0  ;;  %v5765_v21 = vadd.f32 %v23643_v25, %v5686_v37  ;;  %v5913_v22 = vld [vmem:[#allocation3 + $0x1c8] sm:$0xff]  ;;  %v23811_v29 = vpack.c.bf16 %v5850_v56, %v5849_v49  ;;  %v17302_v62 = vld [vmem:[%s25721_s3 + $0x34] sm:$0xf] }
 0x60a   : > { %5831 = vst.msk [vmem:[#allocation3 + $0x208] sm:$0xff] %vm280_vm2, %v5798_v18  ;;  %v5799_v39 = vmax.f32 %v5767_v30, 0.0  ;;  %v5911_v47 = vld [vmem:[#allocation3 + $0x1a8] sm:$0xff]  ;;  %v6366_v60 = vld [vmem:[#allocation3 + $0x71] sm:$0xff] }
 0x60b   : > { %5829 = vst.msk [vmem:[#allocation3 + $0x1e8] sm:$0xff] %vm280_vm2, %v5796_v43  ;;  %v5797_v3 = vmax.f32 %v5765_v21, 0.0  ;;  %v5914_v57 = vld [vmem:[#allocation3 + $0x1d0] sm:$0xff]  ;;  %v5835_v25 = vld [vmem:[#allocation3 + $0x7] sm:$0xff] }
 0x60c   : > { %5832 = vst.msk [vmem:[#allocation3 + $0x210] sm:$0xff] %vm280_vm2, %v5799_v39  ;;  %v5912_v55 = vld [vmem:[#allocation3 + $0x1b0] sm:$0xff]  ;;  %v23767_v33 = vpack.c.bf16 %v5914_v57, %v5913_v22  ;;  %v5867_v50 = vpack.c.bf16 %v5836_v19, %v5835_v25  ;;  %v5857_v30 = vld [vmem:[#allocation3 + $0x167] sm:$0xff] }
 0x60d   : > { %5830 = vst.msk [vmem:[#allocation3 + $0x1f0] sm:$0xff] %vm280_vm2, %v5797_v3  ;;  %v23765_v26 = vpack.c.bf16 %v5912_v55, %v5911_v47  ;;  %v5852_v61 = vld [vmem:[#allocation3 + $0x10f] sm:$0xff]  ;;  %v5859_v43 = vld [vmem:[#allocation3 + $0x187] sm:$0xff] }
 0x60e   : > { %v23813_v59 = vpack.c.bf16 %v5852_v61, %v5851_v54  ;;  %v5854_v17 = vld [vmem:[#allocation3 + $0x12f] sm:$0xff]  ;;  %v5861_v57 = vld [vmem:[#allocation3 + $0x1a7] sm:$0xff] }
 0x60f   : > { %19411 = vmatmul.mubr.msk.bf16.gmra.mrb[56].mxu0 %vm280_vm2, %v23765_v26  ;;  %v5856_v53 = vld [vmem:[#allocation3 + $0x14f] sm:$0xff]  ;;  %v23819_v13 = vpack.c.bf16 %v5854_v17, %v5853_v48  ;;  %v5863_v55 = vld [vmem:[#allocation3 + $0x1c7] sm:$0xff] }
 0x610   : > { %19414 = vmatprep.mubr.msk.bf16.mxu0 %vm280_vm2, %v23767_v33  ;;  %v23821_v8 = vpack.c.bf16 %v5856_v53, %v5855_v63  ;;  %v5858_v41 = vld [vmem:[#allocation3 + $0x16f] sm:$0xff] }
 0x611   : > { %v5860_v18 = vld [vmem:[#allocation3 + $0x18f] sm:$0xff]  ;;  %v23827_v37 = vpack.c.bf16 %v5858_v41, %v5857_v30 }
 0x612   : > { %v5915_v28 = vld [vmem:[#allocation3 + $0x1e8] sm:$0xff]  ;;  %v23829_v21 = vpack.c.bf16 %v5860_v18, %v5859_v43  ;;  %v6360_v19 = vld [vmem:[#allocation3 + $0x11] sm:$0xff] }
 0x613   : > { %v5862_v39 = vld [vmem:[#allocation3 + $0x1af] sm:$0xff] }
 0x614   : > { %v5916_v46 = vld [vmem:[#allocation3 + $0x1f0] sm:$0xff]  ;;  %v23835_v47 = vpack.c.bf16 %v5862_v39, %v5861_v57 }
 0x615   : > { %v23773_v35 = vpack.c.bf16 %v5916_v46, %v5915_v28  ;;  %v5864_v3 = vld [vmem:[#allocation3 + $0x1cf] sm:$0xff]  ;;  %v5865_v46 = vld [vmem:[#allocation3 + $0x1e7] sm:$0xff] }
 0x616   : > { %v23837_v22 = vpack.c.bf16 %v5864_v3, %v5863_v55  ;;  %v6359_v25 = vld [vmem:[#allocation3 + $0x9] sm:$0xff]  ;;  %v6368_v11 = vld [vmem:[#allocation3 + $0x91] sm:$0xff] }
 0x617   : > { %19415 = vmatmul.mubr.msk.bf16.gmra.mrb[60].mxu0 %vm280_vm2, %v23773_v35  ;;  %v5866_v28 = vld [vmem:[#allocation3 + $0x1ef] sm:$0xff] }
 0x618   : > { %19420 = vmatprep.mubr.msk.bf16.mxu0 %vm280_vm2, %v5867_v50  ;;  %v6391_v50 = vpack.c.bf16 %v6360_v19, %v6359_v25  ;;  %v23843_v44 = vpack.c.bf16 %v5866_v28, %v5865_v46  ;;  %v6361_v0 = vld [vmem:[#allocation3 + $0x29] sm:$0xff]  ;;  %v6370_v49 = vld [vmem:[#allocation3 + $0xb1] sm:$0xff] }
 0x619   : > { %v23848_v14 = vpack.c.bf16 %v6362_v58, %v6361_v0  ;;  %v6365_v16 = vld [vmem:[#allocation3 + $0x69] sm:$0xff]  ;;  %v6372_v17 = vld [vmem:[#allocation3 + $0xd1] sm:$0xff] }
 0x61a   : > { %v6367_v2 = vld [vmem:[#allocation3 + $0x89] sm:$0xff]  ;;  %v6374_v41 = vld [vmem:[#allocation3 + $0xf1] sm:$0xff] }
 0x61b   : > { %v23864_v56 = vpack.c.bf16 %v6368_v11, %v6367_v2  ;;  %v6369_v61 = vld [vmem:[#allocation3 + $0xa9] sm:$0xff]  ;;  %v6376_v30 = vld [vmem:[#allocation3 + $0x111] sm:$0xff] }
 0x61c   : > { %v6371_v54 = vld [vmem:[#allocation3 + $0xc9] sm:$0xff]  ;;  %v23870_v53 = vpack.c.bf16 %v6370_v49, %v6369_v61  ;;  %v6378_v57 = vld [vmem:[#allocation3 + $0x131] sm:$0xff] }
 0x61d   : > { %v23872_v48 = vpack.c.bf16 %v6372_v17, %v6371_v54  ;;  %v6373_v63 = vld [vmem:[#allocation3 + $0xe9] sm:$0xff]  ;;  %v6380_v25 = vld [vmem:[#allocation3 + $0x151] sm:$0xff] }
 0x61e   : > { %v6375_v18 = vld [vmem:[#allocation3 + $0x109] sm:$0xff]  ;;  %v23878_v43 = vpack.c.bf16 %v6374_v41, %v6373_v63  ;;  %v6384_v58 = vld [vmem:[#allocation3 + $0x191] sm:$0xff]  ;;  %v7046_v63 = vsel %vm3294_vm3, %v17302_v62, 0 }
 0x61f   : > { %19421 = vmatmul.mubr.msk.bf16.vlgmr.msra.gmra.mrb[32].mxu0 %vm280_vm2, %v23778_v12  ;;  %v23880_v39 = vpack.c.bf16 %v6376_v30, %v6375_v18  ;;  %v6377_v3 = vld [vmem:[#allocation3 + $0x129] sm:$0xff]  ;;  %v6388_v2 = vld [vmem:[#allocation3 + $0x1d1] sm:$0xff] }
 0x620   : > { %19453 = vmatpush3.bf16.msra.mxu0 %v6458_v42  ;;  %19424 = vmatprep.mubr.msk.bf16.mxu0 %vm280_vm2, %v23782_v38  ;;  %v6363_v42 = vld [vmem:[#allocation3 + $0x49] sm:$0xff]  ;;  %v23886_v19 = vpack.c.bf16 %v6378_v57, %v6377_v3  ;;  %v6390_v54 = vld [vmem:[#allocation3 + $0x1f1] sm:$0xff]  ;;  %v17336_v3 = vld [vmem:[%s25721_s3 + $0x3c] sm:$0xf] }
 0x621   : > { %22165 = vmatprep.subr.msk.bf16.mxu0 %vm3294_vm3, %v23787_v1  ;;  %v23852_v40 = vpack.c.bf16 %v6364_v20, %v6363_v42  ;;  %v23862_v1 = vpack.c.bf16 %v6366_v60, %v6365_v16  ;;  %v6379_v55 = vld [vmem:[#allocation3 + $0x149] sm:$0xff]  ;;  %v6386_v16 = vld [vmem:[#allocation3 + $0x1b1] sm:$0xff] }
 0x622   : > { %v23888_v28 = vpack.c.bf16 %v6380_v25, %v6379_v55  ;;  %v6381_v46 = vld [vmem:[#allocation3 + $0x169] sm:$0xff]  ;;  %v17319_v41 = vld [vmem:[%s25721_s3 + $0x38] sm:$0xf]  ;;  %v17370_v25 = vld [vmem:[%s25721_s3 + $0x44] sm:$0xf] }
 0x623   : > { %v6383_v0 = vld [vmem:[#allocation3 + $0x189] sm:$0xff]  ;;  %v7340_v30 = vsel %vm3294_vm3, %v17319_v41, 0 }
 0x624   : > { %v23896_v20 = vpack.c.bf16 %v6384_v58, %v6383_v0  ;;  %v6387_v60 = vld [vmem:[#allocation3 + $0x1c9] sm:$0xff] }
 0x625   : > { %v23904_v61 = vpack.c.bf16 %v6388_v2, %v6387_v60  ;;  %v6389_v49 = vld [vmem:[#allocation3 + $0x1e9] sm:$0xff] }
 0x626   : > { %v23910_v17 = vpack.c.bf16 %v6390_v54, %v6389_v49  ;;  %v7839_v0 = vld [vmem:[#allocation3 + $0xd0] sm:$0xff]  ;;  %v7836_v58 = vld [vmem:[#allocation3 + $0xa8] sm:$0xff] }
 0x627   : > { %19425 = vmatmul.mubr.msk.bf16.gmra.mrb[36].mxu0 %vm280_vm2, %v23795_v52 }
 0x628   : > { %19428 = vmatprep.mubr.msk.bf16.mxu0 %vm280_vm2, %v23797_v9 }
 0x62f   : > { %19429 = vmatmul.mubr.msk.bf16.gmra.mrb[40].mxu0 %vm280_vm2, %v23803_v4 }
 0x630   : > { %19432 = vmatprep.mubr.msk.bf16.mxu0 %vm280_vm2, %v23805_v15 }
 0x637   : > { %19433 = vmatmul.mubr.msk.bf16.gmra.mrb[44].mxu0 %vm280_vm2, %v23811_v29 }
 0x638   : > { %19436 = vmatprep.mubr.msk.bf16.mxu0 %vm280_vm2, %v23813_v59 }
 0x63f   : > { %19437 = vmatmul.mubr.msk.bf16.gmra.mrb[48].mxu0 %vm280_vm2, %v23819_v13 }
 0x640   : > { %19440 = vmatprep.mubr.msk.bf16.mxu0 %vm280_vm2, %v23821_v8 }
 0x647   : > { %19441 = vmatmul.mubr.msk.bf16.gmra.mrb[52].mxu0 %vm280_vm2, %v23827_v37 }
 0x648   : > { %19444 = vmatprep.mubr.msk.bf16.mxu0 %vm280_vm2, %v23829_v21 }
 0x64f   : > { %19445 = vmatmul.mubr.msk.bf16.gmra.mrb[56].mxu0 %vm280_vm2, %v23835_v47 }
 0x650   : > { %19448 = vmatprep.mubr.msk.bf16.mxu0 %vm280_vm2, %v23837_v22 }
 0x657   : > { %19449 = vmatmul.mubr.msk.bf16.gmra.mrb[60].mxu0 %vm280_vm2, %v23843_v44 }
 0x658   : > { %19454 = vmatprep.mubr.msk.bf16.mxu0 %vm280_vm2, %v6391_v50  ;;  %v6382_v50 = vld [vmem:[#allocation3 + $0x171] sm:$0xff] }
 0x659   : > { %v23894_v42 = vpack.c.bf16 %v6382_v50, %v6381_v46  ;;  %v7837_v50 = vld [vmem:[#allocation3 + $0xb0] sm:$0xff] }
 0x65f   : > { %19455 = vmatmul.mubr.msk.bf16.vlgmr.msra.gmra.mrb[32].mxu0 %vm280_vm2, %v23848_v14 }
 0x660   : > { %19487 = vmatpush3.bf16.msra.mxu0 %v6752_v36  ;;  %19458 = vmatprep.mubr.msk.bf16.mxu0 %vm280_vm2, %v23852_v40  ;;  %v6385_v36 = vld [vmem:[#allocation3 + $0x1a9] sm:$0xff] }
 0x661   : > { %22166 = vmatprep.subr.msk.bf16.mxu0 %vm3294_vm3, %v17302_v62  ;;  %v23902_v11 = vpack.c.bf16 %v6386_v16, %v6385_v36  ;;  %v6683_v62 = vld [vmem:[#allocation3 + $0x207] sm:$0xff]  ;;  %v7865_v36 = vpack.c.bf16 %v7837_v50, %v7836_v58 }
 0x662   : > { %v7838_v16 = vld [vmem:[#allocation3 + $0xc8] sm:$0xff] }
 0x663   : > { %v7866_v60 = vpack.c.bf16 %v7839_v0, %v7838_v16  ;;  %v8464_v50 = vld [vmem:[#allocation2 + $0xa8] sm:$0xff]  ;;  %v8467_v16 = vld [vmem:[#allocation2 + $0xd0] sm:$0xff] }
 0x667   : > { %19459 = vmatmul.mubr.msk.bf16.gmra.mrb[36].mxu0 %vm280_vm2, %v23862_v1 }
 0x668   : > { %19462 = vmatprep.mubr.msk.bf16.mxu0 %vm280_vm2, %v23864_v56 }
 0x66f   : > { %19463 = vmatmul.mubr.msk.bf16.gmra.mrb[40].mxu0 %vm280_vm2, %v23870_v53 }
 0x670   : > { %19466 = vmatprep.mubr.msk.bf16.mxu0 %vm280_vm2, %v23872_v48 }
 0x677   : > { %19467 = vmatmul.mubr.msk.bf16.gmra.mrb[44].mxu0 %vm280_vm2, %v23878_v43 }
 0x678   : > { %19470 = vmatprep.mubr.msk.bf16.mxu0 %vm280_vm2, %v23880_v39 }
 0x67f   : > { %19471 = vmatmul.mubr.msk.bf16.gmra.mrb[48].mxu0 %vm280_vm2, %v23886_v19 }
 0x680   : > { %19474 = vmatprep.mubr.msk.bf16.mxu0 %vm280_vm2, %v23888_v28 }
 0x687   : > { %19475 = vmatmul.mubr.msk.bf16.gmra.mrb[52].mxu0 %vm280_vm2, %v23894_v42 }
 0x688   : > { %19478 = vmatprep.mubr.msk.bf16.mxu0 %vm280_vm2, %v23896_v20 }
 0x68f   : > { %19479 = vmatmul.mubr.msk.bf16.gmra.mrb[56].mxu0 %vm280_vm2, %v23902_v11 }
 0x690   : > { %19482 = vmatprep.mubr.msk.bf16.mxu0 %vm280_vm2, %v23904_v61 }
 0x697   : > { %19483 = vmatmul.mubr.msk.bf16.gmra.mrb[60].mxu0 %vm280_vm2, %v23910_v17 }
 0x698   : > { %19488 = vmatprep.mubr.msk.bf16.mxu0 %vm280_vm2, %v23778_v12  ;;  %v6684_v12 = vld [vmem:[#allocation3 + $0x20f] sm:$0xff] }
 0x699   : > { %v23949_v18 = vpack.c.bf16 %v6684_v12, %v6683_v62 }
 0x69f   : > { %19489 = vmatmul.mubr.msk.bf16.vlgmr.msra.gmra.mrb[32].mxu0 %vm280_vm2, %v23782_v38 }
 0x6a0   : > { %19521 = vmatpush3.bf16.msra.mxu0 %v7046_v63  ;;  %19492 = vmatprep.mubr.msk.bf16.mxu0 %vm280_vm2, %v23795_v52 }
 0x6a1   : > { %22167 = vmatprep.subr.msk.bf16.mxu0 %vm3294_vm3, %v17319_v41 }
 0x6a7   : > { %19493 = vmatmul.mubr.msk.bf16.gmra.mrb[36].mxu0 %vm280_vm2, %v23797_v9 }
 0x6a8   : > { %19496 = vmatprep.mubr.msk.bf16.mxu0 %vm280_vm2, %v23803_v4 }
 0x6af   : > { %19497 = vmatmul.mubr.msk.bf16.gmra.mrb[40].mxu0 %vm280_vm2, %v23805_v15 }
 0x6b0   : > { %19500 = vmatprep.mubr.msk.bf16.mxu0 %vm280_vm2, %v23811_v29 }
 0x6b7   : > { %19501 = vmatmul.mubr.msk.bf16.gmra.mrb[44].mxu0 %vm280_vm2, %v23813_v59 }
 0x6b8   : > { %19504 = vmatprep.mubr.msk.bf16.mxu0 %vm280_vm2, %v23819_v13 }
 0x6bf   : > { %19505 = vmatmul.mubr.msk.bf16.gmra.mrb[48].mxu0 %vm280_vm2, %v23821_v8 }
 0x6c0   : > { %19508 = vmatprep.mubr.msk.bf16.mxu0 %vm280_vm2, %v23827_v37 }
 0x6c7   : > { %19509 = vmatmul.mubr.msk.bf16.gmra.mrb[52].mxu0 %vm280_vm2, %v23829_v21 }
 0x6c8   : > { %19512 = vmatprep.mubr.msk.bf16.mxu0 %vm280_vm2, %v23835_v47 }
 0x6cf   : > { %19513 = vmatmul.mubr.msk.bf16.gmra.mrb[56].mxu0 %vm280_vm2, %v23837_v22 }
 0x6d0   : > { %19516 = vmatprep.mubr.msk.bf16.mxu0 %vm280_vm2, %v23843_v44 }
 0x6d7   : > { %19517 = vmatmul.mubr.msk.bf16.gmra.mrb[60].mxu0 %vm280_vm2, %v23949_v18 }
 0x6d8   : > { %19522 = vmatprep.mubr.msk.bf16.mxu0 %vm280_vm2, %v23661_v51  ;;  %v6978_v51 = vld [vmem:[#allocation3 + $0x210] sm:$0xff] }
 0x6df   : > { %19523 = vmatmul.mubr.msk.bf16.vlgmr.msra.gmra.mrb[32].mxu0 %vm280_vm2, %v23665_v24  ;;  %v6977_v24 = vld [vmem:[#allocation3 + $0x208] sm:$0xff] }
 0x6e0   : > { %19555 = vmatpush3.bf16.msra.mxu0 %v7340_v30  ;;  %19526 = vmatprep.mubr.msk.bf16.mxu0 %vm280_vm2, %v23685_v34  ;;  %v23988_v34 = vpack.c.bf16 %v6978_v51, %v6977_v24  ;;  %v8460_v24 = vld [vmem:[#allocation2 + $0x68] sm:$0xff] }
 0x6e1   : > { %22168 = vmatprep.subr.msk.bf16.mxu0 %vm3294_vm3, %v17336_v3 }
 0x6e7   : > { %19527 = vmatmul.mubr.msk.bf16.gmra.mrb[36].mxu0 %vm280_vm2, %v23688_v31  ;;  %v7635_v31 = vsel %vm3294_vm3, %v17336_v3, 0 }
 0x6e8   : > { %19530 = vmatprep.mubr.msk.bf16.mxu0 %vm280_vm2, %v23701_v23  ;;  %v17353_v23 = vld [vmem:[%s25721_s3 + $0x40] sm:$0xf] }
 0x6e9   : > { %v7929_v55 = vsel %vm3294_vm3, %v17353_v23, 0 }
 0x6ef   : > { %19531 = vmatmul.mubr.msk.bf16.gmra.mrb[40].mxu0 %vm280_vm2, %v23704_v10  ;;  %v7271_v10 = vld [vmem:[#allocation3 + $0x209] sm:$0xff] }
 0x6f0   : > { %19534 = vmatprep.mubr.msk.bf16.mxu0 %vm280_vm2, %v23717_v5 }
 0x6f7   : > { %19535 = vmatmul.mubr.msk.bf16.gmra.mrb[44].mxu0 %vm280_vm2, %v23720_v6 }
 0x6f8   : > { %19538 = vmatprep.mubr.msk.bf16.mxu0 %vm280_vm2, %v23733_v27 }
 0x6ff   : > { %19539 = vmatmul.mubr.msk.bf16.gmra.mrb[48].mxu0 %vm280_vm2, %v23736_v32 }
 0x700   : > { %19542 = vmatprep.mubr.msk.bf16.mxu0 %vm280_vm2, %v23749_v45 }
 0x707   : > { %19543 = vmatmul.mubr.msk.bf16.gmra.mrb[52].mxu0 %vm280_vm2, %v23752_v7 }
 0x708   : > { %19546 = vmatprep.mubr.msk.bf16.mxu0 %vm280_vm2, %v23765_v26 }
 0x70f   : > { %19547 = vmatmul.mubr.msk.bf16.gmra.mrb[56].mxu0 %vm280_vm2, %v23767_v33 }
 0x710   : > { %19550 = vmatprep.mubr.msk.bf16.mxu0 %vm280_vm2, %v23773_v35 }
 0x717   : > { %19551 = vmatmul.mubr.msk.bf16.gmra.mrb[60].mxu0 %vm280_vm2, %v23988_v34 }
 0x718   : > { %19556 = vmatprep.mubr.msk.bf16.mxu0 %vm280_vm2, %v23848_v14  ;;  %v7272_v14 = vld [vmem:[#allocation3 + $0x211] sm:$0xff] }
 0x719   : > { %v24027_v57 = vpack.c.bf16 %v7272_v14, %v7271_v10  ;;  %v8463_v10 = vld [vmem:[#allocation2 + $0x90] sm:$0xff] }
 0x71f   : > { %19557 = vmatmul.mubr.msk.bf16.vlgmr.msra.gmra.mrb[32].mxu0 %vm280_vm2, %v23852_v40 }
 0x720   : > { %19589 = vmatpush3.bf16.msra.mxu0 %v7635_v31  ;;  %19560 = vmatprep.mubr.msk.bf16.mxu0 %vm280_vm2, %v23862_v1 }
 0x721   : > { %22169 = vmatprep.subr.msk.bf16.mxu0 %vm3294_vm3, %v17353_v23 }
 0x727   : > { %19561 = vmatmul.mubr.msk.bf16.gmra.mrb[36].mxu0 %vm280_vm2, %v23864_v56 }
 0x728   : > { %19564 = vmatprep.mubr.msk.bf16.mxu0 %vm280_vm2, %v23870_v53 }
 0x72f   : > { %19565 = vmatmul.mubr.msk.bf16.gmra.mrb[40].mxu0 %vm280_vm2, %v23872_v48 }
 0x730   : > { %19568 = vmatprep.mubr.msk.bf16.mxu0 %vm280_vm2, %v23878_v43 }
 0x737   : > { %19569 = vmatmul.mubr.msk.bf16.gmra.mrb[44].mxu0 %vm280_vm2, %v23880_v39 }
 0x738   : > { %19572 = vmatprep.mubr.msk.bf16.mxu0 %vm280_vm2, %v23886_v19 }
 0x73f   : > { %19573 = vmatmul.mubr.msk.bf16.gmra.mrb[48].mxu0 %vm280_vm2, %v23888_v28 }
 0x740   : > { %19576 = vmatprep.mubr.msk.bf16.mxu0 %vm280_vm2, %v23894_v42 }
 0x747   : > { %19577 = vmatmul.mubr.msk.bf16.gmra.mrb[52].mxu0 %vm280_vm2, %v23896_v20 }
 0x748   : > { %19580 = vmatprep.mubr.msk.bf16.mxu0 %vm280_vm2, %v23902_v11 }
 0x74f   : > { %19581 = vmatmul.mubr.msk.bf16.gmra.mrb[56].mxu0 %vm280_vm2, %v23904_v61 }
 0x750   : > { %19584 = vmatprep.mubr.msk.bf16.mxu0 %vm280_vm2, %v23910_v17 }
 0x757   : > { %19585 = vmatmul.mubr.msk.bf16.gmra.mrb[60].mxu0 %vm280_vm2, %v24027_v57 }
 0x758   : > { %19590 = vmatprep.mubr.msk.bf16.mxu0 %vm280_vm2, %v23782_v38  ;;  %v7566_v38 = vld [vmem:[#allocation3 + $0x227] sm:$0xff] }
 0x75f   : > { %19591 = vmatmul.mubr.msk.bf16.vlgmr.msra.gmra.mrb[32].mxu0 %vm280_vm2, %v23795_v52  ;;  %v7567_v52 = vld [vmem:[#allocation3 + $0x22f] sm:$0xff] }
 0x760   : > { %19623 = vmatpush3.bf16.msra.mxu0 %v7929_v55  ;;  %19594 = vmatprep.mubr.msk.bf16.mxu0 %vm280_vm2, %v23797_v9  ;;  %v7583_v9 = vpack.c.bf16 %v7567_v52, %v7566_v38  ;;  %v8461_v55 = vld [vmem:[#allocation2 + $0x70] sm:$0xff] }
 0x761   : > { %22170 = vmatprep.subr.msk.bf16.mxu0 %vm3294_vm3, %v17370_v25 }
 0x767   : > { %19595 = vmatmul.mubr.msk.bf16.gmra.mrb[36].mxu0 %vm280_vm2, %v23803_v4  ;;  %v7831_v4 = vld [vmem:[#allocation3 + $0x50] sm:$0xff] }
 0x768   : > { %19598 = vmatprep.mubr.msk.bf16.mxu0 %vm280_vm2, %v23805_v15  ;;  %v7830_v15 = vld [vmem:[#allocation3 + $0x48] sm:$0xff] }
 0x76f   : > { %19599 = vmatmul.mubr.msk.bf16.gmra.mrb[40].mxu0 %vm280_vm2, %v23811_v29  ;;  %v7862_v29 = vpack.c.bf16 %v7831_v4, %v7830_v15 }
 0x770   : > { %19602 = vmatprep.mubr.msk.bf16.mxu0 %vm280_vm2, %v23813_v59  ;;  %v17390_v59 = vld [vmem:[%s25721_s3 + $0x4c] sm:$0xf] }
 0x771   : > { %22171 = vmatprep.subr.msk.bf16.mxu1 %vm3294_vm3, %v17390_v59 }
 0x777   : > { %19603 = vmatmul.mubr.msk.bf16.gmra.mrb[44].mxu0 %vm280_vm2, %v23819_v13  ;;  %v8703_v13 = vsel %vm3294_vm3, %v17390_v59, 0 }
 0x778   : > { %19606 = vmatprep.mubr.msk.bf16.mxu0 %vm280_vm2, %v23821_v8  ;;  %19691 = vmatpush3.bf16.msra.mxu1 %v8703_v13  ;;  %v7833_v8 = vld [vmem:[#allocation3 + $0x70] sm:$0xff] }
 0x77f   : > { %19607 = vmatmul.mubr.msk.bf16.gmra.mrb[48].mxu0 %vm280_vm2, %v23827_v37  ;;  %v7835_v37 = vld [vmem:[#allocation3 + $0x90] sm:$0xff] }
 0x780   : > { %19610 = vmatprep.mubr.msk.bf16.mxu0 %vm280_vm2, %v23829_v21  ;;  %v7832_v21 = vld [vmem:[#allocation3 + $0x68] sm:$0xff] }
 0x787   : > { %19611 = vmatmul.mubr.msk.bf16.gmra.mrb[52].mxu0 %vm280_vm2, %v23835_v47  ;;  %v7863_v47 = vpack.c.bf16 %v7833_v8, %v7832_v21  ;;  %v24165_v21 = vld [vmem:[%s25721_s3 + $0x50] sm:$0xf] }
 0x788   : > { %19614 = vmatprep.mubr.msk.bf16.mxu0 %vm280_vm2, %v23837_v22  ;;  %v8223_v22 = vsel %vm3294_vm3, %v17370_v25, 0 }
 0x78f   : > { %19615 = vmatmul.mubr.msk.bf16.gmra.mrb[56].mxu0 %vm280_vm2, %v23843_v44  ;;  %v7834_v44 = vld [vmem:[#allocation3 + $0x88] sm:$0xff] }
 0x790   : > { %19618 = vmatprep.mubr.msk.bf16.mxu0 %vm280_vm2, %v23949_v18  ;;  %v7864_v46 = vpack.c.bf16 %v7835_v37, %v7834_v44  ;;  %v8462_v18 = vld [vmem:[#allocation2 + $0x88] sm:$0xff] }
 0x797   : > { %19619 = vmatmul.mubr.msk.bf16.gmra.mrb[60].mxu0 %vm280_vm2, %v7583_v9 }
 0x798   : > { %19624 = vmatprep.mubr.msk.bf16.mxu0 %vm280_vm2, %v7862_v29 }
 0x79f   : > { %19625 = vmatmul.mubr.msk.bf16.vlgmr.msra.gmra.mrb[32].mxu0 %vm280_vm2, %v7863_v47  ;;  %v8466_v47 = vld [vmem:[#allocation2 + $0xc8] sm:$0xff] }
 0x7a0   : > { %19657 = vmatpush3.bf16.msra.mxu0 %v8223_v22  ;;  %19628 = vmatprep.mubr.msk.bf16.mxu0 %vm280_vm2, %v7864_v46 }
 0x7a7   : > { %19629 = vmatmul.mubr.msk.bf16.gmra.mrb[36].mxu0 %vm280_vm2, %v7865_v36 }
 0x7a8   : > { %19632 = vmatprep.mubr.msk.bf16.mxu0 %vm280_vm2, %v7866_v60 }
 0x7af   : > { %19633 = vmatmul.mubr.msk.bf16.gmra.mrb[40].mxu0 %vm280_vm2, %v23717_v5  ;;  %v7860_v5 = vld [vmem:[#allocation3 + $0x228] sm:$0xff] }
 0x7b0   : > { %19636 = vmatprep.mubr.msk.bf16.mxu0 %vm280_vm2, %v23720_v6  ;;  %v7861_v6 = vld [vmem:[#allocation3 + $0x230] sm:$0xff] }
 0x7b7   : > { %19637 = vmatmul.mubr.msk.bf16.gmra.mrb[44].mxu0 %vm280_vm2, %v23733_v27  ;;  %v7877_v27 = vpack.c.bf16 %v7861_v6, %v7860_v5  ;;  %v8465_v6 = vld [vmem:[#allocation2 + $0xb0] sm:$0xff] }
 0x7b8   : > { %19640 = vmatprep.mubr.msk.bf16.mxu0 %vm280_vm2, %v23736_v32  ;;  %v8154_v32 = vld [vmem:[#allocation3 + $0x229] sm:$0xff] }
 0x7bf   : > { %19641 = vmatmul.mubr.msk.bf16.gmra.mrb[48].mxu0 %vm280_vm2, %v23749_v45  ;;  %v8155_v45 = vld [vmem:[#allocation3 + $0x231] sm:$0xff] }
 0x7c0   : > { %19644 = vmatprep.mubr.msk.bf16.mxu0 %vm280_vm2, %v23752_v7  ;;  %v8171_v7 = vpack.c.bf16 %v8155_v45, %v8154_v32 }
 0x7c7   : > { %19645 = vmatmul.mubr.msk.bf16.gmra.mrb[52].mxu0 %vm280_vm2, %v23765_v26  ;;  %v8604_v26 = vld [vmem:[#allocation2 + $0x8] sm:$0xff] }
 0x7c8   : > { %19648 = vmatprep.mubr.msk.bf16.mxu0 %vm280_vm2, %v23767_v33  ;;  %v8605_v33 = vld [vmem:[#allocation2 + $0x10] sm:$0xff] }
 0x7cf   : > { %19649 = vmatmul.mubr.msk.bf16.gmra.mrb[56].mxu0 %vm280_vm2, %v23773_v35  ;;  %v8636_v35 = vpack.c.bf16 %v8605_v33, %v8604_v26 }
 0x7d0   : > { %19652 = vmatprep.mubr.msk.bf16.mxu0 %vm280_vm2, %v23988_v34 }
 0x7d1   : > { %19692 = vmatprep.mubr.msk.bf16.mxu1 %vm280_vm2, %v8636_v35 }
 0x7d7   : > { %19653 = vmatmul.mubr.msk.bf16.gmra.mrb[60].mxu0 %vm280_vm2, %v7877_v27 }
 0x7d8   : > { %19658 = vmatprep.mubr.msk.bf16.mxu0 %vm280_vm2, %v23852_v40  ;;  %v17389_v40 = vld [vmem:[%s25721_s3 + $0x48] sm:$0xf] }
 0x7d9   : > { %22172 = vmatprep.subr.msk.bf16.mxu1 %vm3294_vm3, %v17389_v40  ;;  %v8915_v29 = vsel %vm3294_vm3, %v17389_v40, 0 }
 0x7df   : > { %19659 = vmatmul.mubr.msk.bf16.vlgmr.msra.gmra.mrb[32].mxu0 %vm280_vm2, %v23862_v1  ;;  %v24138_v1 = vld [vmem:[%s25722_s4 + $0x1] ss:$0 sm:$0xff] }
 0x7e0   : > { %19662 = vmatprep.mubr.msk.bf16.mxu0 %vm280_vm2, %v23864_v56 }
 0x7e7   : > { %19663 = vmatmul.mubr.msk.bf16.gmra.mrb[36].mxu0 %vm280_vm2, %v23870_v53 }
 0x7e8   : > { %19666 = vmatprep.mubr.msk.bf16.mxu0 %vm280_vm2, %v23872_v48 }
 0x7ef   : > { %19667 = vmatmul.mubr.msk.bf16.gmra.mrb[40].mxu0 %vm280_vm2, %v23878_v43  ;;  %v8458_v43 = vld [vmem:[#allocation2 + $0x48] sm:$0xff] }
 0x7f0   : > { %19670 = vmatprep.mubr.msk.bf16.mxu0 %vm280_vm2, %v23880_v39 }
 0x7f7   : > { %19671 = vmatmul.mubr.msk.bf16.gmra.mrb[44].mxu0 %vm280_vm2, %v23886_v19 }
 0x7f8   : > { %19674 = vmatprep.mubr.msk.bf16.mxu0 %vm280_vm2, %v23888_v28 }
 0x7ff   : > { %19675 = vmatmul.mubr.msk.bf16.gmra.mrb[48].mxu0 %vm280_vm2, %v23894_v42  ;;  %v8456_v42 = vld [vmem:[#allocation2 + $0x28] sm:$0xff] }
 0x800   : > { %19678 = vmatprep.mubr.msk.bf16.mxu0 %vm280_vm2, %v23896_v20 }
 0x807   : > { %19679 = vmatmul.mubr.msk.bf16.gmra.mrb[52].mxu0 %vm280_vm2, %v23902_v11 }
 0x808   : > { %19682 = vmatprep.mubr.msk.bf16.mxu0 %vm280_vm2, %v23904_v61  ;;  %v8459_v61 = vld [vmem:[#allocation2 + $0x50] sm:$0xff] }
 0x80f   : > { %19683 = vmatmul.mubr.msk.bf16.gmra.mrb[56].mxu0 %vm280_vm2, %v23910_v17  ;;  %v8457_v17 = vld [vmem:[#allocation2 + $0x30] sm:$0xff] }
 0x810   : > { %19686 = vmatprep.mubr.msk.bf16.mxu0 %vm280_vm2, %v24027_v57 }
 0x817   : > { %19687 = vmatmul.mubr.msk.bf16.gmra.mrb[60].mxu0 %vm280_vm2, %v8171_v7 }
 0x8b2   : > { %v19660_v56 = vpop.f32.mrb[32].mxu0 }
 0x8b3   : > { %v8426_v53 = vadd.f32 %v19660_v56, %v24138_v1  ;;  %v8259_v48 = vpop.f32.mrb[33].mxu0 }
 0x8b4   : > { %v8424_v39 = vadd.f32 %v24138_v1, %v8259_v48  ;;  %v19661_v19 = vpop.f32.mrb[34].mxu0  ;;  %v8470_v48 = vld [vmem:[#allocation2 + $0x108] sm:$0xff] }
 0x8b5   : > { %v8490_v28 = vadd.f32 %v8458_v43, %v8426_v53  ;;  %v8427_v20 = vadd.f32 %v19661_v19, %v24138_v1  ;;  %v8262_v2 = vpop.f32.mrb[35].mxu0 }
 0x8b6   : > { %v8488_v11 = vadd.f32 %v8456_v42, %v8424_v39  ;;  %v8425_v49 = vadd.f32 %v24138_v1, %v8262_v2 }
 0x8b7   : > { %8522 = vst.msk [vmem:[#allocation2 + $0x48] sm:$0xff] %vm280_vm2, %v8490_v28  ;;  %v8491_v54 = vadd.f32 %v8459_v61, %v8427_v20  ;;  %v8468_v28 = vld [vmem:[#allocation2 + $0xe8] sm:$0xff] }
 0x8b8   : > { %8520 = vst.msk [vmem:[#allocation2 + $0x28] sm:$0xff] %vm280_vm2, %v8488_v11  ;;  %v8489_v63 = vadd.f32 %v8457_v17, %v8425_v49  ;;  %v8471_v11 = vld [vmem:[#allocation2 + $0x110] sm:$0xff] }
 0x8b9   : > { %8523 = vst.msk [vmem:[#allocation2 + $0x50] sm:$0xff] %vm280_vm2, %v8491_v54  ;;  %v8469_v54 = vld [vmem:[#allocation2 + $0xf0] sm:$0xff] }
 0x8ba   : > { %8521 = vst.msk [vmem:[#allocation2 + $0x30] sm:$0xff] %vm280_vm2, %v8489_v63  ;;  %v19664_v41 = vpop.f32.mrb[36].mxu0 }
 0x8bb   : > { %v8430_v12 = vadd.f32 %v19664_v41, %v24138_v1  ;;  %v8275_v62 = vpop.f32.mrb[37].mxu0 }
 0x8bc   : > { %v8428_v30 = vadd.f32 %v24138_v1, %v8275_v62  ;;  %v19665_v3 = vpop.f32.mrb[38].mxu0 }
 0x8bd   : > { %v8494_v51 = vadd.f32 %v8462_v18, %v8430_v12  ;;  %v8431_v34 = vadd.f32 %v19665_v3, %v24138_v1  ;;  %v8278_v31 = vpop.f32.mrb[39].mxu0 }
 0x8be   : > { %v8492_v23 = vadd.f32 %v8460_v24, %v8428_v30  ;;  %v8429_v14 = vadd.f32 %v24138_v1, %v8278_v31  ;;  %v8608_v59 = vld [vmem:[#allocation2 + $0x48] sm:$0xff] }
 0x8bf   : > { %8526 = vst.msk [vmem:[#allocation2 + $0x88] sm:$0xff] %vm280_vm2, %v8494_v51  ;;  %v8495_v57 = vadd.f32 %v8463_v10, %v8431_v34  ;;  %v8606_v52 = vld [vmem:[#allocation2 + $0x28] sm:$0xff] }
 0x8c0   : > { %8524 = vst.msk [vmem:[#allocation2 + $0x68] sm:$0xff] %vm280_vm2, %v8492_v23  ;;  %v8493_v25 = vadd.f32 %v8461_v55, %v8429_v14  ;;  %v8609_v38 = vld [vmem:[#allocation2 + $0x50] sm:$0xff]  ;;  %v8474_v34 = vld [vmem:[#allocation2 + $0x148] sm:$0xff] }
 0x8c1   : > { %8527 = vst.msk [vmem:[#allocation2 + $0x90] sm:$0xff] %vm280_vm2, %v8495_v57  ;;  %v8607_v9 = vld [vmem:[#allocation2 + $0x30] sm:$0xff]  ;;  %v24160_v37 = vpack.c.bf16 %v8609_v38, %v8608_v59  ;;  %v8472_v14 = vld [vmem:[#allocation2 + $0x128] sm:$0xff] }
 0x8c2   : > { %8525 = vst.msk [vmem:[#allocation2 + $0x70] sm:$0xff] %vm280_vm2, %v8493_v25  ;;  %v19668_v4 = vpop.f32.mrb[40].mxu0  ;;  %v24156_v15 = vpack.c.bf16 %v8607_v9, %v8606_v52  ;;  %v8475_v38 = vld [vmem:[#allocation2 + $0x150] sm:$0xff] }
 0x8c3   : > { %v8434_v13 = vadd.f32 %v19668_v4, %v24138_v1  ;;  %v8291_v8 = vpop.f32.mrb[41].mxu0  ;;  %v8473_v4 = vld [vmem:[#allocation2 + $0x130] sm:$0xff] }
 0x8c4   : > { %v8432_v22 = vadd.f32 %v24138_v1, %v8291_v8  ;;  %v19669_v44 = vpop.f32.mrb[42].mxu0  ;;  %19693 = vmatmul.mubr.msk.bf16.vlgmr.msra.gmra.mrb[32].mxu1 %vm280_vm2, %v24156_v15 }
 0x8c5   : > { %v8498_v46 = vadd.f32 %v8466_v47, %v8434_v13  ;;  %v8435_v0 = vadd.f32 %v19669_v44, %v24138_v1  ;;  %19725 = vmatpush3.bf16.msra.mxu1 %v8915_v29  ;;  %v8294_v58 = vpop.f32.mrb[43].mxu0  ;;  %19696 = vmatprep.mubr.msk.bf16.mxu1 %vm280_vm2, %v24160_v37 }
 0x8c6   : > { %v8496_v36 = vadd.f32 %v8464_v50, %v8432_v22  ;;  %v8433_v60 = vadd.f32 %v24138_v1, %v8294_v58  ;;  %22173 = vmatprep.subr.msk.bf16.mxu1 %vm3294_vm3, %v24165_v21  ;;  %v8612_v35 = vld [vmem:[#allocation2 + $0x88] sm:$0xff] }
 0x8c7   : > { %8530 = vst.msk [vmem:[#allocation2 + $0xc8] sm:$0xff] %vm280_vm2, %v8498_v46  ;;  %v8499_v5 = vadd.f32 %v8467_v16, %v8435_v0  ;;  %v8610_v45 = vld [vmem:[#allocation2 + $0x68] sm:$0xff] }
 0x8c8   : > { %8528 = vst.msk [vmem:[#allocation2 + $0xa8] sm:$0xff] %vm280_vm2, %v8496_v36  ;;  %v8497_v27 = vadd.f32 %v8465_v6, %v8433_v60  ;;  %v8613_v32 = vld [vmem:[#allocation2 + $0x90] sm:$0xff]  ;;  %v8478_v58 = vld [vmem:[#allocation2 + $0x188] sm:$0xff] }
 0x8c9   : > { %8531 = vst.msk [vmem:[#allocation2 + $0xd0] sm:$0xff] %vm280_vm2, %v8499_v5  ;;  %v8611_v7 = vld [vmem:[#allocation2 + $0x70] sm:$0xff]  ;;  %v24183_v53 = vpack.c.bf16 %v8613_v32, %v8612_v35  ;;  %v8476_v5 = vld [vmem:[#allocation2 + $0x168] sm:$0xff] }
 0x8ca   : > { %8529 = vst.msk [vmem:[#allocation2 + $0xb0] sm:$0xff] %vm280_vm2, %v8497_v27  ;;  %v19672_v26 = vpop.f32.mrb[44].mxu0  ;;  %v24180_v33 = vpack.c.bf16 %v8611_v7, %v8610_v45  ;;  %v8479_v45 = vld [vmem:[#allocation2 + $0x190] sm:$0xff] }
 0x8cb   : > { %v8438_v40 = vadd.f32 %v19672_v26, %v24138_v1  ;;  %v8307_v56 = vpop.f32.mrb[45].mxu0  ;;  %v8477_v35 = vld [vmem:[#allocation2 + $0x170] sm:$0xff] }
 0x8cc   : > { %v8436_v43 = vadd.f32 %v24138_v1, %v8307_v56  ;;  %v19673_v39 = vpop.f32.mrb[46].mxu0  ;;  %19697 = vmatmul.mubr.msk.bf16.gmra.mrb[36].mxu1 %vm280_vm2, %v24180_v33 }
 0x8cd   : > { %v8502_v19 = vadd.f32 %v8470_v48, %v8438_v40  ;;  %v8439_v42 = vadd.f32 %v19673_v39, %v24138_v1  ;;  %v8310_v20 = vpop.f32.mrb[47].mxu0  ;;  %19700 = vmatprep.mubr.msk.bf16.mxu1 %vm280_vm2, %v24183_v53 }
 0x8ce   : > { %v8500_v2 = vadd.f32 %v8468_v28, %v8436_v43  ;;  %v8437_v61 = vadd.f32 %v24138_v1, %v8310_v20  ;;  %v8616_v30 = vld [vmem:[#allocation2 + $0xc8] sm:$0xff] }
 0x8cf   : > { %8534 = vst.msk [vmem:[#allocation2 + $0x108] sm:$0xff] %vm280_vm2, %v8502_v19  ;;  %v8503_v49 = vadd.f32 %v8471_v11, %v8439_v42  ;;  %v8614_v41 = vld [vmem:[#allocation2 + $0xa8] sm:$0xff] }
 0x8d0   : > { %8532 = vst.msk [vmem:[#allocation2 + $0xe8] sm:$0xff] %vm280_vm2, %v8500_v2  ;;  %v8501_v17 = vadd.f32 %v8469_v54, %v8437_v61  ;;  %v8617_v63 = vld [vmem:[#allocation2 + $0xd0] sm:$0xff]  ;;  %v8482_v11 = vld [vmem:[#allocation2 + $0x1c8] sm:$0xff] }
 0x8d1   : > { %8535 = vst.msk [vmem:[#allocation2 + $0x110] sm:$0xff] %vm280_vm2, %v8503_v49  ;;  %v8615_v12 = vld [vmem:[#allocation2 + $0xb0] sm:$0xff]  ;;  %v24199_v24 = vpack.c.bf16 %v8617_v63, %v8616_v30 }
 0x8d2   : > { %8533 = vst.msk [vmem:[#allocation2 + $0xf0] sm:$0xff] %vm280_vm2, %v8501_v17  ;;  %v19676_v62 = vpop.f32.mrb[48].mxu0  ;;  %v24196_v18 = vpack.c.bf16 %v8615_v12, %v8614_v41  ;;  %v8480_v17 = vld [vmem:[#allocation2 + $0x1a8] sm:$0xff] }
 0x8d3   : > { %v8442_v3 = vadd.f32 %v19676_v62, %v24138_v1  ;;  %v8323_v51 = vpop.f32.mrb[49].mxu0  ;;  %v8483_v62 = vld [vmem:[#allocation2 + $0x1d0] sm:$0xff] }
 0x8d4   : > { %v8440_v31 = vadd.f32 %v24138_v1, %v8323_v51  ;;  %v19677_v23 = vpop.f32.mrb[50].mxu0  ;;  %19701 = vmatmul.mubr.msk.bf16.gmra.mrb[40].mxu1 %vm280_vm2, %v24196_v18  ;;  %v8481_v51 = vld [vmem:[#allocation2 + $0x1b0] sm:$0xff] }
 0x8d5   : > { %v8506_v10 = vadd.f32 %v8474_v34, %v8442_v3  ;;  %v8443_v57 = vadd.f32 %v19677_v23, %v24138_v1  ;;  %v8326_v55 = vpop.f32.mrb[51].mxu0  ;;  %19704 = vmatprep.mubr.msk.bf16.mxu1 %vm280_vm2, %v24199_v24 }
 0x8d6   : > { %v8504_v25 = vadd.f32 %v8472_v14, %v8440_v31  ;;  %v8441_v52 = vadd.f32 %v24138_v1, %v8326_v55  ;;  %v8620_v44 = vld [vmem:[#allocation2 + $0x108] sm:$0xff] }
 0x8d7   : > { %8538 = vst.msk [vmem:[#allocation2 + $0x148] sm:$0xff] %vm280_vm2, %v8506_v10  ;;  %v8507_v9 = vadd.f32 %v8475_v38, %v8443_v57  ;;  %v8618_v13 = vld [vmem:[#allocation2 + $0xe8] sm:$0xff] }
 0x8d8   : > { %8536 = vst.msk [vmem:[#allocation2 + $0x128] sm:$0xff] %vm280_vm2, %v8504_v25  ;;  %v8505_v29 = vadd.f32 %v8473_v4, %v8441_v52  ;;  %v8621_v59 = vld [vmem:[#allocation2 + $0x110] sm:$0xff] }
 0x8d9   : > { %8539 = vst.msk [vmem:[#allocation2 + $0x150] sm:$0xff] %vm280_vm2, %v8507_v9  ;;  %v8619_v8 = vld [vmem:[#allocation2 + $0xf0] sm:$0xff]  ;;  %v24215_v0 = vpack.c.bf16 %v8621_v59, %v8620_v44  ;;  %v8486_v9 = vld [vmem:[#allocation2 + $0x208] sm:$0xff] }
 0x8da   : > { %8537 = vst.msk [vmem:[#allocation2 + $0x130] sm:$0xff] %vm280_vm2, %v8505_v29  ;;  %v19680_v47 = vpop.f32.mrb[52].mxu0  ;;  %v24212_v22 = vpack.c.bf16 %v8619_v8, %v8618_v13  ;;  %v8484_v13 = vld [vmem:[#allocation2 + $0x1e8] sm:$0xff] }
 0x8db   : > { %v8446_v46 = vadd.f32 %v19680_v47, %v24138_v1  ;;  %v8339_v50 = vpop.f32.mrb[53].mxu0 }
 0x8dc   : > { %v8444_v36 = vadd.f32 %v24138_v1, %v8339_v50  ;;  %v19681_v16 = vpop.f32.mrb[54].mxu0  ;;  %19705 = vmatmul.mubr.msk.bf16.gmra.mrb[44].mxu1 %vm280_vm2, %v24212_v22 }
 0x8dd   : > { %v8510_v60 = vadd.f32 %v8478_v58, %v8446_v46  ;;  %v8447_v6 = vadd.f32 %v19681_v16, %v24138_v1  ;;  %v8342_v27 = vpop.f32.mrb[55].mxu0  ;;  %19708 = vmatprep.mubr.msk.bf16.mxu1 %vm280_vm2, %v24215_v0  ;;  %v8487_v46 = vld [vmem:[#allocation2 + $0x210] sm:$0xff] }
 0x8de   : > { %v8508_v32 = vadd.f32 %v8476_v5, %v8444_v36  ;;  %v8445_v7 = vadd.f32 %v24138_v1, %v8342_v27  ;;  %v8624_v28 = vld [vmem:[#allocation2 + $0x148] sm:$0xff]  ;;  %v8485_v36 = vld [vmem:[#allocation2 + $0x1f0] sm:$0xff] }
 0x8df   : > { %8542 = vst.msk [vmem:[#allocation2 + $0x188] sm:$0xff] %vm280_vm2, %v8510_v60  ;;  %v8511_v26 = vadd.f32 %v8479_v45, %v8447_v6  ;;  %v8622_v48 = vld [vmem:[#allocation2 + $0x128] sm:$0xff] }
 0x8e0   : > { %8540 = vst.msk [vmem:[#allocation2 + $0x168] sm:$0xff] %vm280_vm2, %v8508_v32  ;;  %v8509_v40 = vadd.f32 %v8477_v35, %v8445_v7  ;;  %v8625_v56 = vld [vmem:[#allocation2 + $0x150] sm:$0xff] }
 0x8e1   : > { %8543 = vst.msk [vmem:[#allocation2 + $0x190] sm:$0xff] %vm280_vm2, %v8511_v26  ;;  %v8623_v43 = vld [vmem:[#allocation2 + $0x130] sm:$0xff]  ;;  %v24231_v2 = vpack.c.bf16 %v8625_v56, %v8624_v28 }
 0x8e2   : > { %8541 = vst.msk [vmem:[#allocation2 + $0x170] sm:$0xff] %vm280_vm2, %v8509_v40  ;;  %v19684_v39 = vpop.f32.mrb[56].mxu0  ;;  %v24228_v19 = vpack.c.bf16 %v8623_v43, %v8622_v48  ;;  %v8555_v7 = vld [vmem:[#allocation2 + $0xf] sm:$0xff] }
 0x8e3   : > { %v8450_v42 = vadd.f32 %v19684_v39, %v24138_v1  ;;  %v8355_v20 = vpop.f32.mrb[57].mxu0  ;;  %v8557_v48 = vld [vmem:[#allocation2 + $0x2f] sm:$0xff]  ;;  %v8556_v39 = vld [vmem:[#allocation2 + $0x27] sm:$0xff] }
 0x8e4   : > { %v8448_v61 = vadd.f32 %v24138_v1, %v8355_v20  ;;  %v19685_v49 = vpop.f32.mrb[58].mxu0  ;;  %19709 = vmatmul.mubr.msk.bf16.gmra.mrb[48].mxu1 %vm280_vm2, %v24228_v19  ;;  %v8559_v43 = vld [vmem:[#allocation2 + $0x4f] sm:$0xff]  ;;  %v24273_v28 = vpack.c.bf16 %v8557_v48, %v8556_v39  ;;  %v8558_v20 = vld [vmem:[#allocation2 + $0x47] sm:$0xff] }
 0x8e5   : > { %v8514_v54 = vadd.f32 %v8482_v11, %v8450_v42  ;;  %v8451_v63 = vadd.f32 %v19685_v49, %v24138_v1  ;;  %v8358_v41 = vpop.f32.mrb[59].mxu0  ;;  %19712 = vmatprep.mubr.msk.bf16.mxu1 %vm280_vm2, %v24231_v2  ;;  %v9177_v42 = vsel %vm3294_vm3, %v24165_v21, 0  ;;  %v24277_v11 = vpack.c.bf16 %v8559_v43, %v8558_v20  ;;  %v8561_v49 = vld [vmem:[#allocation2 + $0x6f] sm:$0xff] }
 0x8e6   : > { %v8512_v12 = vadd.f32 %v8480_v17, %v8448_v61  ;;  %v8449_v30 = vadd.f32 %v24138_v1, %v8358_v41  ;;  %v8628_v55 = vld [vmem:[#allocation2 + $0x188] sm:$0xff]  ;;  %v24282_v61 = vld [vmem:[%s25721_s3 + $0x54] sm:$0xf] }
 0x8e7   : > { %8546 = vst.msk [vmem:[#allocation2 + $0x1c8] sm:$0xff] %vm280_vm2, %v8514_v54  ;;  %v8515_v3 = vadd.f32 %v8483_v62, %v8451_v63  ;;  %v8626_v23 = vld [vmem:[#allocation2 + $0x168] sm:$0xff]  ;;  %v9081_v39 = vld [vmem:[#allocation2 + $0x31] sm:$0xff] }
 0x8e8   : > { %8544 = vst.msk [vmem:[#allocation2 + $0x1a8] sm:$0xff] %vm280_vm2, %v8512_v12  ;;  %v8513_v34 = vadd.f32 %v8481_v51, %v8449_v30  ;;  %v8629_v31 = vld [vmem:[#allocation2 + $0x190] sm:$0xff]  ;;  %v8560_v54 = vld [vmem:[#allocation2 + $0x67] sm:$0xff] }
 0x8e9   : > { %8547 = vst.msk [vmem:[#allocation2 + $0x1d0] sm:$0xff] %vm280_vm2, %v8515_v3  ;;  %v8627_v10 = vld [vmem:[#allocation2 + $0x170] sm:$0xff]  ;;  %v24247_v52 = vpack.c.bf16 %v8629_v31, %v8628_v55  ;;  %v24290_v17 = vpack.c.bf16 %v8561_v49, %v8560_v54  ;;  %v8562_v63 = vld [vmem:[#allocation2 + $0x87] sm:$0xff] }
 0x8ea   : > { %8545 = vst.msk [vmem:[#allocation2 + $0x1b0] sm:$0xff] %vm280_vm2, %v8513_v34  ;;  %v19688_v14 = vpop.f32.mrb[60].mxu0  ;;  %v24244_v57 = vpack.c.bf16 %v8627_v10, %v8626_v23  ;;  %v8563_v21 = vld [vmem:[#allocation2 + $0x8f] sm:$0xff]  ;;  %v8564_v30 = vld [vmem:[#allocation2 + $0xa7] sm:$0xff] }
 0x8eb   : > { %v8454_v25 = vadd.f32 %v19688_v14, %v24138_v1  ;;  %v8371_v38 = vpop.f32.mrb[61].mxu0  ;;  %v24292_v41 = vpack.c.bf16 %v8563_v21, %v8562_v63  ;;  %v8565_v12 = vld [vmem:[#allocation2 + $0xaf] sm:$0xff]  ;;  %v8566_v51 = vld [vmem:[#allocation2 + $0xc7] sm:$0xff]  ;;  %v9471_v21 = vsel %vm3294_vm3, %v24282_v61, 0  ;;  %v17457_v63 = vld [vmem:[%s25721_s3 + $0x58] sm:$0xf] }
 0x8ec   : > { %v8452_v4 = vadd.f32 %v24138_v1, %v8371_v38  ;;  %v19689_v29 = vpop.f32.mrb[62].mxu0  ;;  %19713 = vmatmul.mubr.msk.bf16.gmra.mrb[52].mxu1 %vm280_vm2, %v24244_v57  ;;  %v8567_v62 = vld [vmem:[#allocation2 + $0xcf] sm:$0xff]  ;;  %v24298_v3 = vpack.c.bf16 %v8565_v12, %v8564_v30  ;;  %v8568_v10 = vld [vmem:[#allocation2 + $0xe7] sm:$0xff] }
 0x8ed   : > { %v8518_v59 = vadd.f32 %v8486_v9, %v8454_v25  ;;  %v8455_v8 = vadd.f32 %v19689_v29, %v24138_v1  ;;  %v8374_v47 = vpop.f32.mrb[63].mxu0  ;;  %19716 = vmatprep.mubr.msk.bf16.mxu1 %vm280_vm2, %v24247_v52  ;;  %v24300_v34 = vpack.c.bf16 %v8567_v62, %v8566_v51  ;;  %v8569_v31 = vld [vmem:[#allocation2 + $0xef] sm:$0xff]  ;;  %v8570_v55 = vld [vmem:[#allocation2 + $0x107] sm:$0xff] }
 0x8ee   : > { %v8516_v44 = vadd.f32 %v8484_v13, %v8452_v4  ;;  %v8453_v50 = vadd.f32 %v24138_v1, %v8374_v47  ;;  %v8632_v32 = vld [vmem:[#allocation2 + $0x1c8] sm:$0xff]  ;;  %v24306_v14 = vpack.c.bf16 %v8569_v31, %v8568_v10  ;;  %v9083_v20 = vld [vmem:[#allocation2 + $0x51] sm:$0xff] }
 0x8ef   : > { %8550 = vst.msk [vmem:[#allocation2 + $0x208] sm:$0xff] %vm280_vm2, %v8518_v59  ;;  %v8519_v58 = vadd.f32 %v8487_v46, %v8455_v8  ;;  %v8630_v5 = vld [vmem:[#allocation2 + $0x1a8] sm:$0xff]  ;;  %v9085_v62 = vld [vmem:[#allocation2 + $0x71] sm:$0xff] }
 0x8f0   : > { %8548 = vst.msk [vmem:[#allocation2 + $0x1e8] sm:$0xff] %vm280_vm2, %v8516_v44  ;;  %v8517_v16 = vadd.f32 %v8485_v36, %v8453_v50  ;;  %v8633_v60 = vld [vmem:[#allocation2 + $0x1d0] sm:$0xff]  ;;  %v8554_v1 = vld [vmem:[#allocation2 + $0x7] sm:$0xff] }
 0x8f1   : > { %8551 = vst.msk [vmem:[#allocation2 + $0x210] sm:$0xff] %vm280_vm2, %v8519_v58  ;;  %v8631_v6 = vld [vmem:[#allocation2 + $0x1b0] sm:$0xff]  ;;  %v24262_v45 = vpack.c.bf16 %v8633_v60, %v8632_v32  ;;  %v8586_v40 = vpack.c.bf16 %v8555_v7, %v8554_v1  ;;  %v8572_v4 = vld [vmem:[#allocation2 + $0x127] sm:$0xff] }
 0x8f2   : > { %8549 = vst.msk [vmem:[#allocation2 + $0x1f0] sm:$0xff] %vm280_vm2, %v8517_v16  ;;  %v24260_v27 = vpack.c.bf16 %v8631_v6, %v8630_v5  ;;  %v8571_v23 = vld [vmem:[#allocation2 + $0x10f] sm:$0xff]  ;;  %v8574_v59 = vld [vmem:[#allocation2 + $0x147] sm:$0xff] }
 0x8f3   : > { %v24308_v25 = vpack.c.bf16 %v8571_v23, %v8570_v55  ;;  %v8573_v38 = vld [vmem:[#allocation2 + $0x12f] sm:$0xff]  ;;  %v8576_v44 = vld [vmem:[#allocation2 + $0x167] sm:$0xff] }
 0x8f4   : > { %19717 = vmatmul.mubr.msk.bf16.gmra.mrb[56].mxu1 %vm280_vm2, %v24260_v27  ;;  %v8575_v9 = vld [vmem:[#allocation2 + $0x14f] sm:$0xff]  ;;  %v24314_v29 = vpack.c.bf16 %v8573_v38, %v8572_v4  ;;  %v8578_v50 = vld [vmem:[#allocation2 + $0x187] sm:$0xff] }
 0x8f5   : > { %19720 = vmatprep.mubr.msk.bf16.mxu1 %vm280_vm2, %v24262_v45  ;;  %v24316_v13 = vpack.c.bf16 %v8575_v9, %v8574_v59  ;;  %v8577_v8 = vld [vmem:[#allocation2 + $0x16f] sm:$0xff]  ;;  %v8580_v60 = vld [vmem:[#allocation2 + $0x1a7] sm:$0xff] }
 0x8f6   : > { %v8579_v47 = vld [vmem:[#allocation2 + $0x18f] sm:$0xff]  ;;  %v24322_v46 = vpack.c.bf16 %v8577_v8, %v8576_v44  ;;  %v8582_v6 = vld [vmem:[#allocation2 + $0x1c7] sm:$0xff] }
 0x8f7   : > { %v8634_v26 = vld [vmem:[#allocation2 + $0x1e8] sm:$0xff]  ;;  %v24324_v58 = vpack.c.bf16 %v8579_v47, %v8578_v50  ;;  %v9079_v7 = vld [vmem:[#allocation2 + $0x11] sm:$0xff] }
 0x8f8   : > { %v8581_v36 = vld [vmem:[#allocation2 + $0x1af] sm:$0xff] }
 0x8f9   : > { %v8635_v35 = vld [vmem:[#allocation2 + $0x1f0] sm:$0xff]  ;;  %v24330_v5 = vpack.c.bf16 %v8581_v36, %v8580_v60 }
 0x8fa   : > { %v24268_v56 = vpack.c.bf16 %v8635_v35, %v8634_v26  ;;  %v8583_v16 = vld [vmem:[#allocation2 + $0x1cf] sm:$0xff]  ;;  %v8584_v35 = vld [vmem:[#allocation2 + $0x1e7] sm:$0xff] }
 0x8fb   : > { %v24332_v32 = vpack.c.bf16 %v8583_v16, %v8582_v6  ;;  %v9078_v1 = vld [vmem:[#allocation2 + $0x9] sm:$0xff]  ;;  %v9087_v51 = vld [vmem:[#allocation2 + $0x91] sm:$0xff] }
 0x8fc   : > { %19721 = vmatmul.mubr.msk.bf16.gmra.mrb[60].mxu1 %vm280_vm2, %v24268_v56  ;;  %v8585_v26 = vld [vmem:[#allocation2 + $0x1ef] sm:$0xff] }
 0x8fd   : > { %19726 = vmatprep.mubr.msk.bf16.mxu1 %vm280_vm2, %v8586_v40  ;;  %v9110_v40 = vpack.c.bf16 %v9079_v7, %v9078_v1  ;;  %v24338_v48 = vpack.c.bf16 %v8585_v26, %v8584_v35  ;;  %v9080_v43 = vld [vmem:[#allocation2 + $0x29] sm:$0xff]  ;;  %v9089_v10 = vld [vmem:[#allocation2 + $0xb1] sm:$0xff] }
 0x8fe   : > { %v24343_v49 = vpack.c.bf16 %v9081_v39, %v9080_v43  ;;  %v9084_v12 = vld [vmem:[#allocation2 + $0x69] sm:$0xff]  ;;  %v9091_v38 = vld [vmem:[#allocation2 + $0xd1] sm:$0xff] }
 0x8ff   : > { %v9086_v30 = vld [vmem:[#allocation2 + $0x89] sm:$0xff]  ;;  %v9093_v8 = vld [vmem:[#allocation2 + $0xf1] sm:$0xff] }
 0x900   : > { %v24359_v31 = vpack.c.bf16 %v9087_v51, %v9086_v30  ;;  %v9088_v23 = vld [vmem:[#allocation2 + $0xa9] sm:$0xff]  ;;  %v9095_v44 = vld [vmem:[#allocation2 + $0x111] sm:$0xff] }
 0x901   : > { %v9090_v55 = vld [vmem:[#allocation2 + $0xc9] sm:$0xff]  ;;  %v24365_v9 = vpack.c.bf16 %v9089_v10, %v9088_v23  ;;  %v9097_v60 = vld [vmem:[#allocation2 + $0x131] sm:$0xff] }
 0x902   : > { %v24367_v4 = vpack.c.bf16 %v9091_v38, %v9090_v55  ;;  %v9092_v59 = vld [vmem:[#allocation2 + $0xe9] sm:$0xff]  ;;  %v9099_v1 = vld [vmem:[#allocation2 + $0x151] sm:$0xff] }
 0x903   : > { %v9094_v47 = vld [vmem:[#allocation2 + $0x109] sm:$0xff]  ;;  %v24373_v50 = vpack.c.bf16 %v9093_v8, %v9092_v59  ;;  %v9103_v39 = vld [vmem:[#allocation2 + $0x191] sm:$0xff]  ;;  %v9765_v59 = vsel %vm3294_vm3, %v17457_v63, 0  ;;  %v17474_v8 = vld [vmem:[%s25721_s3 + $0x5c] sm:$0xf] }
 0x904   : > { %19727 = vmatmul.mubr.msk.bf16.vlgmr.msra.gmra.mrb[32].mxu1 %vm280_vm2, %v24273_v28  ;;  %v24375_v36 = vpack.c.bf16 %v9095_v44, %v9094_v47  ;;  %v9096_v16 = vld [vmem:[#allocation2 + $0x129] sm:$0xff]  ;;  %v9107_v30 = vld [vmem:[#allocation2 + $0x1d1] sm:$0xff]  ;;  %v10059_v44 = vsel %vm3294_vm3, %v17474_v8, 0 }
 0x905   : > { %19759 = vmatpush3.bf16.msra.mxu1 %v9177_v42  ;;  %19730 = vmatprep.mubr.msk.bf16.mxu1 %vm280_vm2, %v24277_v11  ;;  %v9082_v42 = vld [vmem:[#allocation2 + $0x49] sm:$0xff]  ;;  %v24381_v7 = vpack.c.bf16 %v9097_v60, %v9096_v16  ;;  %v9109_v55 = vld [vmem:[#allocation2 + $0x1f1] sm:$0xff]  ;;  %v17491_v16 = vld [vmem:[%s25721_s3 + $0x60] sm:$0xf] }
 0x906   : > { %22174 = vmatprep.subr.msk.bf16.mxu1 %vm3294_vm3, %v24282_v61  ;;  %v24347_v54 = vpack.c.bf16 %v9083_v20, %v9082_v42  ;;  %v24357_v61 = vpack.c.bf16 %v9085_v62, %v9084_v12  ;;  %v9098_v6 = vld [vmem:[#allocation2 + $0x149] sm:$0xff]  ;;  %v9105_v12 = vld [vmem:[#allocation2 + $0x1b1] sm:$0xff] }
 0x907   : > { %v24383_v26 = vpack.c.bf16 %v9099_v1, %v9098_v6  ;;  %v9100_v35 = vld [vmem:[#allocation2 + $0x169] sm:$0xff] }
 0x908   : > { %v9102_v43 = vld [vmem:[#allocation2 + $0x189] sm:$0xff] }
 0x909   : > { %v24391_v20 = vpack.c.bf16 %v9103_v39, %v9102_v43  ;;  %v9106_v62 = vld [vmem:[#allocation2 + $0x1c9] sm:$0xff] }
 0x90a   : > { %v24399_v23 = vpack.c.bf16 %v9107_v30, %v9106_v62  ;;  %v9108_v10 = vld [vmem:[#allocation2 + $0x1e9] sm:$0xff] }
 0x90b   : > { %v24405_v38 = vpack.c.bf16 %v9109_v55, %v9108_v10  ;;  %v17525_v6 = vld [vmem:[%s25721_s3 + $0x68] sm:$0xf]  ;;  %v10559_v62 = vld [vmem:[#allocation2 + $0xf0] sm:$0xff] }
 0x90c   : > { %19731 = vmatmul.mubr.msk.bf16.gmra.mrb[36].mxu1 %vm280_vm2, %v24290_v17  ;;  %v10554_v43 = vld [vmem:[#allocation2 + $0xa8] sm:$0xff] }
 0x90d   : > { %19734 = vmatprep.mubr.msk.bf16.mxu1 %vm280_vm2, %v24292_v41  ;;  %v10558_v30 = vld [vmem:[#allocation2 + $0xe8] sm:$0xff] }
 0x90e   : > { %v10585_v10 = vpack.c.bf16 %v10559_v62, %v10558_v30 }
 0x914   : > { %19735 = vmatmul.mubr.msk.bf16.gmra.mrb[40].mxu1 %vm280_vm2, %v24298_v3 }
 0x915   : > { %19738 = vmatprep.mubr.msk.bf16.mxu1 %vm280_vm2, %v24300_v34 }
 0x91c   : > { %19739 = vmatmul.mubr.msk.bf16.gmra.mrb[44].mxu1 %vm280_vm2, %v24306_v14 }
 0x91d   : > { %19742 = vmatprep.mubr.msk.bf16.mxu1 %vm280_vm2, %v24308_v25 }
 0x924   : > { %19743 = vmatmul.mubr.msk.bf16.gmra.mrb[48].mxu1 %vm280_vm2, %v24314_v29 }
 0x925   : > { %19746 = vmatprep.mubr.msk.bf16.mxu1 %vm280_vm2, %v24316_v13 }
 0x92c   : > { %19747 = vmatmul.mubr.msk.bf16.gmra.mrb[52].mxu1 %vm280_vm2, %v24322_v46 }
 0x92d   : > { %19750 = vmatprep.mubr.msk.bf16.mxu1 %vm280_vm2, %v24324_v58 }
 0x934   : > { %19751 = vmatmul.mubr.msk.bf16.gmra.mrb[56].mxu1 %vm280_vm2, %v24330_v5 }
 0x935   : > { %19754 = vmatprep.mubr.msk.bf16.mxu1 %vm280_vm2, %v24332_v32 }
 0x93c   : > { %19755 = vmatmul.mubr.msk.bf16.gmra.mrb[60].mxu1 %vm280_vm2, %v24338_v48 }
 0x93d   : > { %19760 = vmatprep.mubr.msk.bf16.mxu1 %vm280_vm2, %v9110_v40  ;;  %v9101_v40 = vld [vmem:[#allocation2 + $0x171] sm:$0xff] }
 0x93e   : > { %v24389_v42 = vpack.c.bf16 %v9101_v40, %v9100_v35  ;;  %v10555_v35 = vld [vmem:[#allocation2 + $0xb0] sm:$0xff] }
 0x93f   : > { %v10557_v40 = vld [vmem:[#allocation2 + $0xd0] sm:$0xff]  ;;  %v10583_v39 = vpack.c.bf16 %v10555_v35, %v10554_v43 }
 0x944   : > { %19761 = vmatmul.mubr.msk.bf16.vlgmr.msra.gmra.mrb[32].mxu1 %vm280_vm2, %v24343_v49 }
 0x945   : > { %19793 = vmatpush3.bf16.msra.mxu1 %v9471_v21  ;;  %19764 = vmatprep.mubr.msk.bf16.mxu1 %vm280_vm2, %v24347_v54  ;;  %v9104_v21 = vld [vmem:[#allocation2 + $0x1a9] sm:$0xff] }
 0x946   : > { %22175 = vmatprep.subr.msk.bf16.mxu1 %vm3294_vm3, %v17457_v63  ;;  %v24397_v51 = vpack.c.bf16 %v9105_v12, %v9104_v21  ;;  %v9402_v63 = vld [vmem:[#allocation2 + $0x207] sm:$0xff] }
 0x947   : > { %v10556_v21 = vld [vmem:[#allocation2 + $0xc8] sm:$0xff] }
 0x948   : > { %v10584_v12 = vpack.c.bf16 %v10557_v40, %v10556_v21 }
 0x94c   : > { %19765 = vmatmul.mubr.msk.bf16.gmra.mrb[36].mxu1 %vm280_vm2, %v24357_v61 }
 0x94d   : > { %19768 = vmatprep.mubr.msk.bf16.mxu1 %vm280_vm2, %v24359_v31 }
 0x954   : > { %19769 = vmatmul.mubr.msk.bf16.gmra.mrb[40].mxu1 %vm280_vm2, %v24365_v9 }
 0x955   : > { %19772 = vmatprep.mubr.msk.bf16.mxu1 %vm280_vm2, %v24367_v4 }
 0x95c   : > { %19773 = vmatmul.mubr.msk.bf16.gmra.mrb[44].mxu1 %vm280_vm2, %v24373_v50 }
 0x95d   : > { %19776 = vmatprep.mubr.msk.bf16.mxu1 %vm280_vm2, %v24375_v36 }
 0x964   : > { %19777 = vmatmul.mubr.msk.bf16.gmra.mrb[48].mxu1 %vm280_vm2, %v24381_v7 }
 0x965   : > { %19780 = vmatprep.mubr.msk.bf16.mxu1 %vm280_vm2, %v24383_v26 }
 0x96c   : > { %19781 = vmatmul.mubr.msk.bf16.gmra.mrb[52].mxu1 %vm280_vm2, %v24389_v42 }
 0x96d   : > { %19784 = vmatprep.mubr.msk.bf16.mxu1 %vm280_vm2, %v24391_v20 }
 0x974   : > { %19785 = vmatmul.mubr.msk.bf16.gmra.mrb[56].mxu1 %vm280_vm2, %v24397_v51 }
 0x975   : > { %19788 = vmatprep.mubr.msk.bf16.mxu1 %vm280_vm2, %v24399_v23 }
 0x97c   : > { %19789 = vmatmul.mubr.msk.bf16.gmra.mrb[60].mxu1 %vm280_vm2, %v24405_v38 }
 0x97d   : > { %19794 = vmatprep.mubr.msk.bf16.mxu1 %vm280_vm2, %v24273_v28  ;;  %v9403_v28 = vld [vmem:[#allocation2 + $0x20f] sm:$0xff] }
 0x97e   : > { %v24444_v47 = vpack.c.bf16 %v9403_v28, %v9402_v63 }
 0x984   : > { %19795 = vmatmul.mubr.msk.bf16.vlgmr.msra.gmra.mrb[32].mxu1 %vm280_vm2, %v24277_v11 }
 0x985   : > { %19827 = vmatpush3.bf16.msra.mxu1 %v9765_v59  ;;  %19798 = vmatprep.mubr.msk.bf16.mxu1 %vm280_vm2, %v24290_v17 }
 0x986   : > { %22176 = vmatprep.subr.msk.bf16.mxu1 %vm3294_vm3, %v17474_v8 }
 0x98c   : > { %19799 = vmatmul.mubr.msk.bf16.gmra.mrb[36].mxu1 %vm280_vm2, %v24292_v41 }
 0x98d   : > { %19802 = vmatprep.mubr.msk.bf16.mxu1 %vm280_vm2, %v24298_v3 }
 0x994   : > { %19803 = vmatmul.mubr.msk.bf16.gmra.mrb[40].mxu1 %vm280_vm2, %v24300_v34 }
 0x995   : > { %19806 = vmatprep.mubr.msk.bf16.mxu1 %vm280_vm2, %v24306_v14 }
 0x99c   : > { %19807 = vmatmul.mubr.msk.bf16.gmra.mrb[44].mxu1 %vm280_vm2, %v24308_v25 }
 0x99d   : > { %19810 = vmatprep.mubr.msk.bf16.mxu1 %vm280_vm2, %v24314_v29 }
 0x9a4   : > { %19811 = vmatmul.mubr.msk.bf16.gmra.mrb[48].mxu1 %vm280_vm2, %v24316_v13 }
 0x9a5   : > { %19814 = vmatprep.mubr.msk.bf16.mxu1 %vm280_vm2, %v24322_v46 }
 0x9ac   : > { %19815 = vmatmul.mubr.msk.bf16.gmra.mrb[52].mxu1 %vm280_vm2, %v24324_v58 }
 0x9ad   : > { %19818 = vmatprep.mubr.msk.bf16.mxu1 %vm280_vm2, %v24330_v5 }
 0x9b4   : > { %19819 = vmatmul.mubr.msk.bf16.gmra.mrb[56].mxu1 %vm280_vm2, %v24332_v32 }
 0x9b5   : > { %19822 = vmatprep.mubr.msk.bf16.mxu1 %vm280_vm2, %v24338_v48 }
 0x9bc   : > { %19823 = vmatmul.mubr.msk.bf16.gmra.mrb[60].mxu1 %vm280_vm2, %v24444_v47 }
 0x9bd   : > { %19828 = vmatprep.mubr.msk.bf16.mxu1 %vm280_vm2, %v24156_v15  ;;  %v9697_v15 = vld [vmem:[#allocation2 + $0x210] sm:$0xff] }
 0x9c4   : > { %19829 = vmatmul.mubr.msk.bf16.vlgmr.msra.gmra.mrb[32].mxu1 %vm280_vm2, %v24160_v37  ;;  %v9696_v37 = vld [vmem:[#allocation2 + $0x208] sm:$0xff] }
 0x9c5   : > { %19861 = vmatpush3.bf16.msra.mxu1 %v10059_v44  ;;  %19832 = vmatprep.mubr.msk.bf16.mxu1 %vm280_vm2, %v24180_v33  ;;  %v24483_v33 = vpack.c.bf16 %v9697_v15, %v9696_v37 }
 0x9c6   : > { %22177 = vmatprep.subr.msk.bf16.mxu1 %vm3294_vm3, %v17491_v16 }
 0x9cc   : > { %19833 = vmatmul.mubr.msk.bf16.gmra.mrb[36].mxu1 %vm280_vm2, %v24183_v53  ;;  %v10353_v53 = vsel %vm3294_vm3, %v17491_v16, 0 }
 0x9cd   : > { %19836 = vmatprep.mubr.msk.bf16.mxu1 %vm280_vm2, %v24196_v18  ;;  %v17508_v18 = vld [vmem:[%s25721_s3 + $0x64] sm:$0xf] }
 0x9ce   : > { %v10647_v60 = vsel %vm3294_vm3, %v17508_v18, 0 }
 0x9d4   : > { %19837 = vmatmul.mubr.msk.bf16.gmra.mrb[40].mxu1 %vm280_vm2, %v24199_v24  ;;  %v9990_v24 = vld [vmem:[#allocation2 + $0x209] sm:$0xff] }
 0x9d5   : > { %19840 = vmatprep.mubr.msk.bf16.mxu1 %vm280_vm2, %v24212_v22  ;;  %v9991_v22 = vld [vmem:[#allocation2 + $0x211] sm:$0xff] }
 0x9dc   : > { %19841 = vmatmul.mubr.msk.bf16.gmra.mrb[44].mxu1 %vm280_vm2, %v24215_v0 }
 0x9dd   : > { %19844 = vmatprep.mubr.msk.bf16.mxu1 %vm280_vm2, %v24228_v19 }
 0x9e4   : > { %19845 = vmatmul.mubr.msk.bf16.gmra.mrb[48].mxu1 %vm280_vm2, %v24231_v2 }
 0x9e5   : > { %19848 = vmatprep.mubr.msk.bf16.mxu1 %vm280_vm2, %v24244_v57 }
 0x9ec   : > { %19849 = vmatmul.mubr.msk.bf16.gmra.mrb[52].mxu1 %vm280_vm2, %v24247_v52 }
 0x9ed   : > { %19852 = vmatprep.mubr.msk.bf16.mxu1 %vm280_vm2, %v24260_v27 }
 0x9f4   : > { %19853 = vmatmul.mubr.msk.bf16.gmra.mrb[56].mxu1 %vm280_vm2, %v24262_v45 }
 0x9f5   : > { %19856 = vmatprep.mubr.msk.bf16.mxu1 %vm280_vm2, %v24268_v56 }
 0x9fc   : > { %19857 = vmatmul.mubr.msk.bf16.gmra.mrb[60].mxu1 %vm280_vm2, %v24483_v33 }
 0x9fd   : > { %19862 = vmatprep.mubr.msk.bf16.mxu1 %vm280_vm2, %v24343_v49  ;;  %v24522_v49 = vpack.c.bf16 %v9991_v22, %v9990_v24 }
 0xa04   : > { %19863 = vmatmul.mubr.msk.bf16.vlgmr.msra.gmra.mrb[32].mxu1 %vm280_vm2, %v24347_v54 }
 0xa05   : > { %19895 = vmatpush3.bf16.msra.mxu1 %v10353_v53  ;;  %19866 = vmatprep.mubr.msk.bf16.mxu1 %vm280_vm2, %v24357_v61 }
 0xa06   : > { %22178 = vmatprep.subr.msk.bf16.mxu1 %vm3294_vm3, %v17508_v18 }
 0xa0c   : > { %19867 = vmatmul.mubr.msk.bf16.gmra.mrb[36].mxu1 %vm280_vm2, %v24359_v31 }
 0xa0d   : > { %19870 = vmatprep.mubr.msk.bf16.mxu1 %vm280_vm2, %v24365_v9 }
 0xa14   : > { %19871 = vmatmul.mubr.msk.bf16.gmra.mrb[40].mxu1 %vm280_vm2, %v24367_v4 }
 0xa15   : > { %19874 = vmatprep.mubr.msk.bf16.mxu1 %vm280_vm2, %v24373_v50 }
 0xa1c   : > { %19875 = vmatmul.mubr.msk.bf16.gmra.mrb[44].mxu1 %vm280_vm2, %v24375_v36 }
 0xa1d   : > { %19878 = vmatprep.mubr.msk.bf16.mxu1 %vm280_vm2, %v24381_v7 }
 0xa24   : > { %19879 = vmatmul.mubr.msk.bf16.gmra.mrb[48].mxu1 %vm280_vm2, %v24383_v26 }
 0xa25   : > { %19882 = vmatprep.mubr.msk.bf16.mxu1 %vm280_vm2, %v24389_v42 }
 0xa2c   : > { %19883 = vmatmul.mubr.msk.bf16.gmra.mrb[52].mxu1 %vm280_vm2, %v24391_v20 }
 0xa2d   : > { %19886 = vmatprep.mubr.msk.bf16.mxu1 %vm280_vm2, %v24397_v51 }
 0xa34   : > { %19887 = vmatmul.mubr.msk.bf16.gmra.mrb[56].mxu1 %vm280_vm2, %v24399_v23 }
 0xa35   : > { %19890 = vmatprep.mubr.msk.bf16.mxu1 %vm280_vm2, %v24405_v38 }
 0xa3c   : > { %19891 = vmatmul.mubr.msk.bf16.gmra.mrb[60].mxu1 %vm280_vm2, %v24522_v49 }
 0xa3d   : > { %19896 = vmatprep.mubr.msk.bf16.mxu1 %vm280_vm2, %v24277_v11  ;;  %v10284_v11 = vld [vmem:[#allocation2 + $0x227] sm:$0xff] }
 0xa44   : > { %19897 = vmatmul.mubr.msk.bf16.vlgmr.msra.gmra.mrb[32].mxu1 %vm280_vm2, %v24290_v17  ;;  %v10285_v17 = vld [vmem:[#allocation2 + $0x22f] sm:$0xff] }
 0xa45   : > { %19929 = vmatpush3.bf16.msra.mxu1 %v10647_v60  ;;  %19900 = vmatprep.mubr.msk.bf16.mxu1 %vm280_vm2, %v24292_v41  ;;  %v10301_v41 = vpack.c.bf16 %v10285_v17, %v10284_v11 }
 0xa46   : > { %22179 = vmatprep.subr.msk.bf16.mxu1 %vm3294_vm3, %v17525_v6 }
 0xa4c   : > { %19901 = vmatmul.mubr.msk.bf16.gmra.mrb[36].mxu1 %vm280_vm2, %v24298_v3  ;;  %v10549_v3 = vld [vmem:[#allocation2 + $0x50] sm:$0xff] }
 0xa4d   : > { %19904 = vmatprep.mubr.msk.bf16.mxu1 %vm280_vm2, %v24300_v34  ;;  %v10548_v34 = vld [vmem:[#allocation2 + $0x48] sm:$0xff] }
 0xa54   : > { %19905 = vmatmul.mubr.msk.bf16.gmra.mrb[40].mxu1 %vm280_vm2, %v24306_v14  ;;  %v10580_v14 = vpack.c.bf16 %v10549_v3, %v10548_v34 }
 0xa55   : > { %19908 = vmatprep.mubr.msk.bf16.mxu1 %vm280_vm2, %v24308_v25  ;;  %v17545_v25 = vld [vmem:[%s25721_s3 + $0x70] sm:$0xf] }
 0xa56   : > { %22180 = vmatprep.subr.msk.bf16.mxu0 %vm3294_vm3, %v17545_v25 }
 0xa5c   : > { %19909 = vmatmul.mubr.msk.bf16.gmra.mrb[44].mxu1 %vm280_vm2, %v24314_v29  ;;  %v11389_v29 = vsel %vm3294_vm3, %v17545_v25, 0 }
 0xa5d   : > { %19912 = vmatprep.mubr.msk.bf16.mxu1 %vm280_vm2, %v24316_v13  ;;  %19997 = vmatpush3.bf16.msra.mxu0 %v11389_v29  ;;  %v10551_v13 = vld [vmem:[#allocation2 + $0x70] sm:$0xff] }
 0xa64   : > { %19913 = vmatmul.mubr.msk.bf16.gmra.mrb[48].mxu1 %vm280_vm2, %v24322_v46  ;;  %v10553_v46 = vld [vmem:[#allocation2 + $0x90] sm:$0xff] }
 0xa65   : > { %19916 = vmatprep.mubr.msk.bf16.mxu1 %vm280_vm2, %v24324_v58  ;;  %v10550_v58 = vld [vmem:[#allocation2 + $0x68] sm:$0xff] }
 0xa6c   : > { %19917 = vmatmul.mubr.msk.bf16.gmra.mrb[52].mxu1 %vm280_vm2, %v24330_v5  ;;  %v10581_v5 = vpack.c.bf16 %v10551_v13, %v10550_v58 }
 0xa6d   : > { %19920 = vmatprep.mubr.msk.bf16.mxu1 %vm280_vm2, %v24332_v32  ;;  %v10941_v32 = vsel %vm3294_vm3, %v17525_v6, 0 }
 0xa74   : > { %19921 = vmatmul.mubr.msk.bf16.gmra.mrb[56].mxu1 %vm280_vm2, %v24338_v48  ;;  %v10552_v48 = vld [vmem:[#allocation2 + $0x88] sm:$0xff] }
 0xa75   : > { %19924 = vmatprep.mubr.msk.bf16.mxu1 %vm280_vm2, %v24444_v47  ;;  %v10582_v1 = vpack.c.bf16 %v10553_v46, %v10552_v48 }
 0xa7c   : > { %19925 = vmatmul.mubr.msk.bf16.gmra.mrb[60].mxu1 %vm280_vm2, %v10301_v41 }
 0xa7d   : > { %19930 = vmatprep.mubr.msk.bf16.mxu1 %vm280_vm2, %v10580_v14  ;;  %v24659_v14 = vld [vmem:[%s25721_s3 + $0x74] sm:$0xf] }
 0xa84   : > { %19931 = vmatmul.mubr.msk.bf16.vlgmr.msra.gmra.mrb[32].mxu1 %vm280_vm2, %v10581_v5 }
 0xa85   : > { %19963 = vmatpush3.bf16.msra.mxu1 %v10941_v32  ;;  %19934 = vmatprep.mubr.msk.bf16.mxu1 %vm280_vm2, %v10582_v1 }
 0xa8c   : > { %19935 = vmatmul.mubr.msk.bf16.gmra.mrb[36].mxu1 %vm280_vm2, %v10583_v39 }
 0xa8d   : > { %19938 = vmatprep.mubr.msk.bf16.mxu1 %vm280_vm2, %v10584_v12 }
 0xa94   : > { %19939 = vmatmul.mubr.msk.bf16.gmra.mrb[40].mxu1 %vm280_vm2, %v10585_v10 }
 0xa95   : > { %19942 = vmatprep.mubr.msk.bf16.mxu1 %vm280_vm2, %v24215_v0  ;;  %v10578_v0 = vld [vmem:[#allocation2 + $0x228] sm:$0xff] }
 0xa9c   : > { %19943 = vmatmul.mubr.msk.bf16.gmra.mrb[44].mxu1 %vm280_vm2, %v24228_v19  ;;  %v10579_v19 = vld [vmem:[#allocation2 + $0x230] sm:$0xff] }
 0xa9d   : > { %19946 = vmatprep.mubr.msk.bf16.mxu1 %vm280_vm2, %v24231_v2  ;;  %v10595_v2 = vpack.c.bf16 %v10579_v19, %v10578_v0 }
 0xaa4   : > { %19947 = vmatmul.mubr.msk.bf16.gmra.mrb[48].mxu1 %vm280_vm2, %v24244_v57  ;;  %v10872_v57 = vld [vmem:[#allocation2 + $0x229] sm:$0xff] }
 0xaa5   : > { %19950 = vmatprep.mubr.msk.bf16.mxu1 %vm280_vm2, %v24247_v52  ;;  %v10873_v52 = vld [vmem:[#allocation2 + $0x231] sm:$0xff] }
 0xaac   : > { %19951 = vmatmul.mubr.msk.bf16.gmra.mrb[52].mxu1 %vm280_vm2, %v24260_v27  ;;  %v10889_v27 = vpack.c.bf16 %v10873_v52, %v10872_v57 }
 0xaad   : > { %19954 = vmatprep.mubr.msk.bf16.mxu1 %vm280_vm2, %v24262_v45  ;;  %v11290_v45 = vld [vmem:[#allocation3 + $0x8] sm:$0xff] }
 0xab4   : > { %19955 = vmatmul.mubr.msk.bf16.gmra.mrb[56].mxu1 %vm280_vm2, %v24268_v56  ;;  %v11291_v56 = vld [vmem:[#allocation3 + $0x10] sm:$0xff] }
 0xab5   : > { %19958 = vmatprep.mubr.msk.bf16.mxu1 %vm280_vm2, %v24483_v33 }
 0xabc   : > { %19959 = vmatmul.mubr.msk.bf16.gmra.mrb[60].mxu1 %vm280_vm2, %v10595_v2 }
 0xabd   : > { %19964 = vmatprep.mubr.msk.bf16.mxu1 %vm280_vm2, %v24347_v54  ;;  %v11322_v54 = vpack.c.bf16 %v11291_v56, %v11290_v45 }
 0xabf   : > { %19998 = vmatprep.mubr.msk.bf16.mxu0 %vm280_vm2, %v11322_v54 }
 0xac4   : > { %19965 = vmatmul.mubr.msk.bf16.vlgmr.msra.gmra.mrb[32].mxu1 %vm280_vm2, %v24357_v61  ;;  %v17544_v61 = vld [vmem:[%s25721_s3 + $0x6c] sm:$0xf] }
 0xac5   : > { %19968 = vmatprep.mubr.msk.bf16.mxu1 %vm280_vm2, %v24359_v31  ;;  %22181 = vmatprep.subr.msk.bf16.mxu0 %vm3294_vm3, %v17544_v61  ;;  %v24632_v31 = vld [vmem:[%s25722_s4 + $0x2] ss:$0 sm:$0xff]  ;;  %v11601_v11 = vsel %vm3294_vm3, %v17544_v61, 0 }
 0xacc   : > { %19969 = vmatmul.mubr.msk.bf16.gmra.mrb[36].mxu1 %vm280_vm2, %v24365_v9 }
 0xacd   : > { %19972 = vmatprep.mubr.msk.bf16.mxu1 %vm280_vm2, %v24367_v4 }
 0xad4   : > { %19973 = vmatmul.mubr.msk.bf16.gmra.mrb[40].mxu1 %vm280_vm2, %v24373_v50 }
 0xad5   : > { %19976 = vmatprep.mubr.msk.bf16.mxu1 %vm280_vm2, %v24375_v36 }
 0xadc   : > { %19977 = vmatmul.mubr.msk.bf16.gmra.mrb[44].mxu1 %vm280_vm2, %v24381_v7 }
 0xadd   : > { %19980 = vmatprep.mubr.msk.bf16.mxu1 %vm280_vm2, %v24383_v26 }
 0xae4   : > { %19981 = vmatmul.mubr.msk.bf16.gmra.mrb[48].mxu1 %vm280_vm2, %v24389_v42 }
 0xae5   : > { %19984 = vmatprep.mubr.msk.bf16.mxu1 %vm280_vm2, %v24391_v20 }
 0xaec   : > { %19985 = vmatmul.mubr.msk.bf16.gmra.mrb[52].mxu1 %vm280_vm2, %v24397_v51 }
 0xaed   : > { %19988 = vmatprep.mubr.msk.bf16.mxu1 %vm280_vm2, %v24399_v23 }
 0xaf4   : > { %19989 = vmatmul.mubr.msk.bf16.gmra.mrb[56].mxu1 %vm280_vm2, %v24405_v38 }
 0xaf5   : > { %19992 = vmatprep.mubr.msk.bf16.mxu1 %vm280_vm2, %v24522_v49 }
 0xafc   : > { %19993 = vmatmul.mubr.msk.bf16.gmra.mrb[60].mxu1 %vm280_vm2, %v10889_v27 }
 0xb97   : > { %v19966_v9 = vpop.f32.mrb[32].mxu1 }
 0xb98   : > { %v11144_v4 = vadd.f32 %v19966_v9, %v24632_v31  ;;  %v10977_v50 = vpop.f32.mrb[33].mxu1 }
 0xb99   : > { %v11142_v36 = vadd.f32 %v24632_v31, %v10977_v50  ;;  %v19967_v7 = vpop.f32.mrb[34].mxu1 }
 0xb9a   : > { %v11176_v26 = vmax.f32 %v11144_v4, 0.0  ;;  %v11145_v42 = vadd.f32 %v19967_v7, %v24632_v31  ;;  %v10980_v20 = vpop.f32.mrb[35].mxu1 }
 0xb9b   : > { %v11174_v51 = vmax.f32 %v11142_v36, 0.0  ;;  %v11143_v23 = vadd.f32 %v24632_v31, %v10980_v20 }
 0xb9c   : > { %11208 = vst.msk [vmem:[#allocation3 + $0x48] sm:$0xff] %vm280_vm2, %v11176_v26  ;;  %v11177_v55 = vmax.f32 %v11145_v42, 0.0 }
 0xb9d   : > { %11206 = vst.msk [vmem:[#allocation3 + $0x28] sm:$0xff] %vm280_vm2, %v11174_v51  ;;  %v11175_v38 = vmax.f32 %v11143_v23, 0.0 }
 0xb9e   : > { %11209 = vst.msk [vmem:[#allocation3 + $0x50] sm:$0xff] %vm280_vm2, %v11177_v55 }
 0xb9f   : > { %11207 = vst.msk [vmem:[#allocation3 + $0x30] sm:$0xff] %vm280_vm2, %v11175_v38  ;;  %v19970_v59 = vpop.f32.mrb[36].mxu1 }
 0xba0   : > { %v11148_v8 = vadd.f32 %v19970_v59, %v24632_v31  ;;  %v10993_v28 = vpop.f32.mrb[37].mxu1 }
 0xba1   : > { %v11146_v63 = vadd.f32 %v24632_v31, %v10993_v28  ;;  %v19971_v47 = vpop.f32.mrb[38].mxu1 }
 0xba2   : > { %v11180_v44 = vmax.f32 %v11148_v8, 0.0  ;;  %v11149_v16 = vadd.f32 %v19971_v47, %v24632_v31  ;;  %v10996_v15 = vpop.f32.mrb[39].mxu1 }
 0xba3   : > { %v11178_v37 = vmax.f32 %v11146_v63, 0.0  ;;  %v11147_v33 = vadd.f32 %v24632_v31, %v10996_v15  ;;  %v11294_v17 = vld [vmem:[#allocation3 + $0x48] sm:$0xff] }
 0xba4   : > { %11212 = vst.msk [vmem:[#allocation3 + $0x88] sm:$0xff] %vm280_vm2, %v11180_v44  ;;  %v11181_v53 = vmax.f32 %v11149_v16, 0.0  ;;  %v11292_v22 = vld [vmem:[#allocation3 + $0x28] sm:$0xff] }
 0xba5   : > { %11210 = vst.msk [vmem:[#allocation3 + $0x68] sm:$0xff] %vm280_vm2, %v11178_v37  ;;  %v11179_v18 = vmax.f32 %v11147_v33, 0.0  ;;  %v11295_v24 = vld [vmem:[#allocation3 + $0x50] sm:$0xff] }
 0xba6   : > { %11213 = vst.msk [vmem:[#allocation3 + $0x90] sm:$0xff] %vm280_vm2, %v11181_v53  ;;  %v11293_v49 = vld [vmem:[#allocation3 + $0x30] sm:$0xff]  ;;  %v24654_v34 = vpack.c.bf16 %v11295_v24, %v11294_v17 }
 0xba7   : > { %11211 = vst.msk [vmem:[#allocation3 + $0x70] sm:$0xff] %vm280_vm2, %v11179_v18  ;;  %v19974_v60 = vpop.f32.mrb[40].mxu1  ;;  %v24650_v6 = vpack.c.bf16 %v11293_v49, %v11292_v22 }
 0xba8   : > { %v11152_v41 = vadd.f32 %v19974_v60, %v24632_v31  ;;  %v11009_v3 = vpop.f32.mrb[41].mxu1 }
 0xba9   : > { %v11150_v25 = vadd.f32 %v24632_v31, %v11009_v3  ;;  %v19975_v29 = vpop.f32.mrb[42].mxu1  ;;  %19999 = vmatmul.mubr.msk.bf16.vlgmr.msra.gmra.mrb[64].mxu0 %vm280_vm2, %v24650_v6 }
 0xbaa   : > { %v11184_v13 = vmax.f32 %v11152_v41, 0.0  ;;  %v11153_v46 = vadd.f32 %v19975_v29, %v24632_v31  ;;  %20031 = vmatpush3.bf16.msra.mxu0 %v11601_v11  ;;  %v11012_v58 = vpop.f32.mrb[43].mxu1  ;;  %20002 = vmatprep.mubr.msk.bf16.mxu0 %vm280_vm2, %v24654_v34 }
 0xbab   : > { %v11182_v5 = vmax.f32 %v11150_v25, 0.0  ;;  %v11151_v32 = vadd.f32 %v24632_v31, %v11012_v58  ;;  %22182 = vmatprep.subr.msk.bf16.mxu0 %vm3294_vm3, %v24659_v14  ;;  %v11298_v12 = vld [vmem:[#allocation3 + $0x88] sm:$0xff] }
 0xbac   : > { %11216 = vst.msk [vmem:[#allocation3 + $0xc8] sm:$0xff] %vm280_vm2, %v11184_v13  ;;  %v11185_v48 = vmax.f32 %v11153_v46, 0.0  ;;  %v11296_v40 = vld [vmem:[#allocation3 + $0x68] sm:$0xff] }
 0xbad   : > { %11214 = vst.msk [vmem:[#allocation3 + $0xa8] sm:$0xff] %vm280_vm2, %v11182_v5  ;;  %v11183_v1 = vmax.f32 %v11151_v32, 0.0  ;;  %v11299_v35 = vld [vmem:[#allocation3 + $0x90] sm:$0xff] }
 0xbae   : > { %11217 = vst.msk [vmem:[#allocation3 + $0xd0] sm:$0xff] %vm280_vm2, %v11185_v48  ;;  %v11297_v43 = vld [vmem:[#allocation3 + $0x70] sm:$0xff]  ;;  %v24677_v10 = vpack.c.bf16 %v11299_v35, %v11298_v12 }
 0xbaf   : > { %11215 = vst.msk [vmem:[#allocation3 + $0xb0] sm:$0xff] %vm280_vm2, %v11183_v1  ;;  %v19978_v39 = vpop.f32.mrb[44].mxu1  ;;  %v24674_v21 = vpack.c.bf16 %v11297_v43, %v11296_v40 }
 0xbb0   : > { %v11156_v62 = vadd.f32 %v19978_v39, %v24632_v31  ;;  %v11025_v30 = vpop.f32.mrb[45].mxu1 }
 0xbb1   : > { %v11154_v0 = vadd.f32 %v24632_v31, %v11025_v30  ;;  %v19979_v19 = vpop.f32.mrb[46].mxu1  ;;  %20003 = vmatmul.mubr.msk.bf16.gmra.mrb[68].mxu0 %vm280_vm2, %v24674_v21 }
 0xbb2   : > { %v11188_v2 = vmax.f32 %v11156_v62, 0.0  ;;  %v11157_v57 = vadd.f32 %v19979_v19, %v24632_v31  ;;  %v11028_v52 = vpop.f32.mrb[47].mxu1  ;;  %20006 = vmatprep.mubr.msk.bf16.mxu0 %vm280_vm2, %v24677_v10 }
 0xbb3   : > { %v11186_v27 = vmax.f32 %v11154_v0, 0.0  ;;  %v11155_v45 = vadd.f32 %v24632_v31, %v11028_v52  ;;  %v11302_v7 = vld [vmem:[#allocation3 + $0xc8] sm:$0xff] }
 0xbb4   : > { %11220 = vst.msk [vmem:[#allocation3 + $0x108] sm:$0xff] %vm280_vm2, %v11188_v2  ;;  %v11189_v56 = vmax.f32 %v11157_v57, 0.0  ;;  %v11300_v9 = vld [vmem:[#allocation3 + $0xa8] sm:$0xff] }
 0xbb5   : > { %11218 = vst.msk [vmem:[#allocation3 + $0xe8] sm:$0xff] %vm280_vm2, %v11186_v27  ;;  %v11187_v54 = vmax.f32 %v11155_v45, 0.0  ;;  %v11303_v61 = vld [vmem:[#allocation3 + $0xd0] sm:$0xff] }
 0xbb6   : > { %11221 = vst.msk [vmem:[#allocation3 + $0x110] sm:$0xff] %vm280_vm2, %v11189_v56  ;;  %v11301_v4 = vld [vmem:[#allocation3 + $0xb0] sm:$0xff]  ;;  %v24693_v20 = vpack.c.bf16 %v11303_v61, %v11302_v7 }
 0xbb7   : > { %11219 = vst.msk [vmem:[#allocation3 + $0xf0] sm:$0xff] %vm280_vm2, %v11187_v54  ;;  %v19982_v50 = vpop.f32.mrb[48].mxu1  ;;  %v24690_v36 = vpack.c.bf16 %v11301_v4, %v11300_v9 }
 0xbb8   : > { %v11160_v26 = vadd.f32 %v19982_v50, %v24632_v31  ;;  %v11041_v42 = vpop.f32.mrb[49].mxu1 }
 0xbb9   : > { %v11158_v51 = vadd.f32 %v24632_v31, %v11041_v42  ;;  %v19983_v23 = vpop.f32.mrb[50].mxu1  ;;  %20007 = vmatmul.mubr.msk.bf16.gmra.mrb[72].mxu0 %vm280_vm2, %v24690_v36 }
 0xbba   : > { %v11192_v55 = vmax.f32 %v11160_v26, 0.0  ;;  %v11161_v38 = vadd.f32 %v19983_v23, %v24632_v31  ;;  %v11044_v59 = vpop.f32.mrb[51].mxu1  ;;  %20010 = vmatprep.mubr.msk.bf16.mxu0 %vm280_vm2, %v24693_v20 }
 0xbbb   : > { %v11190_v8 = vmax.f32 %v11158_v51, 0.0  ;;  %v11159_v28 = vadd.f32 %v24632_v31, %v11044_v59  ;;  %v11306_v53 = vld [vmem:[#allocation3 + $0x108] sm:$0xff] }
 0xbbc   : > { %11224 = vst.msk [vmem:[#allocation3 + $0x148] sm:$0xff] %vm280_vm2, %v11192_v55  ;;  %v11193_v63 = vmax.f32 %v11161_v38, 0.0  ;;  %v11304_v16 = vld [vmem:[#allocation3 + $0xe8] sm:$0xff] }
 0xbbd   : > { %11222 = vst.msk [vmem:[#allocation3 + $0x128] sm:$0xff] %vm280_vm2, %v11190_v8  ;;  %v11191_v47 = vmax.f32 %v11159_v28, 0.0  ;;  %v11307_v44 = vld [vmem:[#allocation3 + $0x110] sm:$0xff] }
 0xbbe   : > { %11225 = vst.msk [vmem:[#allocation3 + $0x150] sm:$0xff] %vm280_vm2, %v11193_v63  ;;  %v11305_v15 = vld [vmem:[#allocation3 + $0xf0] sm:$0xff]  ;;  %v24709_v22 = vpack.c.bf16 %v11307_v44, %v11306_v53 }
 0xbbf   : > { %11223 = vst.msk [vmem:[#allocation3 + $0x130] sm:$0xff] %vm280_vm2, %v11191_v47  ;;  %v19986_v37 = vpop.f32.mrb[52].mxu1  ;;  %v24706_v33 = vpack.c.bf16 %v11305_v15, %v11304_v16  ;;  %v11241_v53 = vld [vmem:[#allocation3 + $0xf] sm:$0xff] }
 0xbc0   : > { %v11164_v18 = vadd.f32 %v19986_v37, %v24632_v31  ;;  %v11057_v24 = vpop.f32.mrb[53].mxu1 }
 0xbc1   : > { %v11162_v49 = vadd.f32 %v24632_v31, %v11057_v24  ;;  %v19987_v60 = vpop.f32.mrb[54].mxu1  ;;  %20011 = vmatmul.mubr.msk.bf16.gmra.mrb[76].mxu0 %vm280_vm2, %v24706_v33 }
 0xbc2   : > { %v11196_v11 = vmax.f32 %v11164_v18, 0.0  ;;  %v11165_v17 = vadd.f32 %v19987_v60, %v24632_v31  ;;  %v11060_v41 = vpop.f32.mrb[55].mxu1  ;;  %20014 = vmatprep.mubr.msk.bf16.mxu0 %vm280_vm2, %v24709_v22 }
 0xbc3   : > { %v11194_v3 = vmax.f32 %v11162_v49, 0.0  ;;  %v11163_v25 = vadd.f32 %v24632_v31, %v11060_v41  ;;  %v11310_v1 = vld [vmem:[#allocation3 + $0x148] sm:$0xff] }
 0xbc4   : > { %11228 = vst.msk [vmem:[#allocation3 + $0x188] sm:$0xff] %vm280_vm2, %v11196_v11  ;;  %v11197_v29 = vmax.f32 %v11165_v17, 0.0  ;;  %v11308_v58 = vld [vmem:[#allocation3 + $0x128] sm:$0xff] }
 0xbc5   : > { %11226 = vst.msk [vmem:[#allocation3 + $0x168] sm:$0xff] %vm280_vm2, %v11194_v3  ;;  %v11195_v13 = vmax.f32 %v11163_v25, 0.0  ;;  %v11311_v46 = vld [vmem:[#allocation3 + $0x150] sm:$0xff]  ;;  %v11242_v41 = vld [vmem:[#allocation3 + $0x27] sm:$0xff]  ;;  %v11863_v25 = vsel %vm3294_vm3, %v24659_v14, 0 }
 0xbc6   : > { %11229 = vst.msk [vmem:[#allocation3 + $0x190] sm:$0xff] %vm280_vm2, %v11197_v29  ;;  %v11309_v5 = vld [vmem:[#allocation3 + $0x130] sm:$0xff]  ;;  %v24725_v43 = vpack.c.bf16 %v11311_v46, %v11310_v1  ;;  %v11244_v29 = vld [vmem:[#allocation3 + $0x47] sm:$0xff]  ;;  %v24776_v46 = vld [vmem:[%s25721_s3 + $0x78] sm:$0xf] }
 0xbc7   : > { %11227 = vst.msk [vmem:[#allocation3 + $0x170] sm:$0xff] %vm280_vm2, %v11195_v13  ;;  %v19990_v32 = vpop.f32.mrb[56].mxu1  ;;  %v24722_v48 = vpack.c.bf16 %v11309_v5, %v11308_v58  ;;  %v11243_v11 = vld [vmem:[#allocation3 + $0x2f] sm:$0xff]  ;;  %v11246_v5 = vld [vmem:[#allocation3 + $0x67] sm:$0xff] }
 0xbc8   : > { %v11168_v35 = vadd.f32 %v19990_v32, %v24632_v31  ;;  %v11073_v40 = vpop.f32.mrb[57].mxu1  ;;  %v11245_v17 = vld [vmem:[#allocation3 + $0x4f] sm:$0xff]  ;;  %v24767_v3 = vpack.c.bf16 %v11243_v11, %v11242_v41  ;;  %v11248_v1 = vld [vmem:[#allocation3 + $0x87] sm:$0xff] }
 0xbc9   : > { %v11166_v39 = vadd.f32 %v24632_v31, %v11073_v40  ;;  %v19991_v12 = vpop.f32.mrb[58].mxu1  ;;  %20015 = vmatmul.mubr.msk.bf16.gmra.mrb[80].mxu0 %vm280_vm2, %v24722_v48  ;;  %v24771_v13 = vpack.c.bf16 %v11245_v17, %v11244_v29  ;;  %v11247_v58 = vld [vmem:[#allocation3 + $0x6f] sm:$0xff] }
 0xbca   : > { %v11200_v62 = vmax.f32 %v11168_v35, 0.0  ;;  %v11169_v30 = vadd.f32 %v19991_v12, %v24632_v31  ;;  %v11076_v0 = vpop.f32.mrb[59].mxu1  ;;  %20018 = vmatprep.mubr.msk.bf16.mxu0 %vm280_vm2, %v24725_v43  ;;  %v11249_v14 = vld [vmem:[#allocation3 + $0x8f] sm:$0xff]  ;;  %v24784_v32 = vpack.c.bf16 %v11247_v58, %v11246_v5  ;;  %v11250_v12 = vld [vmem:[#allocation3 + $0xa7] sm:$0xff] }
 0xbcb   : > { %v11198_v19 = vmax.f32 %v11166_v39, 0.0  ;;  %v11167_v2 = vadd.f32 %v24632_v31, %v11076_v0  ;;  %v11314_v9 = vld [vmem:[#allocation3 + $0x188] sm:$0xff]  ;;  %v24786_v35 = vpack.c.bf16 %v11249_v14, %v11248_v1  ;;  %v11767_v41 = vld [vmem:[#allocation3 + $0x31] sm:$0xff]  ;;  %v12157_v14 = vsel %vm3294_vm3, %v24776_v46, 0  ;;  %v17612_v1 = vld [vmem:[%s25721_s3 + $0x7c] sm:$0xf] }
 0xbcc   : > { %11232 = vst.msk [vmem:[#allocation3 + $0x1c8] sm:$0xff] %vm280_vm2, %v11200_v62  ;;  %v11201_v57 = vmax.f32 %v11169_v30, 0.0  ;;  %v11312_v45 = vld [vmem:[#allocation3 + $0x168] sm:$0xff]  ;;  %v11769_v29 = vld [vmem:[#allocation3 + $0x51] sm:$0xff] }
 0xbcd   : > { %11230 = vst.msk [vmem:[#allocation3 + $0x1a8] sm:$0xff] %vm280_vm2, %v11198_v19  ;;  %v11199_v52 = vmax.f32 %v11167_v2, 0.0  ;;  %v11315_v27 = vld [vmem:[#allocation3 + $0x190] sm:$0xff]  ;;  %v11252_v30 = vld [vmem:[#allocation3 + $0xc7] sm:$0xff] }
 0xbce   : > { %11233 = vst.msk [vmem:[#allocation3 + $0x1d0] sm:$0xff] %vm280_vm2, %v11201_v57  ;;  %v11313_v56 = vld [vmem:[#allocation3 + $0x170] sm:$0xff]  ;;  %v24741_v7 = vpack.c.bf16 %v11315_v27, %v11314_v9  ;;  %v11254_v57 = vld [vmem:[#allocation3 + $0xe7] sm:$0xff] }
 0xbcf   : > { %11231 = vst.msk [vmem:[#allocation3 + $0x1b0] sm:$0xff] %vm280_vm2, %v11199_v52  ;;  %v19994_v54 = vpop.f32.mrb[60].mxu1  ;;  %v24738_v61 = vpack.c.bf16 %v11313_v56, %v11312_v45  ;;  %v11251_v40 = vld [vmem:[#allocation3 + $0xaf] sm:$0xff]  ;;  %v11256_v27 = vld [vmem:[#allocation3 + $0x107] sm:$0xff] }
 0xbd0   : > { %v11172_v4 = vadd.f32 %v19994_v54, %v24632_v31  ;;  %v11089_v50 = vpop.f32.mrb[61].mxu1  ;;  %v11253_v39 = vld [vmem:[#allocation3 + $0xcf] sm:$0xff]  ;;  %v24792_v62 = vpack.c.bf16 %v11251_v40, %v11250_v12  ;;  %v11258_v9 = vld [vmem:[#allocation3 + $0x127] sm:$0xff] }
 0xbd1   : > { %v11170_v26 = vadd.f32 %v24632_v31, %v11089_v50  ;;  %v19995_v42 = vpop.f32.mrb[62].mxu1  ;;  %20019 = vmatmul.mubr.msk.bf16.gmra.mrb[84].mxu0 %vm280_vm2, %v24738_v61  ;;  %v24794_v0 = vpack.c.bf16 %v11253_v39, %v11252_v30  ;;  %v11255_v19 = vld [vmem:[#allocation3 + $0xef] sm:$0xff]  ;;  %v11260_v50 = vld [vmem:[#allocation3 + $0x147] sm:$0xff] }
 0xbd2   : > { %v11204_v51 = vmax.f32 %v11172_v4, 0.0  ;;  %v11173_v23 = vadd.f32 %v19995_v42, %v24632_v31  ;;  %v11092_v55 = vpop.f32.mrb[63].mxu1  ;;  %20022 = vmatprep.mubr.msk.bf16.mxu0 %vm280_vm2, %v24741_v7  ;;  %v11257_v2 = vld [vmem:[#allocation3 + $0x10f] sm:$0xff]  ;;  %v24800_v52 = vpack.c.bf16 %v11255_v19, %v11254_v57 }
 0xbd3   : > { %v11202_v38 = vmax.f32 %v11170_v26, 0.0  ;;  %v11171_v59 = vadd.f32 %v24632_v31, %v11092_v55  ;;  %v11318_v15 = vld [vmem:[#allocation3 + $0x1c8] sm:$0xff]  ;;  %v24802_v45 = vpack.c.bf16 %v11257_v2, %v11256_v27  ;;  %v11771_v39 = vld [vmem:[#allocation3 + $0x71] sm:$0xff] }
 0xbd4   : > { %11236 = vst.msk [vmem:[#allocation3 + $0x208] sm:$0xff] %vm280_vm2, %v11204_v51  ;;  %v11205_v8 = vmax.f32 %v11173_v23, 0.0  ;;  %v11316_v47 = vld [vmem:[#allocation3 + $0x1a8] sm:$0xff]  ;;  %v11773_v30 = vld [vmem:[#allocation3 + $0x91] sm:$0xff] }
 0xbd5   : > { %11234 = vst.msk [vmem:[#allocation3 + $0x1e8] sm:$0xff] %vm280_vm2, %v11202_v38  ;;  %v11203_v28 = vmax.f32 %v11171_v59, 0.0  ;;  %v11319_v63 = vld [vmem:[#allocation3 + $0x1d0] sm:$0xff]  ;;  %v11240_v31 = vld [vmem:[#allocation3 + $0x7] sm:$0xff] }
 0xbd6   : > { %11237 = vst.msk [vmem:[#allocation3 + $0x210] sm:$0xff] %vm280_vm2, %v11205_v8  ;;  %v11317_v44 = vld [vmem:[#allocation3 + $0x1b0] sm:$0xff]  ;;  %v24756_v37 = vpack.c.bf16 %v11319_v63, %v11318_v15  ;;  %v11272_v49 = vpack.c.bf16 %v11241_v53, %v11240_v31  ;;  %v11262_v23 = vld [vmem:[#allocation3 + $0x167] sm:$0xff] }
 0xbd7   : > { %11235 = vst.msk [vmem:[#allocation3 + $0x1f0] sm:$0xff] %vm280_vm2, %v11203_v28  ;;  %v24754_v16 = vpack.c.bf16 %v11317_v44, %v11316_v47  ;;  %v11259_v56 = vld [vmem:[#allocation3 + $0x12f] sm:$0xff]  ;;  %v11264_v38 = vld [vmem:[#allocation3 + $0x187] sm:$0xff] }
 0xbd8   : > { %v11261_v54 = vld [vmem:[#allocation3 + $0x14f] sm:$0xff]  ;;  %v24808_v4 = vpack.c.bf16 %v11259_v56, %v11258_v9  ;;  %v11266_v63 = vld [vmem:[#allocation3 + $0x1a7] sm:$0xff] }
 0xbd9   : > { %20023 = vmatmul.mubr.msk.bf16.gmra.mrb[88].mxu0 %vm280_vm2, %v24754_v16  ;;  %v24810_v26 = vpack.c.bf16 %v11261_v54, %v11260_v50  ;;  %v11263_v42 = vld [vmem:[#allocation3 + $0x16f] sm:$0xff]  ;;  %v11268_v44 = vld [vmem:[#allocation3 + $0x1c7] sm:$0xff] }
 0xbda   : > { %20026 = vmatprep.mubr.msk.bf16.mxu0 %vm280_vm2, %v24756_v37  ;;  %v11265_v51 = vld [vmem:[#allocation3 + $0x18f] sm:$0xff]  ;;  %v24816_v55 = vpack.c.bf16 %v11263_v42, %v11262_v23 }
 0xbdb   : > { %v24818_v59 = vpack.c.bf16 %v11265_v51, %v11264_v38  ;;  %v11267_v8 = vld [vmem:[#allocation3 + $0x1af] sm:$0xff] }
 0xbdc   : > { %v11320_v18 = vld [vmem:[#allocation3 + $0x1e8] sm:$0xff]  ;;  %v24824_v47 = vpack.c.bf16 %v11267_v8, %v11266_v63  ;;  %v11765_v53 = vld [vmem:[#allocation3 + $0x11] sm:$0xff] }
 0xbdd   : > { %v11269_v28 = vld [vmem:[#allocation3 + $0x1cf] sm:$0xff] }
 0xbde   : > { %v11321_v24 = vld [vmem:[#allocation3 + $0x1f0] sm:$0xff]  ;;  %v24826_v15 = vpack.c.bf16 %v11269_v28, %v11268_v44 }
 0xbdf   : > { %v24762_v60 = vpack.c.bf16 %v11321_v24, %v11320_v18  ;;  %v11764_v31 = vld [vmem:[#allocation3 + $0x9] sm:$0xff]  ;;  %v11775_v57 = vld [vmem:[#allocation3 + $0xb1] sm:$0xff] }
 0xbe0   : > { %v11271_v18 = vld [vmem:[#allocation3 + $0x1ef] sm:$0xff]  ;;  %v11270_v24 = vld [vmem:[#allocation3 + $0x1e7] sm:$0xff] }
 0xbe1   : > { %20027 = vmatmul.mubr.msk.bf16.gmra.mrb[92].mxu0 %vm280_vm2, %v24762_v60  ;;  %v24832_v11 = vpack.c.bf16 %v11271_v18, %v11270_v24  ;;  %v11766_v17 = vld [vmem:[#allocation3 + $0x29] sm:$0xff]  ;;  %v11777_v56 = vld [vmem:[#allocation3 + $0xd1] sm:$0xff] }
 0xbe2   : > { %20032 = vmatprep.mubr.msk.bf16.mxu0 %vm280_vm2, %v11272_v49  ;;  %v11796_v49 = vpack.c.bf16 %v11765_v53, %v11764_v31  ;;  %v24837_v58 = vpack.c.bf16 %v11767_v41, %v11766_v17  ;;  %v11770_v40 = vld [vmem:[#allocation3 + $0x69] sm:$0xff]  ;;  %v11779_v42 = vld [vmem:[#allocation3 + $0xf1] sm:$0xff] }
 0xbe3   : > { %v11772_v12 = vld [vmem:[#allocation3 + $0x89] sm:$0xff]  ;;  %v11781_v23 = vld [vmem:[#allocation3 + $0x111] sm:$0xff] }
 0xbe4   : > { %v24853_v19 = vpack.c.bf16 %v11773_v30, %v11772_v12  ;;  %v11774_v2 = vld [vmem:[#allocation3 + $0xa9] sm:$0xff]  ;;  %v11783_v63 = vld [vmem:[#allocation3 + $0x131] sm:$0xff] }
 0xbe5   : > { %v11776_v27 = vld [vmem:[#allocation3 + $0xc9] sm:$0xff]  ;;  %v24859_v54 = vpack.c.bf16 %v11775_v57, %v11774_v2  ;;  %v11785_v31 = vld [vmem:[#allocation3 + $0x151] sm:$0xff] }
 0xbe6   : > { %v24861_v9 = vpack.c.bf16 %v11777_v56, %v11776_v27  ;;  %v11778_v50 = vld [vmem:[#allocation3 + $0xe9] sm:$0xff]  ;;  %v11789_v41 = vld [vmem:[#allocation3 + $0x191] sm:$0xff] }
 0xbe7   : > { %v11780_v51 = vld [vmem:[#allocation3 + $0x109] sm:$0xff]  ;;  %v24867_v38 = vpack.c.bf16 %v11779_v42, %v11778_v50  ;;  %v11793_v12 = vld [vmem:[#allocation3 + $0x1d1] sm:$0xff]  ;;  %v12451_v50 = vsel %vm3294_vm3, %v17612_v1, 0  ;;  %v17629_v42 = vld [vmem:[%s25721_s3 + $0x80] sm:$0xf] }
 0xbe8   : > { %v24869_v8 = vpack.c.bf16 %v11781_v23, %v11780_v51  ;;  %v11782_v28 = vld [vmem:[#allocation3 + $0x129] sm:$0xff]  ;;  %v11795_v27 = vld [vmem:[#allocation3 + $0x1f1] sm:$0xff]  ;;  %v12745_v23 = vsel %vm3294_vm3, %v17629_v42, 0 }
 0xbe9   : > { %20033 = vmatmul.mubr.msk.bf16.vlgmr.msra.gmra.mrb[64].mxu0 %vm280_vm2, %v24767_v3  ;;  %v11784_v44 = vld [vmem:[#allocation3 + $0x149] sm:$0xff]  ;;  %v24875_v53 = vpack.c.bf16 %v11783_v63, %v11782_v28  ;;  %v17646_v28 = vld [vmem:[%s25721_s3 + $0x84] sm:$0xf] }
 0xbea   : > { %20065 = vmatpush3.bf16.msra.mxu0 %v11863_v25  ;;  %20036 = vmatprep.mubr.msk.bf16.mxu0 %vm280_vm2, %v24771_v13  ;;  %v11768_v25 = vld [vmem:[#allocation3 + $0x49] sm:$0xff]  ;;  %v24877_v18 = vpack.c.bf16 %v11785_v31, %v11784_v44 }
 0xbeb   : > { %22183 = vmatprep.subr.msk.bf16.mxu0 %vm3294_vm3, %v24776_v46  ;;  %v24841_v5 = vpack.c.bf16 %v11769_v29, %v11768_v25  ;;  %v24851_v46 = vpack.c.bf16 %v11771_v39, %v11770_v40  ;;  %v11786_v24 = vld [vmem:[#allocation3 + $0x169] sm:$0xff]  ;;  %v11791_v40 = vld [vmem:[#allocation3 + $0x1b1] sm:$0xff] }
 0xbec   : > { %v11788_v17 = vld [vmem:[#allocation3 + $0x189] sm:$0xff] }
 0xbed   : > { %v24885_v29 = vpack.c.bf16 %v11789_v41, %v11788_v17  ;;  %v11792_v39 = vld [vmem:[#allocation3 + $0x1c9] sm:$0xff] }
 0xbee   : > { %v24893_v2 = vpack.c.bf16 %v11793_v12, %v11792_v39  ;;  %v11794_v57 = vld [vmem:[#allocation3 + $0x1e9] sm:$0xff] }
 0xbef   : > { %v24899_v56 = vpack.c.bf16 %v11795_v27, %v11794_v57  ;;  %v17680_v31 = vld [vmem:[%s25721_s3 + $0x8c] sm:$0xf]  ;;  %v13243_v17 = vld [vmem:[#allocation3 + $0xd0] sm:$0xff] }
 0xbf0   : > { %v13240_v41 = vld [vmem:[#allocation3 + $0xa8] sm:$0xff] }
 0xbf1   : > { %20037 = vmatmul.mubr.msk.bf16.gmra.mrb[68].mxu0 %vm280_vm2, %v24784_v32 }
 0xbf2   : > { %20040 = vmatprep.mubr.msk.bf16.mxu0 %vm280_vm2, %v24786_v35 }
 0xbf9   : > { %20041 = vmatmul.mubr.msk.bf16.gmra.mrb[72].mxu0 %vm280_vm2, %v24792_v62 }
 0xbfa   : > { %20044 = vmatprep.mubr.msk.bf16.mxu0 %vm280_vm2, %v24794_v0 }
 0xc01   : > { %20045 = vmatmul.mubr.msk.bf16.gmra.mrb[76].mxu0 %vm280_vm2, %v24800_v52 }
 0xc02   : > { %20048 = vmatprep.mubr.msk.bf16.mxu0 %vm280_vm2, %v24802_v45 }
 0xc09   : > { %20049 = vmatmul.mubr.msk.bf16.gmra.mrb[80].mxu0 %vm280_vm2, %v24808_v4 }
 0xc0a   : > { %20052 = vmatprep.mubr.msk.bf16.mxu0 %vm280_vm2, %v24810_v26 }
 0xc11   : > { %20053 = vmatmul.mubr.msk.bf16.gmra.mrb[84].mxu0 %vm280_vm2, %v24816_v55 }
 0xc12   : > { %20056 = vmatprep.mubr.msk.bf16.mxu0 %vm280_vm2, %v24818_v59 }
 0xc19   : > { %20057 = vmatmul.mubr.msk.bf16.gmra.mrb[88].mxu0 %vm280_vm2, %v24824_v47 }
 0xc1a   : > { %20060 = vmatprep.mubr.msk.bf16.mxu0 %vm280_vm2, %v24826_v15 }
 0xc21   : > { %20061 = vmatmul.mubr.msk.bf16.gmra.mrb[92].mxu0 %vm280_vm2, %v24832_v11 }
 0xc22   : > { %20066 = vmatprep.mubr.msk.bf16.mxu0 %vm280_vm2, %v11796_v49  ;;  %v11787_v49 = vld [vmem:[#allocation3 + $0x171] sm:$0xff] }
 0xc23   : > { %v24883_v25 = vpack.c.bf16 %v11787_v49, %v11786_v24  ;;  %v13241_v49 = vld [vmem:[#allocation3 + $0xb0] sm:$0xff] }
 0xc29   : > { %20067 = vmatmul.mubr.msk.bf16.vlgmr.msra.gmra.mrb[64].mxu0 %vm280_vm2, %v24837_v58 }
 0xc2a   : > { %20099 = vmatpush3.bf16.msra.mxu0 %v12157_v14  ;;  %20070 = vmatprep.mubr.msk.bf16.mxu0 %vm280_vm2, %v24841_v5  ;;  %v11790_v14 = vld [vmem:[#allocation3 + $0x1a9] sm:$0xff] }
 0xc2b   : > { %22184 = vmatprep.subr.msk.bf16.mxu0 %vm3294_vm3, %v17612_v1  ;;  %v24891_v30 = vpack.c.bf16 %v11791_v40, %v11790_v14  ;;  %v12088_v1 = vld [vmem:[#allocation3 + $0x207] sm:$0xff]  ;;  %v13269_v14 = vpack.c.bf16 %v13241_v49, %v13240_v41 }
 0xc2c   : > { %v13242_v40 = vld [vmem:[#allocation3 + $0xc8] sm:$0xff] }
 0xc2d   : > { %v13270_v39 = vpack.c.bf16 %v13243_v17, %v13242_v40  ;;  %v13868_v49 = vld [vmem:[#allocation2 + $0xa8] sm:$0xff]  ;;  %v13871_v40 = vld [vmem:[#allocation2 + $0xd0] sm:$0xff] }
 0xc31   : > { %20071 = vmatmul.mubr.msk.bf16.gmra.mrb[68].mxu0 %vm280_vm2, %v24851_v46 }
 0xc32   : > { %20074 = vmatprep.mubr.msk.bf16.mxu0 %vm280_vm2, %v24853_v19 }
 0xc39   : > { %20075 = vmatmul.mubr.msk.bf16.gmra.mrb[72].mxu0 %vm280_vm2, %v24859_v54 }
 0xc3a   : > { %20078 = vmatprep.mubr.msk.bf16.mxu0 %vm280_vm2, %v24861_v9 }
 0xc41   : > { %20079 = vmatmul.mubr.msk.bf16.gmra.mrb[76].mxu0 %vm280_vm2, %v24867_v38 }
 0xc42   : > { %20082 = vmatprep.mubr.msk.bf16.mxu0 %vm280_vm2, %v24869_v8 }
 0xc49   : > { %20083 = vmatmul.mubr.msk.bf16.gmra.mrb[80].mxu0 %vm280_vm2, %v24875_v53 }
 0xc4a   : > { %20086 = vmatprep.mubr.msk.bf16.mxu0 %vm280_vm2, %v24877_v18 }
 0xc51   : > { %20087 = vmatmul.mubr.msk.bf16.gmra.mrb[84].mxu0 %vm280_vm2, %v24883_v25 }
 0xc52   : > { %20090 = vmatprep.mubr.msk.bf16.mxu0 %vm280_vm2, %v24885_v29 }
 0xc59   : > { %20091 = vmatmul.mubr.msk.bf16.gmra.mrb[88].mxu0 %vm280_vm2, %v24891_v30 }
 0xc5a   : > { %20094 = vmatprep.mubr.msk.bf16.mxu0 %vm280_vm2, %v24893_v2 }
 0xc61   : > { %20095 = vmatmul.mubr.msk.bf16.gmra.mrb[92].mxu0 %vm280_vm2, %v24899_v56 }
 0xc62   : > { %20100 = vmatprep.mubr.msk.bf16.mxu0 %vm280_vm2, %v24767_v3  ;;  %v12089_v3 = vld [vmem:[#allocation3 + $0x20f] sm:$0xff] }
 0xc63   : > { %v24938_v51 = vpack.c.bf16 %v12089_v3, %v12088_v1 }
 0xc69   : > { %20101 = vmatmul.mubr.msk.bf16.vlgmr.msra.gmra.mrb[64].mxu0 %vm280_vm2, %v24771_v13 }
 0xc6a   : > { %20133 = vmatpush3.bf16.msra.mxu0 %v12451_v50  ;;  %20104 = vmatprep.mubr.msk.bf16.mxu0 %vm280_vm2, %v24784_v32 }
 0xc6b   : > { %22185 = vmatprep.subr.msk.bf16.mxu0 %vm3294_vm3, %v17629_v42 }
 0xc71   : > { %20105 = vmatmul.mubr.msk.bf16.gmra.mrb[68].mxu0 %vm280_vm2, %v24786_v35 }
 0xc72   : > { %20108 = vmatprep.mubr.msk.bf16.mxu0 %vm280_vm2, %v24792_v62 }
 0xc79   : > { %20109 = vmatmul.mubr.msk.bf16.gmra.mrb[72].mxu0 %vm280_vm2, %v24794_v0 }
 0xc7a   : > { %20112 = vmatprep.mubr.msk.bf16.mxu0 %vm280_vm2, %v24800_v52 }
 0xc81   : > { %20113 = vmatmul.mubr.msk.bf16.gmra.mrb[76].mxu0 %vm280_vm2, %v24802_v45 }
 0xc82   : > { %20116 = vmatprep.mubr.msk.bf16.mxu0 %vm280_vm2, %v24808_v4 }
 0xc89   : > { %20117 = vmatmul.mubr.msk.bf16.gmra.mrb[80].mxu0 %vm280_vm2, %v24810_v26 }
 0xc8a   : > { %20120 = vmatprep.mubr.msk.bf16.mxu0 %vm280_vm2, %v24816_v55 }
 0xc91   : > { %20121 = vmatmul.mubr.msk.bf16.gmra.mrb[84].mxu0 %vm280_vm2, %v24818_v59 }
 0xc92   : > { %20124 = vmatprep.mubr.msk.bf16.mxu0 %vm280_vm2, %v24824_v47 }
 0xc99   : > { %20125 = vmatmul.mubr.msk.bf16.gmra.mrb[88].mxu0 %vm280_vm2, %v24826_v15 }
 0xc9a   : > { %20128 = vmatprep.mubr.msk.bf16.mxu0 %vm280_vm2, %v24832_v11 }
 0xca1   : > { %20129 = vmatmul.mubr.msk.bf16.gmra.mrb[92].mxu0 %vm280_vm2, %v24938_v51 }
 0xca2   : > { %20134 = vmatprep.mubr.msk.bf16.mxu0 %vm280_vm2, %v24650_v6  ;;  %v12383_v6 = vld [vmem:[#allocation3 + $0x210] sm:$0xff] }
 0xca9   : > { %20135 = vmatmul.mubr.msk.bf16.vlgmr.msra.gmra.mrb[64].mxu0 %vm280_vm2, %v24654_v34  ;;  %v12382_v34 = vld [vmem:[#allocation3 + $0x208] sm:$0xff] }
 0xcaa   : > { %20167 = vmatpush3.bf16.msra.mxu0 %v12745_v23  ;;  %20138 = vmatprep.mubr.msk.bf16.mxu0 %vm280_vm2, %v24674_v21  ;;  %v24977_v21 = vpack.c.bf16 %v12383_v6, %v12382_v34  ;;  %v13864_v34 = vld [vmem:[#allocation2 + $0x68] sm:$0xff] }
 0xcab   : > { %22186 = vmatprep.subr.msk.bf16.mxu0 %vm3294_vm3, %v17646_v28 }
 0xcb1   : > { %20139 = vmatmul.mubr.msk.bf16.gmra.mrb[68].mxu0 %vm280_vm2, %v24677_v10  ;;  %v13039_v10 = vsel %vm3294_vm3, %v17646_v28, 0 }
 0xcb2   : > { %20142 = vmatprep.mubr.msk.bf16.mxu0 %vm280_vm2, %v24690_v36  ;;  %v17663_v36 = vld [vmem:[%s25721_s3 + $0x88] sm:$0xf] }
 0xcb3   : > { %v13333_v44 = vsel %vm3294_vm3, %v17663_v36, 0 }
 0xcb9   : > { %20143 = vmatmul.mubr.msk.bf16.gmra.mrb[72].mxu0 %vm280_vm2, %v24693_v20  ;;  %v12676_v20 = vld [vmem:[#allocation3 + $0x209] sm:$0xff] }
 0xcba   : > { %20146 = vmatprep.mubr.msk.bf16.mxu0 %vm280_vm2, %v24706_v33 }
 0xcc1   : > { %20147 = vmatmul.mubr.msk.bf16.gmra.mrb[76].mxu0 %vm280_vm2, %v24709_v22 }
 0xcc2   : > { %20150 = vmatprep.mubr.msk.bf16.mxu0 %vm280_vm2, %v24722_v48 }
 0xcc9   : > { %20151 = vmatmul.mubr.msk.bf16.gmra.mrb[80].mxu0 %vm280_vm2, %v24725_v43 }
 0xcca   : > { %20154 = vmatprep.mubr.msk.bf16.mxu0 %vm280_vm2, %v24738_v61 }
 0xcd1   : > { %20155 = vmatmul.mubr.msk.bf16.gmra.mrb[84].mxu0 %vm280_vm2, %v24741_v7 }
 0xcd2   : > { %20158 = vmatprep.mubr.msk.bf16.mxu0 %vm280_vm2, %v24754_v16 }
 0xcd9   : > { %20159 = vmatmul.mubr.msk.bf16.gmra.mrb[88].mxu0 %vm280_vm2, %v24756_v37 }
 0xcda   : > { %20162 = vmatprep.mubr.msk.bf16.mxu0 %vm280_vm2, %v24762_v60 }
 0xce1   : > { %20163 = vmatmul.mubr.msk.bf16.gmra.mrb[92].mxu0 %vm280_vm2, %v24977_v21 }
 0xce2   : > { %20168 = vmatprep.mubr.msk.bf16.mxu0 %vm280_vm2, %v24837_v58  ;;  %v12677_v58 = vld [vmem:[#allocation3 + $0x211] sm:$0xff] }
 0xce3   : > { %v25016_v63 = vpack.c.bf16 %v12677_v58, %v12676_v20  ;;  %v13867_v20 = vld [vmem:[#allocation2 + $0x90] sm:$0xff] }
 0xce9   : > { %20169 = vmatmul.mubr.msk.bf16.vlgmr.msra.gmra.mrb[64].mxu0 %vm280_vm2, %v24841_v5 }
 0xcea   : > { %20201 = vmatpush3.bf16.msra.mxu0 %v13039_v10  ;;  %20172 = vmatprep.mubr.msk.bf16.mxu0 %vm280_vm2, %v24851_v46 }
 0xceb   : > { %22187 = vmatprep.subr.msk.bf16.mxu0 %vm3294_vm3, %v17663_v36 }
 0xcf1   : > { %20173 = vmatmul.mubr.msk.bf16.gmra.mrb[68].mxu0 %vm280_vm2, %v24853_v19 }
 0xcf2   : > { %20176 = vmatprep.mubr.msk.bf16.mxu0 %vm280_vm2, %v24859_v54 }
 0xcf9   : > { %20177 = vmatmul.mubr.msk.bf16.gmra.mrb[72].mxu0 %vm280_vm2, %v24861_v9 }
 0xcfa   : > { %20180 = vmatprep.mubr.msk.bf16.mxu0 %vm280_vm2, %v24867_v38 }
 0xd01   : > { %20181 = vmatmul.mubr.msk.bf16.gmra.mrb[76].mxu0 %vm280_vm2, %v24869_v8 }
 0xd02   : > { %20184 = vmatprep.mubr.msk.bf16.mxu0 %vm280_vm2, %v24875_v53 }
 0xd09   : > { %20185 = vmatmul.mubr.msk.bf16.gmra.mrb[80].mxu0 %vm280_vm2, %v24877_v18 }
 0xd0a   : > { %20188 = vmatprep.mubr.msk.bf16.mxu0 %vm280_vm2, %v24883_v25 }
 0xd11   : > { %20189 = vmatmul.mubr.msk.bf16.gmra.mrb[84].mxu0 %vm280_vm2, %v24885_v29 }
 0xd12   : > { %20192 = vmatprep.mubr.msk.bf16.mxu0 %vm280_vm2, %v24891_v30 }
 0xd19   : > { %20193 = vmatmul.mubr.msk.bf16.gmra.mrb[88].mxu0 %vm280_vm2, %v24893_v2 }
 0xd1a   : > { %20196 = vmatprep.mubr.msk.bf16.mxu0 %vm280_vm2, %v24899_v56 }
 0xd21   : > { %20197 = vmatmul.mubr.msk.bf16.gmra.mrb[92].mxu0 %vm280_vm2, %v25016_v63 }
 0xd22   : > { %20202 = vmatprep.mubr.msk.bf16.mxu0 %vm280_vm2, %v24771_v13  ;;  %v12970_v13 = vld [vmem:[#allocation3 + $0x227] sm:$0xff] }
 0xd29   : > { %20203 = vmatmul.mubr.msk.bf16.vlgmr.msra.gmra.mrb[64].mxu0 %vm280_vm2, %v24784_v32  ;;  %v12971_v32 = vld [vmem:[#allocation3 + $0x22f] sm:$0xff] }
 0xd2a   : > { %20235 = vmatpush3.bf16.msra.mxu0 %v13333_v44  ;;  %20206 = vmatprep.mubr.msk.bf16.mxu0 %vm280_vm2, %v24786_v35  ;;  %v12987_v35 = vpack.c.bf16 %v12971_v32, %v12970_v13  ;;  %v13865_v44 = vld [vmem:[#allocation2 + $0x70] sm:$0xff] }
 0xd2b   : > { %22188 = vmatprep.subr.msk.bf16.mxu0 %vm3294_vm3, %v17680_v31 }
 0xd31   : > { %20207 = vmatmul.mubr.msk.bf16.gmra.mrb[68].mxu0 %vm280_vm2, %v24792_v62  ;;  %v13235_v62 = vld [vmem:[#allocation3 + $0x50] sm:$0xff] }
 0xd32   : > { %20210 = vmatprep.mubr.msk.bf16.mxu0 %vm280_vm2, %v24794_v0  ;;  %v13234_v0 = vld [vmem:[#allocation3 + $0x48] sm:$0xff] }
 0xd39   : > { %20211 = vmatmul.mubr.msk.bf16.gmra.mrb[72].mxu0 %vm280_vm2, %v24800_v52  ;;  %v13266_v52 = vpack.c.bf16 %v13235_v62, %v13234_v0 }
 0xd3a   : > { %20214 = vmatprep.mubr.msk.bf16.mxu0 %vm280_vm2, %v24802_v45  ;;  %v17698_v45 = vld [vmem:[%s25723_s5 + $0x4] sm:$0xf] }
 0xd3b   : > { %22189 = vmatprep.subr.msk.bf16.mxu1 %vm3294_vm3, %v17698_v45 }
 0xd41   : > { %20215 = vmatmul.mubr.msk.bf16.gmra.mrb[76].mxu0 %vm280_vm2, %v24808_v4  ;;  %v14105_v4 = vsel %vm3294_vm3, %v17698_v45, 0 }
 0xd42   : > { %20218 = vmatprep.mubr.msk.bf16.mxu0 %vm280_vm2, %v24810_v26  ;;  %20303 = vmatpush3.bf16.msra.mxu1 %v14105_v4  ;;  %v13237_v26 = vld [vmem:[#allocation3 + $0x70] sm:$0xff] }
 0xd49   : > { %20219 = vmatmul.mubr.msk.bf16.gmra.mrb[80].mxu0 %vm280_vm2, %v24816_v55  ;;  %v13239_v55 = vld [vmem:[#allocation3 + $0x90] sm:$0xff] }
 0xd4a   : > { %20222 = vmatprep.mubr.msk.bf16.mxu0 %vm280_vm2, %v24818_v59  ;;  %v13236_v59 = vld [vmem:[#allocation3 + $0x68] sm:$0xff] }
 0xd51   : > { %20223 = vmatmul.mubr.msk.bf16.gmra.mrb[84].mxu0 %vm280_vm2, %v24824_v47  ;;  %v13267_v47 = vpack.c.bf16 %v13237_v26, %v13236_v59  ;;  %v25154_v59 = vld [vmem:[%s25723_s5 + $0x8] sm:$0xf] }
 0xd52   : > { %20226 = vmatprep.mubr.msk.bf16.mxu0 %vm280_vm2, %v24826_v15  ;;  %v13627_v15 = vsel %vm3294_vm3, %v17680_v31, 0 }
 0xd59   : > { %20227 = vmatmul.mubr.msk.bf16.gmra.mrb[88].mxu0 %vm280_vm2, %v24832_v11  ;;  %v13238_v11 = vld [vmem:[#allocation3 + $0x88] sm:$0xff] }
 0xd5a   : > { %20230 = vmatprep.mubr.msk.bf16.mxu0 %vm280_vm2, %v24938_v51  ;;  %v13268_v24 = vpack.c.bf16 %v13239_v55, %v13238_v11  ;;  %v13866_v51 = vld [vmem:[#allocation2 + $0x88] sm:$0xff] }
 0xd61   : > { %20231 = vmatmul.mubr.msk.bf16.gmra.mrb[92].mxu0 %vm280_vm2, %v12987_v35 }
 0xd62   : > { %20236 = vmatprep.mubr.msk.bf16.mxu0 %vm280_vm2, %v13266_v52 }
 0xd69   : > { %20237 = vmatmul.mubr.msk.bf16.vlgmr.msra.gmra.mrb[64].mxu0 %vm280_vm2, %v13267_v47  ;;  %v13870_v47 = vld [vmem:[#allocation2 + $0xc8] sm:$0xff] }
 0xd6a   : > { %20269 = vmatpush3.bf16.msra.mxu0 %v13627_v15  ;;  %20240 = vmatprep.mubr.msk.bf16.mxu0 %vm280_vm2, %v13268_v24 }
 0xd71   : > { %20241 = vmatmul.mubr.msk.bf16.gmra.mrb[68].mxu0 %vm280_vm2, %v13269_v14 }
 0xd72   : > { %20244 = vmatprep.mubr.msk.bf16.mxu0 %vm280_vm2, %v13270_v39 }
 0xd79   : > { %20245 = vmatmul.mubr.msk.bf16.gmra.mrb[72].mxu0 %vm280_vm2, %v24706_v33  ;;  %v13264_v33 = vld [vmem:[#allocation3 + $0x228] sm:$0xff] }
 0xd7a   : > { %20248 = vmatprep.mubr.msk.bf16.mxu0 %vm280_vm2, %v24709_v22  ;;  %v13265_v22 = vld [vmem:[#allocation3 + $0x230] sm:$0xff] }
 0xd81   : > { %20249 = vmatmul.mubr.msk.bf16.gmra.mrb[76].mxu0 %vm280_vm2, %v24722_v48  ;;  %v13281_v48 = vpack.c.bf16 %v13265_v22, %v13264_v33  ;;  %v13869_v22 = vld [vmem:[#allocation2 + $0xb0] sm:$0xff] }
 0xd82   : > { %20252 = vmatprep.mubr.msk.bf16.mxu0 %vm280_vm2, %v24725_v43  ;;  %v13558_v43 = vld [vmem:[#allocation3 + $0x229] sm:$0xff] }
 0xd89   : > { %20253 = vmatmul.mubr.msk.bf16.gmra.mrb[80].mxu0 %vm280_vm2, %v24738_v61  ;;  %v13559_v61 = vld [vmem:[#allocation3 + $0x231] sm:$0xff] }
 0xd8a   : > { %20256 = vmatprep.mubr.msk.bf16.mxu0 %vm280_vm2, %v24741_v7  ;;  %v13575_v7 = vpack.c.bf16 %v13559_v61, %v13558_v43 }
 0xd91   : > { %20257 = vmatmul.mubr.msk.bf16.gmra.mrb[84].mxu0 %vm280_vm2, %v24754_v16  ;;  %v14006_v16 = vld [vmem:[#allocation2 + $0x8] sm:$0xff] }
 0xd92   : > { %20260 = vmatprep.mubr.msk.bf16.mxu0 %vm280_vm2, %v24756_v37  ;;  %v14007_v37 = vld [vmem:[#allocation2 + $0x10] sm:$0xff] }
 0xd99   : > { %20261 = vmatmul.mubr.msk.bf16.gmra.mrb[88].mxu0 %vm280_vm2, %v24762_v60  ;;  %v14038_v60 = vpack.c.bf16 %v14007_v37, %v14006_v16 }
 0xd9a   : > { %20264 = vmatprep.mubr.msk.bf16.mxu0 %vm280_vm2, %v24977_v21 }
 0xd9b   : > { %20304 = vmatprep.mubr.msk.bf16.mxu1 %vm280_vm2, %v14038_v60 }
 0xda1   : > { %20265 = vmatmul.mubr.msk.bf16.gmra.mrb[92].mxu0 %vm280_vm2, %v13281_v48 }
 0xda2   : > { %20270 = vmatprep.mubr.msk.bf16.mxu0 %vm280_vm2, %v24841_v5  ;;  %v14005_v5 = vld [vmem:[%s25723_s5] sm:$0xf] }
 0xda3   : > { %22190 = vmatprep.subr.msk.bf16.mxu1 %vm3294_vm3, %v14005_v5  ;;  %v14317_v52 = vsel %vm3294_vm3, %v14005_v5, 0 }
 0xda9   : > { %20271 = vmatmul.mubr.msk.bf16.vlgmr.msra.gmra.mrb[64].mxu0 %vm280_vm2, %v24851_v46  ;;  %v25127_v46 = vld [vmem:[%s25722_s4 + $0x3] ss:$0 sm:$0xff] }
 0xdaa   : > { %20274 = vmatprep.mubr.msk.bf16.mxu0 %vm280_vm2, %v24853_v19 }
 0xdb1   : > { %20275 = vmatmul.mubr.msk.bf16.gmra.mrb[68].mxu0 %vm280_vm2, %v24859_v54 }
 0xdb2   : > { %20278 = vmatprep.mubr.msk.bf16.mxu0 %vm280_vm2, %v24861_v9 }
 0xdb9   : > { %20279 = vmatmul.mubr.msk.bf16.gmra.mrb[72].mxu0 %vm280_vm2, %v24867_v38  ;;  %v13862_v38 = vld [vmem:[#allocation2 + $0x48] sm:$0xff] }
 0xdba   : > { %20282 = vmatprep.mubr.msk.bf16.mxu0 %vm280_vm2, %v24869_v8 }
 0xdc1   : > { %20283 = vmatmul.mubr.msk.bf16.gmra.mrb[76].mxu0 %vm280_vm2, %v24875_v53 }
 0xdc2   : > { %20286 = vmatprep.mubr.msk.bf16.mxu0 %vm280_vm2, %v24877_v18 }
 0xdc9   : > { %20287 = vmatmul.mubr.msk.bf16.gmra.mrb[80].mxu0 %vm280_vm2, %v24883_v25  ;;  %v13860_v25 = vld [vmem:[#allocation2 + $0x28] sm:$0xff] }
 0xdca   : > { %20290 = vmatprep.mubr.msk.bf16.mxu0 %vm280_vm2, %v24885_v29 }
 0xdd1   : > { %20291 = vmatmul.mubr.msk.bf16.gmra.mrb[84].mxu0 %vm280_vm2, %v24891_v30 }
 0xdd2   : > { %20294 = vmatprep.mubr.msk.bf16.mxu0 %vm280_vm2, %v24893_v2  ;;  %v13863_v2 = vld [vmem:[#allocation2 + $0x50] sm:$0xff] }
 0xdd9   : > { %20295 = vmatmul.mubr.msk.bf16.gmra.mrb[88].mxu0 %vm280_vm2, %v24899_v56  ;;  %v13861_v56 = vld [vmem:[#allocation2 + $0x30] sm:$0xff] }
 0xdda   : > { %20298 = vmatprep.mubr.msk.bf16.mxu0 %vm280_vm2, %v25016_v63 }
 0xde1   : > { %20299 = vmatmul.mubr.msk.bf16.gmra.mrb[92].mxu0 %vm280_vm2, %v13575_v7 }
 0xe7c   : > { %v20272_v19 = vpop.f32.mrb[64].mxu0 }
 0xe7d   : > { %v13830_v54 = vadd.f32 %v20272_v19, %v25127_v46  ;;  %v13663_v9 = vpop.f32.mrb[65].mxu0 }
 0xe7e   : > { %v13828_v8 = vadd.f32 %v25127_v46, %v13663_v9  ;;  %v20273_v53 = vpop.f32.mrb[66].mxu0  ;;  %v13874_v9 = vld [vmem:[#allocation2 + $0x108] sm:$0xff] }
 0xe7f   : > { %v13894_v18 = vadd.f32 %v13862_v38, %v13830_v54  ;;  %v13831_v29 = vadd.f32 %v20273_v53, %v25127_v46  ;;  %v13666_v12 = vpop.f32.mrb[67].mxu0 }
 0xe80   : > { %v13892_v30 = vadd.f32 %v13860_v25, %v13828_v8  ;;  %v13829_v57 = vadd.f32 %v25127_v46, %v13666_v12 }
 0xe81   : > { %13926 = vst.msk [vmem:[#allocation2 + $0x48] sm:$0xff] %vm280_vm2, %v13894_v18  ;;  %v13895_v27 = vadd.f32 %v13863_v2, %v13831_v29  ;;  %v13872_v18 = vld [vmem:[#allocation2 + $0xe8] sm:$0xff] }
 0xe82   : > { %13924 = vst.msk [vmem:[#allocation2 + $0x28] sm:$0xff] %vm280_vm2, %v13892_v30  ;;  %v13893_v50 = vadd.f32 %v13861_v56, %v13829_v57  ;;  %v13875_v30 = vld [vmem:[#allocation2 + $0x110] sm:$0xff] }
 0xe83   : > { %13927 = vst.msk [vmem:[#allocation2 + $0x50] sm:$0xff] %vm280_vm2, %v13895_v27  ;;  %v13873_v27 = vld [vmem:[#allocation2 + $0xf0] sm:$0xff] }
 0xe84   : > { %13925 = vst.msk [vmem:[#allocation2 + $0x30] sm:$0xff] %vm280_vm2, %v13893_v50  ;;  %v20276_v42 = vpop.f32.mrb[68].mxu0 }
 0xe85   : > { %v13834_v3 = vadd.f32 %v20276_v42, %v25127_v46  ;;  %v13679_v1 = vpop.f32.mrb[69].mxu0 }
 0xe86   : > { %v13832_v23 = vadd.f32 %v25127_v46, %v13679_v1  ;;  %v20277_v28 = vpop.f32.mrb[70].mxu0 }
 0xe87   : > { %v13898_v6 = vadd.f32 %v13866_v51, %v13834_v3  ;;  %v13835_v21 = vadd.f32 %v20277_v28, %v25127_v46  ;;  %v13682_v10 = vpop.f32.mrb[71].mxu0 }
 0xe88   : > { %v13896_v36 = vadd.f32 %v13864_v34, %v13832_v23  ;;  %v13833_v58 = vadd.f32 %v25127_v46, %v13682_v10  ;;  %v14010_v45 = vld [vmem:[#allocation2 + $0x48] sm:$0xff] }
 0xe89   : > { %13930 = vst.msk [vmem:[#allocation2 + $0x88] sm:$0xff] %vm280_vm2, %v13898_v6  ;;  %v13899_v63 = vadd.f32 %v13867_v20, %v13835_v21  ;;  %v14008_v32 = vld [vmem:[#allocation2 + $0x28] sm:$0xff] }
 0xe8a   : > { %13928 = vst.msk [vmem:[#allocation2 + $0x68] sm:$0xff] %vm280_vm2, %v13896_v36  ;;  %v13897_v31 = vadd.f32 %v13865_v44, %v13833_v58  ;;  %v14011_v13 = vld [vmem:[#allocation2 + $0x50] sm:$0xff]  ;;  %v13878_v21 = vld [vmem:[#allocation2 + $0x148] sm:$0xff] }
 0xe8b   : > { %13931 = vst.msk [vmem:[#allocation2 + $0x90] sm:$0xff] %vm280_vm2, %v13899_v63  ;;  %v14009_v35 = vld [vmem:[#allocation2 + $0x30] sm:$0xff]  ;;  %v25149_v55 = vpack.c.bf16 %v14011_v13, %v14010_v45  ;;  %v13876_v58 = vld [vmem:[#allocation2 + $0x128] sm:$0xff] }
 0xe8c   : > { %13929 = vst.msk [vmem:[#allocation2 + $0x70] sm:$0xff] %vm280_vm2, %v13897_v31  ;;  %v20280_v62 = vpop.f32.mrb[72].mxu0  ;;  %v25145_v0 = vpack.c.bf16 %v14009_v35, %v14008_v32  ;;  %v13879_v13 = vld [vmem:[#allocation2 + $0x150] sm:$0xff] }
 0xe8d   : > { %v13838_v4 = vadd.f32 %v20280_v62, %v25127_v46  ;;  %v13695_v26 = vpop.f32.mrb[73].mxu0  ;;  %v13877_v62 = vld [vmem:[#allocation2 + $0x130] sm:$0xff] }
 0xe8e   : > { %v13836_v15 = vadd.f32 %v25127_v46, %v13695_v26  ;;  %v20281_v11 = vpop.f32.mrb[74].mxu0  ;;  %20305 = vmatmul.mubr.msk.bf16.vlgmr.msra.gmra.mrb[64].mxu1 %vm280_vm2, %v25145_v0 }
 0xe8f   : > { %v13902_v24 = vadd.f32 %v13870_v47, %v13838_v4  ;;  %v13839_v17 = vadd.f32 %v20281_v11, %v25127_v46  ;;  %20337 = vmatpush3.bf16.msra.mxu1 %v14317_v52  ;;  %v13698_v41 = vpop.f32.mrb[75].mxu0  ;;  %20308 = vmatprep.mubr.msk.bf16.mxu1 %vm280_vm2, %v25149_v55 }
 0xe90   : > { %v13900_v14 = vadd.f32 %v13868_v49, %v13836_v15  ;;  %v13837_v39 = vadd.f32 %v25127_v46, %v13698_v41  ;;  %22191 = vmatprep.subr.msk.bf16.mxu1 %vm3294_vm3, %v25154_v59  ;;  %v14014_v60 = vld [vmem:[#allocation2 + $0x88] sm:$0xff] }
 0xe91   : > { %13934 = vst.msk [vmem:[#allocation2 + $0xc8] sm:$0xff] %vm280_vm2, %v13902_v24  ;;  %v13903_v33 = vadd.f32 %v13871_v40, %v13839_v17  ;;  %v14012_v61 = vld [vmem:[#allocation2 + $0x68] sm:$0xff] }
 0xe92   : > { %13932 = vst.msk [vmem:[#allocation2 + $0xa8] sm:$0xff] %vm280_vm2, %v13900_v14  ;;  %v13901_v48 = vadd.f32 %v13869_v22, %v13837_v39  ;;  %v14015_v43 = vld [vmem:[#allocation2 + $0x90] sm:$0xff]  ;;  %v13882_v41 = vld [vmem:[#allocation2 + $0x188] sm:$0xff] }
 0xe93   : > { %13935 = vst.msk [vmem:[#allocation2 + $0xd0] sm:$0xff] %vm280_vm2, %v13903_v33  ;;  %v14013_v7 = vld [vmem:[#allocation2 + $0x70] sm:$0xff]  ;;  %v25172_v54 = vpack.c.bf16 %v14015_v43, %v14014_v60  ;;  %v13880_v33 = vld [vmem:[#allocation2 + $0x168] sm:$0xff] }
 0xe94   : > { %13933 = vst.msk [vmem:[#allocation2 + $0xb0] sm:$0xff] %vm280_vm2, %v13901_v48  ;;  %v20284_v16 = vpop.f32.mrb[76].mxu0  ;;  %v25169_v37 = vpack.c.bf16 %v14013_v7, %v14012_v61  ;;  %v13883_v61 = vld [vmem:[#allocation2 + $0x190] sm:$0xff] }
 0xe95   : > { %v13842_v5 = vadd.f32 %v20284_v16, %v25127_v46  ;;  %v13711_v19 = vpop.f32.mrb[77].mxu0  ;;  %v13881_v60 = vld [vmem:[#allocation2 + $0x170] sm:$0xff] }
 0xe96   : > { %v13840_v38 = vadd.f32 %v25127_v46, %v13711_v19  ;;  %v20285_v8 = vpop.f32.mrb[78].mxu0  ;;  %20309 = vmatmul.mubr.msk.bf16.gmra.mrb[68].mxu1 %vm280_vm2, %v25169_v37 }
 0xe97   : > { %v13906_v53 = vadd.f32 %v13874_v9, %v13842_v5  ;;  %v13843_v25 = vadd.f32 %v20285_v8, %v25127_v46  ;;  %v13714_v29 = vpop.f32.mrb[79].mxu0  ;;  %20312 = vmatprep.mubr.msk.bf16.mxu1 %vm280_vm2, %v25172_v54 }
 0xe98   : > { %v13904_v12 = vadd.f32 %v13872_v18, %v13840_v38  ;;  %v13841_v2 = vadd.f32 %v25127_v46, %v13714_v29  ;;  %v14018_v23 = vld [vmem:[#allocation2 + $0xc8] sm:$0xff] }
 0xe99   : > { %13938 = vst.msk [vmem:[#allocation2 + $0x108] sm:$0xff] %vm280_vm2, %v13906_v53  ;;  %v13907_v57 = vadd.f32 %v13875_v30, %v13843_v25  ;;  %v14016_v42 = vld [vmem:[#allocation2 + $0xa8] sm:$0xff] }
 0xe9a   : > { %13936 = vst.msk [vmem:[#allocation2 + $0xe8] sm:$0xff] %vm280_vm2, %v13904_v12  ;;  %v13905_v56 = vadd.f32 %v13873_v27, %v13841_v2  ;;  %v14019_v50 = vld [vmem:[#allocation2 + $0xd0] sm:$0xff]  ;;  %v13886_v30 = vld [vmem:[#allocation2 + $0x1c8] sm:$0xff] }
 0xe9b   : > { %13939 = vst.msk [vmem:[#allocation2 + $0x110] sm:$0xff] %vm280_vm2, %v13907_v57  ;;  %v14017_v3 = vld [vmem:[#allocation2 + $0xb0] sm:$0xff]  ;;  %v25188_v34 = vpack.c.bf16 %v14019_v50, %v14018_v23 }
 0xe9c   : > { %13937 = vst.msk [vmem:[#allocation2 + $0xf0] sm:$0xff] %vm280_vm2, %v13905_v56  ;;  %v20288_v1 = vpop.f32.mrb[80].mxu0  ;;  %v25185_v51 = vpack.c.bf16 %v14017_v3, %v14016_v42  ;;  %v13884_v56 = vld [vmem:[#allocation2 + $0x1a8] sm:$0xff] }
 0xe9d   : > { %v13846_v28 = vadd.f32 %v20288_v1, %v25127_v46  ;;  %v13727_v6 = vpop.f32.mrb[81].mxu0  ;;  %v13887_v1 = vld [vmem:[#allocation2 + $0x1d0] sm:$0xff] }
 0xe9e   : > { %v13844_v10 = vadd.f32 %v25127_v46, %v13727_v6  ;;  %v20289_v36 = vpop.f32.mrb[82].mxu0  ;;  %20313 = vmatmul.mubr.msk.bf16.gmra.mrb[72].mxu1 %vm280_vm2, %v25185_v51  ;;  %v13885_v6 = vld [vmem:[#allocation2 + $0x1b0] sm:$0xff] }
 0xe9f   : > { %v13910_v20 = vadd.f32 %v13878_v21, %v13846_v28  ;;  %v13847_v63 = vadd.f32 %v20289_v36, %v25127_v46  ;;  %v13730_v44 = vpop.f32.mrb[83].mxu0  ;;  %20316 = vmatprep.mubr.msk.bf16.mxu1 %vm280_vm2, %v25188_v34 }
 0xea0   : > { %v13908_v31 = vadd.f32 %v13876_v58, %v13844_v10  ;;  %v13845_v32 = vadd.f32 %v25127_v46, %v13730_v44  ;;  %v14022_v11 = vld [vmem:[#allocation2 + $0x108] sm:$0xff] }
 0xea1   : > { %13942 = vst.msk [vmem:[#allocation2 + $0x148] sm:$0xff] %vm280_vm2, %v13910_v20  ;;  %v13911_v35 = vadd.f32 %v13879_v13, %v13847_v63  ;;  %v14020_v4 = vld [vmem:[#allocation2 + $0xe8] sm:$0xff] }
 0xea2   : > { %13940 = vst.msk [vmem:[#allocation2 + $0x128] sm:$0xff] %vm280_vm2, %v13908_v31  ;;  %v13909_v52 = vadd.f32 %v13877_v62, %v13845_v32  ;;  %v14023_v45 = vld [vmem:[#allocation2 + $0x110] sm:$0xff] }
 0xea3   : > { %13943 = vst.msk [vmem:[#allocation2 + $0x150] sm:$0xff] %vm280_vm2, %v13911_v35  ;;  %v14021_v26 = vld [vmem:[#allocation2 + $0xf0] sm:$0xff]  ;;  %v25204_v17 = vpack.c.bf16 %v14023_v45, %v14022_v11  ;;  %v13890_v35 = vld [vmem:[#allocation2 + $0x208] sm:$0xff] }
 0xea4   : > { %13941 = vst.msk [vmem:[#allocation2 + $0x130] sm:$0xff] %vm280_vm2, %v13909_v52  ;;  %v20292_v47 = vpop.f32.mrb[84].mxu0  ;;  %v25201_v15 = vpack.c.bf16 %v14021_v26, %v14020_v4  ;;  %v13888_v4 = vld [vmem:[#allocation2 + $0x1e8] sm:$0xff] }
 0xea5   : > { %v13850_v24 = vadd.f32 %v20292_v47, %v25127_v46  ;;  %v13743_v49 = vpop.f32.mrb[85].mxu0 }
 0xea6   : > { %v13848_v14 = vadd.f32 %v25127_v46, %v13743_v49  ;;  %v20293_v40 = vpop.f32.mrb[86].mxu0  ;;  %20317 = vmatmul.mubr.msk.bf16.gmra.mrb[76].mxu1 %vm280_vm2, %v25201_v15 }
 0xea7   : > { %v13914_v39 = vadd.f32 %v13882_v41, %v13850_v24  ;;  %v13851_v22 = vadd.f32 %v20293_v40, %v25127_v46  ;;  %v13746_v48 = vpop.f32.mrb[87].mxu0  ;;  %20320 = vmatprep.mubr.msk.bf16.mxu1 %vm280_vm2, %v25204_v17  ;;  %v13891_v24 = vld [vmem:[#allocation2 + $0x210] sm:$0xff] }
 0xea8   : > { %v13912_v43 = vadd.f32 %v13880_v33, %v13848_v14  ;;  %v13849_v7 = vadd.f32 %v25127_v46, %v13746_v48  ;;  %v14026_v18 = vld [vmem:[#allocation2 + $0x148] sm:$0xff]  ;;  %v13889_v14 = vld [vmem:[#allocation2 + $0x1f0] sm:$0xff] }
 0xea9   : > { %13946 = vst.msk [vmem:[#allocation2 + $0x188] sm:$0xff] %vm280_vm2, %v13914_v39  ;;  %v13915_v16 = vadd.f32 %v13883_v61, %v13851_v22  ;;  %v14024_v9 = vld [vmem:[#allocation2 + $0x128] sm:$0xff] }
 0xeaa   : > { %13944 = vst.msk [vmem:[#allocation2 + $0x168] sm:$0xff] %vm280_vm2, %v13912_v43  ;;  %v13913_v5 = vadd.f32 %v13881_v60, %v13849_v7  ;;  %v14027_v19 = vld [vmem:[#allocation2 + $0x150] sm:$0xff] }
 0xeab   : > { %13947 = vst.msk [vmem:[#allocation2 + $0x190] sm:$0xff] %vm280_vm2, %v13915_v16  ;;  %v14025_v38 = vld [vmem:[#allocation2 + $0x130] sm:$0xff]  ;;  %v25220_v12 = vpack.c.bf16 %v14027_v19, %v14026_v18 }
 0xeac   : > { %13945 = vst.msk [vmem:[#allocation2 + $0x170] sm:$0xff] %vm280_vm2, %v13913_v5  ;;  %v20296_v8 = vpop.f32.mrb[88].mxu0  ;;  %v25217_v53 = vpack.c.bf16 %v14025_v38, %v14024_v9  ;;  %v13958_v7 = vld [vmem:[#allocation2 + $0xf] sm:$0xff] }
 0xead   : > { %v13854_v25 = vadd.f32 %v20296_v8, %v25127_v46  ;;  %v13759_v29 = vpop.f32.mrb[89].mxu0  ;;  %v13960_v9 = vld [vmem:[#allocation2 + $0x2f] sm:$0xff]  ;;  %v13959_v8 = vld [vmem:[#allocation2 + $0x27] sm:$0xff] }
 0xeae   : > { %v13852_v2 = vadd.f32 %v25127_v46, %v13759_v29  ;;  %v20297_v57 = vpop.f32.mrb[90].mxu0  ;;  %20321 = vmatmul.mubr.msk.bf16.gmra.mrb[80].mxu1 %vm280_vm2, %v25217_v53  ;;  %v13962_v38 = vld [vmem:[#allocation2 + $0x4f] sm:$0xff]  ;;  %v25262_v18 = vpack.c.bf16 %v13960_v9, %v13959_v8  ;;  %v13961_v29 = vld [vmem:[#allocation2 + $0x47] sm:$0xff] }
 0xeaf   : > { %v13918_v27 = vadd.f32 %v13886_v30, %v13854_v25  ;;  %v13855_v50 = vadd.f32 %v20297_v57, %v25127_v46  ;;  %v13762_v42 = vpop.f32.mrb[91].mxu0  ;;  %20324 = vmatprep.mubr.msk.bf16.mxu1 %vm280_vm2, %v25220_v12  ;;  %v14579_v25 = vsel %vm3294_vm3, %v25154_v59, 0  ;;  %v25266_v30 = vpack.c.bf16 %v13962_v38, %v13961_v29  ;;  %v13964_v57 = vld [vmem:[#allocation2 + $0x6f] sm:$0xff] }
 0xeb0   : > { %v13916_v3 = vadd.f32 %v13884_v56, %v13852_v2  ;;  %v13853_v23 = vadd.f32 %v25127_v46, %v13762_v42  ;;  %v14030_v44 = vld [vmem:[#allocation2 + $0x188] sm:$0xff]  ;;  %v14483_v8 = vld [vmem:[#allocation2 + $0x31] sm:$0xff] }
 0xeb1   : > { %13950 = vst.msk [vmem:[#allocation2 + $0x1c8] sm:$0xff] %vm280_vm2, %v13918_v27  ;;  %v13919_v28 = vadd.f32 %v13887_v1, %v13855_v50  ;;  %v14028_v36 = vld [vmem:[#allocation2 + $0x168] sm:$0xff]  ;;  %v14485_v29 = vld [vmem:[#allocation2 + $0x51] sm:$0xff] }
 0xeb2   : > { %13948 = vst.msk [vmem:[#allocation2 + $0x1a8] sm:$0xff] %vm280_vm2, %v13916_v3  ;;  %v13917_v21 = vadd.f32 %v13885_v6, %v13853_v23  ;;  %v14031_v10 = vld [vmem:[#allocation2 + $0x190] sm:$0xff]  ;;  %v25271_v2 = vld [vmem:[%s25723_s5 + $0xc] sm:$0xf] }
 0xeb3   : > { %13951 = vst.msk [vmem:[#allocation2 + $0x1d0] sm:$0xff] %vm280_vm2, %v13919_v28  ;;  %v14029_v20 = vld [vmem:[#allocation2 + $0x170] sm:$0xff]  ;;  %v25236_v32 = vpack.c.bf16 %v14031_v10, %v14030_v44  ;;  %v13963_v27 = vld [vmem:[#allocation2 + $0x67] sm:$0xff] }
 0xeb4   : > { %13949 = vst.msk [vmem:[#allocation2 + $0x1b0] sm:$0xff] %vm280_vm2, %v13917_v21  ;;  %v20300_v58 = vpop.f32.mrb[92].mxu0  ;;  %v25233_v63 = vpack.c.bf16 %v14029_v20, %v14028_v36  ;;  %v13966_v59 = vld [vmem:[#allocation2 + $0x8f] sm:$0xff]  ;;  %v25279_v56 = vpack.c.bf16 %v13964_v57, %v13963_v27  ;;  %v13965_v50 = vld [vmem:[#allocation2 + $0x87] sm:$0xff] }
 0xeb5   : > { %v13858_v31 = vadd.f32 %v20300_v58, %v25127_v46  ;;  %v13775_v13 = vpop.f32.mrb[93].mxu0  ;;  %v25281_v42 = vpack.c.bf16 %v13966_v59, %v13965_v50  ;;  %v13968_v3 = vld [vmem:[#allocation2 + $0xaf] sm:$0xff]  ;;  %v13967_v23 = vld [vmem:[#allocation2 + $0xa7] sm:$0xff]  ;;  %v14873_v59 = vsel %vm3294_vm3, %v25271_v2, 0 }
 0xeb6   : > { %v13856_v62 = vadd.f32 %v25127_v46, %v13775_v13  ;;  %v20301_v52 = vpop.f32.mrb[94].mxu0  ;;  %20325 = vmatmul.mubr.msk.bf16.gmra.mrb[84].mxu1 %vm280_vm2, %v25233_v63  ;;  %v13970_v1 = vld [vmem:[#allocation2 + $0xcf] sm:$0xff]  ;;  %v25287_v28 = vpack.c.bf16 %v13968_v3, %v13967_v23  ;;  %v13969_v6 = vld [vmem:[#allocation2 + $0xc7] sm:$0xff] }
 0xeb7   : > { %v13922_v45 = vadd.f32 %v13890_v35, %v13858_v31  ;;  %v13859_v26 = vadd.f32 %v20301_v52, %v25127_v46  ;;  %v13778_v47 = vpop.f32.mrb[95].mxu0  ;;  %20328 = vmatprep.mubr.msk.bf16.mxu1 %vm280_vm2, %v25236_v32  ;;  %v25289_v21 = vpack.c.bf16 %v13970_v1, %v13969_v6  ;;  %v13972_v10 = vld [vmem:[#allocation2 + $0xef] sm:$0xff]  ;;  %v13971_v20 = vld [vmem:[#allocation2 + $0xe7] sm:$0xff] }
 0xeb8   : > { %v13920_v11 = vadd.f32 %v13888_v4, %v13856_v62  ;;  %v13857_v49 = vadd.f32 %v25127_v46, %v13778_v47  ;;  %v14034_v43 = vld [vmem:[#allocation2 + $0x1c8] sm:$0xff]  ;;  %v25295_v58 = vpack.c.bf16 %v13972_v10, %v13971_v20  ;;  %v17765_v50 = vld [vmem:[%s25723_s5 + $0x10] sm:$0xf] }
 0xeb9   : > { %13954 = vst.msk [vmem:[#allocation2 + $0x208] sm:$0xff] %vm280_vm2, %v13922_v45  ;;  %v13923_v41 = vadd.f32 %v13891_v24, %v13859_v26  ;;  %v14032_v33 = vld [vmem:[#allocation2 + $0x1a8] sm:$0xff]  ;;  %v14487_v1 = vld [vmem:[#allocation2 + $0x71] sm:$0xff] }
 0xeba   : > { %13952 = vst.msk [vmem:[#allocation2 + $0x1e8] sm:$0xff] %vm280_vm2, %v13920_v11  ;;  %v13921_v40 = vadd.f32 %v13889_v14, %v13857_v49  ;;  %v14035_v39 = vld [vmem:[#allocation2 + $0x1d0] sm:$0xff]  ;;  %v13957_v46 = vld [vmem:[#allocation2 + $0x7] sm:$0xff] }
 0xebb   : > { %13955 = vst.msk [vmem:[#allocation2 + $0x210] sm:$0xff] %vm280_vm2, %v13923_v41  ;;  %v14033_v22 = vld [vmem:[#allocation2 + $0x1b0] sm:$0xff]  ;;  %v25251_v61 = vpack.c.bf16 %v14035_v39, %v14034_v43  ;;  %v13989_v5 = vpack.c.bf16 %v13958_v7, %v13957_v46  ;;  %v13973_v44 = vld [vmem:[#allocation2 + $0x107] sm:$0xff] }
 0xebc   : > { %13953 = vst.msk [vmem:[#allocation2 + $0x1f0] sm:$0xff] %vm280_vm2, %v13921_v40  ;;  %v25249_v48 = vpack.c.bf16 %v14033_v22, %v14032_v33  ;;  %v13974_v36 = vld [vmem:[#allocation2 + $0x10f] sm:$0xff]  ;;  %v13975_v62 = vld [vmem:[#allocation2 + $0x127] sm:$0xff] }
 0xebd   : > { %v25297_v31 = vpack.c.bf16 %v13974_v36, %v13973_v44  ;;  %v13976_v13 = vld [vmem:[#allocation2 + $0x12f] sm:$0xff]  ;;  %v13977_v45 = vld [vmem:[#allocation2 + $0x147] sm:$0xff] }
 0xebe   : > { %20329 = vmatmul.mubr.msk.bf16.gmra.mrb[88].mxu1 %vm280_vm2, %v25249_v48  ;;  %v13978_v35 = vld [vmem:[#allocation2 + $0x14f] sm:$0xff]  ;;  %v25303_v52 = vpack.c.bf16 %v13976_v13, %v13975_v62  ;;  %v13979_v11 = vld [vmem:[#allocation2 + $0x167] sm:$0xff] }
 0xebf   : > { %20332 = vmatprep.mubr.msk.bf16.mxu1 %vm280_vm2, %v25251_v61  ;;  %v25305_v4 = vpack.c.bf16 %v13978_v35, %v13977_v45  ;;  %v13980_v26 = vld [vmem:[#allocation2 + $0x16f] sm:$0xff]  ;;  %v13981_v49 = vld [vmem:[#allocation2 + $0x187] sm:$0xff] }
 0xec0   : > { %v13982_v47 = vld [vmem:[#allocation2 + $0x18f] sm:$0xff]  ;;  %v25311_v24 = vpack.c.bf16 %v13980_v26, %v13979_v11  ;;  %v13983_v39 = vld [vmem:[#allocation2 + $0x1a7] sm:$0xff] }
 0xec1   : > { %v14036_v16 = vld [vmem:[#allocation2 + $0x1e8] sm:$0xff]  ;;  %v25313_v41 = vpack.c.bf16 %v13982_v47, %v13981_v49  ;;  %v14481_v7 = vld [vmem:[#allocation2 + $0x11] sm:$0xff] }
 0xec2   : > { %v13984_v14 = vld [vmem:[#allocation2 + $0x1af] sm:$0xff]  ;;  %v13985_v22 = vld [vmem:[#allocation2 + $0x1c7] sm:$0xff] }
 0xec3   : > { %v14037_v60 = vld [vmem:[#allocation2 + $0x1f0] sm:$0xff]  ;;  %v25319_v33 = vpack.c.bf16 %v13984_v14, %v13983_v39 }
 0xec4   : > { %v25257_v19 = vpack.c.bf16 %v14037_v60, %v14036_v16  ;;  %v13986_v40 = vld [vmem:[#allocation2 + $0x1cf] sm:$0xff]  ;;  %v13987_v60 = vld [vmem:[#allocation2 + $0x1e7] sm:$0xff] }
 0xec5   : > { %v25321_v43 = vpack.c.bf16 %v13986_v40, %v13985_v22  ;;  %v14480_v46 = vld [vmem:[#allocation2 + $0x9] sm:$0xff]  ;;  %v14489_v6 = vld [vmem:[#allocation2 + $0x91] sm:$0xff] }
 0xec6   : > { %20333 = vmatmul.mubr.msk.bf16.gmra.mrb[92].mxu1 %vm280_vm2, %v25257_v19  ;;  %v13988_v16 = vld [vmem:[#allocation2 + $0x1ef] sm:$0xff] }
 0xec7   : > { %20338 = vmatprep.mubr.msk.bf16.mxu1 %vm280_vm2, %v13989_v5  ;;  %v14512_v5 = vpack.c.bf16 %v14481_v7, %v14480_v46  ;;  %v25327_v9 = vpack.c.bf16 %v13988_v16, %v13987_v60  ;;  %v14482_v38 = vld [vmem:[#allocation2 + $0x29] sm:$0xff]  ;;  %v14491_v20 = vld [vmem:[#allocation2 + $0xb1] sm:$0xff] }
 0xec8   : > { %v25332_v57 = vpack.c.bf16 %v14483_v8, %v14482_v38  ;;  %v14486_v3 = vld [vmem:[#allocation2 + $0x69] sm:$0xff]  ;;  %v14493_v13 = vld [vmem:[#allocation2 + $0xd1] sm:$0xff] }
 0xec9   : > { %v14488_v23 = vld [vmem:[#allocation2 + $0x89] sm:$0xff]  ;;  %v14495_v26 = vld [vmem:[#allocation2 + $0xf1] sm:$0xff] }
 0xeca   : > { %v25348_v10 = vpack.c.bf16 %v14489_v6, %v14488_v23  ;;  %v14490_v36 = vld [vmem:[#allocation2 + $0xa9] sm:$0xff]  ;;  %v14497_v11 = vld [vmem:[#allocation2 + $0x111] sm:$0xff] }
 0xecb   : > { %v14492_v44 = vld [vmem:[#allocation2 + $0xc9] sm:$0xff]  ;;  %v25354_v35 = vpack.c.bf16 %v14491_v20, %v14490_v36  ;;  %v14499_v39 = vld [vmem:[#allocation2 + $0x131] sm:$0xff] }
 0xecc   : > { %v25356_v62 = vpack.c.bf16 %v14493_v13, %v14492_v44  ;;  %v14494_v45 = vld [vmem:[#allocation2 + $0xe9] sm:$0xff]  ;;  %v14501_v46 = vld [vmem:[#allocation2 + $0x151] sm:$0xff] }
 0xecd   : > { %v14496_v47 = vld [vmem:[#allocation2 + $0x109] sm:$0xff]  ;;  %v25362_v49 = vpack.c.bf16 %v14495_v26, %v14494_v45  ;;  %v14505_v8 = vld [vmem:[#allocation2 + $0x191] sm:$0xff]  ;;  %v15167_v45 = vsel %vm3294_vm3, %v17765_v50, 0 }
 0xece   : > { %20339 = vmatmul.mubr.msk.bf16.vlgmr.msra.gmra.mrb[64].mxu1 %vm280_vm2, %v25262_v18  ;;  %v25364_v14 = vpack.c.bf16 %v14497_v11, %v14496_v47  ;;  %v14498_v40 = vld [vmem:[#allocation2 + $0x129] sm:$0xff]  ;;  %v14509_v23 = vld [vmem:[#allocation2 + $0x1d1] sm:$0xff] }
 0xecf   : > { %20371 = vmatpush3.bf16.msra.mxu1 %v14579_v25  ;;  %20342 = vmatprep.mubr.msk.bf16.mxu1 %vm280_vm2, %v25266_v30  ;;  %v14484_v25 = vld [vmem:[#allocation2 + $0x49] sm:$0xff]  ;;  %v25370_v7 = vpack.c.bf16 %v14499_v39, %v14498_v40  ;;  %v14511_v44 = vld [vmem:[#allocation2 + $0x1f1] sm:$0xff] }
 0xed0   : > { %22192 = vmatprep.subr.msk.bf16.mxu1 %vm3294_vm3, %v25271_v2  ;;  %v25336_v27 = vpack.c.bf16 %v14485_v29, %v14484_v25  ;;  %v25346_v2 = vpack.c.bf16 %v14487_v1, %v14486_v3  ;;  %v14500_v22 = vld [vmem:[#allocation2 + $0x149] sm:$0xff]  ;;  %v14507_v3 = vld [vmem:[#allocation2 + $0x1b1] sm:$0xff] }
 0xed1   : > { %v25372_v16 = vpack.c.bf16 %v14501_v46, %v14500_v22  ;;  %v14502_v60 = vld [vmem:[#allocation2 + $0x169] sm:$0xff]  ;;  %v17782_v26 = vld [vmem:[%s25723_s5 + $0x14] sm:$0xf]  ;;  %v17799_v40 = vld [vmem:[%s25723_s5 + $0x18] sm:$0xf] }
 0xed2   : > { %v14504_v38 = vld [vmem:[#allocation2 + $0x189] sm:$0xff]  ;;  %v15461_v11 = vsel %vm3294_vm3, %v17782_v26, 0  ;;  %v17833_v22 = vld [vmem:[%s25723_s5 + $0x20] sm:$0xf] }
 0xed3   : > { %v25380_v29 = vpack.c.bf16 %v14505_v8, %v14504_v38  ;;  %v14508_v1 = vld [vmem:[#allocation2 + $0x1c9] sm:$0xff] }
 0xed4   : > { %v25388_v36 = vpack.c.bf16 %v14509_v23, %v14508_v1  ;;  %v14510_v20 = vld [vmem:[#allocation2 + $0x1e9] sm:$0xff] }
 0xed5   : > { %v25394_v13 = vpack.c.bf16 %v14511_v44, %v14510_v20  ;;  %v15959_v46 = vld [vmem:[#allocation2 + $0xd0] sm:$0xff]  ;;  %v15958_v38 = vld [vmem:[#allocation2 + $0xc8] sm:$0xff] }
 0xed6   : > { %20343 = vmatmul.mubr.msk.bf16.gmra.mrb[68].mxu1 %vm280_vm2, %v25279_v56  ;;  %v15986_v8 = vpack.c.bf16 %v15959_v46, %v15958_v38 }
 0xed7   : > { %20346 = vmatprep.mubr.msk.bf16.mxu1 %vm280_vm2, %v25281_v42 }
 0xede   : > { %20347 = vmatmul.mubr.msk.bf16.gmra.mrb[72].mxu1 %vm280_vm2, %v25287_v28 }
 0xedf   : > { %20350 = vmatprep.mubr.msk.bf16.mxu1 %vm280_vm2, %v25289_v21 }
 0xee6   : > { %20351 = vmatmul.mubr.msk.bf16.gmra.mrb[76].mxu1 %vm280_vm2, %v25295_v58 }
 0xee7   : > { %20354 = vmatprep.mubr.msk.bf16.mxu1 %vm280_vm2, %v25297_v31 }
 0xeee   : > { %20355 = vmatmul.mubr.msk.bf16.gmra.mrb[80].mxu1 %vm280_vm2, %v25303_v52 }
 0xeef   : > { %20358 = vmatprep.mubr.msk.bf16.mxu1 %vm280_vm2, %v25305_v4 }
 0xef6   : > { %20359 = vmatmul.mubr.msk.bf16.gmra.mrb[84].mxu1 %vm280_vm2, %v25311_v24 }
 0xef7   : > { %20362 = vmatprep.mubr.msk.bf16.mxu1 %vm280_vm2, %v25313_v41 }
 0xefe   : > { %20363 = vmatmul.mubr.msk.bf16.gmra.mrb[88].mxu1 %vm280_vm2, %v25319_v33 }
 0xeff   : > { %20366 = vmatprep.mubr.msk.bf16.mxu1 %vm280_vm2, %v25321_v43 }
 0xf06   : > { %20367 = vmatmul.mubr.msk.bf16.gmra.mrb[92].mxu1 %vm280_vm2, %v25327_v9 }
 0xf07   : > { %20372 = vmatprep.mubr.msk.bf16.mxu1 %vm280_vm2, %v14512_v5  ;;  %v14503_v5 = vld [vmem:[#allocation2 + $0x171] sm:$0xff] }
 0xf08   : > { %v25378_v25 = vpack.c.bf16 %v14503_v5, %v14502_v60  ;;  %v15956_v60 = vld [vmem:[#allocation2 + $0xa8] sm:$0xff] }
 0xf0e   : > { %20373 = vmatmul.mubr.msk.bf16.vlgmr.msra.gmra.mrb[64].mxu1 %vm280_vm2, %v25332_v57 }
 0xf0f   : > { %20405 = vmatpush3.bf16.msra.mxu1 %v14873_v59  ;;  %20376 = vmatprep.mubr.msk.bf16.mxu1 %vm280_vm2, %v25336_v27  ;;  %v14506_v59 = vld [vmem:[#allocation2 + $0x1a9] sm:$0xff] }
 0xf10   : > { %22193 = vmatprep.subr.msk.bf16.mxu1 %vm3294_vm3, %v17765_v50  ;;  %v25386_v6 = vpack.c.bf16 %v14507_v3, %v14506_v59  ;;  %v14804_v50 = vld [vmem:[#allocation2 + $0x207] sm:$0xff]  ;;  %v15961_v59 = vld [vmem:[#allocation2 + $0xf0] sm:$0xff] }
 0xf11   : > { %v15960_v3 = vld [vmem:[#allocation2 + $0xe8] sm:$0xff] }
 0xf12   : > { %v15987_v1 = vpack.c.bf16 %v15961_v59, %v15960_v3  ;;  %v16588_v3 = vld [vmem:[#allocation4 + $0x60] sm:$0xff] }
 0xf16   : > { %20377 = vmatmul.mubr.msk.bf16.gmra.mrb[68].mxu1 %vm280_vm2, %v25346_v2 }
 0xf17   : > { %20380 = vmatprep.mubr.msk.bf16.mxu1 %vm280_vm2, %v25348_v10 }
 0xf1e   : > { %20381 = vmatmul.mubr.msk.bf16.gmra.mrb[72].mxu1 %vm280_vm2, %v25354_v35 }
 0xf1f   : > { %20384 = vmatprep.mubr.msk.bf16.mxu1 %vm280_vm2, %v25356_v62 }
 0xf26   : > { %20385 = vmatmul.mubr.msk.bf16.gmra.mrb[76].mxu1 %vm280_vm2, %v25362_v49 }
 0xf27   : > { %20388 = vmatprep.mubr.msk.bf16.mxu1 %vm280_vm2, %v25364_v14 }
 0xf2e   : > { %20389 = vmatmul.mubr.msk.bf16.gmra.mrb[80].mxu1 %vm280_vm2, %v25370_v7 }
 0xf2f   : > { %20392 = vmatprep.mubr.msk.bf16.mxu1 %vm280_vm2, %v25372_v16 }
 0xf36   : > { %20393 = vmatmul.mubr.msk.bf16.gmra.mrb[84].mxu1 %vm280_vm2, %v25378_v25 }
 0xf37   : > { %20396 = vmatprep.mubr.msk.bf16.mxu1 %vm280_vm2, %v25380_v29 }
 0xf3e   : > { %20397 = vmatmul.mubr.msk.bf16.gmra.mrb[88].mxu1 %vm280_vm2, %v25386_v6 }
 0xf3f   : > { %20400 = vmatprep.mubr.msk.bf16.mxu1 %vm280_vm2, %v25388_v36 }
 0xf46   : > { %20401 = vmatmul.mubr.msk.bf16.gmra.mrb[92].mxu1 %vm280_vm2, %v25394_v13 }
 0xf47   : > { %20406 = vmatprep.mubr.msk.bf16.mxu1 %vm280_vm2, %v25262_v18  ;;  %v14805_v18 = vld [vmem:[#allocation2 + $0x20f] sm:$0xff] }
 0xf48   : > { %v25433_v47 = vpack.c.bf16 %v14805_v18, %v14804_v50 }
 0xf4e   : > { %20407 = vmatmul.mubr.msk.bf16.vlgmr.msra.gmra.mrb[64].mxu1 %vm280_vm2, %v25266_v30 }
 0xf4f   : > { %20439 = vmatpush3.bf16.msra.mxu1 %v15167_v45  ;;  %20410 = vmatprep.mubr.msk.bf16.mxu1 %vm280_vm2, %v25279_v56 }
 0xf50   : > { %22194 = vmatprep.subr.msk.bf16.mxu1 %vm3294_vm3, %v17782_v26  ;;  %v16582_v26 = vld [vmem:[#allocation4 + $0x30] sm:$0xff] }
 0xf56   : > { %20411 = vmatmul.mubr.msk.bf16.gmra.mrb[68].mxu1 %vm280_vm2, %v25281_v42 }
 0xf57   : > { %20414 = vmatprep.mubr.msk.bf16.mxu1 %vm280_vm2, %v25287_v28 }
 0xf5e   : > { %20415 = vmatmul.mubr.msk.bf16.gmra.mrb[72].mxu1 %vm280_vm2, %v25289_v21 }
 0xf5f   : > { %20418 = vmatprep.mubr.msk.bf16.mxu1 %vm280_vm2, %v25295_v58 }
 0xf66   : > { %20419 = vmatmul.mubr.msk.bf16.gmra.mrb[76].mxu1 %vm280_vm2, %v25297_v31 }
 0xf67   : > { %20422 = vmatprep.mubr.msk.bf16.mxu1 %vm280_vm2, %v25303_v52 }
 0xf6e   : > { %20423 = vmatmul.mubr.msk.bf16.gmra.mrb[80].mxu1 %vm280_vm2, %v25305_v4 }
 0xf6f   : > { %20426 = vmatprep.mubr.msk.bf16.mxu1 %vm280_vm2, %v25311_v24 }
 0xf76   : > { %20427 = vmatmul.mubr.msk.bf16.gmra.mrb[84].mxu1 %vm280_vm2, %v25313_v41 }
 0xf77   : > { %20430 = vmatprep.mubr.msk.bf16.mxu1 %vm280_vm2, %v25319_v33 }
 0xf7e   : > { %20431 = vmatmul.mubr.msk.bf16.gmra.mrb[88].mxu1 %vm280_vm2, %v25321_v43 }
 0xf7f   : > { %20434 = vmatprep.mubr.msk.bf16.mxu1 %vm280_vm2, %v25327_v9 }
 0xf86   : > { %20435 = vmatmul.mubr.msk.bf16.gmra.mrb[92].mxu1 %vm280_vm2, %v25433_v47 }
 0xf87   : > { %20440 = vmatprep.mubr.msk.bf16.mxu1 %vm280_vm2, %v25145_v0  ;;  %v15099_v0 = vld [vmem:[#allocation2 + $0x210] sm:$0xff] }
 0xf8e   : > { %20441 = vmatmul.mubr.msk.bf16.vlgmr.msra.gmra.mrb[64].mxu1 %vm280_vm2, %v25149_v55  ;;  %v15098_v55 = vld [vmem:[#allocation2 + $0x208] sm:$0xff] }
 0xf8f   : > { %20473 = vmatpush3.bf16.msra.mxu1 %v15461_v11  ;;  %20444 = vmatprep.mubr.msk.bf16.mxu1 %vm280_vm2, %v25169_v37  ;;  %v25472_v37 = vpack.c.bf16 %v15099_v0, %v15098_v55  ;;  %v16580_v11 = vld [vmem:[#allocation4 + $0x20] sm:$0xff] }
 0xf90   : > { %22195 = vmatprep.subr.msk.bf16.mxu1 %vm3294_vm3, %v17799_v40 }
 0xf96   : > { %20445 = vmatmul.mubr.msk.bf16.gmra.mrb[68].mxu1 %vm280_vm2, %v25172_v54  ;;  %v15755_v54 = vsel %vm3294_vm3, %v17799_v40, 0 }
 0xf97   : > { %20448 = vmatprep.mubr.msk.bf16.mxu1 %vm280_vm2, %v25185_v51  ;;  %v17816_v51 = vld [vmem:[%s25723_s5 + $0x1c] sm:$0xf] }
 0xf98   : > { %v16049_v39 = vsel %vm3294_vm3, %v17816_v51, 0 }
 0xf9e   : > { %20449 = vmatmul.mubr.msk.bf16.gmra.mrb[72].mxu1 %vm280_vm2, %v25188_v34  ;;  %v15392_v34 = vld [vmem:[#allocation2 + $0x209] sm:$0xff] }
 0xf9f   : > { %20452 = vmatprep.mubr.msk.bf16.mxu1 %vm280_vm2, %v25201_v15  ;;  %v15393_v15 = vld [vmem:[#allocation2 + $0x211] sm:$0xff] }
 0xfa6   : > { %20453 = vmatmul.mubr.msk.bf16.gmra.mrb[76].mxu1 %vm280_vm2, %v25204_v17 }
 0xfa7   : > { %20456 = vmatprep.mubr.msk.bf16.mxu1 %vm280_vm2, %v25217_v53 }
 0xfae   : > { %20457 = vmatmul.mubr.msk.bf16.gmra.mrb[80].mxu1 %vm280_vm2, %v25220_v12 }
 0xfaf   : > { %20460 = vmatprep.mubr.msk.bf16.mxu1 %vm280_vm2, %v25233_v63 }
 0xfb6   : > { %20461 = vmatmul.mubr.msk.bf16.gmra.mrb[84].mxu1 %vm280_vm2, %v25236_v32 }
 0xfb7   : > { %20464 = vmatprep.mubr.msk.bf16.mxu1 %vm280_vm2, %v25249_v48 }
 0xfbe   : > { %20465 = vmatmul.mubr.msk.bf16.gmra.mrb[88].mxu1 %vm280_vm2, %v25251_v61 }
 0xfbf   : > { %20468 = vmatprep.mubr.msk.bf16.mxu1 %vm280_vm2, %v25257_v19 }
 0xfc6   : > { %20469 = vmatmul.mubr.msk.bf16.gmra.mrb[92].mxu1 %vm280_vm2, %v25472_v37 }
 0xfc7   : > { %20474 = vmatprep.mubr.msk.bf16.mxu1 %vm280_vm2, %v25332_v57  ;;  %v25511_v57 = vpack.c.bf16 %v15393_v15, %v15392_v34  ;;  %v16581_v34 = vld [vmem:[#allocation4 + $0x28] sm:$0xff] }
 0xfce   : > { %20475 = vmatmul.mubr.msk.bf16.vlgmr.msra.gmra.mrb[64].mxu1 %vm280_vm2, %v25336_v27 }
 0xfcf   : > { %20507 = vmatpush3.bf16.msra.mxu1 %v15755_v54  ;;  %20478 = vmatprep.mubr.msk.bf16.mxu1 %vm280_vm2, %v25346_v2 }
 0xfd0   : > { %22196 = vmatprep.subr.msk.bf16.mxu1 %vm3294_vm3, %v17816_v51 }
 0xfd6   : > { %20479 = vmatmul.mubr.msk.bf16.gmra.mrb[68].mxu1 %vm280_vm2, %v25348_v10 }
 0xfd7   : > { %20482 = vmatprep.mubr.msk.bf16.mxu1 %vm280_vm2, %v25354_v35 }
 0xfde   : > { %20483 = vmatmul.mubr.msk.bf16.gmra.mrb[72].mxu1 %vm280_vm2, %v25356_v62 }
 0xfdf   : > { %20486 = vmatprep.mubr.msk.bf16.mxu1 %vm280_vm2, %v25362_v49 }
 0xfe6   : > { %20487 = vmatmul.mubr.msk.bf16.gmra.mrb[76].mxu1 %vm280_vm2, %v25364_v14 }
 0xfe7   : > { %20490 = vmatprep.mubr.msk.bf16.mxu1 %vm280_vm2, %v25370_v7 }
 0xfee   : > { %20491 = vmatmul.mubr.msk.bf16.gmra.mrb[80].mxu1 %vm280_vm2, %v25372_v16 }
 0xfef   : > { %20494 = vmatprep.mubr.msk.bf16.mxu1 %vm280_vm2, %v25378_v25 }
 0xff6   : > { %20495 = vmatmul.mubr.msk.bf16.gmra.mrb[84].mxu1 %vm280_vm2, %v25380_v29 }
 0xff7   : > { %20498 = vmatprep.mubr.msk.bf16.mxu1 %vm280_vm2, %v25386_v6 }
 0xffe   : > { %20499 = vmatmul.mubr.msk.bf16.gmra.mrb[88].mxu1 %vm280_vm2, %v25388_v36 }
 0xfff   : > { %20502 = vmatprep.mubr.msk.bf16.mxu1 %vm280_vm2, %v25394_v13 }
0x1006   : > { %20503 = vmatmul.mubr.msk.bf16.gmra.mrb[92].mxu1 %vm280_vm2, %v25511_v57 }
0x1007   : > { %20508 = vmatprep.mubr.msk.bf16.mxu1 %vm280_vm2, %v25266_v30  ;;  %v15686_v30 = vld [vmem:[#allocation2 + $0x227] sm:$0xff] }
0x100e   : > { %20509 = vmatmul.mubr.msk.bf16.vlgmr.msra.gmra.mrb[64].mxu1 %vm280_vm2, %v25279_v56  ;;  %v15687_v56 = vld [vmem:[#allocation2 + $0x22f] sm:$0xff] }
0x100f   : > { %20541 = vmatpush3.bf16.msra.mxu1 %v16049_v39  ;;  %20512 = vmatprep.mubr.msk.bf16.mxu1 %vm280_vm2, %v25281_v42  ;;  %v15703_v42 = vpack.c.bf16 %v15687_v56, %v15686_v30  ;;  %v16586_v30 = vld [vmem:[#allocation4 + $0x50] sm:$0xff] }
0x1010   : > { %22197 = vmatprep.subr.msk.bf16.mxu1 %vm3294_vm3, %v17833_v22 }
0x1016   : > { %20513 = vmatmul.mubr.msk.bf16.gmra.mrb[68].mxu1 %vm280_vm2, %v25287_v28  ;;  %v15951_v28 = vld [vmem:[#allocation2 + $0x50] sm:$0xff] }
0x1017   : > { %20516 = vmatprep.mubr.msk.bf16.mxu1 %vm280_vm2, %v25289_v21  ;;  %v15950_v21 = vld [vmem:[#allocation2 + $0x48] sm:$0xff] }
0x101e   : > { %20517 = vmatmul.mubr.msk.bf16.gmra.mrb[72].mxu1 %vm280_vm2, %v25295_v58  ;;  %v15982_v58 = vpack.c.bf16 %v15951_v28, %v15950_v21  ;;  %v16584_v21 = vld [vmem:[#allocation4 + $0x40] sm:$0xff] }
0x101f   : > { %20520 = vmatprep.mubr.msk.bf16.mxu1 %vm280_vm2, %v25297_v31  ;;  %v15953_v31 = vld [vmem:[#allocation2 + $0x70] sm:$0xff] }
0x1026   : > { %20521 = vmatmul.mubr.msk.bf16.gmra.mrb[76].mxu1 %vm280_vm2, %v25303_v52  ;;  %v15955_v52 = vld [vmem:[#allocation2 + $0x90] sm:$0xff] }
0x1027   : > { %20524 = vmatprep.mubr.msk.bf16.mxu1 %vm280_vm2, %v25305_v4  ;;  %v15952_v4 = vld [vmem:[#allocation2 + $0x68] sm:$0xff] }
0x102e   : > { %20525 = vmatmul.mubr.msk.bf16.gmra.mrb[80].mxu1 %vm280_vm2, %v25311_v24  ;;  %v15983_v24 = vpack.c.bf16 %v15953_v31, %v15952_v4  ;;  %v16587_v4 = vld [vmem:[#allocation4 + $0x58] sm:$0xff] }
0x102f   : > { %20528 = vmatprep.mubr.msk.bf16.mxu1 %vm280_vm2, %v25313_v41  ;;  %v16343_v41 = vsel %vm3294_vm3, %v17833_v22, 0 }
0x1036   : > { %20529 = vmatmul.mubr.msk.bf16.gmra.mrb[84].mxu1 %vm280_vm2, %v25319_v33  ;;  %v15954_v33 = vld [vmem:[#allocation2 + $0x88] sm:$0xff] }
0x1037   : > { %20532 = vmatprep.mubr.msk.bf16.mxu1 %vm280_vm2, %v25321_v43  ;;  %v15984_v43 = vpack.c.bf16 %v15955_v52, %v15954_v33  ;;  %v16585_v33 = vld [vmem:[#allocation4 + $0x48] sm:$0xff] }
0x103e   : > { %20533 = vmatmul.mubr.msk.bf16.gmra.mrb[88].mxu1 %vm280_vm2, %v25327_v9  ;;  %v15957_v9 = vld [vmem:[#allocation2 + $0xb0] sm:$0xff] }
0x103f   : > { %20536 = vmatprep.mubr.msk.bf16.mxu1 %vm280_vm2, %v25433_v47  ;;  %v15985_v5 = vpack.c.bf16 %v15957_v9, %v15956_v60 }
0x1046   : > { %20537 = vmatmul.mubr.msk.bf16.gmra.mrb[92].mxu1 %vm280_vm2, %v15703_v42 }
0x1047   : > { %20542 = vmatprep.mubr.msk.bf16.mxu1 %vm280_vm2, %v15982_v58 }
0x104e   : > { %20543 = vmatmul.mubr.msk.bf16.vlgmr.msra.gmra.mrb[64].mxu1 %vm280_vm2, %v15983_v24 }
0x104f   : > { %20575 = vmatpush3.bf16.msra.mxu1 %v16343_v41  ;;  %20546 = vmatprep.mubr.msk.bf16.mxu1 %vm280_vm2, %v15984_v43 }
0x1056   : > { %20547 = vmatmul.mubr.msk.bf16.gmra.mrb[68].mxu1 %vm280_vm2, %v15985_v5  ;;  %v16590_v5 = vld [vmem:[#allocation4 + $0x70] sm:$0xff] }
0x1057   : > { %20550 = vmatprep.mubr.msk.bf16.mxu1 %vm280_vm2, %v15986_v8 }
0x105e   : > { %20551 = vmatmul.mubr.msk.bf16.gmra.mrb[72].mxu1 %vm280_vm2, %v15987_v1 }
0x105f   : > { %20554 = vmatprep.mubr.msk.bf16.mxu1 %vm280_vm2, %v25204_v17  ;;  %v15980_v17 = vld [vmem:[#allocation2 + $0x228] sm:$0xff] }
0x1066   : > { %20555 = vmatmul.mubr.msk.bf16.gmra.mrb[76].mxu1 %vm280_vm2, %v25217_v53  ;;  %v15981_v53 = vld [vmem:[#allocation2 + $0x230] sm:$0xff] }
0x1067   : > { %20558 = vmatprep.mubr.msk.bf16.mxu1 %vm280_vm2, %v25220_v12  ;;  %v15997_v12 = vpack.c.bf16 %v15981_v53, %v15980_v17 }
0x106e   : > { %20559 = vmatmul.mubr.msk.bf16.gmra.mrb[80].mxu1 %vm280_vm2, %v25233_v63  ;;  %v16274_v63 = vld [vmem:[#allocation2 + $0x229] sm:$0xff] }
0x106f   : > { %20562 = vmatprep.mubr.msk.bf16.mxu1 %vm280_vm2, %v25236_v32  ;;  %v16275_v32 = vld [vmem:[#allocation2 + $0x231] sm:$0xff] }
0x1076   : > { %20563 = vmatmul.mubr.msk.bf16.gmra.mrb[84].mxu1 %vm280_vm2, %v25249_v48  ;;  %v16291_v48 = vpack.c.bf16 %v16275_v32, %v16274_v63 }
0x1077   : > { %20566 = vmatprep.mubr.msk.bf16.mxu1 %vm280_vm2, %v25251_v61  ;;  %v25611_v61 = vld [vmem:[%s25724_s6] ss:$0 sm:$0xff] }
0x107e   : > { %20567 = vmatmul.mubr.msk.bf16.gmra.mrb[88].mxu1 %vm280_vm2, %v25257_v19 }
0x107f   : > { %20570 = vmatprep.mubr.msk.bf16.mxu1 %vm280_vm2, %v25472_v37  ;;  %v16583_v37 = vld [vmem:[#allocation4 + $0x38] sm:$0xff] }
0x1086   : > { %20571 = vmatmul.mubr.msk.bf16.gmra.mrb[92].mxu1 %vm280_vm2, %v15997_v12  ;;  %v16591_v12 = vld [vmem:[#allocation4 + $0x78] sm:$0xff] }
0x1087   : > { %20576 = vmatprep.mubr.msk.bf16.mxu1 %vm280_vm2, %v25336_v27 }
0x108e   : > { %20577 = vmatmul.mubr.msk.bf16.vlgmr.msra.gmra.mrb[64].mxu1 %vm280_vm2, %v25346_v2 }
0x108f   : > { %20580 = vmatprep.mubr.msk.bf16.mxu1 %vm280_vm2, %v25348_v10  ;;  %v16578_v10 = vld [vmem:[#allocation4 + $0x10] sm:$0xff] }
0x1096   : > { %20581 = vmatmul.mubr.msk.bf16.gmra.mrb[68].mxu1 %vm280_vm2, %v25354_v35 }
0x1097   : > { %20584 = vmatprep.mubr.msk.bf16.mxu1 %vm280_vm2, %v25356_v62 }
0x109e   : > { %20585 = vmatmul.mubr.msk.bf16.gmra.mrb[72].mxu1 %vm280_vm2, %v25362_v49 }
0x109f   : > { %20588 = vmatprep.mubr.msk.bf16.mxu1 %vm280_vm2, %v25364_v14  ;;  %v16576_v14 = vld [vmem:[#allocation4] sm:$0xff] }
0x10a6   : > { %20589 = vmatmul.mubr.msk.bf16.gmra.mrb[76].mxu1 %vm280_vm2, %v25370_v7 }
0x10a7   : > { %20592 = vmatprep.mubr.msk.bf16.mxu1 %vm280_vm2, %v25372_v16 }
0x10ae   : > { %20593 = vmatmul.mubr.msk.bf16.gmra.mrb[80].mxu1 %vm280_vm2, %v25378_v25 }
0x10af   : > { %20596 = vmatprep.mubr.msk.bf16.mxu1 %vm280_vm2, %v25380_v29  ;;  %v16579_v29 = vld [vmem:[#allocation4 + $0x18] sm:$0xff] }
0x10b6   : > { %20597 = vmatmul.mubr.msk.bf16.gmra.mrb[84].mxu1 %vm280_vm2, %v25386_v6 }
0x10b7   : > { %20600 = vmatprep.mubr.msk.bf16.mxu1 %vm280_vm2, %v25388_v36  ;;  %v16577_v36 = vld [vmem:[#allocation4 + $0x8] sm:$0xff] }
0x10be   : > { %20601 = vmatmul.mubr.msk.bf16.gmra.mrb[88].mxu1 %vm280_vm2, %v25394_v13 }
0x10bf   : > { %20604 = vmatprep.mubr.msk.bf16.mxu1 %vm280_vm2, %v25511_v57 }
0x10c6   : > { %20605 = vmatmul.mubr.msk.bf16.gmra.mrb[92].mxu1 %vm280_vm2, %v16291_v48  ;;  %v16589_v48 = vld [vmem:[#allocation4 + $0x68] sm:$0xff] }
0x1161   : > { %v20578_v19 = vpop.f32.mrb[64].mxu1 }
0x1162   : > { %v16546_v27 = vadd.f32 %v20578_v19, %v25611_v61  ;;  %v16379_v2 = vpop.f32.mrb[65].mxu1 }
0x1163   : > { %v16544_v35 = vadd.f32 %v25611_v61, %v16379_v2  ;;  %v20579_v62 = vpop.f32.mrb[66].mxu1 }
0x1164   : > { %v16610_v49 = vadd.f32 %v16578_v10, %v16546_v27  ;;  %v16547_v7 = vadd.f32 %v20579_v62, %v25611_v61  ;;  %v16382_v16 = vpop.f32.mrb[67].mxu1 }
0x1165   : > { %v16608_v25 = vadd.f32 %v16576_v14, %v16544_v35  ;;  %v16545_v23 = vadd.f32 %v25611_v61, %v16382_v16  ;;  %v16594_v35 = vld [vmem:[#allocation4 + $0x90] sm:$0xff] }
0x1166   : > { %16642 = vst.msk [vmem:[%s25618_s27 + $0x10] sm:$0xff] %vm280_vm2, %v16610_v49  ;;  %v16611_v6 = vadd.f32 %v16579_v29, %v16547_v7  ;;  %v16592_v7 = vld [vmem:[#allocation4 + $0x80] sm:$0xff] }
0x1167   : > { %16640 = vst.msk [vmem:[%s25618_s27] sm:$0xff] %vm280_vm2, %v16608_v25  ;;  %v16609_v20 = vadd.f32 %v16577_v36, %v16545_v23  ;;  %v16595_v23 = vld [vmem:[#allocation4 + $0x98] sm:$0xff] }
0x1168   : > { %16643 = vst.msk [vmem:[%s25618_s27 + $0x18] sm:$0xff] %vm280_vm2, %v16611_v6 }
0x1169   : > { %16641 = vst.msk [vmem:[%s25618_s27 + $0x8] sm:$0xff] %vm280_vm2, %v16609_v20  ;;  %v20582_v44 = vpop.f32.mrb[68].mxu1  ;;  %v16593_v20 = vld [vmem:[#allocation4 + $0x88] sm:$0xff] }
0x116a   : > { %v16550_v13 = vadd.f32 %v20582_v44, %v25611_v61  ;;  %v16395_v45 = vpop.f32.mrb[69].mxu1 }
0x116b   : > { %v16548_v18 = vadd.f32 %v25611_v61, %v16395_v45  ;;  %v20583_v50 = vpop.f32.mrb[70].mxu1 }
0x116c   : > { %v16614_v47 = vadd.f32 %v16582_v26, %v16550_v13  ;;  %v16551_v40 = vadd.f32 %v20583_v50, %v25611_v61  ;;  %v16398_v0 = vpop.f32.mrb[71].mxu1 }
0x116d   : > { %v16612_v55 = vadd.f32 %v16580_v11, %v16548_v18  ;;  %v16549_v54 = vadd.f32 %v25611_v61, %v16398_v0  ;;  %v16598_v18 = vld [vmem:[#allocation4 + $0xb0] sm:$0xff] }
0x116e   : > { %16646 = vst.msk [vmem:[%s25618_s27 + $0x30] sm:$0xff] %vm280_vm2, %v16614_v47  ;;  %v16615_v51 = vadd.f32 %v16583_v37, %v16551_v40  ;;  %v16596_v40 = vld [vmem:[#allocation4 + $0xa0] sm:$0xff] }
0x116f   : > { %16644 = vst.msk [vmem:[%s25618_s27 + $0x20] sm:$0xff] %vm280_vm2, %v16612_v55  ;;  %v16613_v15 = vadd.f32 %v16581_v34, %v16549_v54  ;;  %v16599_v54 = vld [vmem:[#allocation4 + $0xb8] sm:$0xff] }
0x1170   : > { %16647 = vst.msk [vmem:[%s25618_s27 + $0x38] sm:$0xff] %vm280_vm2, %v16615_v51 }
0x1171   : > { %16645 = vst.msk [vmem:[%s25618_s27 + $0x28] sm:$0xff] %vm280_vm2, %v16613_v15  ;;  %v20586_v57 = vpop.f32.mrb[72].mxu1  ;;  %v16597_v15 = vld [vmem:[#allocation4 + $0xa8] sm:$0xff] }
0x1172   : > { %v16554_v39 = vadd.f32 %v20586_v57, %v25611_v61  ;;  %v16411_v22 = vpop.f32.mrb[73].mxu1 }
0x1173   : > { %v16552_v56 = vadd.f32 %v25611_v61, %v16411_v22  ;;  %v20587_v42 = vpop.f32.mrb[74].mxu1 }
0x1174   : > { %v16618_v28 = vadd.f32 %v16586_v30, %v16554_v39  ;;  %v16555_v58 = vadd.f32 %v20587_v42, %v25611_v61  ;;  %v16414_v31 = vpop.f32.mrb[75].mxu1 }
0x1175   : > { %v16616_v52 = vadd.f32 %v16584_v21, %v16552_v56  ;;  %v16553_v24 = vadd.f32 %v25611_v61, %v16414_v31  ;;  %v16602_v56 = vld [vmem:[#allocation4 + $0xd0] sm:$0xff] }
0x1176   : > { %16650 = vst.msk [vmem:[%s25618_s27 + $0x50] sm:$0xff] %vm280_vm2, %v16618_v28  ;;  %v16619_v41 = vadd.f32 %v16587_v4, %v16555_v58  ;;  %v16600_v58 = vld [vmem:[#allocation4 + $0xc0] sm:$0xff] }
0x1177   : > { %16648 = vst.msk [vmem:[%s25618_s27 + $0x40] sm:$0xff] %vm280_vm2, %v16616_v52  ;;  %v16617_v43 = vadd.f32 %v16585_v33, %v16553_v24  ;;  %v16603_v24 = vld [vmem:[#allocation4 + $0xd8] sm:$0xff] }
0x1178   : > { %16651 = vst.msk [vmem:[%s25618_s27 + $0x58] sm:$0xff] %vm280_vm2, %v16619_v41 }
0x1179   : > { %16649 = vst.msk [vmem:[%s25618_s27 + $0x48] sm:$0xff] %vm280_vm2, %v16617_v43  ;;  %v20590_v9 = vpop.f32.mrb[76].mxu1  ;;  %v16601_v43 = vld [vmem:[#allocation4 + $0xc8] sm:$0xff] }
0x117a   : > { %v16558_v46 = vadd.f32 %v20590_v9, %v25611_v61  ;;  %v16427_v60 = vpop.f32.mrb[77].mxu1 }
0x117b   : > { %v16556_v38 = vadd.f32 %v25611_v61, %v16427_v60  ;;  %v20591_v8 = vpop.f32.mrb[78].mxu1 }
0x117c   : > { %v16622_v59 = vadd.f32 %v16590_v5, %v16558_v46  ;;  %v16559_v1 = vadd.f32 %v20591_v8, %v25611_v61  ;;  %v16430_v17 = vpop.f32.mrb[79].mxu1 }
0x117d   : > { %v16620_v53 = vadd.f32 %v16588_v3, %v16556_v38  ;;  %v16557_v63 = vadd.f32 %v25611_v61, %v16430_v17  ;;  %v16606_v38 = vld [vmem:[#allocation4 + $0xf0] sm:$0xff] }
0x117e   : > { %16654 = vst.msk [vmem:[%s25618_s27 + $0x70] sm:$0xff] %vm280_vm2, %v16622_v59  ;;  %v16623_v32 = vadd.f32 %v16591_v12, %v16559_v1  ;;  %v16604_v1 = vld [vmem:[#allocation4 + $0xe0] sm:$0xff] }
0x117f   : > { %16652 = vst.msk [vmem:[%s25618_s27 + $0x60] sm:$0xff] %vm280_vm2, %v16620_v53  ;;  %v16621_v19 = vadd.f32 %v16589_v48, %v16557_v63  ;;  %v16607_v63 = vld [vmem:[#allocation4 + $0xf8] sm:$0xff] }
0x1180   : > { %16655 = vst.msk [vmem:[%s25618_s27 + $0x78] sm:$0xff] %vm280_vm2, %v16623_v32 }
0x1181   : > { %16653 = vst.msk [vmem:[%s25618_s27 + $0x68] sm:$0xff] %vm280_vm2, %v16621_v19  ;;  %v20594_v27 = vpop.f32.mrb[80].mxu1  ;;  %v16605_v19 = vld [vmem:[#allocation4 + $0xe8] sm:$0xff] }
0x1182   : > { %v16562_v2 = vadd.f32 %v20594_v27, %v25611_v61  ;;  %v16443_v10 = vpop.f32.mrb[81].mxu1 }
0x1183   : > { %v16560_v62 = vadd.f32 %v25611_v61, %v16443_v10  ;;  %v20595_v49 = vpop.f32.mrb[82].mxu1 }
0x1184   : > { %v16626_v14 = vadd.f32 %v16594_v35, %v16562_v2  ;;  %v16563_v16 = vadd.f32 %v20595_v49, %v25611_v61  ;;  %v16446_v25 = vpop.f32.mrb[83].mxu1 }
0x1185   : > { %v16624_v29 = vadd.f32 %v16592_v7, %v16560_v62  ;;  %v16561_v6 = vadd.f32 %v25611_v61, %v16446_v25 }
0x1186   : > { %16658 = vst.msk [vmem:[%s25618_s27 + $0x90] sm:$0xff] %vm280_vm2, %v16626_v14  ;;  %v16627_v36 = vadd.f32 %v16595_v23, %v16563_v16 }
0x1187   : > { %16656 = vst.msk [vmem:[%s25618_s27 + $0x80] sm:$0xff] %vm280_vm2, %v16624_v29  ;;  %v16625_v44 = vadd.f32 %v16593_v20, %v16561_v6 }
0x1188   : > { %16659 = vst.msk [vmem:[%s25618_s27 + $0x98] sm:$0xff] %vm280_vm2, %v16627_v36 }
0x1189   : > { %16657 = vst.msk [vmem:[%s25618_s27 + $0x88] sm:$0xff] %vm280_vm2, %v16625_v44  ;;  %v20598_v13 = vpop.f32.mrb[84].mxu1 }
0x118a   : > { %v16566_v45 = vadd.f32 %v20598_v13, %v25611_v61  ;;  %v16459_v26 = vpop.f32.mrb[85].mxu1 }
0x118b   : > { %v16564_v50 = vadd.f32 %v25611_v61, %v16459_v26  ;;  %v20599_v47 = vpop.f32.mrb[86].mxu1 }
0x118c   : > { %v16630_v11 = vadd.f32 %v16598_v18, %v16566_v45  ;;  %v16567_v0 = vadd.f32 %v20599_v47, %v25611_v61  ;;  %v16462_v55 = vpop.f32.mrb[87].mxu1 }
0x118d   : > { %v16628_v37 = vadd.f32 %v16596_v40, %v16564_v50  ;;  %v16565_v51 = vadd.f32 %v25611_v61, %v16462_v55 }
0x118e   : > { %16662 = vst.msk [vmem:[%s25618_s27 + $0xb0] sm:$0xff] %vm280_vm2, %v16630_v11  ;;  %v16631_v34 = vadd.f32 %v16599_v54, %v16567_v0 }
0x118f   : > { %16660 = vst.msk [vmem:[%s25618_s27 + $0xa0] sm:$0xff] %vm280_vm2, %v16628_v37  ;;  %v16629_v57 = vadd.f32 %v16597_v15, %v16565_v51 }
0x1190   : > { %16663 = vst.msk [vmem:[%s25618_s27 + $0xb8] sm:$0xff] %vm280_vm2, %v16631_v34 }
0x1191   : > { %16661 = vst.msk [vmem:[%s25618_s27 + $0xa8] sm:$0xff] %vm280_vm2, %v16629_v57  ;;  %v20602_v39 = vpop.f32.mrb[88].mxu1 }
0x1192   : > { %v16570_v22 = vadd.f32 %v20602_v39, %v25611_v61  ;;  %v16475_v30 = vpop.f32.mrb[89].mxu1 }
0x1193   : > { %v16568_v42 = vadd.f32 %v25611_v61, %v16475_v30  ;;  %v20603_v28 = vpop.f32.mrb[90].mxu1 }
0x1194   : > { %v16634_v21 = vadd.f32 %v16602_v56, %v16570_v22  ;;  %v16571_v31 = vadd.f32 %v20603_v28, %v25611_v61  ;;  %v16478_v52 = vpop.f32.mrb[91].mxu1 }
0x1195   : > { %v16632_v4 = vadd.f32 %v16600_v58, %v16568_v42  ;;  %v16569_v41 = vadd.f32 %v25611_v61, %v16478_v52 }
0x1196   : > { %16666 = vst.msk [vmem:[%s25618_s27 + $0xd0] sm:$0xff] %vm280_vm2, %v16634_v21  ;;  %v16635_v33 = vadd.f32 %v16603_v24, %v16571_v31 }
0x1197   : > { %16664 = vst.msk [vmem:[%s25618_s27 + $0xc0] sm:$0xff] %vm280_vm2, %v16632_v4  ;;  %v16633_v9 = vadd.f32 %v16601_v43, %v16569_v41 }
0x1198   : > { %16667 = vst.msk [vmem:[%s25618_s27 + $0xd8] sm:$0xff] %vm280_vm2, %v16635_v33 }
0x1199   : > { %16665 = vst.msk [vmem:[%s25618_s27 + $0xc8] sm:$0xff] %vm280_vm2, %v16633_v9  ;;  %v20606_v46 = vpop.f32.mrb[92].mxu1 }
0x119a   : > { %v16574_v60 = vadd.f32 %v20606_v46, %v25611_v61  ;;  %v16491_v5 = vpop.f32.mrb[93].mxu1 }
0x119b   : > { %v16572_v8 = vadd.f32 %v25611_v61, %v16491_v5  ;;  %v20607_v59 = vpop.f32.mrb[94].mxu1 }
0x119c   : > { %v16638_v3 = vadd.f32 %v16606_v38, %v16574_v60  ;;  %v16575_v17 = vadd.f32 %v20607_v59, %v25611_v61  ;;  %v16494_v53 = vpop.f32.mrb[95].mxu1 }
0x119d   : > { %v16636_v12 = vadd.f32 %v16604_v1, %v16572_v8  ;;  %v16573_v32 = vadd.f32 %v25611_v61, %v16494_v53 }
0x119e   : > { %16670 = vst.msk [vmem:[%s25618_s27 + $0xf0] sm:$0xff] %vm280_vm2, %v16638_v3  ;;  %v16639_v48 = vadd.f32 %v16607_v63, %v16575_v17 }
0x119f   : > { %16668 = vst.msk [vmem:[%s25618_s27 + $0xe0] sm:$0xff] %vm280_vm2, %v16636_v12  ;;  %v16637_v27 = vadd.f32 %v16605_v19, %v16573_v32 }
0x11a0   : > { %16671 = vst.msk [vmem:[%s25618_s27 + $0xf8] sm:$0xff] %vm280_vm2, %v16639_v48 }
0x11a1   : > { %16669 = vst.msk [vmem:[%s25618_s27 + $0xe8] sm:$0xff] %vm280_vm2, %v16637_v27 }
0x11a2 PF: > { %s17_s24 = sadd.s32 1, %s22214_s24  }
0x11a3   : > { %p14_p4 = scmp.ge.s32.totalorder %s17_s24, 4  }
0x11a5   :  { %16 = sbr.rel (!%p14_p4) target bundleno = 1 (0x1), region = 138 }

</bundles_post_ra>
